<compile_context>
chip_gen: v5e
topology: v5e:2x2
jax: 0.10.0
libtpu: 0.0.40
codegen_flags: <defaults>
</compile_context>

<pallas_src>
import functools

import numpy as np
import jax
import jax.numpy as jnp
from jax.experimental import pallas as pl
from jax.experimental.pallas import tpu as pltpu


# -------- Config (stands in for the original `opt` object) --------
class Opt:
    channel = 4
    patch_height = 16
    patch_width = 16
    img_height = 8
    img_width = 8
    drop_prob = 0.5  # dropout treated as identity (eval semantics)


opt = Opt()


# ---------------- one-time (host-side) weight preparation ----------------

def _conv3x3_s2_dense(w, b, H_in, W_in, stride=2, pad=1):
    """Fold Conv2d(k=3, stride=2, pad=1) into a dense matrix.

    Returns K of shape (Ci, H_in*W_in, O*Ho*Wo) and bias row (1, O*Ho*Wo) such that
      y[o*Ho*Wo + ho*Wo + wo] = sum_{c,q} x[c, q] * K[c, q, o*Ho*Wo + ho*Wo + wo] + b[o]
    which exactly matches PyTorch Conv2d followed by a row-major (c,h,w) flatten.
    """
    w = np.asarray(w, np.float32)
    b = np.asarray(b, np.float32)
    O, Ci, KH, KW = w.shape
    Ho = (H_in + 2 * pad - KH) // stride + 1
    Wo = (W_in + 2 * pad - KW) // stride + 1
    P = Ho * Wo
    K = np.zeros((Ci, H_in * W_in, O * P), np.float32)
    for kh in range(KH):
        for kw in range(KW):
            wk = w[:, :, kh, kw].T                       # (Ci, O)
            for ho in range(Ho):
                hi = ho * stride - pad + kh
                if hi < 0 or hi >= H_in:
                    continue
                for wo in range(Wo):
                    wi = wo * stride - pad + kw
                    if wi < 0 or wi >= W_in:
                        continue
                    q = hi * W_in + wi
                    p = ho * Wo + wo
                    K[:, q, p::P] += wk                  # columns o*P + p, all o
    b_row = np.repeat(b[:, None], P, axis=1).reshape(1, O * P)
    return K, b_row


def _affine_base_grid(H, W):
    """F.affine_grid base coordinates (align_corners=False): rows [x_norm, y_norm, 1]."""
    p = np.arange(H * W)
    xs = (2.0 * (p % W) + 1.0) / W - 1.0
    ys = (2.0 * (p // W) + 1.0) / H - 1.0
    return np.stack([xs, ys, np.ones_like(xs)], axis=0).astype(np.float32)   # (3, HW)


# ---------------- fused Pallas kernel ----------------

def _make_fused_kernel(C, H, W):
    HW = H * W

    def kernel(img_row_ref, stacked_ref, base_ref,
               loc_w1_ref, loc_b1_ref, loc_w2a_ref, loc_b2a_ref,
               loc_w2b_ref, loc_b2b_ref,
               k1_ref, b1_ref, k2_ref, b2_ref,
               fc_w1_ref, fc_b1_ref, fc_w2_ref, fc_b2_ref,
               trans_ref, pred_ref):
        f32 = jnp.float32
        dn_t = (((1,), (1,)), ((), ()))      # contract last dims: x @ w.T (PyTorch weights)

        # ---- LocalNetwork.fc: Linear(C*HW->20) -> Tanh -> Dropout(id) -> Linear(20->6) -> Tanh
        xrow = img_row_ref[0]                                             # (1, C*HW)
        h = jnp.tanh(jax.lax.dot_general(xrow, loc_w1_ref[...], dn_t,
                                         preferred_element_type=f32) + loc_b1_ref[...])
        # TODO(synk): nn.Dropout treated as identity (eval mode); no PRNG dropout here.
        tha = jnp.tanh(jax.lax.dot_general(h, loc_w2a_ref[...], dn_t,
                                           preferred_element_type=f32) + loc_b2a_ref[...])
        thb = jnp.tanh(jax.lax.dot_general(h, loc_w2b_ref[...], dn_t,
                                           preferred_element_type=f32) + loc_b2b_ref[...])

        # ---- F.affine_grid (align_corners=False): grid_x/grid_y for all HW output pixels
        # TODO(synk): matches modern PyTorch default align_corners=False (pre-1.3 used True).
        base = base_ref[...]                                              # (3, HW)
        gx = jnp.dot(tha, base, preferred_element_type=f32)               # (1, HW)
        gy = jnp.dot(thb, base, preferred_element_type=f32)               # (1, HW)

        # ---- F.grid_sample (bilinear, zero padding, align_corners=False)
        ix = ((gx + 1.0) * W - 1.0) * 0.5
        iy = ((gy + 1.0) * H - 1.0) * 0.5
        ix0 = jnp.floor(ix)
        iy0 = jnp.floor(iy)
        wx1 = ix - ix0
        wy1 = iy - iy0
        wx0 = 1.0 - wx1
        wy0 = 1.0 - wy1
        vx0 = (ix0 >= 0.0) & (ix0 <= W - 1.0)
        vx1 = (ix0 >= -1.0) & (ix0 <= W - 2.0)          # validity of ix0 + 1
        vy0 = (iy0 >= 0.0) & (iy0 <= H - 1.0)
        vy1 = (iy0 >= -1.0) & (iy0 <= H - 2.0)          # validity of iy0 + 1
        w00 = jnp.where(vy0 & vx0, wy0 * wx0, 0.0)
        w01 = jnp.where(vy0 & vx1, wy0 * wx1, 0.0)
        w10 = jnp.where(vy1 & vx0, wy1 * wx0, 0.0)
        w11 = jnp.where(vy1 & vx1, wy1 * wx1, 0.0)
        q00 = (iy0 * W + ix0).astype(jnp.int32)          # (1, HW) top-left corner flat index

        # Sampling matrix Mt[q_in, p_out]: the 4 bilinear corners sit at offsets
        # {0, 1, W, W+1} from q00; invalid (out-of-bounds) corners carry zero weight,
        # so a single iota-difference + 4 compares builds the whole matrix.
        rq = jax.lax.broadcasted_iota(jnp.int32, (HW, HW), 0)
        diff = rq - q00                                   # (HW_in, HW_out)
        Mt = (jnp.where(diff == 0, w00, 0.0) +
              jnp.where(diff == 1, w01, 0.0) +
              jnp.where(diff == W, w10, 0.0) +
              jnp.where(diff == W + 1, w11, 0.0))         # (HW_in, HW_out), f32

        x2c = stacked_ref[0]                              # (2C, HW): img || target channels
        sampled = jnp.dot(x2c, Mt, preferred_element_type=f32)            # (2C, HW)
        trans_ref[0] = sampled.astype(trans_ref.dtype)

        # ---- conv1 (3x3, s2, p1) + ReLU, as dense matrix; output flat index o*64 + p
        acc = b1_ref[...]                                 # (1, 16*64) = (1, 1024)
        for c in range(C):                                # only the transformed img feeds conv
            acc = acc + jnp.dot(sampled[c:c + 1, :], k1_ref[c],
                                preferred_element_type=f32)
        y1 = jnp.maximum(acc, 0.0)                        # (1, 1024)

        # ---- conv2 (3x3, s2, p1) + ReLU; output already in PyTorch (c,h,w) flatten order
        y2 = jnp.maximum(jnp.dot(y1, k2_ref[...], preferred_element_type=f32)
                         + b2_ref[...], 0.0)              # (1, 256)

        # ---- fc head: Linear(256->1024) -> ReLU -> Dropout(id) -> Linear(1024->64)
        hf = jnp.maximum(jax.lax.dot_general(y2, fc_w1_ref[...], dn_t,
                                             preferred_element_type=f32)
                         + fc_b1_ref[...], 0.0)           # (1, 1024)
        pred = (jax.lax.dot_general(hf, fc_w2_ref[...], dn_t,
                                    preferred_element_type=f32) + fc_b2_ref[...])
        pred_ref[0] = pred.astype(pred_ref.dtype)         # (1, 64)

    return kernel


def _batch_spec(shape):
    tail = (0,) * (len(shape) - 1)
    return pl.BlockSpec(shape, lambda b: (b,) + tail)


def _const_spec(arr):
    zeros = (0,) * arr.ndim
    return pl.BlockSpec(arr.shape, lambda b: zeros)


# ---------------- JAX wrapper ----------------

def network_forward(params, img, target):
    B, C, H, W = img.shape
    HW = H * W
    out_dim = params["fc_w2"].shape[0]

    img_row = img.reshape(B, 1, C * HW)                                   # for theta fc
    stacked = jnp.concatenate([img, target], axis=1).reshape(B, 2 * C, HW)

    weights = [params[k] for k in (
        "base", "loc_w1", "loc_b1", "loc_w2a", "loc_b2a", "loc_w2b", "loc_b2b",
        "k1", "b1row", "k2", "b2row", "fc_w1", "fc_b1", "fc_w2", "fc_b2")]

    kernel = _make_fused_kernel(C, H, W)

    trans, pred = pl.pallas_call(
        kernel,
        out_shape=(jax.ShapeDtypeStruct((B, 2 * C, HW), jnp.float32),
                   jax.ShapeDtypeStruct((B, 1, out_dim), jnp.float32)),
        grid=(B,),
        in_specs=[_batch_spec((1, 1, C * HW)),
                  _batch_spec((1, 2 * C, HW))] + [_const_spec(w) for w in weights],
        out_specs=(_batch_spec((1, 2 * C, HW)),
                   _batch_spec((1, 1, out_dim))),
        compiler_params=pltpu.CompilerParams(
            dimension_semantics=("parallel",),           # v7x: one batch per TensorCore
            vmem_limit_bytes=48 * 1024 * 1024),
    )(img_row, stacked, *weights)

    transform_img = trans[:, :C].reshape(B, C, H, W)
    transform_target = trans[:, C:].reshape(B, C, H, W)
    predict = pred.reshape(B, out_dim)
    return transform_img, transform_target, predict


# ---------------- deterministic parameter init (matches PyTorch defaults) ----------------

def init_params(key):
    ks = jax.random.split(key, 10)
    C, PH, PW = opt.channel, opt.patch_height, opt.patch_width
    HW = PH * PW
    loc_in = C * HW

    def uniform(k, shape, fan_in):
        bound = 1.0 / (fan_in ** 0.5)
        return jax.random.uniform(k, shape, jnp.float32, -bound, bound)

    # LocalNetwork.fc
    loc_w1 = uniform(ks[0], (20, loc_in), loc_in)
    loc_b1 = uniform(ks[1], (20,), loc_in)
    loc_w2 = jnp.zeros((6, 20), jnp.float32)              # nn.init.constant_(weight, 0)
    loc_b2 = jnp.array([1, 0, 0, 0, 1, 0], jnp.float32)   # identity-affine bias

    # conv stack
    conv1_w = uniform(ks[2], (16, C, 3, 3), C * 9)
    conv1_b = uniform(ks[3], (16,), C * 9)
    conv2_w = uniform(ks[4], (16, 16, 3, 3), 16 * 9)
    conv2_b = uniform(ks[5], (16,), 16 * 9)

    # fc head (reproduces the original expression's operator precedence: -> 256)
    fc_in = PH // 4 * PW // 4 * 16
    fc_out = opt.img_height * opt.img_width
    fc_w1 = uniform(ks[6], (1024, fc_in), fc_in)
    fc_b1 = uniform(ks[7], (1024,), fc_in)
    fc_w2 = uniform(ks[8], (fc_out, 1024), 1024)
    fc_b2 = uniform(ks[9], (fc_out,), 1024)

    # ---- one-time weight prep for the fused kernel (host-side, outside jit) ----
    k1, b1row = _conv3x3_s2_dense(conv1_w, conv1_b, PH, PW)          # (C, 256, 1024), (1, 1024)
    k2_3d, b2row = _conv3x3_s2_dense(conv2_w, conv2_b, PH // 2, PW // 2)
    k2 = k2_3d.reshape(16 * (PH // 2) * (PW // 2), -1)               # (1024, 256)
    base = _affine_base_grid(PH, PW)                                 # (3, 256)

    return {
        "base": jnp.asarray(base),
        "loc_w1": loc_w1, "loc_b1": loc_b1.reshape(1, 20),
        "loc_w2a": loc_w2[0:3], "loc_b2a": loc_b2[0:3].reshape(1, 3),
        "loc_w2b": loc_w2[3:6], "loc_b2b": loc_b2[3:6].reshape(1, 3),
        "k1": jnp.asarray(k1), "b1row": jnp.asarray(b1row),
        "k2": jnp.asarray(k2), "b2row": jnp.asarray(b2row),
        "fc_w1": fc_w1, "fc_b1": fc_b1.reshape(1, 1024),
        "fc_w2": fc_w2, "fc_b2": fc_b2.reshape(1, fc_out),
    }


if __name__ == "__main__":
    key = jax.random.PRNGKey(0)
    kp, ki, kt = jax.random.split(key, 3)
    params = init_params(kp)

    B = 2
    img = jax.random.normal(
        ki, (B, opt.channel, opt.patch_height, opt.patch_width), jnp.float32)
    target = jax.random.normal(
        kt, (B, opt.channel, opt.patch_height, opt.patch_width), jnp.float32)

    fwd = jax.jit(network_forward)
    transform_img, transform_target, predict = fwd(params, img, target)
    jax.block_until_ready((transform_img, transform_target, predict))

    assert transform_img.shape == (B, opt.channel, opt.patch_height, opt.patch_width)
    assert transform_target.shape == (B, opt.channel, opt.patch_height, opt.patch_width)
    assert predict.shape == (B, opt.img_height * opt.img_width)
    assert bool(jnp.all(jnp.isfinite(transform_img)))
    assert bool(jnp.all(jnp.isfinite(transform_target)))
    assert bool(jnp.all(jnp.isfinite(predict)))
    print("KERNEL_OK")
</pallas_src>

<mosaic_0001>
module attributes {stable_mosaic.version = 11 : i64} {
  func.func @kernel(%arg0: i32, %arg1: memref<1x1x1024xf32, #tpu.memory_space<vmem>>, %arg2: memref<1x8x256xf32, #tpu.memory_space<vmem>>, %arg3: memref<3x256xf32, #tpu.memory_space<vmem>>, %arg4: memref<20x1024xf32, #tpu.memory_space<vmem>>, %arg5: memref<1x20xf32, #tpu.memory_space<vmem>>, %arg6: memref<3x20xf32, #tpu.memory_space<vmem>>, %arg7: memref<1x3xf32, #tpu.memory_space<vmem>>, %arg8: memref<3x20xf32, #tpu.memory_space<vmem>>, %arg9: memref<1x3xf32, #tpu.memory_space<vmem>>, %arg10: memref<4x256x1024xf32, #tpu.memory_space<vmem>>, %arg11: memref<1x1024xf32, #tpu.memory_space<vmem>>, %arg12: memref<1024x256xf32, #tpu.memory_space<vmem>>, %arg13: memref<1x256xf32, #tpu.memory_space<vmem>>, %arg14: memref<1024x256xf32, #tpu.memory_space<vmem>>, %arg15: memref<1x1024xf32, #tpu.memory_space<vmem>>, %arg16: memref<64x1024xf32, #tpu.memory_space<vmem>>, %arg17: memref<1x64xf32, #tpu.memory_space<vmem>>, %arg18: memref<1x8x256xf32, #tpu.memory_space<vmem>>, %arg19: memref<1x1x64xf32, #tpu.memory_space<vmem>>) attributes {dimension_semantics = [#tpu.dimension_semantics<parallel>], iteration_bounds = array<i64: 2>, scalar_prefetch = 0 : i64, scratch_operands = 0 : i64, tpu.core_type = #tpu.core_type<tc>, window_params = [{transform_indices = @transform_0, window_bounds = array<i64: 1, 1, 1024>}, {transform_indices = @transform_1, window_bounds = array<i64: 1, 8, 256>}, {pipeline_mode = #tpu.pipeline_mode<synchronous>, transform_indices = @transform_2, window_bounds = array<i64: 3, 256>}, {pipeline_mode = #tpu.pipeline_mode<synchronous>, transform_indices = @transform_3, window_bounds = array<i64: 20, 1024>}, {pipeline_mode = #tpu.pipeline_mode<synchronous>, transform_indices = @transform_4, window_bounds = array<i64: 1, 20>}, {pipeline_mode = #tpu.pipeline_mode<synchronous>, transform_indices = @transform_5, window_bounds = array<i64: 3, 20>}, {pipeline_mode = #tpu.pipeline_mode<synchronous>, transform_indices = @transform_6, window_bounds = array<i64: 1, 3>}, {pipeline_mode = #tpu.pipeline_mode<synchronous>, transform_indices = @transform_7, window_bounds = array<i64: 3, 20>}, {pipeline_mode = #tpu.pipeline_mode<synchronous>, transform_indices = @transform_8, window_bounds = array<i64: 1, 3>}, {pipeline_mode = #tpu.pipeline_mode<synchronous>, transform_indices = @transform_9, window_bounds = array<i64: 4, 256, 1024>}, {pipeline_mode = #tpu.pipeline_mode<synchronous>, transform_indices = @transform_10, window_bounds = array<i64: 1, 1024>}, {pipeline_mode = #tpu.pipeline_mode<synchronous>, transform_indices = @transform_11, window_bounds = array<i64: 1024, 256>}, {pipeline_mode = #tpu.pipeline_mode<synchronous>, transform_indices = @transform_12, window_bounds = array<i64: 1, 256>}, {pipeline_mode = #tpu.pipeline_mode<synchronous>, transform_indices = @transform_13, window_bounds = array<i64: 1024, 256>}, {pipeline_mode = #tpu.pipeline_mode<synchronous>, transform_indices = @transform_14, window_bounds = array<i64: 1, 1024>}, {pipeline_mode = #tpu.pipeline_mode<synchronous>, transform_indices = @transform_15, window_bounds = array<i64: 64, 1024>}, {pipeline_mode = #tpu.pipeline_mode<synchronous>, transform_indices = @transform_16, window_bounds = array<i64: 1, 64>}, {transform_indices = @transform_17, window_bounds = array<i64: 1, 8, 256>}, {transform_indices = @transform_18, window_bounds = array<i64: 1, 1, 64>}]} {
    %c0 = arith.constant 0 : index
    %c0_0 = arith.constant 0 : index
    %c0_1 = arith.constant 0 : index
    %0 = vector.load %arg1[%c0, %c0_0, %c0_1] : memref<1x1x1024xf32, #tpu.memory_space<vmem>>, vector<1x1x1024xf32>
    %1 = vector.shape_cast %0 : vector<1x1x1024xf32> to vector<1x1024xf32>
    %c0_2 = arith.constant 0 : index
    %c0_3 = arith.constant 0 : index
    %2 = vector.load %arg4[%c0_2, %c0_3] : memref<20x1024xf32, #tpu.memory_space<vmem>>, vector<20x1024xf32>
    %cst = arith.constant dense<0.000000e+00> : vector<1x20xf32>
    %3 = tpu.matmul %1, %2, %cst {dimension_numbers = #tpu.dot_dimension_numbers<[1], [1], [0], [0], [0, 0, 1, 0], [], []>} : vector<1x1024xf32>, vector<20x1024xf32>, vector<1x20xf32> -> vector<1x20xf32>
    %c0_4 = arith.constant 0 : index
    %c0_5 = arith.constant 0 : index
    %4 = vector.load %arg5[%c0_4, %c0_5] : memref<1x20xf32, #tpu.memory_space<vmem>>, vector<1x20xf32>
    %5 = arith.addf %3, %4 : vector<1x20xf32>
    %6 = math.tanh %5 : vector<1x20xf32>
    %c0_6 = arith.constant 0 : index
    %c0_7 = arith.constant 0 : index
    %7 = vector.load %arg6[%c0_6, %c0_7] : memref<3x20xf32, #tpu.memory_space<vmem>>, vector<3x20xf32>
    %cst_8 = arith.constant dense<0.000000e+00> : vector<1x3xf32>
    %8 = tpu.matmul %6, %7, %cst_8 {dimension_numbers = #tpu.dot_dimension_numbers<[1], [1], [0], [0], [0, 0, 1, 0], [], []>} : vector<1x20xf32>, vector<3x20xf32>, vector<1x3xf32> -> vector<1x3xf32>
    %c0_9 = arith.constant 0 : index
    %c0_10 = arith.constant 0 : index
    %9 = vector.load %arg7[%c0_9, %c0_10] : memref<1x3xf32, #tpu.memory_space<vmem>>, vector<1x3xf32>
    %10 = arith.addf %8, %9 : vector<1x3xf32>
    %11 = math.tanh %10 : vector<1x3xf32>
    %c0_11 = arith.constant 0 : index
    %c0_12 = arith.constant 0 : index
    %12 = vector.load %arg8[%c0_11, %c0_12] : memref<3x20xf32, #tpu.memory_space<vmem>>, vector<3x20xf32>
    %cst_13 = arith.constant dense<0.000000e+00> : vector<1x3xf32>
    %13 = tpu.matmul %6, %12, %cst_13 {dimension_numbers = #tpu.dot_dimension_numbers<[1], [1], [0], [0], [0, 0, 1, 0], [], []>} : vector<1x20xf32>, vector<3x20xf32>, vector<1x3xf32> -> vector<1x3xf32>
    %c0_14 = arith.constant 0 : index
    %c0_15 = arith.constant 0 : index
    %14 = vector.load %arg9[%c0_14, %c0_15] : memref<1x3xf32, #tpu.memory_space<vmem>>, vector<1x3xf32>
    %15 = arith.addf %13, %14 : vector<1x3xf32>
    %16 = math.tanh %15 : vector<1x3xf32>
    %c0_16 = arith.constant 0 : index
    %c0_17 = arith.constant 0 : index
    %17 = vector.load %arg3[%c0_16, %c0_17] : memref<3x256xf32, #tpu.memory_space<vmem>>, vector<3x256xf32>
    %cst_18 = arith.constant dense<0.000000e+00> : vector<1x256xf32>
    %18 = tpu.matmul %11, %17, %cst_18 {dimension_numbers = #tpu.dot_dimension_numbers<[1], [0], [0], [1], [0, 0, 1, 1], [], []>} : vector<1x3xf32>, vector<3x256xf32>, vector<1x256xf32> -> vector<1x256xf32>
    %cst_19 = arith.constant dense<0.000000e+00> : vector<1x256xf32>
    %19 = tpu.matmul %16, %17, %cst_19 {dimension_numbers = #tpu.dot_dimension_numbers<[1], [0], [0], [1], [0, 0, 1, 1], [], []>} : vector<1x3xf32>, vector<3x256xf32>, vector<1x256xf32> -> vector<1x256xf32>
    %cst_20 = arith.constant 1.000000e+00 : f32
    %20 = vector.broadcast %cst_20 : f32 to vector<1x256xf32>
    %21 = arith.addf %18, %20 : vector<1x256xf32>
    %cst_21 = arith.constant 1.600000e+01 : f32
    %22 = vector.broadcast %cst_21 : f32 to vector<1x256xf32>
    %23 = arith.mulf %21, %22 : vector<1x256xf32>
    %cst_22 = arith.constant 1.000000e+00 : f32
    %24 = vector.broadcast %cst_22 : f32 to vector<1x256xf32>
    %25 = arith.subf %23, %24 : vector<1x256xf32>
    %cst_23 = arith.constant 5.000000e-01 : f32
    %26 = vector.broadcast %cst_23 : f32 to vector<1x256xf32>
    %27 = arith.mulf %25, %26 : vector<1x256xf32>
    %cst_24 = arith.constant 1.000000e+00 : f32
    %28 = vector.broadcast %cst_24 : f32 to vector<1x256xf32>
    %29 = arith.addf %19, %28 : vector<1x256xf32>
    %cst_25 = arith.constant 1.600000e+01 : f32
    %30 = vector.broadcast %cst_25 : f32 to vector<1x256xf32>
    %31 = arith.mulf %29, %30 : vector<1x256xf32>
    %cst_26 = arith.constant 1.000000e+00 : f32
    %32 = vector.broadcast %cst_26 : f32 to vector<1x256xf32>
    %33 = arith.subf %31, %32 : vector<1x256xf32>
    %cst_27 = arith.constant 5.000000e-01 : f32
    %34 = vector.broadcast %cst_27 : f32 to vector<1x256xf32>
    %35 = arith.mulf %33, %34 : vector<1x256xf32>
    %36 = math.floor %27 : vector<1x256xf32>
    %37 = math.floor %35 : vector<1x256xf32>
    %38 = arith.subf %27, %36 : vector<1x256xf32>
    %39 = arith.subf %35, %37 : vector<1x256xf32>
    %cst_28 = arith.constant 1.000000e+00 : f32
    %40 = vector.broadcast %cst_28 : f32 to vector<1x256xf32>
    %41 = arith.subf %40, %38 : vector<1x256xf32>
    %cst_29 = arith.constant 1.000000e+00 : f32
    %42 = vector.broadcast %cst_29 : f32 to vector<1x256xf32>
    %43 = arith.subf %42, %39 : vector<1x256xf32>
    %cst_30 = arith.constant 0.000000e+00 : f32
    %44 = vector.broadcast %cst_30 : f32 to vector<1x256xf32>
    %45 = arith.cmpf oge, %36, %44 : vector<1x256xf32>
    %cst_31 = arith.constant 1.500000e+01 : f32
    %46 = vector.broadcast %cst_31 : f32 to vector<1x256xf32>
    %47 = arith.cmpf ole, %36, %46 : vector<1x256xf32>
    %48 = arith.andi %45, %47 : vector<1x256xi1>
    %cst_32 = arith.constant -1.000000e+00 : f32
    %49 = vector.broadcast %cst_32 : f32 to vector<1x256xf32>
    %50 = arith.cmpf oge, %36, %49 : vector<1x256xf32>
    %cst_33 = arith.constant 1.400000e+01 : f32
    %51 = vector.broadcast %cst_33 : f32 to vector<1x256xf32>
    %52 = arith.cmpf ole, %36, %51 : vector<1x256xf32>
    %53 = arith.andi %50, %52 : vector<1x256xi1>
    %cst_34 = arith.constant 0.000000e+00 : f32
    %54 = vector.broadcast %cst_34 : f32 to vector<1x256xf32>
    %55 = arith.cmpf oge, %37, %54 : vector<1x256xf32>
    %cst_35 = arith.constant 1.500000e+01 : f32
    %56 = vector.broadcast %cst_35 : f32 to vector<1x256xf32>
    %57 = arith.cmpf ole, %37, %56 : vector<1x256xf32>
    %58 = arith.andi %55, %57 : vector<1x256xi1>
    %cst_36 = arith.constant -1.000000e+00 : f32
    %59 = vector.broadcast %cst_36 : f32 to vector<1x256xf32>
    %60 = arith.cmpf oge, %37, %59 : vector<1x256xf32>
    %cst_37 = arith.constant 1.400000e+01 : f32
    %61 = vector.broadcast %cst_37 : f32 to vector<1x256xf32>
    %62 = arith.cmpf ole, %37, %61 : vector<1x256xf32>
    %63 = arith.andi %60, %62 : vector<1x256xi1>
    %64 = arith.andi %58, %48 : vector<1x256xi1>
    %65 = arith.mulf %43, %41 : vector<1x256xf32>
    %cst_38 = arith.constant 0.000000e+00 : f32
    %66 = vector.broadcast %cst_38 : f32 to vector<1x256xf32>
    %67 = arith.select %64, %65, %66 : vector<1x256xi1>, vector<1x256xf32>
    %68 = arith.andi %58, %53 : vector<1x256xi1>
    %69 = arith.mulf %43, %38 : vector<1x256xf32>
    %cst_39 = arith.constant 0.000000e+00 : f32
    %70 = vector.broadcast %cst_39 : f32 to vector<1x256xf32>
    %71 = arith.select %68, %69, %70 : vector<1x256xi1>, vector<1x256xf32>
    %72 = arith.andi %63, %48 : vector<1x256xi1>
    %73 = arith.mulf %39, %41 : vector<1x256xf32>
    %cst_40 = arith.constant 0.000000e+00 : f32
    %74 = vector.broadcast %cst_40 : f32 to vector<1x256xf32>
    %75 = arith.select %72, %73, %74 : vector<1x256xi1>, vector<1x256xf32>
    %76 = arith.andi %63, %53 : vector<1x256xi1>
    %77 = arith.mulf %39, %38 : vector<1x256xf32>
    %cst_41 = arith.constant 0.000000e+00 : f32
    %78 = vector.broadcast %cst_41 : f32 to vector<1x256xf32>
    %79 = arith.select %76, %77, %78 : vector<1x256xi1>, vector<1x256xf32>
    %cst_42 = arith.constant 1.600000e+01 : f32
    %80 = vector.broadcast %cst_42 : f32 to vector<1x256xf32>
    %81 = arith.mulf %37, %80 : vector<1x256xf32>
    %82 = arith.addf %81, %36 : vector<1x256xf32>
    %83 = arith.fptosi %82 : vector<1x256xf32> to vector<1x256xi32>
    %84 = tpu.iota {dimensions = array<i32: 0>} : vector<256x256xi32>
    %85 = vector.broadcast %83 : vector<1x256xi32> to vector<256x256xi32>
    %86 = arith.subi %84, %85 : vector<256x256xi32>
    %c0_i32 = arith.constant 0 : i32
    %87 = vector.broadcast %c0_i32 : i32 to vector<256x256xi32>
    %88 = arith.cmpi eq, %86, %87 : vector<256x256xi32>
    %cst_43 = arith.constant 0.000000e+00 : f32
    %89 = vector.shape_cast %67 : vector<1x256xf32> to vector<1x256xf32>
    %90 = vector.broadcast %89 : vector<1x256xf32> to vector<256x256xf32>
    %91 = vector.broadcast %cst_43 : f32 to vector<256x256xf32>
    %92 = arith.select %88, %90, %91 : vector<256x256xi1>, vector<256x256xf32>
    %c1_i32 = arith.constant 1 : i32
    %93 = vector.broadcast %c1_i32 : i32 to vector<256x256xi32>
    %94 = arith.cmpi eq, %86, %93 : vector<256x256xi32>
    %cst_44 = arith.constant 0.000000e+00 : f32
    %95 = vector.shape_cast %71 : vector<1x256xf32> to vector<1x256xf32>
    %96 = vector.broadcast %95 : vector<1x256xf32> to vector<256x256xf32>
    %97 = vector.broadcast %cst_44 : f32 to vector<256x256xf32>
    %98 = arith.select %94, %96, %97 : vector<256x256xi1>, vector<256x256xf32>
    %99 = arith.addf %92, %98 : vector<256x256xf32>
    %c16_i32 = arith.constant 16 : i32
    %100 = vector.broadcast %c16_i32 : i32 to vector<256x256xi32>
    %101 = arith.cmpi eq, %86, %100 : vector<256x256xi32>
    %cst_45 = arith.constant 0.000000e+00 : f32
    %102 = vector.shape_cast %75 : vector<1x256xf32> to vector<1x256xf32>
    %103 = vector.broadcast %102 : vector<1x256xf32> to vector<256x256xf32>
    %104 = vector.broadcast %cst_45 : f32 to vector<256x256xf32>
    %105 = arith.select %101, %103, %104 : vector<256x256xi1>, vector<256x256xf32>
    %106 = arith.addf %99, %105 : vector<256x256xf32>
    %c17_i32 = arith.constant 17 : i32
    %107 = vector.broadcast %c17_i32 : i32 to vector<256x256xi32>
    %108 = arith.cmpi eq, %86, %107 : vector<256x256xi32>
    %cst_46 = arith.constant 0.000000e+00 : f32
    %109 = vector.shape_cast %79 : vector<1x256xf32> to vector<1x256xf32>
    %110 = vector.broadcast %109 : vector<1x256xf32> to vector<256x256xf32>
    %111 = vector.broadcast %cst_46 : f32 to vector<256x256xf32>
    %112 = arith.select %108, %110, %111 : vector<256x256xi1>, vector<256x256xf32>
    %113 = arith.addf %106, %112 : vector<256x256xf32>
    %c0_47 = arith.constant 0 : index
    %c0_48 = arith.constant 0 : index
    %c0_49 = arith.constant 0 : index
    %114 = vector.load %arg2[%c0_47, %c0_48, %c0_49] : memref<1x8x256xf32, #tpu.memory_space<vmem>>, vector<1x8x256xf32>
    %115 = vector.shape_cast %114 : vector<1x8x256xf32> to vector<8x256xf32>
    %cst_50 = arith.constant dense<0.000000e+00> : vector<8x256xf32>
    %116 = tpu.matmul %115, %113, %cst_50 {dimension_numbers = #tpu.dot_dimension_numbers<[1], [0], [0], [1], [0, 0, 1, 1], [], []>} : vector<8x256xf32>, vector<256x256xf32>, vector<8x256xf32> -> vector<8x256xf32>
    %c0_51 = arith.constant 0 : index
    %c0_52 = arith.constant 0 : index
    %c0_53 = arith.constant 0 : index
    %117 = vector.load %arg18[%c0_51, %c0_52, %c0_53] : memref<1x8x256xf32, #tpu.memory_space<vmem>>, vector<1x8x256xf32>
    %118 = vector.shape_cast %117 : vector<1x8x256xf32> to vector<8x256xf32>
    %119 = vector.shape_cast %116 : vector<8x256xf32> to vector<1x8x256xf32>
    tpu.vector_store %arg18[%c0_51, %c0_52, %c0_53], %119 {strides = array<i32>} : memref<1x8x256xf32, #tpu.memory_space<vmem>>, vector<1x8x256xf32>,
    %c0_54 = arith.constant 0 : index
    %c0_55 = arith.constant 0 : index
    %120 = vector.load %arg11[%c0_54, %c0_55] : memref<1x1024xf32, #tpu.memory_space<vmem>>, vector<1x1024xf32>
    %121 = vector.extract_strided_slice %116 {offsets = [0, 0], sizes = [1, 256], strides = [1, 1]} : vector<8x256xf32> to vector<1x256xf32>
    %c0_56 = arith.constant 0 : index
    %c0_57 = arith.constant 0 : index
    %c0_58 = arith.constant 0 : index
    %122 = vector.load %arg10[%c0_56, %c0_57, %c0_58] : memref<4x256x1024xf32, #tpu.memory_space<vmem>>, vector<1x256x1024xf32>
    %123 = vector.shape_cast %122 : vector<1x256x1024xf32> to vector<256x1024xf32>
    %cst_59 = arith.constant dense<0.000000e+00> : vector<1x1024xf32>
    %124 = tpu.matmul %121, %123, %cst_59 {dimension_numbers = #tpu.dot_dimension_numbers<[1], [0], [0], [1], [0, 0, 1, 1], [], []>} : vector<1x256xf32>, vector<256x1024xf32>, vector<1x1024xf32> -> vector<1x1024xf32>
    %125 = arith.addf %120, %124 : vector<1x1024xf32>
    %126 = vector.extract_strided_slice %116 {offsets = [1, 0], sizes = [1, 256], strides = [1, 1]} : vector<8x256xf32> to vector<1x256xf32>
    %c1 = arith.constant 1 : index
    %c0_60 = arith.constant 0 : index
    %c0_61 = arith.constant 0 : index
    %127 = vector.load %arg10[%c1, %c0_60, %c0_61] : memref<4x256x1024xf32, #tpu.memory_space<vmem>>, vector<1x256x1024xf32>
    %128 = vector.shape_cast %127 : vector<1x256x1024xf32> to vector<256x1024xf32>
    %cst_62 = arith.constant dense<0.000000e+00> : vector<1x1024xf32>
    %129 = tpu.matmul %126, %128, %cst_62 {dimension_numbers = #tpu.dot_dimension_numbers<[1], [0], [0], [1], [0, 0, 1, 1], [], []>} : vector<1x256xf32>, vector<256x1024xf32>, vector<1x1024xf32> -> vector<1x1024xf32>
    %130 = arith.addf %125, %129 : vector<1x1024xf32>
    %131 = vector.extract_strided_slice %116 {offsets = [2, 0], sizes = [1, 256], strides = [1, 1]} : vector<8x256xf32> to vector<1x256xf32>
    %c2 = arith.constant 2 : index
    %c0_63 = arith.constant 0 : index
    %c0_64 = arith.constant 0 : index
    %132 = vector.load %arg10[%c2, %c0_63, %c0_64] : memref<4x256x1024xf32, #tpu.memory_space<vmem>>, vector<1x256x1024xf32>
    %133 = vector.shape_cast %132 : vector<1x256x1024xf32> to vector<256x1024xf32>
    %cst_65 = arith.constant dense<0.000000e+00> : vector<1x1024xf32>
    %134 = tpu.matmul %131, %133, %cst_65 {dimension_numbers = #tpu.dot_dimension_numbers<[1], [0], [0], [1], [0, 0, 1, 1], [], []>} : vector<1x256xf32>, vector<256x1024xf32>, vector<1x1024xf32> -> vector<1x1024xf32>
    %135 = arith.addf %130, %134 : vector<1x1024xf32>
    %136 = vector.extract_strided_slice %116 {offsets = [3, 0], sizes = [1, 256], strides = [1, 1]} : vector<8x256xf32> to vector<1x256xf32>
    %c3 = arith.constant 3 : index
    %c0_66 = arith.constant 0 : index
    %c0_67 = arith.constant 0 : index
    %137 = vector.load %arg10[%c3, %c0_66, %c0_67] : memref<4x256x1024xf32, #tpu.memory_space<vmem>>, vector<1x256x1024xf32>
    %138 = vector.shape_cast %137 : vector<1x256x1024xf32> to vector<256x1024xf32>
    %cst_68 = arith.constant dense<0.000000e+00> : vector<1x1024xf32>
    %139 = tpu.matmul %136, %138, %cst_68 {dimension_numbers = #tpu.dot_dimension_numbers<[1], [0], [0], [1], [0, 0, 1, 1], [], []>} : vector<1x256xf32>, vector<256x1024xf32>, vector<1x1024xf32> -> vector<1x1024xf32>
    %140 = arith.addf %135, %139 : vector<1x1024xf32>
    %cst_69 = arith.constant 0.000000e+00 : f32
    %141 = vector.broadcast %cst_69 : f32 to vector<1x1024xf32>
    %142 = arith.maximumf %140, %141 : vector<1x1024xf32>
    %c0_70 = arith.constant 0 : index
    %c0_71 = arith.constant 0 : index
    %143 = vector.load %arg12[%c0_70, %c0_71] : memref<1024x256xf32, #tpu.memory_space<vmem>>, vector<1024x256xf32>
    %cst_72 = arith.constant dense<0.000000e+00> : vector<1x256xf32>
    %144 = tpu.matmul %142, %143, %cst_72 {dimension_numbers = #tpu.dot_dimension_numbers<[1], [0], [0], [1], [0, 0, 1, 1], [], []>} : vector<1x1024xf32>, vector<1024x256xf32>, vector<1x256xf32> -> vector<1x256xf32>
    %c0_73 = arith.constant 0 : index
    %c0_74 = arith.constant 0 : index
    %145 = vector.load %arg13[%c0_73, %c0_74] : memref<1x256xf32, #tpu.memory_space<vmem>>, vector<1x256xf32>
    %146 = arith.addf %144, %145 : vector<1x256xf32>
    %cst_75 = arith.constant 0.000000e+00 : f32
    %147 = vector.broadcast %cst_75 : f32 to vector<1x256xf32>
    %148 = arith.maximumf %146, %147 : vector<1x256xf32>
    %c0_76 = arith.constant 0 : index
    %c0_77 = arith.constant 0 : index
    %149 = vector.load %arg14[%c0_76, %c0_77] : memref<1024x256xf32, #tpu.memory_space<vmem>>, vector<1024x256xf32>
    %cst_78 = arith.constant dense<0.000000e+00> : vector<1x1024xf32>
    %150 = tpu.matmul %148, %149, %cst_78 {dimension_numbers = #tpu.dot_dimension_numbers<[1], [1], [0], [0], [0, 0, 1, 0], [], []>} : vector<1x256xf32>, vector<1024x256xf32>, vector<1x1024xf32> -> vector<1x1024xf32>
    %c0_79 = arith.constant 0 : index
    %c0_80 = arith.constant 0 : index
    %151 = vector.load %arg15[%c0_79, %c0_80] : memref<1x1024xf32, #tpu.memory_space<vmem>>, vector<1x1024xf32>
    %152 = arith.addf %150, %151 : vector<1x1024xf32>
    %cst_81 = arith.constant 0.000000e+00 : f32
    %153 = vector.broadcast %cst_81 : f32 to vector<1x1024xf32>
    %154 = arith.maximumf %152, %153 : vector<1x1024xf32>
    %c0_82 = arith.constant 0 : index
    %c0_83 = arith.constant 0 : index
    %155 = vector.load %arg16[%c0_82, %c0_83] : memref<64x1024xf32, #tpu.memory_space<vmem>>, vector<64x1024xf32>
    %cst_84 = arith.constant dense<0.000000e+00> : vector<1x64xf32>
    %156 = tpu.matmul %154, %155, %cst_84 {dimension_numbers = #tpu.dot_dimension_numbers<[1], [1], [0], [0], [0, 0, 1, 0], [], []>} : vector<1x1024xf32>, vector<64x1024xf32>, vector<1x64xf32> -> vector<1x64xf32>
    %c0_85 = arith.constant 0 : index
    %c0_86 = arith.constant 0 : index
    %157 = vector.load %arg17[%c0_85, %c0_86] : memref<1x64xf32, #tpu.memory_space<vmem>>, vector<1x64xf32>
    %158 = arith.addf %156, %157 : vector<1x64xf32>
    %c0_87 = arith.constant 0 : index
    %c0_88 = arith.constant 0 : index
    %c0_89 = arith.constant 0 : index
    %159 = vector.load %arg19[%c0_87, %c0_88, %c0_89] : memref<1x1x64xf32, #tpu.memory_space<vmem>>, vector<1x1x64xf32>
    %160 = vector.shape_cast %159 : vector<1x1x64xf32> to vector<1x64xf32>
    %161 = vector.shape_cast %158 : vector<1x64xf32> to vector<1x1x64xf32>
    tpu.vector_store %arg19[%c0_87, %c0_88, %c0_89], %161 {strides = array<i32>} : memref<1x1x64xf32, #tpu.memory_space<vmem>>, vector<1x1x64xf32>,
    return
  }
  func.func @transform_0(%arg0: i32) -> (i32, i32, i32) {
    %c0_i32 = arith.constant 0 : i32
    %c0_i32_0 = arith.constant 0 : i32
    %c0_i32_1 = arith.constant 0 : i32
    return %arg0, %c0_i32, %c0_i32_0 : i32, i32, i32
  }
  func.func @transform_1(%arg0: i32) -> (i32, i32, i32) {
    %c0_i32 = arith.constant 0 : i32
    %c0_i32_0 = arith.constant 0 : i32
    %c0_i32_1 = arith.constant 0 : i32
    return %arg0, %c0_i32, %c0_i32_0 : i32, i32, i32
  }
  func.func @transform_2(%arg0: i32) -> (i32, i32) {
    %c0_i32 = arith.constant 0 : i32
    %c0_i32_0 = arith.constant 0 : i32
    %c0_i32_1 = arith.constant 0 : i32
    return %c0_i32, %c0_i32_0 : i32, i32
  }
  func.func @transform_3(%arg0: i32) -> (i32, i32) {
    %c0_i32 = arith.constant 0 : i32
    %c0_i32_0 = arith.constant 0 : i32
    %c0_i32_1 = arith.constant 0 : i32
    return %c0_i32, %c0_i32_0 : i32, i32
  }
  func.func @transform_4(%arg0: i32) -> (i32, i32) {
    %c0_i32 = arith.constant 0 : i32
    %c0_i32_0 = arith.constant 0 : i32
    %c0_i32_1 = arith.constant 0 : i32
    return %c0_i32, %c0_i32_0 : i32, i32
  }
  func.func @transform_5(%arg0: i32) -> (i32, i32) {
    %c0_i32 = arith.constant 0 : i32
    %c0_i32_0 = arith.constant 0 : i32
    %c0_i32_1 = arith.constant 0 : i32
    return %c0_i32, %c0_i32_0 : i32, i32
  }
  func.func @transform_6(%arg0: i32) -> (i32, i32) {
    %c0_i32 = arith.constant 0 : i32
    %c0_i32_0 = arith.constant 0 : i32
    %c0_i32_1 = arith.constant 0 : i32
    return %c0_i32, %c0_i32_0 : i32, i32
  }
  func.func @transform_7(%arg0: i32) -> (i32, i32) {
    %c0_i32 = arith.constant 0 : i32
    %c0_i32_0 = arith.constant 0 : i32
    %c0_i32_1 = arith.constant 0 : i32
    return %c0_i32, %c0_i32_0 : i32, i32
  }
  func.func @transform_8(%arg0: i32) -> (i32, i32) {
    %c0_i32 = arith.constant 0 : i32
    %c0_i32_0 = arith.constant 0 : i32
    %c0_i32_1 = arith.constant 0 : i32
    return %c0_i32, %c0_i32_0 : i32, i32
  }
  func.func @transform_9(%arg0: i32) -> (i32, i32, i32) {
    %c0_i32 = arith.constant 0 : i32
    %c0_i32_0 = arith.constant 0 : i32
    %c0_i32_1 = arith.constant 0 : i32
    %c0_i32_2 = arith.constant 0 : i32
    return %c0_i32, %c0_i32_0, %c0_i32_1 : i32, i32, i32
  }
  func.func @transform_10(%arg0: i32) -> (i32, i32) {
    %c0_i32 = arith.constant 0 : i32
    %c0_i32_0 = arith.constant 0 : i32
    %c0_i32_1 = arith.constant 0 : i32
    return %c0_i32, %c0_i32_0 : i32, i32
  }
  func.func @transform_11(%arg0: i32) -> (i32, i32) {
    %c0_i32 = arith.constant 0 : i32
    %c0_i32_0 = arith.constant 0 : i32
    %c0_i32_1 = arith.constant 0 : i32
    return %c0_i32, %c0_i32_0 : i32, i32
  }
  func.func @transform_12(%arg0: i32) -> (i32, i32) {
    %c0_i32 = arith.constant 0 : i32
    %c0_i32_0 = arith.constant 0 : i32
    %c0_i32_1 = arith.constant 0 : i32
    return %c0_i32, %c0_i32_0 : i32, i32
  }
  func.func @transform_13(%arg0: i32) -> (i32, i32) {
    %c0_i32 = arith.constant 0 : i32
    %c0_i32_0 = arith.constant 0 : i32
    %c0_i32_1 = arith.constant 0 : i32
    return %c0_i32, %c0_i32_0 : i32, i32
  }
  func.func @transform_14(%arg0: i32) -> (i32, i32) {
    %c0_i32 = arith.constant 0 : i32
    %c0_i32_0 = arith.constant 0 : i32
    %c0_i32_1 = arith.constant 0 : i32
    return %c0_i32, %c0_i32_0 : i32, i32
  }
  func.func @transform_15(%arg0: i32) -> (i32, i32) {
    %c0_i32 = arith.constant 0 : i32
    %c0_i32_0 = arith.constant 0 : i32
    %c0_i32_1 = arith.constant 0 : i32
    return %c0_i32, %c0_i32_0 : i32, i32
  }
  func.func @transform_16(%arg0: i32) -> (i32, i32) {
    %c0_i32 = arith.constant 0 : i32
    %c0_i32_0 = arith.constant 0 : i32
    %c0_i32_1 = arith.constant 0 : i32
    return %c0_i32, %c0_i32_0 : i32, i32
  }
  func.func @transform_17(%arg0: i32) -> (i32, i32, i32) {
    %c0_i32 = arith.constant 0 : i32
    %c0_i32_0 = arith.constant 0 : i32
    %c0_i32_1 = arith.constant 0 : i32
    return %arg0, %c0_i32, %c0_i32_0 : i32, i32, i32
  }
  func.func @transform_18(%arg0: i32) -> (i32, i32, i32) {
    %c0_i32 = arith.constant 0 : i32
    %c0_i32_0 = arith.constant 0 : i32
    %c0_i32_1 = arith.constant 0 : i32
    return %arg0, %c0_i32, %c0_i32_0 : i32, i32, i32
  }
}

</mosaic_0001>

<bundles_post_ra>
// kernel: network_forward.1
= control target key start
LH: loop header
LB: loop body
LE: loop exit
PB: predicated region body
PF: predicated region fallthrough
CT: control target
= control target key end

     0   :  { %s8262_s0 = inlined_call_operand.vmem [shape: f32[2,1,1024], index: 0, kind: input, shape index: {}]   ;;  %s8263_s1 = inlined_call_operand.vmem [shape: f32[2,8,256], index: 1, kind: input, shape index: {}]   ;;  %s8264_s2 = inlined_call_operand.hbm [shape: f32[3,256], index: 2, kind: input, shape index: {}]   ;;  %s8265_s3 = inlined_call_operand.hbm [shape: f32[20,1024], index: 3, kind: input, shape index: {}]   ;;  %s8266_s4 = inlined_call_operand.hbm [shape: f32[1,20], index: 4, kind: input, shape index: {}]   ;;  %s8267_s5 = inlined_call_operand.hbm [shape: f32[3,20], index: 5, kind: input, shape index: {}]   ;;  %s8268_s6 = inlined_call_operand.hbm [shape: f32[1,3], index: 6, kind: input, shape index: {}]   ;;  %s8269_s7 = inlined_call_operand.hbm [shape: f32[3,20], index: 7, kind: input, shape index: {}]   ;;  %s8270_s8 = inlined_call_operand.hbm [shape: f32[1,3], index: 8, kind: input, shape index: {}]   ;;  %s8271_s9 = inlined_call_operand.hbm [shape: f32[4,256,1024], index: 9, kind: input, shape index: {}]   ;;  %s8272_s10 = inlined_call_operand.hbm [shape: f32[1,1024], index: 10, kind: input, shape index: {}]   ;;  %s8273_s11 = inlined_call_operand.hbm [shape: f32[1024,256], index: 11, kind: input, shape index: {}]   ;;  %s8274_s12 = inlined_call_operand.hbm [shape: f32[1,256], index: 12, kind: input, shape index: {}]   ;;  %s8275_s13 = inlined_call_operand.hbm [shape: f32[1024,256], index: 13, kind: input, shape index: {}]   ;;  %s8276_s14 = inlined_call_operand.hbm [shape: f32[1,1024], index: 14, kind: input, shape index: {}]   ;;  %s8277_s15 = inlined_call_operand.hbm [shape: f32[64,1024], index: 15, kind: input, shape index: {}]   ;;  %s8278_s16 = inlined_call_operand.hbm [shape: f32[1,64], index: 16, kind: input, shape index: {}]   ;;  %s8279_s17 = inlined_call_operand.vmem [shape: f32[2,8,256], index: 17, kind: output, shape index: {0}]   ;;  %s8280_s18 = inlined_call_operand.hbm [shape: f32[2,1,64], index: 18, kind: output, shape index: {1}]  }
   0x1   :  { %8293 = sst [smem:[#allocation44_spill]] %s8262_s0 }
   0x2   :  { %8294 = sst [smem:[#allocation45_spill]] %s8263_s1 }
   0x3   :  { %8295 = sst [smem:[#allocation46_spill]] %s8264_s2 }
   0x4   :  { %8296 = sst [smem:[#allocation47_spill]] %s8265_s3 }
   0x5   :  { %8297 = sst [smem:[#allocation48_spill]] %s8267_s5 }
   0x6   :  { %8298 = sst [smem:[#allocation49_spill]] %s8269_s7 }
   0x7   :  { %8299 = sst [smem:[#allocation50_spill]] %s8271_s9 }
   0x8   :  { %8300 = sst [smem:[#allocation51_spill]] %s8280_s18 }
   0x9   :  { %24 = vsyncpa [#allocation3], 0 }
   0xa   :  { %25 = vsyncpa [#allocation6], 0 }
   0xb   :  { %26 = vsyncpa [#allocation9], 0 }
   0xc   :  { %27 = vsyncpa [#allocation12], 0 }
   0xd   :  { %28 = vsyncpa [#allocation15], 0 }
   0xe   :  { %29 = vsyncpa [#allocation18], 0 }
   0xf   :  { %30 = vsyncpa [#allocation21], 0 }
  0x10   :  { %31 = vsyncpa [#allocation24], 0 }
  0x11   :  { %32 = vsyncpa [#allocation4], 0 }
  0x12   :  { %34 = vsyncpa [#allocation4 + $0x1], 0  ;;  %s7215_s27 = smov 0   ;;  %s7217_s28 = smov 0  }
  0x13   :  { %s7219_s29 = smov 0   ;;  %s7221_s30 = smov 0  }
  0x14 LB: > { %8301 = sst [smem:[#allocation36_spill]] %s7087_s27  ;;  %s7236_s0 = sadd.s32 4294967295, %s7099_s30   ;;  %s7099_s30 = sphi %s7221_s30, %s8344_s30   ;;  %s7095_s29 = sphi %s7219_s29, %s8347_s29   ;;  %s7091_s28 = sphi %s7217_s28, %s8346_s28   ;;  %s7087_s27 = sphi %s7215_s27, %s8345_s27  }
  0x15   : > { %8302 = sst [smem:[#allocation37_spill]] %s7091_s28  ;;  %s6282_s19 = sadd.s32 4294967294, %s7099_s30  }
  0x16   : > { %8303 = sst [smem:[#allocation38_spill]] %s7095_s29  ;;  %s7240_s1 = sadd.s32 1, %s7099_s30  }
  0x17   : > { %8304 = sst [smem:[#allocation39_spill]] %s7099_s30  ;;  %s440_s20 = sadd.s32 1, %s7095_s29 }
  0x18   : > { %8305 = sst [smem:[#allocation40_spill]] %s7240_s1  ;;  %s437_s21 = ssub.s32 %s7099_s30, %s7240_s1 }
  0x19   : > { %p450_p0 = scmp.ne.s32.totalorder %s7095_s29, %s7091_s28  ;;  %p438_p1 = scmp.eq.s32.totalorder %s437_s21, 0 }
  0x1a   : > { %p451_p2 = scmp.eq.s32.totalorder %s7236_s0, 1  ;;  %p456_p3 = scmp.ne.s32.totalorder %s7091_s28, %s7087_s27 }
  0x1b   : > { %p457_p4 = scmp.eq.s32.totalorder %s6282_s19, 1  ;;  %p6283_p7 = scmp.ge.s32.totalorder %s7099_s30, 1 }
  0x1c   : > { %s7251_s22 = scalar_select %p438_p1, %s7095_s29, %s440_s20  }
  0x1d   : > { %p7253_p5 = por %p451_p2, %p450_p0  ;;  %p7257_p6 = por %p457_p4, %p456_p3 }
  0x1e   : > { %8306 = sst [smem:[#allocation41_spill]] %s7251_s22  ;;  %p464_p8 = scmp.lt.s32.totalorder %s7099_s30, 3 }
  0x1f   : > { %s8307_s2 = scalar_select %p7253_p5, 1, 0 }
  0x20   : > { %s8309_s23 = scalar_select %p7257_p6, 1, 0 }
  0x21   : > { %8308 = sst [smem:[#allocation42_spill]] %s8307_s2  ;;  %p6463_p9 = scmp.eq.s32.totalorder %s7236_s0, 0 }
  0x22   : > { %8310 = sst [smem:[#allocation43_spill]] %s8309_s23  ;;  %p7264_p10 = pnand %p6283_p7, %p464_p8 }
  0x23   : > { %s8312_s3 = sld [smem:[#allocation47_spill]]  ;;  %s7101_s20 = smov [#allocation5]  }
  0x24   : > { %p6413_p11 = pneg %p7264_p10  ;;  %s489_s21 = sshll.u32 %s7101_s20, 4  ;;  %s490_s21 = int_to_ptr.vmem [resolvable:$true] %s489_s21 }
  0x25   : > { %s8314_s5 = sld [smem:[#allocation48_spill]]  ;;  %s8291_s25 = smov 1024  }
  0x26   : > { %p7275_p12 = pnand %p6463_p9, %p6413_p11  ;;  %s8292_s26 = smov 64  }
  0x27   : > { %s7104_s20 = smov [#allocation8]   ;;  %s8315_s7 = sld [smem:[#allocation49_spill]] }
  0x28   : > { %s8316_s9 = sld [smem:[#allocation50_spill]]  ;;  %s7105_s18 = smov [#allocation11]  }
  0x29   : > { %s487_s19 = sshll.u32 %s8312_s3, 4  ;;  %s516_s3 = sshll.u32 %s7104_s20, 4  ;;  %s488_s19 = int_to_ptr.hbm [resolvable:$true] %s487_s19  ;;  %s517_s3 = int_to_ptr.vmem [resolvable:$true] %s516_s3 }
  0x2a   : > { %6419 = dma.hbm_to_vmem [thread:$0]  (!%p7275_p12), %s488_s19, 3072, %s490_s21, [#allocation6], %s8291_s25, %s8291_s25, %s8292_s26  }
  0x2b   : > { %s514_s23 = sshll.u32 %s8314_s5, 4  ;;  %s540_s28 = sshll.u32 %s7105_s18, 4  ;;  %s515_s23 = int_to_ptr.hbm [resolvable:$true] %s514_s23  ;;  %s541_s28 = int_to_ptr.vmem [resolvable:$true] %s540_s28 }
  0x2c   : > { %6425 = dma.hbm_to_vmem [thread:$0]  (!%p7275_p12), %s515_s23, 64, %s517_s3, [#allocation9]  }
  0x2d   : > { %s538_s2 = sshll.u32 %s8315_s7, 4  ;;  %s7106_s19 = smov [#allocation14]   ;;  %s539_s2 = int_to_ptr.hbm [resolvable:$true] %s538_s2 }
  0x2e   : > { %s561_s5 = sshll.u32 %s8316_s9, 4  ;;  %s563_s21 = sshll.u32 %s7106_s19, 4  ;;  %s562_s5 = int_to_ptr.hbm [resolvable:$true] %s561_s5  ;;  %s564_s21 = int_to_ptr.vmem [resolvable:$true] %s563_s21 }
  0x2f   : > { %6431 = dma.hbm_to_vmem [thread:$0]  (!%p7275_p12), %s539_s2, 64, %s541_s28, [#allocation12]  }
  0x30   : > { %s587_s20 = sshll.u32 %s8273_s11, 4  ;;  %s7107_s3 = smov [#allocation17]   ;;  %s588_s20 = int_to_ptr.hbm [resolvable:$true] %s587_s20 }
  0x31   : > { %6437 = dma.hbm_to_vmem [thread:$0]  (!%p7275_p12), %s562_s5, 131072, %s564_s21, [#allocation15], %s8291_s25, %s8291_s25, %s8292_s26  }
  0x32   : > { %s589_s18 = sshll.u32 %s7107_s3, 4  ;;  %s613_s28 = sshll.u32 %s8275_s13, 4  ;;  %s590_s18 = int_to_ptr.vmem [resolvable:$true] %s589_s18  ;;  %s614_s28 = int_to_ptr.hbm [resolvable:$true] %s613_s28 }
  0x33   : > { %s7108_s2 = smov 256   ;;  %s7109_s1 = smov 16  }
  0x34   : > { %6443 = dma.hbm_to_vmem [thread:$0]  (!%p7275_p12), %s588_s20, 32768, %s590_s18, [#allocation18], %s7108_s2, %s7108_s2, %s7109_s1  }
  0x35   : > { %s7110_s19 = smov [#allocation20]   ;;  %s639_s5 = sshll.u32 %s8277_s15, 4  ;;  %s640_s5 = int_to_ptr.hbm [resolvable:$true] %s639_s5 }
  0x36   : > { %s615_s27 = sshll.u32 %s7110_s19, 4  ;;  %s8317_s23 = sld [smem:[#allocation46_spill]]  ;;  %s616_s27 = int_to_ptr.vmem [resolvable:$true] %s615_s27 }
  0x37   : > { %6449 = dma.hbm_to_vmem [thread:$0]  (!%p7275_p12), %s614_s28, 32768, %s616_s27, [#allocation21], %s7108_s2, %s7108_s2, %s7109_s1  }
  0x38   : > { %s7111_s25 = smov [#allocation23]   ;;  %s8318_s20 = smov 64  }
  0x39   : > { %s641_s26 = sshll.u32 %s7111_s25, 4  ;;  %s8319_s18 = smov 1024   ;;  %s642_s26 = int_to_ptr.vmem [resolvable:$true] %s641_s26 }
  0x3a   : > { %6455 = dma.hbm_to_vmem [thread:$0]  (!%p7275_p12), %s640_s5, 8192, %s642_s26, [#allocation24], %s8319_s18, %s8319_s18, %s8318_s20  }
  0x3b   : > { %s7112_s7 = smov [#allocation2]   ;;  %s502_s28 = sshll.u32 %s8266_s4, 4  ;;  %s503_s28 = int_to_ptr.hbm [resolvable:$true] %s502_s28 }
  0x3c   : > { %s476_s29 = sshll.u32 %s8317_s23, 4  ;;  %s478_s19 = sshll.u32 %s7112_s7, 4  ;;  %s477_s29 = int_to_ptr.hbm [resolvable:$true] %s476_s29  ;;  %s479_s19 = int_to_ptr.vmem [resolvable:$true] %s478_s19 }
  0x3d   : > { %6416 = dma.hbm_to_vmem [thread:$0]  (!%p7275_p12), %s477_s29, 128, %s479_s19, [#allocation3]  }
  0x3e   : > { %s526_s1 = sshll.u32 %s8268_s6, 4  ;;  %s7113_s27 = smov [#allocation7]   ;;  %s527_s1 = int_to_ptr.hbm [resolvable:$true] %s526_s1 }
  0x3f   : > { %s504_s21 = sshll.u32 %s7113_s27, 4  ;;  %s7114_s26 = smov [#allocation10]   ;;  %s505_s21 = int_to_ptr.vmem [resolvable:$true] %s504_s21 }
  0x40   : > { %6422 = dma.hbm_to_vmem [thread:$0]  (!%p7275_p12), %s503_s28, 16, %s505_s21, [#allocation6]  }
  0x41   : > { %s528_s5 = sshll.u32 %s7114_s26, 4  ;;  %s550_s23 = sshll.u32 %s8270_s8, 4  ;;  %s529_s5 = int_to_ptr.vmem [resolvable:$true] %s528_s5  ;;  %s551_s23 = int_to_ptr.hbm [resolvable:$true] %s550_s23 }
  0x42   : > { %6428 = dma.hbm_to_vmem [thread:$0]  (!%p7275_p12), %s527_s1, 16, %s529_s5, [#allocation9]  }
  0x43   : > { %s576_s18 = sshll.u32 %s8272_s10, 4  ;;  %s7115_s7 = smov [#allocation13]   ;;  %s577_s18 = int_to_ptr.hbm [resolvable:$true] %s576_s18 }
  0x44   : > { %s552_s19 = sshll.u32 %s7115_s7, 4  ;;  %s7116_s30 = smov [#allocation16]   ;;  %s553_s19 = int_to_ptr.vmem [resolvable:$true] %s552_s19 }
  0x45   : > { %6434 = dma.hbm_to_vmem [thread:$0]  (!%p7275_p12), %s551_s23, 16, %s553_s19, [#allocation12]  }
  0x46   : > { %s578_s28 = sshll.u32 %s7116_s30, 4  ;;  %s602_s27 = sshll.u32 %s8274_s12, 4  ;;  %s579_s28 = int_to_ptr.vmem [resolvable:$true] %s578_s28  ;;  %s603_s27 = int_to_ptr.hbm [resolvable:$true] %s602_s27 }
  0x47   : > { %6440 = dma.hbm_to_vmem [thread:$0]  (!%p7275_p12), %s577_s18, 128, %s579_s28, [#allocation15]  }
  0x48   : > { %s628_s26 = sshll.u32 %s8276_s14, 4  ;;  %s7117_s5 = smov [#allocation19]   ;;  %s629_s26 = int_to_ptr.hbm [resolvable:$true] %s628_s26 }
  0x49   : > { %s604_s9 = sshll.u32 %s7117_s5, 4  ;;  %s7118_s3 = smov [#allocation22]   ;;  %s605_s9 = int_to_ptr.vmem [resolvable:$true] %s604_s9 }
  0x4a   : > { %6446 = dma.hbm_to_vmem [thread:$0]  (!%p7275_p12), %s603_s27, 32, %s605_s9, [#allocation18]  }
  0x4b   : > { %s630_s23 = sshll.u32 %s7118_s3, 4  ;;  %s654_s7 = sshll.u32 %s8278_s16, 4  ;;  %s631_s23 = int_to_ptr.vmem [resolvable:$true] %s630_s23  ;;  %s655_s7 = int_to_ptr.hbm [resolvable:$true] %s654_s7 }
  0x4c   : > { %6452 = dma.hbm_to_vmem [thread:$0]  (!%p7275_p12), %s629_s26, 128, %s631_s23, [#allocation21]  }
  0x4d   : > { %s7119_s18 = smov [#allocation25]   ;;  %684 = sbr.rel (%p7264_p10) target bundleno = 2121 (0x849), region = 88 }
  0x4e   : > { %s656_s19 = sshll.u32 %s7119_s18, 4  ;;  %s657_s19 = int_to_ptr.vmem [resolvable:$true] %s656_s19 }
  0x4f   : > { %6458 = dma.hbm_to_vmem [thread:$0]  (!%p7275_p12), %s655_s7, 16, %s657_s19, [#allocation24]  }
  0x52   : > { %7050 = dma.done.wait (%p6463_p9), [#allocation3], 128  }
  0x53   : > { %7052 = vsyncadd (%p6463_p9), [#allocation3], 4294967168 }
  0x54   : > { %7054 = dma.done.wait (%p6463_p9), [#allocation6], 3088  }
  0x55   : > { %7056 = vsyncadd (%p6463_p9), [#allocation6], 4294964208 }
  0x56   : > { %7058 = dma.done.wait (%p6463_p9), [#allocation9], 80  }
  0x57   : > { %7060 = vsyncadd (%p6463_p9), [#allocation9], 4294967216 }
  0x58   : > { %7062 = dma.done.wait (%p6463_p9), [#allocation12], 80  }
  0x59   : > { %7064 = vsyncadd (%p6463_p9), [#allocation12], 4294967216 }
  0x5a   : > { %7066 = dma.done.wait (%p6463_p9), [#allocation15], 131200  }
  0x5b   : > { %7068 = vsyncadd (%p6463_p9), [#allocation15], 4294836096 }
  0x5c   : > { %7070 = dma.done.wait (%p6463_p9), [#allocation18], 32800  }
  0x5d   : > { %7072 = vsyncadd (%p6463_p9), [#allocation18], 4294934496 }
  0x5e   : > { %7074 = dma.done.wait (%p6463_p9), [#allocation21], 32896  }
  0x5f   : > { %7076 = vsyncadd (%p6463_p9), [#allocation21], 4294934400 }
  0x60   : > { %7078 = dma.done.wait (%p6463_p9), [#allocation24], 8208  }
  0x61   : > { %7080 = vsyncadd (%p6463_p9), [#allocation24], 4294959088  ;;  %p817_p13 = scmp.lt.s32.totalorder %s7236_s0, 1  ;;  %v850_v0 = vld [vmem:[#allocation5 + $0x90] sm:$0xf]  ;;  %v840_v5 = vld [vmem:[#allocation5 + $0x40] sm:$0xff] }
  0x62   : > { %v848_v1 = vld [vmem:[#allocation5 + $0x80] sm:$0xf]  ;;  %v851_v2 = vld [vmem:[#allocation5 + $0x98] sm:$0xf]  ;;  %927 = vmatpush.xpose.msra.mxu2 %v850_v0  ;;  %v849_v3 = vld [vmem:[#allocation5 + $0x88] sm:$0xf] }
  0x63   : > { %s7396_s22 = scalar_select %p817_p13, %s7236_s0, 1  ;;  %887 = vmatpush.xpose.msra.mxu0 %v848_v1  ;;  %947 = vmatpush.xpose.msra.mxu3 %v851_v2  ;;  %v842_v4 = vld [vmem:[#allocation5 + $0x50] sm:$0xff]  ;;  %v843_v6 = vld [vmem:[#allocation5 + $0x58] sm:$0xff]  ;;  %v841_v7 = vld [vmem:[#allocation5 + $0x48] sm:$0xff]  ;;  %vm1037_vm0 = vcmask 162816   ;;  %vm1100_vm1 = vcmask 1042432  }
  0x64   : > { %907 = vmatpush.xpose.msra.mxu1 %v849_v3  ;;  %s8320_s2 = sld [smem:[#allocation44_spill]]  ;;  %v834_v9 = vld [vmem:[#allocation5 + $0x10] sm:$0xff]  ;;  %v832_v10 = vld [vmem:[#allocation5] sm:$0xff]  ;;  %v835_v12 = vld [vmem:[#allocation5 + $0x18] sm:$0xff]  ;;  %vm1096_vm2 = vcmask 23552  }
  0x65   : > { %s6316_s24 = sshll.u32 %s7396_s22, 3  ;;  %v854_v11 = vld [vmem:[#allocation5 + $0xb0] sm:$0xf]  ;;  %v852_v13 = vld [vmem:[#allocation5 + $0xa0] sm:$0xf]  ;;  %v833_v16 = vld [vmem:[#allocation5 + $0x8] sm:$0xff] }
  0x66   : > { %928 = vmatpush.xpose.msra.mxu2 %v842_v4  ;;  %v855_v14 = vld [vmem:[#allocation5 + $0xb8] sm:$0xf]  ;;  %v853_v18 = vld [vmem:[#allocation5 + $0xa8] sm:$0xf]  ;;  %v846_v20 = vld [vmem:[#allocation5 + $0x70] sm:$0xff]  ;;  %s6339_s27 = sshll.u32 %s7396_s22, 4 }
  0x67   : > { %888 = vmatpush.xpose.msra.mxu0 %v840_v5  ;;  %948 = vmatpush.xpose.msra.mxu3 %v843_v6  ;;  %v844_v21 = vld [vmem:[#allocation5 + $0x60] sm:$0xff]  ;;  %v847_v22 = vld [vmem:[#allocation5 + $0x78] sm:$0xff]  ;;  %v845_v24 = vld [vmem:[#allocation5 + $0x68] sm:$0xff]  ;;  %s8337_s26 = sld [smem:[#allocation45_spill]]  ;;  %s7932_s23 = scalar_lea.vmem %s8279_s17, %s6339_s27 }
  0x68   : > { %908 = vmatpush.xpose.msra.mxu1 %v841_v7  ;;  %v838_v25 = vld [vmem:[#allocation5 + $0x30] sm:$0xff]  ;;  %v836_v26 = vld [vmem:[#allocation5 + $0x20] sm:$0xff]  ;;  %v839_v27 = vld [vmem:[#allocation5 + $0x38] sm:$0xff]  ;;  %s8338_s29 = sld [smem:[#allocation37_spill]] }
  0x69   : > { %v837_v29 = vld [vmem:[#allocation5 + $0x28] sm:$0xff]  ;;  %v1035_v33 = vld [vmem:[#allocation8] sm:$0x7]  ;;  %v856_v35 = vld [vmem:[#allocation7] sm:$0x1]  ;;  %s8339_s19 = sld [smem:[#allocation51_spill]] }
  0x6a   : > { %s820_s25 = scalar_lea.vmem %s8320_s2, %s6316_s24  ;;  %929 = vmatpush.xpose.msra.mxu2 %v834_v9  ;;  %v1065_v34 = vld [vmem:[#allocation11] sm:$0x7]  ;;  %v1091_v53 = vld [vmem:[#allocation2] sm:$0x77]  ;;  %v1036_v58 = vld [vmem:[#allocation10] sm:$0x1] }
  0x6b   : > { %v831_v8 = vld [vmem:[%s820_s25] sm:$0xff]  ;;  %889 = vmatpush.xpose.msra.mxu0 %v832_v10  ;;  %949 = vmatpush.xpose.msra.mxu3 %v835_v12  ;;  %1093 = vst [vmem:[#allocation1] ss:$2 sm:$0xff] %v1091_v53  ;;  %v1066_v59 = vld [vmem:[#allocation13] sm:$0x1] }
  0x6c   : > { %v860_v15 = vperm.slane %v831_v8, 2  ;;  %v858_v17 = vperm.slane %v831_v8, 0  ;;  %v861_v19 = vperm.slane %v831_v8, 3  ;;  %909 = vmatpush.xpose.msra.mxu1 %v833_v16  ;;  %v859_v23 = vperm.slane %v831_v8, 1 }
  0x6d   : > { %v864_v28 = vperm.slane %v831_v8, 6  ;;  %v862_v30 = vperm.slane %v831_v8, 4  ;;  %v865_v31 = vperm.slane %v831_v8, 7  ;;  %v863_v32 = vperm.slane %v831_v8, 5  ;;  %s7908_s5 = scalar_lea.vmem %s8337_s26, %s6339_s27 }
  0x6e   : > { %1007 = vmatpush.xpose.msrb.mxu2 %v854_v11  ;;  %890 = vmatmul.f32.vlgmr.msra.gmra.mxu0 %v858_v17  ;;  %v1273_v8 = vlaneseq  ;;  %s815_s20 = sand.u32 1, %s8338_s29  }
  0x6f   : > { %967 = vmatpush.xpose.msrb.mxu0 %v852_v13  ;;  %1027 = vmatpush.xpose.msrb.mxu3 %v855_v14  ;;  %s6041_s22 = scalar_lea.hbm %s8339_s19, %s7236_s0  ;;  %s816_s30 = scalar_lea.vmem [#allocation26], %s815_s20 }
  0x70   : > { %930 = vmatmul.f32.vlgmr.msra.gmra.mxu2 %v860_v15  ;;  %987 = vmatpush.xpose.msrb.mxu1 %v853_v18  ;;  %v7406_v17 = vshrl.u32 %v1273_v8, 7  ;;  %s6043_s28 = sshll.u32 %s816_s30, 4  ;;  %s6045_s2 = sshll.u32 %s6041_s22, 4  ;;  %s6044_s28 = int_to_ptr.vmem [resolvable:$true] %s6043_s28  ;;  %s6046_s2 = int_to_ptr.hbm [resolvable:$true] %s6045_s2 }
  0x71   : > { %950 = vmatmul.f32.vlgmr.msra.gmra.mxu3 %v861_v19  ;;  %910 = vmatmul.f32.vlgmr.msra.gmra.mxu1 %v859_v23  ;;  %s6030_s25 = scalar_lea.sflag [#allocation4], %s815_s20  ;;  %s7019_s27 = sshra.s32 %s6046_s2, 4  ;;  %s7020_s27 = int_to_ptr.hbm [resolvable:$true] %s7019_s27 }
  0x72   : > { %1008 = vmatpush.xpose.msrb.mxu2 %v846_v20  ;;  %v1094_v54 = vld.sshfl [vmem:[#allocation1] sm:$0xff pattern:$0x75316420]  ;;  %v1095_v55 = vld.sshfl [vmem:[#allocation1 + $0x8] sm:$0xff pattern:$0x75316420]  ;;  %p7026_p3 = scmp.lt.s32.totalorder %s7020_s27, %s8339_s19 }
  0x73   : > { %968 = vmatpush.xpose.msrb.mxu0 %v844_v21  ;;  %1028 = vmatpush.xpose.msrb.mxu3 %v847_v22  ;;  %1151 = vst [vmem:[#allocation1] ss:$2 sm:$0xff] %v1091_v53  ;;  %s7021_s1 = scalar_lea.hbm %s7020_s27, 1  ;;  %s7025_s26 = scalar_lea.hbm %s8339_s19, 2 }
  0x74   : > { %988 = vmatpush.xpose.msrb.mxu1 %v845_v24  ;;  %p7022_p0 = scmp.ne.s32.totalorder %s7020_s27, %s7021_s1  ;;  %p7027_p4 = scmp.lt.s32.totalorder %s7025_s26, %s7021_s1 }
  0x76   : > { %1009 = vmatpush.xpose.msrb.mxu2 %v838_v25  ;;  %v7409_v25 = vadd.s32 120, %v7406_v17  ;;  %p7023_p1 = pnand %p7022_p0, %p7253_p5  ;;  %p7028_p7 = por %p7027_p4, %p7026_p3 }
  0x77   : > { %969 = vmatpush.xpose.msrb.mxu0 %v836_v26  ;;  %1029 = vmatpush.xpose.msrb.mxu3 %v839_v27  ;;  %v7412_v26 = vadd.s32 248, %v7406_v17  ;;  %v7415_v27 = vadd.s32 112, %v7406_v17 }
  0x78   : > { %989 = vmatpush.xpose.msrb.mxu1 %v837_v29  ;;  %p7024_p2 = pneg %p7023_p1 }
  0x79   : > { %1010 = vmatmul.f32.vlgmr.msrb.gmra.mxu2 %v864_v28 }
  0x7a   : > { %970 = vmatmul.f32.vlgmr.msrb.gmra.mxu0 %v862_v30  ;;  %1030 = vmatmul.f32.vlgmr.msrb.gmra.mxu3 %v865_v31  ;;  %v1152_v56 = vld.sshfl [vmem:[#allocation1] sm:$0xff pattern:$0x75316420]  ;;  %v1153_v57 = vld.sshfl [vmem:[#allocation1 + $0x8] sm:$0xff pattern:$0x75316420]  ;;  %p7029_p8 = pnand %p7028_p7, %p7024_p2 }
  0x7b   : > { %990 = vmatmul.f32.vlgmr.msrb.gmra.mxu1 %v863_v32  ;;  %6321 = vmatpush.xpose.msk.msra.mxu0 %vm1037_vm0, %v1035_v33  ;;  %v7418_v31 = vadd.s32 240, %v7406_v17 }
  0x7c   : > { %6323 = vmatpush.xpose.msk.msra.mxu1 %vm1037_vm0, %v1065_v34  ;;  %6325 = vmatpush.msk.msra.mxu2 %vm1100_vm1, %v1094_v54 }
  0x7d   : > { %6327 = vmatpush.msk.msra.mxu3 %vm1100_vm1, %v1095_v55 }
  0x7f   : > { %6331 = vmatpush.msk.msrb.mxu0 %vm1100_vm1, %v1152_v56 }
  0x80   : > { %6333 = vmatpush.msk.msrb.mxu1 %vm1100_vm1, %v1153_v57 }
  0xeb   : > { %v891_v36 = vpop.f32.mrf.mxu0 }
  0xec   : > { %v892_v37 = vadd.f32 %v891_v36, %v856_v35 }
  0xee   : > { %v911_v38 = vpop.f32.mrf.mxu1 }
  0xef   : > { %v912_v39 = vadd.f32 %v911_v38, %v892_v37 }
  0xf3   : > { %v931_v40 = vpop.f32.mrf.mxu2 }
  0xf4   : > { %v932_v41 = vadd.f32 %v931_v40, %v912_v39  ;;  %v951_v42 = vpop.f32.mrf.mxu3 }
  0xf6   : > { %v952_v43 = vadd.f32 %v951_v42, %v932_v41 }
  0xf7   : > { %v971_v44 = vpop.f32.mrf.mxu0 }
  0xf8   : > { %v972_v45 = vadd.f32 %v971_v44, %v952_v43  ;;  %v991_v46 = vpop.f32.mrf.mxu1 }
  0xfa   : > { %v992_v47 = vadd.f32 %v991_v46, %v972_v45 }
  0xfc   : > { %v1011_v48 = vpop.f32.mrf.mxu2 }
  0xfd   : > { %v1012_v49 = vadd.f32 %v1011_v48, %v992_v47  ;;  %v1031_v50 = vpop.f32.mrf.mxu3 }
  0xff   : > { %v1032_v51 = vadd.f32 %v1031_v50, %v1012_v49 }
 0x101   : > { %6545 = vtanh.f32 %v1032_v51 }
 0x107   : > { %v6546_v52 = vpop.eup %6545 }
 0x108   : > { %6322 = vmatmul.msk.f32.vlgmr.msra.gmra.mxu0 %vm1037_vm0, %v6546_v52  ;;  %6324 = vmatmul.msk.f32.vlgmr.msra.gmra.mxu1 %vm1037_vm0, %v6546_v52 }
 0x185   : > { %v1061_v60 = vpop.f32.mrf.mxu0  ;;  %v1087_v61 = vpop.f32.mrf.mxu1 }
 0x186   : > { %v1062_v62 = vadd.f32 %v1061_v60, %v1036_v58  ;;  %v1088_v63 = vadd.f32 %v1087_v61, %v1066_v59 }
 0x188   : > { %6547 = vtanh.f32 %v1062_v62 }
 0x189   : > { %6549 = vtanh.f32 %v1088_v63 }
 0x18e   : > { %v6548_v0 = vpop.eup %6547 }
 0x18f   : > { %v6550_v1 = vpop.eup %6549  ;;  %6326 = vmatmul.msk.f32.vlgmr.msra.gmra.mxu2 %vm1096_vm2, %v6548_v0  ;;  %6328 = vmatmul.msk.f32.vlgmr.msra.gmra.mxu3 %vm1096_vm2, %v6548_v0 }
 0x190   : > { %6332 = vmatmul.msk.f32.vlgmr.msrb.gmra.mxu0 %vm1096_vm2, %v6550_v1  ;;  %6334 = vmatmul.msk.f32.vlgmr.msrb.gmra.mxu1 %vm1096_vm2, %v6550_v1  ;;  %v7469_v1 = vadd.s32 104, %v7406_v17 }
 0x20d   : > { %v1178_v2 = vpop.f32.mrf.mxu0  ;;  %v1198_v3 = vpop.f32.mrf.mxu1 }
 0x20e   : > { %v1179_v4 = vadd.f32 1.0, %v1178_v2  ;;  %v1199_v5 = vadd.f32 1.0, %v1198_v3 }
 0x210   : > { %v1201_v6 = vmul.f32 16.0, %v1179_v4  ;;  %v1202_v7 = vmul.f32 16.0, %v1199_v5 }
 0x212   : > { %v6335_v9 = vadd.f32 -1.0, %v1201_v6  ;;  %v6336_v10 = vadd.f32 -1.0, %v1202_v7  ;;  %v1122_v11 = vpop.f32.mrf.mxu2  ;;  %v1142_v12 = vpop.f32.mrf.mxu3 }
 0x213   : > { %v1123_v13 = vadd.f32 1.0, %v1122_v11  ;;  %v1143_v14 = vadd.f32 1.0, %v1142_v12 }
 0x214   : > { %v1205_v15 = vmul.f32 0.5, %v6335_v9  ;;  %v1206_v16 = vmul.f32 0.5, %v6336_v10  ;;  %v7488_v10 = vadd.s32 232, %v7406_v17 }
 0x215   : > { %v1145_v18 = vmul.f32 16.0, %v1123_v13  ;;  %v1146_v19 = vmul.f32 16.0, %v1143_v14 }
 0x216   : > { %v1209_v20 = vfloor.f32 %v1205_v15  ;;  %v1210_v21 = vfloor.f32 %v1206_v16 }
 0x217   : > { %v6329_v22 = vadd.f32 -1.0, %v1145_v18  ;;  %v6330_v23 = vadd.f32 -1.0, %v1146_v19 }
 0x218   : > { %v1213_v24 = vsub.f32 %v1205_v15, %v1209_v20  ;;  %vm1231_vm3 = vcmp.ge.f32.partialorder %v1209_v20, 0.0  ;;  %vm1233_vm4 = vcmp.le.f32.partialorder %v1209_v20, 15.0  ;;  %vm1237_vm5 = vcmp.ge.f32.partialorder %v1209_v20, -1.0 }
 0x219   : > { %v1149_v28 = vmul.f32 0.5, %v6329_v22  ;;  %v1267_v29 = vmul.f32 16.0, %v1209_v20  ;;  %vm1239_vm6 = vcmp.le.f32.partialorder %v1209_v20, 14.0  ;;  %v1150_v30 = vmul.f32 0.5, %v6330_v23  ;;  %vm7420_vm7 = vmand %vm1231_vm3, %vm1233_vm4 }
 0x21a   : > { %v1214_v32 = vsub.f32 %v1206_v16, %v1210_v21  ;;  %vm1232_vm8 = vcmp.ge.f32.partialorder %v1210_v21, 0.0  ;;  %vm1234_vm9 = vcmp.le.f32.partialorder %v1210_v21, 15.0  ;;  %v1217_v35 = vsub.f32 1.0, %v1213_v24  ;;  %vm7424_vm10 = vmand %vm1237_vm5, %vm1239_vm6 }
 0x21b   : > { %v1207_v33 = vfloor.f32 %v1149_v28  ;;  %v1208_v37 = vfloor.f32 %v1150_v30  ;;  %vm1238_vm11 = vcmp.ge.f32.partialorder %v1210_v21, -1.0  ;;  %vm1240_vm12 = vcmp.le.f32.partialorder %v1210_v21, 14.0  ;;  %vm7428_vm0 = vmand %vm1232_vm8, %vm1234_vm9 }
 0x21c   : > { %v1268_v40 = vmul.f32 16.0, %v1210_v21  ;;  %v1218_v44 = vsub.f32 1.0, %v1214_v32  ;;  %vm7442_vm4 = vmand %vm1238_vm11, %vm1240_vm12 }
 0x21d   : > { %v1211_v38 = vsub.f32 %v1149_v28, %v1207_v33  ;;  %vm1219_vm13 = vcmp.ge.f32.partialorder %v1207_v33, 0.0  ;;  %vm1221_vm14 = vcmp.le.f32.partialorder %v1207_v33, 15.0  ;;  %vm1225_vm15 = vcmp.ge.f32.partialorder %v1207_v33, -1.0 }
 0x21e   : > { %vm7432_vm1 = vmand %vm1219_vm13, %vm1221_vm14  ;;  %vm1227_vm2 = vcmp.le.f32.partialorder %v1207_v33, 14.0  ;;  %v1269_v42 = vadd.f32 %v1267_v29, %v1207_v33  ;;  %v1212_v43 = vsub.f32 %v1150_v30, %v1208_v37  ;;  %vm1220_vm9 = vcmp.ge.f32.partialorder %v1208_v37, 0.0 }
 0x21f   : > { %v1215_v45 = vsub.f32 1.0, %v1211_v38  ;;  %vm7436_vm3 = vmand %vm1225_vm15, %vm1227_vm2  ;;  %v1251_v47 = vmul.f32 %v1217_v35, %v1211_v38  ;;  %v1263_v48 = vmul.f32 %v1213_v24, %v1211_v38  ;;  %vm1222_vm11 = vcmp.le.f32.partialorder %v1208_v37, 15.0 }
 0x220   : > { %vm1243_vm5 = vmand %vm7420_vm7, %vm7432_vm1  ;;  %vm6341_vm6 = vcmp.lt.s32.totalorder %v1269_v42, 0  ;;  %v6342_v50 = vceil.f32 %v1269_v42  ;;  %v6343_v51 = vfloor.f32 %v1269_v42  ;;  %v1216_v52 = vsub.f32 1.0, %v1212_v43 }
 0x221   : > { %v1245_v53 = vmul.f32 %v1217_v35, %v1215_v45  ;;  %vm1249_vm8 = vmand %vm7420_vm7, %vm7436_vm3  ;;  %v1257_v54 = vmul.f32 %v1215_v45, %v1213_v24  ;;  %vm1226_vm13 = vcmp.ge.f32.partialorder %v1208_v37, -1.0  ;;  %vm1228_vm14 = vcmp.le.f32.partialorder %v1208_v37, 14.0 }
 0x222   : > { %v1253_v55 = vsel %vm1249_vm8, %v1251_v47, 0.0  ;;  %vm1255_vm12 = vmand %vm7424_vm10, %vm7432_vm1  ;;  %v6344_v56 = vsel %vm6341_vm6, %v6342_v50, %v6343_v51  ;;  %v1246_v60 = vmul.f32 %v1218_v44, %v1216_v52  ;;  %v1252_v0 = vmul.f32 %v1218_v44, %v1212_v43 }
 0x223   : > { %v1247_v57 = vsel %vm1243_vm5, %v1245_v53, 0.0  ;;  %v1259_v58 = vsel %vm1255_vm12, %v1257_v54, 0.0  ;;  %vm1261_vm15 = vmand %vm7424_vm10, %vm7436_vm3  ;;  %v6345_v59 = vcvt.f32.s32 %v6344_v56  ;;  %v7462_v62 = vperm.slane %v1253_v55, 0 }
 0x224   : > { %v1265_v61 = vsel %vm1261_vm15, %v1263_v48, 0.0  ;;  %vm7464_vm7 = vmand %vm1220_vm9, %vm1222_vm11  ;;  %v7473_v3 = vperm.slane %v1247_v57, 0  ;;  %v1258_v5 = vmul.f32 %v1216_v52, %v1214_v32  ;;  %v1270_v6 = vadd.f32 %v1268_v40, %v1208_v37 }
 0x225   : > { %v7471_v2 = vperm.slane %v6345_v59, 0  ;;  %vm7475_vm1 = vmand %vm1226_vm13, %vm1228_vm14  ;;  %v7479_v7 = vperm.slane %v1259_v58, 0  ;;  %v7481_v8 = vperm.slane %v1265_v61, 0  ;;  %v1264_v9 = vmul.f32 %v1214_v32, %v1212_v43 }
 0x226   : > { %vm1244_vm10 = vmand %vm7428_vm0, %vm7464_vm7  ;;  %vm6346_vm3 = vcmp.lt.s32.totalorder %v1270_v6, 0  ;;  %v6347_v12 = vceil.f32 %v1270_v6  ;;  %v6348_v13 = vfloor.f32 %v1270_v6 }
 0x227   : > { %v1248_v11 = vsel %vm1244_vm10, %v1246_v60, 0.0  ;;  %vm1250_vm2 = vmand %vm7428_vm0, %vm7475_vm1  ;;  %v1338_v16 = vsub.s32 %v7409_v25, %v7471_v2  ;;  %v1370_v18 = vsub.s32 %v7412_v26, %v7471_v2  ;;  %v7512_v22 = vsub.s32 %v7415_v27, %v7471_v2 }
 0x228   : > { %v1254_v14 = vsel %vm1250_vm2, %v1252_v0, 0.0  ;;  %vm1256_vm5 = vmand %vm7442_vm4, %vm7464_vm7  ;;  %v7498_v15 = vperm.slane %v1248_v11, 0  ;;  %v6349_v20 = vsel %vm6346_vm3, %v6347_v12, %v6348_v13  ;;  %v1368_v60 = vsub.s32 %v7418_v31, %v7471_v2 }
 0x229   : > { %v1260_v19 = vsel %vm1256_vm5, %v1258_v5, 0.0  ;;  %vm1262_vm0 = vmand %vm7442_vm4, %vm7475_vm1  ;;  %v7508_v21 = vperm.slane %v1254_v14, 0  ;;  %v6350_v24 = vcvt.f32.s32 %v6349_v20  ;;  %vm1402_vm6 = vcmp.eq.s32.totalorder %v1338_v16, 0 }
 0x22a   : > { %v1266_v23 = vsel %vm1262_vm0, %v1264_v9, 0.0  ;;  %v7514_v28 = vperm.slane %v1260_v19, 0  ;;  %v1468_v30 = vsel %vm1402_vm6, %v7473_v3, 0.0  ;;  %vm1532_vm8 = vcmp.eq.s32.totalorder %v1338_v16, 1 }
 0x22b   : > { %v7516_v29 = vperm.slane %v1266_v23, 0  ;;  %vm1726_vm9 = vcmp.eq.s32.totalorder %v1338_v16, 16  ;;  %v7519_v32 = vperm.slane %v6350_v24, 0  ;;  %v1598_v33 = vsel %vm1532_vm8, %v7462_v62, 0.0 }
 0x22c   : > { %v1792_v34 = vsel %vm1726_vm9, %v7479_v7, 0.0  ;;  %vm1920_vm4 = vcmp.eq.s32.totalorder %v1338_v16, 17  ;;  %v1662_v35 = vadd.f32 %v1598_v33, %v1468_v30  ;;  %vm1434_vm11 = vcmp.eq.s32.totalorder %v1370_v18, 0 }
 0x22d   : > { %v1986_v36 = vsel %vm1920_vm4, %v7481_v8, 0.0  ;;  %vm1564_vm12 = vcmp.eq.s32.totalorder %v1370_v18, 1  ;;  %v1500_v37 = vsel %vm1434_vm11, %v7473_v3, 0.0  ;;  %vm1758_vm13 = vcmp.eq.s32.totalorder %v1370_v18, 16 }
 0x22e   : > { %v1630_v38 = vsel %vm1564_vm12, %v7462_v62, 0.0  ;;  %vm1952_vm14 = vcmp.eq.s32.totalorder %v1370_v18, 17  ;;  %v1856_v39 = vadd.f32 %v1792_v34, %v1662_v35  ;;  %v1824_v41 = vsel %vm1758_vm13, %v7479_v7, 0.0 }
 0x22f   : > { %v1694_v40 = vadd.f32 %v1630_v38, %v1500_v37  ;;  %v2018_v42 = vsel %vm1952_vm14, %v7481_v8, 0.0  ;;  %v1339_v43 = vsub.s32 %v7409_v25, %v7519_v32  ;;  %v1371_v44 = vsub.s32 %v7412_v26, %v7519_v32 }
 0x230   : > { %vm1400_vm15 = vcmp.eq.s32.totalorder %v7512_v22, 0  ;;  %vm1530_vm7 = vcmp.eq.s32.totalorder %v7512_v22, 1  ;;  %v2050_v45 = vadd.f32 %v1986_v36, %v1856_v39  ;;  %vm1724_vm9 = vcmp.eq.s32.totalorder %v7512_v22, 16 }
 0x231   : > { %v1888_v46 = vadd.f32 %v1824_v41, %v1694_v40  ;;  %v1466_v47 = vsel %vm1400_vm15, %v7473_v3, 0.0  ;;  %v1596_v48 = vsel %vm1530_vm7, %v7462_v62, 0.0  ;;  %vm1403_vm1 = vcmp.eq.s32.totalorder %v1339_v43, 0 }
 0x232   : > { %vm1533_vm10 = vcmp.eq.s32.totalorder %v1339_v43, 1  ;;  %vm1727_vm2 = vcmp.eq.s32.totalorder %v1339_v43, 16  ;;  %vm1921_vm3 = vcmp.eq.s32.totalorder %v1339_v43, 17  ;;  %2086 = vmatpush.msrb.mxu2 %v2050_v45  ;;  %v1469_v25 = vsel %vm1403_vm1, %v7498_v15, 0.0 }
 0x233   : > { %v2082_v49 = vadd.f32 %v2018_v42, %v1888_v46  ;;  %v1599_v26 = vsel %vm1533_vm10, %v7508_v21, 0.0  ;;  %v1793_v50 = vsel %vm1727_vm2, %v7514_v28, 0.0  ;;  %v1987_v52 = vsel %vm1921_vm3, %v7516_v29, 0.0 }
 0x234   : > { %v1663_v51 = vadd.f32 %v1599_v26, %v1469_v25  ;;  %vm1435_vm5 = vcmp.eq.s32.totalorder %v1371_v44, 0  ;;  %vm1565_vm0 = vcmp.eq.s32.totalorder %v1371_v44, 1  ;;  %vm1759_vm6 = vcmp.eq.s32.totalorder %v1371_v44, 16 }
 0x235   : > { %2106 = vmatpush.msrb.mxu3 %v2082_v49  ;;  %v1501_v53 = vsel %vm1435_vm5, %v7498_v15, 0.0  ;;  %v1631_v54 = vsel %vm1565_vm0, %v7508_v21, 0.0  ;;  %vm1953_vm8 = vcmp.eq.s32.totalorder %v1371_v44, 17  ;;  %v1825_v57 = vsel %vm1759_vm6, %v7514_v28, 0.0 }
 0x236   : > { %v1857_v55 = vadd.f32 %v1793_v50, %v1663_v51  ;;  %v1695_v56 = vadd.f32 %v1631_v54, %v1501_v53  ;;  %v2019_v58 = vsel %vm1953_vm8, %v7516_v29, 0.0  ;;  %v1660_v59 = vadd.f32 %v1596_v48, %v1466_v47 }
 0x237   : > { %vm1918_vm4 = vcmp.eq.s32.totalorder %v7512_v22, 17  ;;  %v1790_v0 = vsel %vm1724_vm9, %v7479_v7, 0.0  ;;  %vm1432_vm11 = vcmp.eq.s32.totalorder %v1368_v60, 0  ;;  %vm1562_vm12 = vcmp.eq.s32.totalorder %v1368_v60, 1 }
 0x238   : > { %v2051_v61 = vadd.f32 %v1987_v52, %v1857_v55  ;;  %v1889_v63 = vadd.f32 %v1825_v57, %v1695_v56  ;;  %v1984_v4 = vsel %vm1918_vm4, %v7481_v8, 0.0  ;;  %v1854_v5 = vadd.f32 %v1790_v0, %v1660_v59 }
 0x239   : > { %vm1756_vm13 = vcmp.eq.s32.totalorder %v1368_v60, 16  ;;  %v1498_v9 = vsel %vm1432_vm11, %v7473_v3, 0.0  ;;  %v1628_v11 = vsel %vm1562_vm12, %v7462_v62, 0.0  ;;  %vm1950_vm14 = vcmp.eq.s32.totalorder %v1368_v60, 17 }
 0x23a   : > { %2126 = vmatpush.msra.mxu0 %v2051_v61  ;;  %v2083_v6 = vadd.f32 %v2019_v58, %v1889_v63  ;;  %v1822_v12 = vsel %vm1756_vm13, %v7479_v7, 0.0  ;;  %v2048_v13 = vadd.f32 %v1984_v4, %v1854_v5  ;;  %v1692_v14 = vadd.f32 %v1628_v11, %v1498_v9 }
 0x23b   : > { %v1337_v16 = vsub.s32 %v7415_v27, %v7519_v32  ;;  %v2016_v18 = vsel %vm1950_vm14, %v7481_v8, 0.0  ;;  %v1369_v19 = vsub.s32 %v7418_v31, %v7519_v32  ;;  %v1334_v20 = vsub.s32 %v7469_v1, %v7471_v2 }
 0x23c   : > { %2146 = vmatpush.msra.mxu1 %v2083_v6  ;;  %v1366_v22 = vsub.s32 %v7488_v10, %v7471_v2  ;;  %2087 = vmatpush.msrb.mxu2 %v2048_v13  ;;  %v1886_v23 = vadd.f32 %v1822_v12, %v1692_v14  ;;  %v1335_v52 = vsub.s32 %v7469_v1, %v7519_v32  ;;  %v1286_v56 = vadd.s32 96, %v7406_v17 }
 0x23d   : > { %vm1401_vm15 = vcmp.eq.s32.totalorder %v1337_v16, 0  ;;  %vm1531_vm7 = vcmp.eq.s32.totalorder %v1337_v16, 1  ;;  %vm1725_vm1 = vcmp.eq.s32.totalorder %v1337_v16, 16  ;;  %vm1919_vm10 = vcmp.eq.s32.totalorder %v1337_v16, 17 }
 0x23e   : > { %v1467_v24 = vsel %vm1401_vm15, %v7498_v15, 0.0  ;;  %v1597_v27 = vsel %vm1531_vm7, %v7508_v21, 0.0  ;;  %v1791_v30 = vsel %vm1725_vm1, %v7514_v28, 0.0  ;;  %v2080_v33 = vadd.f32 %v2016_v18, %v1886_v23 }
 0x23f   : > { %v1661_v31 = vadd.f32 %v1597_v27, %v1467_v24  ;;  %v1985_v34 = vsel %vm1919_vm10, %v7516_v29, 0.0  ;;  %vm1433_vm2 = vcmp.eq.s32.totalorder %v1369_v19, 0  ;;  %vm1563_vm3 = vcmp.eq.s32.totalorder %v1369_v19, 1 }
 0x240   : > { %v1499_v35 = vsel %vm1433_vm2, %v7498_v15, 0.0  ;;  %vm1757_vm5 = vcmp.eq.s32.totalorder %v1369_v19, 16  ;;  %vm1951_vm0 = vcmp.eq.s32.totalorder %v1369_v19, 17  ;;  %2107 = vmatpush.msrb.mxu3 %v2080_v33  ;;  %v1629_v37 = vsel %vm1563_vm3, %v7508_v21, 0.0 }
 0x241   : > { %v1855_v36 = vadd.f32 %v1791_v30, %v1661_v31  ;;  %v1823_v38 = vsel %vm1757_vm5, %v7514_v28, 0.0  ;;  %v2017_v39 = vsel %vm1951_vm0, %v7516_v29, 0.0  ;;  %v1693_v40 = vadd.f32 %v1629_v37, %v1499_v35 }
 0x242   : > { %vm1398_vm6 = vcmp.eq.s32.totalorder %v1334_v20, 0  ;;  %vm1528_vm8 = vcmp.eq.s32.totalorder %v1334_v20, 1  ;;  %vm1722_vm9 = vcmp.eq.s32.totalorder %v1334_v20, 16  ;;  %vm1916_vm4 = vcmp.eq.s32.totalorder %v1334_v20, 17 }
 0x243   : > { %v2049_v41 = vadd.f32 %v1985_v34, %v1855_v36  ;;  %v1464_v42 = vsel %vm1398_vm6, %v7473_v3, 0.0  ;;  %v1594_v43 = vsel %vm1528_vm8, %v7462_v62, 0.0  ;;  %v1788_v44 = vsel %vm1722_vm9, %v7479_v7, 0.0 }
 0x244   : > { %v1887_v45 = vadd.f32 %v1823_v38, %v1693_v40  ;;  %v1658_v46 = vadd.f32 %v1594_v43, %v1464_v42  ;;  %vm1430_vm11 = vcmp.eq.s32.totalorder %v1366_v22, 0  ;;  %v1982_v47 = vsel %vm1916_vm4, %v7481_v8, 0.0 }
 0x245   : > { %2127 = vmatpush.msra.mxu0 %v2049_v41  ;;  %v1496_v48 = vsel %vm1430_vm11, %v7473_v3, 0.0  ;;  %vm1560_vm12 = vcmp.eq.s32.totalorder %v1366_v22, 1  ;;  %vm1754_vm13 = vcmp.eq.s32.totalorder %v1366_v22, 16  ;;  %vm1948_vm14 = vcmp.eq.s32.totalorder %v1366_v22, 17 }
 0x246   : > { %v2081_v49 = vadd.f32 %v2017_v39, %v1887_v45  ;;  %v1852_v25 = vadd.f32 %v1788_v44, %v1658_v46  ;;  %v1626_v26 = vsel %vm1560_vm12, %v7462_v62, 0.0  ;;  %v1820_v50 = vsel %vm1754_vm13, %v7479_v7, 0.0 }
 0x247   : > { %v1690_v51 = vadd.f32 %v1626_v26, %v1496_v48  ;;  %v1367_v53 = vsub.s32 %v7488_v10, %v7519_v32  ;;  %v2014_v55 = vsel %vm1948_vm14, %v7481_v8, 0.0  ;;  %v1302_v57 = vadd.s32 224, %v7406_v17 }
 0x248   : > { %2147 = vmatpush.msra.mxu1 %v2081_v49  ;;  %v2046_v54 = vadd.f32 %v1982_v47, %v1852_v25  ;;  %vm1399_vm15 = vcmp.eq.s32.totalorder %v1335_v52, 0  ;;  %vm1529_vm7 = vcmp.eq.s32.totalorder %v1335_v52, 1  ;;  %vm1723_vm1 = vcmp.eq.s32.totalorder %v1335_v52, 16 }
 0x249   : > { %v1884_v58 = vadd.f32 %v1820_v50, %v1690_v51  ;;  %v1465_v59 = vsel %vm1399_vm15, %v7498_v15, 0.0  ;;  %v1595_v1 = vsel %vm1529_vm7, %v7508_v21, 0.0  ;;  %v1789_v60 = vsel %vm1723_vm1, %v7514_v28, 0.0 }
 0x24a   : > { %2088 = vmatpush.msrb.mxu2 %v2046_v54  ;;  %vm1917_vm10 = vcmp.eq.s32.totalorder %v1335_v52, 17  ;;  %v1659_v61 = vadd.f32 %v1595_v1, %v1465_v59  ;;  %vm1431_vm2 = vcmp.eq.s32.totalorder %v1367_v53, 0  ;;  %vm1561_vm3 = vcmp.eq.s32.totalorder %v1367_v53, 1 }
 0x24b   : > { %v2078_v10 = vadd.f32 %v2014_v55, %v1884_v58  ;;  %v1983_v63 = vsel %vm1917_vm10, %v7516_v29, 0.0  ;;  %v1497_v0 = vsel %vm1431_vm2, %v7498_v15, 0.0  ;;  %vm1755_vm5 = vcmp.eq.s32.totalorder %v1367_v53, 16 }
 0x24c   : > { %vm1949_vm0 = vcmp.eq.s32.totalorder %v1367_v53, 17  ;;  %v1853_v4 = vadd.f32 %v1789_v60, %v1659_v61  ;;  %v1627_v5 = vsel %vm1561_vm3, %v7508_v21, 0.0  ;;  %v1821_v6 = vsel %vm1755_vm5, %v7514_v28, 0.0 }
 0x24d   : > { %2108 = vmatpush.msrb.mxu3 %v2078_v10  ;;  %v2015_v9 = vsel %vm1949_vm0, %v7516_v29, 0.0  ;;  %v1691_v11 = vadd.f32 %v1627_v5, %v1497_v0  ;;  %v1332_v12 = vsub.s32 %v1286_v56, %v7471_v2  ;;  %v1364_v13 = vsub.s32 %v1302_v57, %v7471_v2 }
 0x24e   : > { %v1333_v14 = vsub.s32 %v1286_v56, %v7519_v32  ;;  %v2047_v16 = vadd.f32 %v1983_v63, %v1853_v4  ;;  %v1365_v18 = vsub.s32 %v1302_v57, %v7519_v32  ;;  %v1285_v19 = vadd.s32 88, %v7406_v17 }
 0x24f   : > { %v1301_v20 = vadd.s32 216, %v7406_v17  ;;  %v1885_v22 = vadd.f32 %v1821_v6, %v1691_v11  ;;  %vm1396_vm6 = vcmp.eq.s32.totalorder %v1332_v12, 0  ;;  %vm1526_vm8 = vcmp.eq.s32.totalorder %v1332_v12, 1 }
 0x250   : > { %vm1720_vm9 = vcmp.eq.s32.totalorder %v1332_v12, 16  ;;  %2128 = vmatpush.msra.mxu0 %v2047_v16  ;;  %v1462_v23 = vsel %vm1396_vm6, %v7473_v3, 0.0  ;;  %v1592_v24 = vsel %vm1526_vm8, %v7462_v62, 0.0  ;;  %vm1914_vm4 = vcmp.eq.s32.totalorder %v1332_v12, 17 }
 0x251   : > { %v1786_v27 = vsel %vm1720_vm9, %v7479_v7, 0.0  ;;  %v2079_v30 = vadd.f32 %v2015_v9, %v1885_v22  ;;  %v1656_v33 = vadd.f32 %v1592_v24, %v1462_v23  ;;  %v1980_v31 = vsel %vm1914_vm4, %v7481_v8, 0.0 }
 0x252   : > { %vm1428_vm11 = vcmp.eq.s32.totalorder %v1364_v13, 0  ;;  %vm1558_vm12 = vcmp.eq.s32.totalorder %v1364_v13, 1  ;;  %vm1752_vm13 = vcmp.eq.s32.totalorder %v1364_v13, 16  ;;  %vm1946_vm14 = vcmp.eq.s32.totalorder %v1364_v13, 17 }
 0x253   : > { %v1494_v34 = vsel %vm1428_vm11, %v7473_v3, 0.0  ;;  %2148 = vmatpush.msra.mxu1 %v2079_v30  ;;  %v1850_v35 = vadd.f32 %v1786_v27, %v1656_v33  ;;  %v1624_v36 = vsel %vm1558_vm12, %v7462_v62, 0.0  ;;  %v1818_v37 = vsel %vm1752_vm13, %v7479_v7, 0.0 }
 0x254   : > { %v2012_v38 = vsel %vm1946_vm14, %v7481_v8, 0.0  ;;  %v1688_v39 = vadd.f32 %v1624_v36, %v1494_v34  ;;  %vm1397_vm15 = vcmp.eq.s32.totalorder %v1333_v14, 0  ;;  %vm1527_vm7 = vcmp.eq.s32.totalorder %v1333_v14, 1 }
 0x255   : > { %vm1721_vm1 = vcmp.eq.s32.totalorder %v1333_v14, 16  ;;  %v2044_v40 = vadd.f32 %v1980_v31, %v1850_v35  ;;  %v1463_v41 = vsel %vm1397_vm15, %v7498_v15, 0.0  ;;  %v1593_v42 = vsel %vm1527_vm7, %v7508_v21, 0.0 }
 0x256   : > { %v1787_v43 = vsel %vm1721_vm1, %v7514_v28, 0.0  ;;  %v1882_v44 = vadd.f32 %v1818_v37, %v1688_v39  ;;  %v1657_v45 = vadd.f32 %v1593_v42, %v1463_v41  ;;  %vm1915_vm10 = vcmp.eq.s32.totalorder %v1333_v14, 17 }
 0x257   : > { %vm1429_vm2 = vcmp.eq.s32.totalorder %v1365_v18, 0  ;;  %2089 = vmatpush.msrb.mxu2 %v2044_v40  ;;  %v1981_v46 = vsel %vm1915_vm10, %v7516_v29, 0.0  ;;  %vm1559_vm3 = vcmp.eq.s32.totalorder %v1365_v18, 1  ;;  %vm1753_vm5 = vcmp.eq.s32.totalorder %v1365_v18, 16 }
 0x258   : > { %v1495_v47 = vsel %vm1429_vm2, %v7498_v15, 0.0  ;;  %v2076_v48 = vadd.f32 %v2012_v38, %v1882_v44  ;;  %v1851_v49 = vadd.f32 %v1787_v43, %v1657_v45  ;;  %v1625_v25 = vsel %vm1559_vm3, %v7508_v21, 0.0 }
 0x259   : > { %v1819_v26 = vsel %vm1753_vm5, %v7514_v28, 0.0  ;;  %v1689_v50 = vadd.f32 %v1625_v25, %v1495_v47  ;;  %vm1947_vm0 = vcmp.eq.s32.totalorder %v1365_v18, 17  ;;  %v1330_v51 = vsub.s32 %v1285_v19, %v7471_v2 }
 0x25a   : > { %v1362_v52 = vsub.s32 %v1301_v20, %v7471_v2  ;;  %2109 = vmatpush.msrb.mxu3 %v2076_v48  ;;  %v2045_v53 = vadd.f32 %v1981_v46, %v1851_v49  ;;  %v2013_v54 = vsel %vm1947_vm0, %v7516_v29, 0.0  ;;  %v1331_v55 = vsub.s32 %v1285_v19, %v7519_v32 }
 0x25b   : > { %v1363_v56 = vsub.s32 %v1301_v20, %v7519_v32  ;;  %v1883_v57 = vadd.f32 %v1819_v26, %v1689_v50  ;;  %vm1394_vm6 = vcmp.eq.s32.totalorder %v1330_v51, 0  ;;  %vm1524_vm8 = vcmp.eq.s32.totalorder %v1330_v51, 1 }
 0x25c   : > { %vm1718_vm9 = vcmp.eq.s32.totalorder %v1330_v51, 16  ;;  %2129 = vmatpush.msra.mxu0 %v2045_v53  ;;  %v1460_v58 = vsel %vm1394_vm6, %v7473_v3, 0.0  ;;  %v1590_v59 = vsel %vm1524_vm8, %v7462_v62, 0.0  ;;  %vm1912_vm4 = vcmp.eq.s32.totalorder %v1330_v51, 17 }
 0x25d   : > { %v1784_v1 = vsel %vm1718_vm9, %v7479_v7, 0.0  ;;  %v2077_v60 = vadd.f32 %v2013_v54, %v1883_v57  ;;  %v1654_v10 = vadd.f32 %v1590_v59, %v1460_v58  ;;  %v1978_v61 = vsel %vm1912_vm4, %v7481_v8, 0.0 }
 0x25e   : > { %vm1426_vm11 = vcmp.eq.s32.totalorder %v1362_v52, 0  ;;  %vm1556_vm12 = vcmp.eq.s32.totalorder %v1362_v52, 1  ;;  %vm1750_vm13 = vcmp.eq.s32.totalorder %v1362_v52, 16  ;;  %vm1944_vm14 = vcmp.eq.s32.totalorder %v1362_v52, 17 }
 0x25f   : > { %v1492_v63 = vsel %vm1426_vm11, %v7473_v3, 0.0  ;;  %2149 = vmatpush.msra.mxu1 %v2077_v60  ;;  %v1848_v0 = vadd.f32 %v1784_v1, %v1654_v10  ;;  %v1622_v4 = vsel %vm1556_vm12, %v7462_v62, 0.0  ;;  %v1816_v5 = vsel %vm1750_vm13, %v7479_v7, 0.0 }
 0x260   : > { %v2010_v6 = vsel %vm1944_vm14, %v7481_v8, 0.0  ;;  %v1686_v9 = vadd.f32 %v1622_v4, %v1492_v63  ;;  %vm1395_vm15 = vcmp.eq.s32.totalorder %v1331_v55, 0  ;;  %vm1525_vm7 = vcmp.eq.s32.totalorder %v1331_v55, 1 }
 0x261   : > { %vm1719_vm1 = vcmp.eq.s32.totalorder %v1331_v55, 16  ;;  %v2042_v11 = vadd.f32 %v1978_v61, %v1848_v0  ;;  %v1461_v12 = vsel %vm1395_vm15, %v7498_v15, 0.0  ;;  %v1591_v13 = vsel %vm1525_vm7, %v7508_v21, 0.0 }
 0x262   : > { %v1785_v14 = vsel %vm1719_vm1, %v7514_v28, 0.0  ;;  %v1880_v16 = vadd.f32 %v1816_v5, %v1686_v9  ;;  %v1655_v18 = vadd.f32 %v1591_v13, %v1461_v12  ;;  %vm1913_vm10 = vcmp.eq.s32.totalorder %v1331_v55, 17 }
 0x263   : > { %vm1427_vm2 = vcmp.eq.s32.totalorder %v1363_v56, 0  ;;  %2090 = vmatpush.msrb.mxu2 %v2042_v11  ;;  %v1979_v19 = vsel %vm1913_vm10, %v7516_v29, 0.0  ;;  %vm1557_vm3 = vcmp.eq.s32.totalorder %v1363_v56, 1  ;;  %vm1751_vm5 = vcmp.eq.s32.totalorder %v1363_v56, 16 }
 0x264   : > { %v1493_v20 = vsel %vm1427_vm2, %v7498_v15, 0.0  ;;  %v2074_v22 = vadd.f32 %v2010_v6, %v1880_v16  ;;  %v1849_v23 = vadd.f32 %v1785_v14, %v1655_v18  ;;  %v1623_v24 = vsel %vm1557_vm3, %v7508_v21, 0.0 }
 0x265   : > { %v1817_v27 = vsel %vm1751_vm5, %v7514_v28, 0.0  ;;  %v1687_v30 = vadd.f32 %v1623_v24, %v1493_v20  ;;  %vm1945_vm0 = vcmp.eq.s32.totalorder %v1363_v56, 17  ;;  %v1284_v33 = vadd.s32 80, %v7406_v17 }
 0x266   : > { %v1300_v31 = vadd.s32 208, %v7406_v17  ;;  %2110 = vmatpush.msrb.mxu3 %v2074_v22  ;;  %v2043_v34 = vadd.f32 %v1979_v19, %v1849_v23  ;;  %v2011_v35 = vsel %vm1945_vm0, %v7516_v29, 0.0  ;;  %v1283_v36 = vadd.s32 72, %v7406_v17 }
 0x267   : > { %v7638_v37 = vadd.s32 200, %v7406_v17  ;;  %v1881_v38 = vadd.f32 %v1817_v27, %v1687_v30  ;;  %v1328_v39 = vsub.s32 %v1284_v33, %v7471_v2  ;;  %v1329_v41 = vsub.s32 %v1284_v33, %v7519_v32 }
 0x268   : > { %v1360_v40 = vsub.s32 %v1300_v31, %v7471_v2  ;;  %2130 = vmatpush.msra.mxu0 %v2043_v34  ;;  %v1361_v42 = vsub.s32 %v1300_v31, %v7519_v32  ;;  %v1326_v43 = vsub.s32 %v1283_v36, %v7471_v2  ;;  %v7650_v45 = vsub.s32 %v1283_v36, %v7519_v32 }
 0x269   : > { %v7647_v44 = vsub.s32 %v7638_v37, %v7471_v2  ;;  %v2075_v46 = vadd.f32 %v2011_v35, %v1881_v38  ;;  %vm1392_vm6 = vcmp.eq.s32.totalorder %v1328_v39, 0  ;;  %vm1522_vm8 = vcmp.eq.s32.totalorder %v1328_v39, 1 }
 0x26a   : > { %vm1716_vm9 = vcmp.eq.s32.totalorder %v1328_v39, 16  ;;  %v1458_v47 = vsel %vm1392_vm6, %v7473_v3, 0.0  ;;  %v1588_v48 = vsel %vm1522_vm8, %v7462_v62, 0.0  ;;  %vm1910_vm4 = vcmp.eq.s32.totalorder %v1328_v39, 17 }
 0x26b   : > { %v1782_v49 = vsel %vm1716_vm9, %v7479_v7, 0.0  ;;  %2150 = vmatpush.msra.mxu1 %v2075_v46  ;;  %v1652_v25 = vadd.f32 %v1588_v48, %v1458_v47  ;;  %v1976_v26 = vsel %vm1910_vm4, %v7481_v8, 0.0  ;;  %vm1424_vm11 = vcmp.eq.s32.totalorder %v1360_v40, 0 }
 0x26c   : > { %vm1554_vm12 = vcmp.eq.s32.totalorder %v1360_v40, 1  ;;  %v1490_v50 = vsel %vm1424_vm11, %v7473_v3, 0.0  ;;  %vm1748_vm13 = vcmp.eq.s32.totalorder %v1360_v40, 16  ;;  %vm1942_vm14 = vcmp.eq.s32.totalorder %v1360_v40, 17 }
 0x26d   : > { %v1620_v51 = vsel %vm1554_vm12, %v7462_v62, 0.0  ;;  %v1846_v52 = vadd.f32 %v1782_v49, %v1652_v25  ;;  %v1814_v54 = vsel %vm1748_vm13, %v7479_v7, 0.0  ;;  %v2008_v55 = vsel %vm1942_vm14, %v7481_v8, 0.0 }
 0x26e   : > { %v1684_v53 = vadd.f32 %v1620_v51, %v1490_v50  ;;  %vm1393_vm15 = vcmp.eq.s32.totalorder %v1329_v41, 0  ;;  %vm1523_vm7 = vcmp.eq.s32.totalorder %v1329_v41, 1  ;;  %vm1717_vm1 = vcmp.eq.s32.totalorder %v1329_v41, 16 }
 0x26f   : > { %vm1911_vm10 = vcmp.eq.s32.totalorder %v1329_v41, 17  ;;  %v2040_v56 = vadd.f32 %v1976_v26, %v1846_v52  ;;  %v1459_v58 = vsel %vm1393_vm15, %v7498_v15, 0.0  ;;  %v1589_v59 = vsel %vm1523_vm7, %v7508_v21, 0.0 }
 0x270   : > { %v1878_v57 = vadd.f32 %v1814_v54, %v1684_v53  ;;  %v1653_v1 = vadd.f32 %v1589_v59, %v1459_v58  ;;  %v1783_v60 = vsel %vm1717_vm1, %v7514_v28, 0.0  ;;  %v1977_v10 = vsel %vm1911_vm10, %v7516_v29, 0.0 }
 0x271   : > { %vm1425_vm2 = vcmp.eq.s32.totalorder %v1361_v42, 0  ;;  %2091 = vmatpush.msrb.mxu2 %v2040_v56  ;;  %vm1555_vm3 = vcmp.eq.s32.totalorder %v1361_v42, 1  ;;  %vm1749_vm5 = vcmp.eq.s32.totalorder %v1361_v42, 16  ;;  %vm1943_vm0 = vcmp.eq.s32.totalorder %v1361_v42, 17 }
 0x272   : > { %v2072_v61 = vadd.f32 %v2008_v55, %v1878_v57  ;;  %v1491_v63 = vsel %vm1425_vm2, %v7498_v15, 0.0  ;;  %v1847_v0 = vadd.f32 %v1783_v60, %v1653_v1  ;;  %v1621_v4 = vsel %vm1555_vm3, %v7508_v21, 0.0 }
 0x273   : > { %v1815_v5 = vsel %vm1749_vm5, %v7514_v28, 0.0  ;;  %v1685_v6 = vadd.f32 %v1621_v4, %v1491_v63  ;;  %v2009_v9 = vsel %vm1943_vm0, %v7516_v29, 0.0  ;;  %vm1390_vm6 = vcmp.eq.s32.totalorder %v1326_v43, 0 }
 0x274   : > { %2111 = vmatpush.msrb.mxu3 %v2072_v61  ;;  %vm1520_vm8 = vcmp.eq.s32.totalorder %v1326_v43, 1  ;;  %v2041_v11 = vadd.f32 %v1977_v10, %v1847_v0  ;;  %v1456_v12 = vsel %vm1390_vm6, %v7473_v3, 0.0  ;;  %vm1714_vm9 = vcmp.eq.s32.totalorder %v1326_v43, 16 }
 0x275   : > { %v1586_v13 = vsel %vm1520_vm8, %v7462_v62, 0.0  ;;  %v1879_v14 = vadd.f32 %v1815_v5, %v1685_v6  ;;  %v1780_v18 = vsel %vm1714_vm9, %v7479_v7, 0.0  ;;  %vm1908_vm4 = vcmp.eq.s32.totalorder %v1326_v43, 17 }
 0x276   : > { %v1650_v16 = vadd.f32 %v1586_v13, %v1456_v12  ;;  %2131 = vmatpush.msra.mxu0 %v2041_v11  ;;  %v1974_v19 = vsel %vm1908_vm4, %v7481_v8, 0.0  ;;  %vm1422_vm11 = vcmp.eq.s32.totalorder %v7647_v44, 0  ;;  %vm1552_vm12 = vcmp.eq.s32.totalorder %v7647_v44, 1 }
 0x277   : > { %vm1746_vm13 = vcmp.eq.s32.totalorder %v7647_v44, 16  ;;  %v2073_v20 = vadd.f32 %v2009_v9, %v1879_v14  ;;  %v1488_v23 = vsel %vm1422_vm11, %v7473_v3, 0.0  ;;  %v1618_v24 = vsel %vm1552_vm12, %v7462_v62, 0.0 }
 0x278   : > { %v1844_v22 = vadd.f32 %v1780_v18, %v1650_v16  ;;  %v1682_v27 = vadd.f32 %v1618_v24, %v1488_v23  ;;  %v1812_v30 = vsel %vm1746_vm13, %v7479_v7, 0.0  ;;  %vm1940_vm14 = vcmp.eq.s32.totalorder %v7647_v44, 17 }
 0x279   : > { %vm1391_vm15 = vcmp.eq.s32.totalorder %v7650_v45, 0  ;;  %2151 = vmatpush.msra.mxu1 %v2073_v20  ;;  %v2006_v31 = vsel %vm1940_vm14, %v7481_v8, 0.0  ;;  %vm1521_vm7 = vcmp.eq.s32.totalorder %v7650_v45, 1  ;;  %vm1715_vm1 = vcmp.eq.s32.totalorder %v7650_v45, 16 }
 0x27a   : > { %v2038_v33 = vadd.f32 %v1974_v19, %v1844_v22  ;;  %v1457_v34 = vsel %vm1391_vm15, %v7498_v15, 0.0  ;;  %v1876_v35 = vadd.f32 %v1812_v30, %v1682_v27  ;;  %v1587_v36 = vsel %vm1521_vm7, %v7508_v21, 0.0 }
 0x27b   : > { %vm1909_vm10 = vcmp.eq.s32.totalorder %v7650_v45, 17  ;;  %v1651_v38 = vadd.f32 %v1587_v36, %v1457_v34  ;;  %v1781_v39 = vsel %vm1715_vm1, %v7514_v28, 0.0  ;;  %v1359_v41 = vsub.s32 %v7638_v37, %v7519_v32 }
 0x27c   : > { %2092 = vmatpush.msrb.mxu2 %v2038_v33  ;;  %v1975_v40 = vsel %vm1909_vm10, %v7516_v29, 0.0  ;;  %v2070_v42 = vadd.f32 %v2006_v31, %v1876_v35  ;;  %v1282_v43 = vadd.s32 64, %v7406_v17  ;;  %v1298_v44 = vadd.s32 192, %v7406_v17 }
 0x27d   : > { %v7693_v46 = vadd.s32 56, %v7406_v17  ;;  %v1845_v47 = vadd.f32 %v1781_v39, %v1651_v38  ;;  %vm1423_vm2 = vcmp.eq.s32.totalorder %v1359_v41, 0  ;;  %vm1553_vm3 = vcmp.eq.s32.totalorder %v1359_v41, 1 }
 0x27e   : > { %vm1747_vm5 = vcmp.eq.s32.totalorder %v1359_v41, 16  ;;  %2112 = vmatpush.msrb.mxu3 %v2070_v42  ;;  %v1489_v45 = vsel %vm1423_vm2, %v7498_v15, 0.0  ;;  %v1619_v48 = vsel %vm1553_vm3, %v7508_v21, 0.0  ;;  %vm1941_vm0 = vcmp.eq.s32.totalorder %v1359_v41, 17 }
 0x27f   : > { %v1813_v49 = vsel %vm1747_vm5, %v7514_v28, 0.0  ;;  %v2039_v37 = vadd.f32 %v1975_v40, %v1845_v47  ;;  %v1683_v25 = vadd.f32 %v1619_v48, %v1489_v45  ;;  %v2007_v26 = vsel %vm1941_vm0, %v7516_v29, 0.0 }
 0x280   : > { %v1324_v50 = vsub.s32 %v1282_v43, %v7471_v2  ;;  %v1356_v51 = vsub.s32 %v1298_v44, %v7471_v2  ;;  %v1325_v52 = vsub.s32 %v1282_v43, %v7519_v32  ;;  %v1357_v53 = vsub.s32 %v1298_v44, %v7519_v32 }
 0x281   : > { %v1322_v54 = vsub.s32 %v7693_v46, %v7471_v2  ;;  %2132 = vmatpush.msra.mxu0 %v2039_v37  ;;  %v1877_v55 = vadd.f32 %v1813_v49, %v1683_v25  ;;  %v1297_v39 = vadd.s32 184, %v7406_v17  ;;  %v1323_v40 = vsub.s32 %v7693_v46, %v7519_v32 }
 0x282   : > { %vm1388_vm6 = vcmp.eq.s32.totalorder %v1324_v50, 0  ;;  %vm1518_vm8 = vcmp.eq.s32.totalorder %v1324_v50, 1  ;;  %vm1712_vm9 = vcmp.eq.s32.totalorder %v1324_v50, 16  ;;  %vm1906_vm4 = vcmp.eq.s32.totalorder %v1324_v50, 17 }
 0x283   : > { %v1454_v56 = vsel %vm1388_vm6, %v7473_v3, 0.0  ;;  %v1584_v57 = vsel %vm1518_vm8, %v7462_v62, 0.0  ;;  %v1778_v58 = vsel %vm1712_vm9, %v7479_v7, 0.0  ;;  %v2071_v59 = vadd.f32 %v2007_v26, %v1877_v55 }
 0x284   : > { %v1648_v1 = vadd.f32 %v1584_v57, %v1454_v56  ;;  %v1972_v60 = vsel %vm1906_vm4, %v7481_v8, 0.0  ;;  %vm1420_vm11 = vcmp.eq.s32.totalorder %v1356_v51, 0  ;;  %vm1550_vm12 = vcmp.eq.s32.totalorder %v1356_v51, 1 }
 0x285   : > { %v1486_v10 = vsel %vm1420_vm11, %v7473_v3, 0.0  ;;  %vm1744_vm13 = vcmp.eq.s32.totalorder %v1356_v51, 16  ;;  %vm1938_vm14 = vcmp.eq.s32.totalorder %v1356_v51, 17  ;;  %2152 = vmatpush.msra.mxu1 %v2071_v59  ;;  %v1616_v63 = vsel %vm1550_vm12, %v7462_v62, 0.0 }
 0x286   : > { %v1842_v61 = vadd.f32 %v1778_v58, %v1648_v1  ;;  %v1810_v0 = vsel %vm1744_vm13, %v7479_v7, 0.0  ;;  %v2004_v4 = vsel %vm1938_vm14, %v7481_v8, 0.0  ;;  %v1680_v5 = vadd.f32 %v1616_v63, %v1486_v10 }
 0x287   : > { %vm1389_vm15 = vcmp.eq.s32.totalorder %v1325_v52, 0  ;;  %vm1519_vm7 = vcmp.eq.s32.totalorder %v1325_v52, 1  ;;  %vm1713_vm1 = vcmp.eq.s32.totalorder %v1325_v52, 16  ;;  %vm1907_vm10 = vcmp.eq.s32.totalorder %v1325_v52, 17 }
 0x288   : > { %v2036_v6 = vadd.f32 %v1972_v60, %v1842_v61  ;;  %v1455_v9 = vsel %vm1389_vm15, %v7498_v15, 0.0  ;;  %v1585_v11 = vsel %vm1519_vm7, %v7508_v21, 0.0  ;;  %v1779_v12 = vsel %vm1713_vm1, %v7514_v28, 0.0 }
 0x289   : > { %v1874_v13 = vadd.f32 %v1810_v0, %v1680_v5  ;;  %v1649_v14 = vadd.f32 %v1585_v11, %v1455_v9  ;;  %vm1421_vm2 = vcmp.eq.s32.totalorder %v1357_v53, 0  ;;  %v1973_v16 = vsel %vm1907_vm10, %v7516_v29, 0.0 }
 0x28a   : > { %2093 = vmatpush.msrb.mxu2 %v2036_v6  ;;  %v1487_v18 = vsel %vm1421_vm2, %v7498_v15, 0.0  ;;  %vm1551_vm3 = vcmp.eq.s32.totalorder %v1357_v53, 1  ;;  %vm1745_vm5 = vcmp.eq.s32.totalorder %v1357_v53, 16  ;;  %vm1939_vm0 = vcmp.eq.s32.totalorder %v1357_v53, 17 }
 0x28b   : > { %v2068_v19 = vadd.f32 %v2004_v4, %v1874_v13  ;;  %v1843_v20 = vadd.f32 %v1779_v12, %v1649_v14  ;;  %v1617_v22 = vsel %vm1551_vm3, %v7508_v21, 0.0  ;;  %v1811_v23 = vsel %vm1745_vm5, %v7514_v28, 0.0 }
 0x28c   : > { %v1681_v24 = vadd.f32 %v1617_v22, %v1487_v18  ;;  %vm1386_vm6 = vcmp.eq.s32.totalorder %v1322_v54, 0  ;;  %vm1516_vm8 = vcmp.eq.s32.totalorder %v1322_v54, 1  ;;  %v2005_v30 = vsel %vm1939_vm0, %v7516_v29, 0.0 }
 0x28d   : > { %2113 = vmatpush.msrb.mxu3 %v2068_v19  ;;  %v2037_v27 = vadd.f32 %v1973_v16, %v1843_v20  ;;  %v1452_v33 = vsel %vm1386_vm6, %v7473_v3, 0.0  ;;  %v1582_v31 = vsel %vm1516_vm8, %v7462_v62, 0.0  ;;  %vm1710_vm9 = vcmp.eq.s32.totalorder %v1322_v54, 16 }
 0x28e   : > { %v1875_v34 = vadd.f32 %v1811_v23, %v1681_v24  ;;  %v1646_v35 = vadd.f32 %v1582_v31, %v1452_v33  ;;  %vm1904_vm4 = vcmp.eq.s32.totalorder %v1322_v54, 17  ;;  %v1776_v36 = vsel %vm1710_vm9, %v7479_v7, 0.0 }
 0x28f   : > { %2133 = vmatpush.msra.mxu0 %v2037_v27  ;;  %v1970_v38 = vsel %vm1904_vm4, %v7481_v8, 0.0  ;;  %v1280_v43 = vadd.s32 48, %v7406_v17  ;;  %v7730_v44 = vadd.s32 176, %v7406_v17  ;;  %v1354_v47 = vsub.s32 %v1297_v39, %v7471_v2 }
 0x290   : > { %v2069_v41 = vadd.f32 %v2005_v30, %v1875_v34  ;;  %v1840_v42 = vadd.f32 %v1776_v36, %v1646_v35  ;;  %vm1387_vm11 = vcmp.eq.s32.totalorder %v1323_v40, 0  ;;  %vm1517_vm12 = vcmp.eq.s32.totalorder %v1323_v40, 1 }
 0x291   : > { %vm1711_vm13 = vcmp.eq.s32.totalorder %v1323_v40, 16  ;;  %v1453_v48 = vsel %vm1387_vm11, %v7498_v15, 0.0  ;;  %v1583_v49 = vsel %vm1517_vm12, %v7508_v21, 0.0  ;;  %vm1418_vm14 = vcmp.eq.s32.totalorder %v1354_v47, 0 }
 0x292   : > { %2153 = vmatpush.msra.mxu1 %v2069_v41  ;;  %v2034_v45 = vadd.f32 %v1970_v38, %v1840_v42  ;;  %v1777_v46 = vsel %vm1711_vm13, %v7514_v28, 0.0  ;;  %vm1548_vm15 = vcmp.eq.s32.totalorder %v1354_v47, 1  ;;  %vm1742_vm7 = vcmp.eq.s32.totalorder %v1354_v47, 16 }
 0x293   : > { %vm1936_vm1 = vcmp.eq.s32.totalorder %v1354_v47, 17  ;;  %v1484_v37 = vsel %vm1418_vm14, %v7473_v3, 0.0  ;;  %v1614_v25 = vsel %vm1548_vm15, %v7462_v62, 0.0  ;;  %v1808_v26 = vsel %vm1742_vm7, %v7479_v7, 0.0 }
 0x294   : > { %2094 = vmatpush.msrb.mxu2 %v2034_v45  ;;  %v2002_v50 = vsel %vm1936_vm1, %v7481_v8, 0.0  ;;  %v1678_v51 = vadd.f32 %v1614_v25, %v1484_v37  ;;  %v1647_v52 = vadd.f32 %v1583_v49, %v1453_v48  ;;  %vm1905_vm10 = vcmp.eq.s32.totalorder %v1323_v40, 17 }
 0x295   : > { %v1355_v53 = vsub.s32 %v1297_v39, %v7519_v32  ;;  %v1971_v54 = vsel %vm1905_vm10, %v7516_v29, 0.0  ;;  %v1320_v55 = vsub.s32 %v1280_v43, %v7471_v2  ;;  %v1352_v56 = vsub.s32 %v7730_v44, %v7471_v2 }
 0x296   : > { %v1321_v57 = vsub.s32 %v1280_v43, %v7519_v32  ;;  %v1872_v58 = vadd.f32 %v1808_v26, %v1678_v51  ;;  %v1841_v59 = vadd.f32 %v1777_v46, %v1647_v52  ;;  %v1353_v34 = vsub.s32 %v7730_v44, %v7519_v32 }
 0x297   : > { %vm1419_vm2 = vcmp.eq.s32.totalorder %v1355_v53, 0  ;;  %vm1549_vm3 = vcmp.eq.s32.totalorder %v1355_v53, 1  ;;  %vm1743_vm5 = vcmp.eq.s32.totalorder %v1355_v53, 16  ;;  %vm1937_vm0 = vcmp.eq.s32.totalorder %v1355_v53, 17 }
 0x298   : > { %v1485_v1 = vsel %vm1419_vm2, %v7498_v15, 0.0  ;;  %v1615_v60 = vsel %vm1549_vm3, %v7508_v21, 0.0  ;;  %v2066_v10 = vadd.f32 %v2002_v50, %v1872_v58  ;;  %v2035_v61 = vadd.f32 %v1971_v54, %v1841_v59 }
 0x299   : > { %v1679_v63 = vadd.f32 %v1615_v60, %v1485_v1  ;;  %v1809_v0 = vsel %vm1743_vm5, %v7514_v28, 0.0  ;;  %v2003_v4 = vsel %vm1937_vm0, %v7516_v29, 0.0  ;;  %vm1384_vm6 = vcmp.eq.s32.totalorder %v1320_v55, 0 }
 0x29a   : > { %vm1514_vm8 = vcmp.eq.s32.totalorder %v1320_v55, 1  ;;  %vm1708_vm9 = vcmp.eq.s32.totalorder %v1320_v55, 16  ;;  %2114 = vmatpush.msrb.mxu3 %v2066_v10  ;;  %2134 = vmatpush.msra.mxu0 %v2035_v61  ;;  %v1450_v6 = vsel %vm1384_vm6, %v7473_v3, 0.0  ;;  %vm1902_vm4 = vcmp.eq.s32.totalorder %v1320_v55, 17 }
 0x29b   : > { %v1873_v5 = vadd.f32 %v1809_v0, %v1679_v63  ;;  %v1580_v9 = vsel %vm1514_vm8, %v7462_v62, 0.0  ;;  %v1774_v11 = vsel %vm1708_vm9, %v7479_v7, 0.0  ;;  %vm1416_vm11 = vcmp.eq.s32.totalorder %v1352_v56, 0 }
 0x29c   : > { %v1644_v12 = vadd.f32 %v1580_v9, %v1450_v6  ;;  %vm1546_vm12 = vcmp.eq.s32.totalorder %v1352_v56, 1  ;;  %v1968_v14 = vsel %vm1902_vm4, %v7481_v8, 0.0  ;;  %v1482_v16 = vsel %vm1416_vm11, %v7473_v3, 0.0 }
 0x29d   : > { %v2067_v13 = vadd.f32 %v2003_v4, %v1873_v5  ;;  %v1612_v18 = vsel %vm1546_vm12, %v7462_v62, 0.0  ;;  %vm1740_vm13 = vcmp.eq.s32.totalorder %v1352_v56, 16  ;;  %vm1934_vm14 = vcmp.eq.s32.totalorder %v1352_v56, 17 }
 0x29e   : > { %v1838_v19 = vadd.f32 %v1774_v11, %v1644_v12  ;;  %v1676_v20 = vadd.f32 %v1612_v18, %v1482_v16  ;;  %v1806_v22 = vsel %vm1740_vm13, %v7479_v7, 0.0  ;;  %v2000_v23 = vsel %vm1934_vm14, %v7481_v8, 0.0 }
 0x29f   : > { %2154 = vmatpush.msra.mxu1 %v2067_v13  ;;  %vm1385_vm15 = vcmp.eq.s32.totalorder %v1321_v57, 0  ;;  %vm1515_vm7 = vcmp.eq.s32.totalorder %v1321_v57, 1  ;;  %vm1709_vm1 = vcmp.eq.s32.totalorder %v1321_v57, 16  ;;  %vm1903_vm10 = vcmp.eq.s32.totalorder %v1321_v57, 17 }
 0x2a0   : > { %v2032_v24 = vadd.f32 %v1968_v14, %v1838_v19  ;;  %v1870_v27 = vadd.f32 %v1806_v22, %v1676_v20  ;;  %v1451_v30 = vsel %vm1385_vm15, %v7498_v15, 0.0  ;;  %v1581_v33 = vsel %vm1515_vm7, %v7508_v21, 0.0 }
 0x2a1   : > { %v1645_v31 = vadd.f32 %v1581_v33, %v1451_v30  ;;  %v1775_v36 = vsel %vm1709_vm1, %v7514_v28, 0.0  ;;  %v1279_v38 = vadd.s32 40, %v7406_v17  ;;  %vm1417_vm2 = vcmp.eq.s32.totalorder %v1353_v34, 0 }
 0x2a2   : > { %2095 = vmatpush.msrb.mxu2 %v2032_v24  ;;  %v2064_v35 = vadd.f32 %v2000_v23, %v1870_v27  ;;  %vm1547_vm3 = vcmp.eq.s32.totalorder %v1353_v34, 1  ;;  %vm1741_vm5 = vcmp.eq.s32.totalorder %v1353_v34, 16  ;;  %v1969_v40 = vsel %vm1903_vm10, %v7516_v29, 0.0 }
 0x2a3   : > { %v1839_v39 = vadd.f32 %v1775_v36, %v1645_v31  ;;  %v1483_v41 = vsel %vm1417_vm2, %v7498_v15, 0.0  ;;  %v1613_v42 = vsel %vm1547_vm3, %v7508_v21, 0.0  ;;  %vm1935_vm0 = vcmp.eq.s32.totalorder %v1353_v34, 17 }
 0x2a4   : > { %2115 = vmatpush.msrb.mxu3 %v2064_v35  ;;  %v1677_v44 = vadd.f32 %v1613_v42, %v1483_v41  ;;  %v1807_v47 = vsel %vm1741_vm5, %v7514_v28, 0.0  ;;  %v1318_v45 = vsub.s32 %v1279_v38, %v7471_v2  ;;  %v2001_v48 = vsel %vm1935_vm0, %v7516_v29, 0.0 }
 0x2a5   : > { %v2033_v43 = vadd.f32 %v1969_v40, %v1839_v39  ;;  %v1295_v49 = vadd.s32 168, %v7406_v17  ;;  %v1319_v46 = vsub.s32 %v1279_v38, %v7519_v32  ;;  %v7773_v37 = vadd.s32 32, %v7406_v17 }
 0x2a6   : > { %v1871_v25 = vadd.f32 %v1807_v47, %v1677_v44  ;;  %vm1382_vm6 = vcmp.eq.s32.totalorder %v1318_v45, 0  ;;  %vm1512_vm8 = vcmp.eq.s32.totalorder %v1318_v45, 1  ;;  %vm1706_vm9 = vcmp.eq.s32.totalorder %v1318_v45, 16 }
 0x2a7   : > { %2135 = vmatpush.msra.mxu0 %v2033_v43  ;;  %v1448_v26 = vsel %vm1382_vm6, %v7473_v3, 0.0  ;;  %v1578_v50 = vsel %vm1512_vm8, %v7462_v62, 0.0  ;;  %vm1900_vm4 = vcmp.eq.s32.totalorder %v1318_v45, 17  ;;  %v7778_v51 = vadd.s32 160, %v7406_v17 }
 0x2a8   : > { %v2065_v52 = vadd.f32 %v2001_v48, %v1871_v25  ;;  %v1642_v53 = vadd.f32 %v1578_v50, %v1448_v26  ;;  %v1772_v54 = vsel %vm1706_vm9, %v7479_v7, 0.0  ;;  %v1350_v55 = vsub.s32 %v1295_v49, %v7471_v2 }
 0x2a9   : > { %v1966_v56 = vsel %vm1900_vm4, %v7481_v8, 0.0  ;;  %vm1383_vm11 = vcmp.eq.s32.totalorder %v1319_v46, 0  ;;  %vm1513_vm12 = vcmp.eq.s32.totalorder %v1319_v46, 1  ;;  %vm1707_vm13 = vcmp.eq.s32.totalorder %v1319_v46, 16 }
 0x2aa   : > { %2155 = vmatpush.msra.mxu1 %v2065_v52  ;;  %v1836_v57 = vadd.f32 %v1772_v54, %v1642_v53  ;;  %vm1414_vm14 = vcmp.eq.s32.totalorder %v1350_v55, 0  ;;  %vm1544_vm15 = vcmp.eq.s32.totalorder %v1350_v55, 1  ;;  %vm1738_vm7 = vcmp.eq.s32.totalorder %v1350_v55, 16 }
 0x2ab   : > { %v1480_v58 = vsel %vm1414_vm14, %v7473_v3, 0.0  ;;  %v1610_v59 = vsel %vm1544_vm15, %v7462_v62, 0.0  ;;  %vm1932_vm1 = vcmp.eq.s32.totalorder %v1350_v55, 17  ;;  %vm1901_vm10 = vcmp.eq.s32.totalorder %v1319_v46, 17 }
 0x2ac   : > { %v2030_v1 = vadd.f32 %v1966_v56, %v1836_v57  ;;  %v1674_v60 = vadd.f32 %v1610_v59, %v1480_v58  ;;  %v1804_v10 = vsel %vm1738_vm7, %v7479_v7, 0.0  ;;  %v1449_v61 = vsel %vm1383_vm11, %v7498_v15, 0.0 }
 0x2ad   : > { %v1998_v63 = vsel %vm1932_vm1, %v7481_v8, 0.0  ;;  %v1579_v0 = vsel %vm1513_vm12, %v7508_v21, 0.0  ;;  %v1773_v4 = vsel %vm1707_vm13, %v7514_v28, 0.0  ;;  %v1351_v5 = vsub.s32 %v1295_v49, %v7519_v32 }
 0x2ae   : > { %2096 = vmatpush.msrb.mxu2 %v2030_v1  ;;  %v1868_v6 = vadd.f32 %v1804_v10, %v1674_v60  ;;  %v1643_v9 = vadd.f32 %v1579_v0, %v1449_v61  ;;  %v1316_v11 = vsub.s32 %v7773_v37, %v7471_v2  ;;  %v1348_v12 = vsub.s32 %v7778_v51, %v7471_v2 }
 0x2af   : > { %vm1415_vm2 = vcmp.eq.s32.totalorder %v1351_v5, 0  ;;  %vm1545_vm3 = vcmp.eq.s32.totalorder %v1351_v5, 1  ;;  %vm1739_vm5 = vcmp.eq.s32.totalorder %v1351_v5, 16  ;;  %vm1933_vm0 = vcmp.eq.s32.totalorder %v1351_v5, 17 }
 0x2b0   : > { %v2062_v13 = vadd.f32 %v1998_v63, %v1868_v6  ;;  %v1837_v14 = vadd.f32 %v1773_v4, %v1643_v9  ;;  %v1481_v16 = vsel %vm1415_vm2, %v7498_v15, 0.0  ;;  %v1611_v18 = vsel %vm1545_vm3, %v7508_v21, 0.0 }
 0x2b1   : > { %v1967_v19 = vsel %vm1901_vm10, %v7516_v29, 0.0  ;;  %v1675_v20 = vadd.f32 %v1611_v18, %v1481_v16  ;;  %v1805_v22 = vsel %vm1739_vm5, %v7514_v28, 0.0  ;;  %vm1380_vm6 = vcmp.eq.s32.totalorder %v1316_v11, 0 }
 0x2b2   : > { %2116 = vmatpush.msrb.mxu3 %v2062_v13  ;;  %v2031_v23 = vadd.f32 %v1967_v19, %v1837_v14  ;;  %v1446_v24 = vsel %vm1380_vm6, %v7473_v3, 0.0  ;;  %vm1510_vm8 = vcmp.eq.s32.totalorder %v1316_v11, 1  ;;  %vm1704_vm9 = vcmp.eq.s32.totalorder %v1316_v11, 16 }
 0x2b3   : > { %v1869_v27 = vadd.f32 %v1805_v22, %v1675_v20  ;;  %v1999_v30 = vsel %vm1933_vm0, %v7516_v29, 0.0  ;;  %v1576_v33 = vsel %vm1510_vm8, %v7462_v62, 0.0  ;;  %vm1898_vm4 = vcmp.eq.s32.totalorder %v1316_v11, 17 }
 0x2b4   : > { %2136 = vmatpush.msra.mxu0 %v2031_v23  ;;  %v1640_v31 = vadd.f32 %v1576_v33, %v1446_v24  ;;  %v1770_v34 = vsel %vm1704_vm9, %v7479_v7, 0.0  ;;  %vm1412_vm11 = vcmp.eq.s32.totalorder %v1348_v12, 0  ;;  %vm1542_vm12 = vcmp.eq.s32.totalorder %v1348_v12, 1 }
 0x2b5   : > { %v2063_v35 = vadd.f32 %v1999_v30, %v1869_v27  ;;  %v1478_v36 = vsel %vm1412_vm11, %v7473_v3, 0.0  ;;  %v1608_v38 = vsel %vm1542_vm12, %v7462_v62, 0.0  ;;  %vm1736_vm13 = vcmp.eq.s32.totalorder %v1348_v12, 16 }
 0x2b6   : > { %v1834_v39 = vadd.f32 %v1770_v34, %v1640_v31  ;;  %v1964_v40 = vsel %vm1898_vm4, %v7481_v8, 0.0  ;;  %v1672_v41 = vadd.f32 %v1608_v38, %v1478_v36  ;;  %vm1930_vm14 = vcmp.eq.s32.totalorder %v1348_v12, 17 }
 0x2b7   : > { %2156 = vmatpush.msra.mxu1 %v2063_v35  ;;  %v1802_v42 = vsel %vm1736_vm13, %v7479_v7, 0.0  ;;  %v1996_v43 = vsel %vm1930_vm14, %v7481_v8, 0.0  ;;  %v1317_v44 = vsub.s32 %v7773_v37, %v7519_v32  ;;  %v1349_v47 = vsub.s32 %v7778_v51, %v7519_v32 }
 0x2b8   : > { %v2028_v45 = vadd.f32 %v1964_v40, %v1834_v39  ;;  %v1866_v48 = vadd.f32 %v1802_v42, %v1672_v41  ;;  %v1277_v49 = vadd.s32 24, %v7406_v17  ;;  %v1293_v46 = vadd.s32 152, %v7406_v17 }
 0x2b9   : > { %vm1381_vm15 = vcmp.eq.s32.totalorder %v1317_v44, 0  ;;  %vm1511_vm7 = vcmp.eq.s32.totalorder %v1317_v44, 1  ;;  %vm1705_vm1 = vcmp.eq.s32.totalorder %v1317_v44, 16  ;;  %v7818_v25 = vadd.s32 16, %v7406_v17 }
 0x2ba   : > { %2097 = vmatpush.msrb.mxu2 %v2028_v45  ;;  %v2060_v26 = vadd.f32 %v1996_v43, %v1866_v48  ;;  %v1447_v50 = vsel %vm1381_vm15, %v7498_v15, 0.0  ;;  %v1577_v37 = vsel %vm1511_vm7, %v7508_v21, 0.0  ;;  %vm1899_vm10 = vcmp.eq.s32.totalorder %v1317_v44, 17 }
 0x2bb   : > { %v1641_v51 = vadd.f32 %v1577_v37, %v1447_v50  ;;  %v1771_v52 = vsel %vm1705_vm1, %v7514_v28, 0.0  ;;  %vm1413_vm2 = vcmp.eq.s32.totalorder %v1349_v47, 0  ;;  %vm1543_vm3 = vcmp.eq.s32.totalorder %v1349_v47, 1 }
 0x2bc   : > { %2117 = vmatpush.msrb.mxu3 %v2060_v26  ;;  %v1479_v53 = vsel %vm1413_vm2, %v7498_v15, 0.0  ;;  %v1609_v54 = vsel %vm1543_vm3, %v7508_v21, 0.0  ;;  %vm1737_vm5 = vcmp.eq.s32.totalorder %v1349_v47, 16  ;;  %vm1931_vm0 = vcmp.eq.s32.totalorder %v1349_v47, 17 }
 0x2bd   : > { %v1835_v55 = vadd.f32 %v1771_v52, %v1641_v51  ;;  %v1965_v56 = vsel %vm1899_vm10, %v7516_v29, 0.0  ;;  %v1673_v57 = vadd.f32 %v1609_v54, %v1479_v53  ;;  %v1803_v58 = vsel %vm1737_vm5, %v7514_v28, 0.0 }
 0x2be   : > { %v1997_v59 = vsel %vm1931_vm0, %v7516_v29, 0.0  ;;  %v1314_v1 = vsub.s32 %v1277_v49, %v7471_v2  ;;  %v1346_v60 = vsub.s32 %v1293_v46, %v7471_v2  ;;  %v1315_v10 = vsub.s32 %v1277_v49, %v7519_v32 }
 0x2bf   : > { %v2029_v61 = vadd.f32 %v1965_v56, %v1835_v55  ;;  %v1867_v63 = vadd.f32 %v1803_v58, %v1673_v57  ;;  %v1347_v0 = vsub.s32 %v1293_v46, %v7519_v32  ;;  %v1312_v4 = vsub.s32 %v7818_v25, %v7471_v2 }
 0x2c0   : > { %vm1378_vm6 = vcmp.eq.s32.totalorder %v1314_v1, 0  ;;  %vm1508_vm8 = vcmp.eq.s32.totalorder %v1314_v1, 1  ;;  %vm1702_vm9 = vcmp.eq.s32.totalorder %v1314_v1, 16  ;;  %vm1896_vm4 = vcmp.eq.s32.totalorder %v1314_v1, 17 }
 0x2c1   : > { %2137 = vmatpush.msra.mxu0 %v2029_v61  ;;  %v2061_v5 = vadd.f32 %v1997_v59, %v1867_v63  ;;  %v1444_v6 = vsel %vm1378_vm6, %v7473_v3, 0.0  ;;  %v1574_v9 = vsel %vm1508_vm8, %v7462_v62, 0.0  ;;  %v1292_v11 = vadd.s32 144, %v7406_v17 }
 0x2c2   : > { %v1638_v12 = vadd.f32 %v1574_v9, %v1444_v6  ;;  %v1768_v13 = vsel %vm1702_vm9, %v7479_v7, 0.0  ;;  %vm1410_vm11 = vcmp.eq.s32.totalorder %v1346_v60, 0  ;;  %vm1540_vm12 = vcmp.eq.s32.totalorder %v1346_v60, 1 }
 0x2c3   : > { %2157 = vmatpush.msra.mxu1 %v2061_v5  ;;  %v1962_v14 = vsel %vm1896_vm4, %v7481_v8, 0.0  ;;  %v1476_v16 = vsel %vm1410_vm11, %v7473_v3, 0.0  ;;  %v1606_v18 = vsel %vm1540_vm12, %v7462_v62, 0.0  ;;  %vm1734_vm13 = vcmp.eq.s32.totalorder %v1346_v60, 16 }
 0x2c4   : > { %v1832_v19 = vadd.f32 %v1768_v13, %v1638_v12  ;;  %v1670_v20 = vadd.f32 %v1606_v18, %v1476_v16  ;;  %v1800_v22 = vsel %vm1734_vm13, %v7479_v7, 0.0  ;;  %vm1928_vm14 = vcmp.eq.s32.totalorder %v1346_v60, 17 }
 0x2c5   : > { %vm1379_vm15 = vcmp.eq.s32.totalorder %v1315_v10, 0  ;;  %vm1509_vm7 = vcmp.eq.s32.totalorder %v1315_v10, 1  ;;  %vm1703_vm1 = vcmp.eq.s32.totalorder %v1315_v10, 16  ;;  %vm1897_vm10 = vcmp.eq.s32.totalorder %v1315_v10, 17 }
 0x2c6   : > { %v2026_v23 = vadd.f32 %v1962_v14, %v1832_v19  ;;  %v1864_v24 = vadd.f32 %v1800_v22, %v1670_v20  ;;  %v1445_v27 = vsel %vm1379_vm15, %v7498_v15, 0.0  ;;  %v1575_v30 = vsel %vm1509_vm7, %v7508_v21, 0.0 }
 0x2c7   : > { %v1994_v33 = vsel %vm1928_vm14, %v7481_v8, 0.0  ;;  %v1639_v31 = vadd.f32 %v1575_v30, %v1445_v27  ;;  %v1769_v34 = vsel %vm1703_vm1, %v7514_v28, 0.0  ;;  %vm1411_vm2 = vcmp.eq.s32.totalorder %v1347_v0, 0 }
 0x2c8   : > { %2098 = vmatpush.msrb.mxu2 %v2026_v23  ;;  %v2058_v35 = vadd.f32 %v1994_v33, %v1864_v24  ;;  %v1477_v36 = vsel %vm1411_vm2, %v7498_v15, 0.0  ;;  %vm1541_vm3 = vcmp.eq.s32.totalorder %v1347_v0, 1  ;;  %vm1735_vm5 = vcmp.eq.s32.totalorder %v1347_v0, 16 }
 0x2c9   : > { %v1833_v38 = vadd.f32 %v1769_v34, %v1639_v31  ;;  %v1963_v39 = vsel %vm1897_vm10, %v7516_v29, 0.0  ;;  %v1607_v40 = vsel %vm1541_vm3, %v7508_v21, 0.0  ;;  %vm1929_vm0 = vcmp.eq.s32.totalorder %v1347_v0, 17 }
 0x2ca   : > { %2118 = vmatpush.msrb.mxu3 %v2058_v35  ;;  %v1671_v41 = vadd.f32 %v1607_v40, %v1477_v36  ;;  %v1801_v42 = vsel %vm1735_vm5, %v7514_v28, 0.0  ;;  %vm1376_vm6 = vcmp.eq.s32.totalorder %v1312_v4, 0  ;;  %vm1506_vm8 = vcmp.eq.s32.totalorder %v1312_v4, 1 }
 0x2cb   : > { %v2027_v43 = vadd.f32 %v1963_v39, %v1833_v38  ;;  %v1442_v44 = vsel %vm1376_vm6, %v7473_v3, 0.0  ;;  %v1572_v47 = vsel %vm1506_vm8, %v7462_v62, 0.0  ;;  %vm1700_vm9 = vcmp.eq.s32.totalorder %v1312_v4, 16 }
 0x2cc   : > { %v1865_v45 = vadd.f32 %v1801_v42, %v1671_v41  ;;  %v1995_v48 = vsel %vm1929_vm0, %v7516_v29, 0.0  ;;  %v1636_v49 = vadd.f32 %v1572_v47, %v1442_v44  ;;  %vm1894_vm4 = vcmp.eq.s32.totalorder %v1312_v4, 17 }
 0x2cd   : > { %2138 = vmatpush.msra.mxu0 %v2027_v43  ;;  %v1766_v46 = vsel %vm1700_vm9, %v7479_v7, 0.0  ;;  %v1960_v26 = vsel %vm1894_vm4, %v7481_v8, 0.0  ;;  %v1344_v50 = vsub.s32 %v1292_v11, %v7471_v2  ;;  %v1313_v37 = vsub.s32 %v7818_v25, %v7519_v32 }
 0x2ce   : > { %v2059_v51 = vadd.f32 %v1995_v48, %v1865_v45  ;;  %v1830_v52 = vadd.f32 %v1766_v46, %v1636_v49  ;;  %v1345_v53 = vsub.s32 %v1292_v11, %v7519_v32  ;;  %v1275_v54 = vadd.s32 8, %v7406_v17 }
 0x2cf   : > { %vm1408_vm11 = vcmp.eq.s32.totalorder %v1344_v50, 0  ;;  %vm1538_vm12 = vcmp.eq.s32.totalorder %v1344_v50, 1  ;;  %vm1732_vm13 = vcmp.eq.s32.totalorder %v1344_v50, 16  ;;  %vm1926_vm14 = vcmp.eq.s32.totalorder %v1344_v50, 17 }
 0x2d0   : > { %2158 = vmatpush.msra.mxu1 %v2059_v51  ;;  %v2024_v55 = vadd.f32 %v1960_v26, %v1830_v52  ;;  %v1474_v56 = vsel %vm1408_vm11, %v7473_v3, 0.0  ;;  %v1604_v57 = vsel %vm1538_vm12, %v7462_v62, 0.0  ;;  %v1291_v58 = vadd.s32 136, %v7406_v17 }
 0x2d1   : > { %v1668_v59 = vadd.f32 %v1604_v57, %v1474_v56  ;;  %v1798_v25 = vsel %vm1732_vm13, %v7479_v7, 0.0  ;;  %vm1377_vm15 = vcmp.eq.s32.totalorder %v1313_v37, 0  ;;  %vm1507_vm7 = vcmp.eq.s32.totalorder %v1313_v37, 1 }
 0x2d2   : > { %2099 = vmatpush.msrb.mxu2 %v2024_v55  ;;  %v1992_v1 = vsel %vm1926_vm14, %v7481_v8, 0.0  ;;  %v1443_v60 = vsel %vm1377_vm15, %v7498_v15, 0.0  ;;  %v1573_v10 = vsel %vm1507_vm7, %v7508_v21, 0.0  ;;  %vm1701_vm1 = vcmp.eq.s32.totalorder %v1313_v37, 16 }
 0x2d3   : > { %v1862_v61 = vadd.f32 %v1798_v25, %v1668_v59  ;;  %v1637_v63 = vadd.f32 %v1573_v10, %v1443_v60  ;;  %v1767_v0 = vsel %vm1701_vm1, %v7514_v28, 0.0  ;;  %vm1895_vm10 = vcmp.eq.s32.totalorder %v1313_v37, 17 }
 0x2d4   : > { %vm1409_vm2 = vcmp.eq.s32.totalorder %v1345_v53, 0  ;;  %vm1539_vm3 = vcmp.eq.s32.totalorder %v1345_v53, 1  ;;  %vm1733_vm5 = vcmp.eq.s32.totalorder %v1345_v53, 16  ;;  %vm1927_vm0 = vcmp.eq.s32.totalorder %v1345_v53, 17 }
 0x2d5   : > { %v2056_v4 = vadd.f32 %v1992_v1, %v1862_v61  ;;  %v1831_v5 = vadd.f32 %v1767_v0, %v1637_v63  ;;  %v1475_v6 = vsel %vm1409_vm2, %v7498_v15, 0.0  ;;  %v1605_v9 = vsel %vm1539_vm3, %v7508_v21, 0.0 }
 0x2d6   : > { %v1961_v11 = vsel %vm1895_vm10, %v7516_v29, 0.0  ;;  %v1669_v12 = vadd.f32 %v1605_v9, %v1475_v6  ;;  %v1799_v13 = vsel %vm1733_vm5, %v7514_v28, 0.0  ;;  %v1310_v14 = vsub.s32 %v1275_v54, %v7471_v2  ;;  %v2084_v9 = vld [vmem:[%s7908_s5] sm:$0xff] }
 0x2d7   : > { %2119 = vmatpush.msrb.mxu3 %v2056_v4  ;;  %v2025_v16 = vadd.f32 %v1961_v11, %v1831_v5  ;;  %v1993_v18 = vsel %vm1927_vm0, %v7516_v29, 0.0  ;;  %v1342_v19 = vsub.s32 %v1291_v58, %v7471_v2  ;;  %v1311_v20 = vsub.s32 %v1275_v54, %v7519_v32 }
 0x2d8   : > { %v1863_v22 = vadd.f32 %v1799_v13, %v1669_v12  ;;  %vm1374_vm6 = vcmp.eq.s32.totalorder %v1310_v14, 0  ;;  %vm1504_vm8 = vcmp.eq.s32.totalorder %v1310_v14, 1  ;;  %vm1698_vm9 = vcmp.eq.s32.totalorder %v1310_v14, 16 }
 0x2d9   : > { %2139 = vmatpush.msra.mxu0 %v2025_v16  ;;  %v1440_v23 = vsel %vm1374_vm6, %v7473_v3, 0.0  ;;  %v1570_v24 = vsel %vm1504_vm8, %v7462_v62, 0.0  ;;  %vm1892_vm4 = vcmp.eq.s32.totalorder %v1310_v14, 17  ;;  %v1343_v27 = vsub.s32 %v1291_v58, %v7519_v32  ;;  %v2289_v14 = vld [vmem:[#allocation14 + $0x3c0] sm:$0xff] }
 0x2da   : > { %v2057_v30 = vadd.f32 %v1993_v18, %v1863_v22  ;;  %v1634_v33 = vadd.f32 %v1570_v24, %v1440_v23  ;;  %v1764_v31 = vsel %vm1698_vm9, %v7479_v7, 0.0  ;;  %vm1406_vm11 = vcmp.eq.s32.totalorder %v1342_v19, 0  ;;  %v2085_v23 = vld [vmem:[%s7908_s5 + $0x8] sm:$0xff] }
 0x2db   : > { %v1472_v34 = vsel %vm1406_vm11, %v7473_v3, 0.0  ;;  %vm1536_vm12 = vcmp.eq.s32.totalorder %v1342_v19, 1  ;;  %vm1730_vm13 = vcmp.eq.s32.totalorder %v1342_v19, 16  ;;  %vm1924_vm14 = vcmp.eq.s32.totalorder %v1342_v19, 17 }
 0x2dc   : > { %2159 = vmatpush.msra.mxu1 %v2057_v30  ;;  %v1828_v35 = vadd.f32 %v1764_v31, %v1634_v33  ;;  %v1958_v36 = vsel %vm1892_vm4, %v7481_v8, 0.0  ;;  %v1602_v38 = vsel %vm1536_vm12, %v7462_v62, 0.0  ;;  %v1796_v39 = vsel %vm1730_vm13, %v7479_v7, 0.0  ;;  %v2273_v31 = vld [vmem:[#allocation14 + $0x340] sm:$0xff] }
 0x2dd   : > { %v1666_v40 = vadd.f32 %v1602_v38, %v1472_v34  ;;  %vm1375_vm15 = vcmp.eq.s32.totalorder %v1311_v20, 0  ;;  %vm1505_vm7 = vcmp.eq.s32.totalorder %v1311_v20, 1  ;;  %vm1699_vm1 = vcmp.eq.s32.totalorder %v1311_v20, 16 }
 0x2de   : > { %v2022_v41 = vadd.f32 %v1958_v36, %v1828_v35  ;;  %v1990_v42 = vsel %vm1924_vm14, %v7481_v8, 0.0  ;;  %v1441_v43 = vsel %vm1375_vm15, %v7498_v15, 0.0  ;;  %v1571_v44 = vsel %vm1505_vm7, %v7508_v21, 0.0  ;;  %v2409_v35 = vld [vmem:[#allocation14 + $0x780] sm:$0xff]  ;;  %v2290_v36 = vld [vmem:[#allocation14 + $0x3c8] sm:$0xff] }
 0x2df   : > { %v1860_v47 = vadd.f32 %v1796_v39, %v1666_v40  ;;  %v1635_v45 = vadd.f32 %v1571_v44, %v1441_v43  ;;  %vm1893_vm10 = vcmp.eq.s32.totalorder %v1311_v20, 17  ;;  %vm1407_vm2 = vcmp.eq.s32.totalorder %v1343_v27, 0  ;;  %v2401_v39 = vld [vmem:[#allocation14 + $0x740] sm:$0xff]  ;;  %v2418_v40 = vld [vmem:[#allocation14 + $0x7c8] sm:$0xff] }
 0x2e0   : > { %2100 = vmatpush.msrb.mxu2 %v2022_v41  ;;  %v1765_v48 = vsel %vm1699_vm1, %v7514_v28, 0.0  ;;  %v1473_v49 = vsel %vm1407_vm2, %v7498_v15, 0.0  ;;  %vm1537_vm3 = vcmp.eq.s32.totalorder %v1343_v27, 1  ;;  %vm1731_vm5 = vcmp.eq.s32.totalorder %v1343_v27, 16  ;;  %v2282_v41 = vld [vmem:[#allocation14 + $0x388] sm:$0xff] }
 0x2e1   : > { %v2054_v46 = vadd.f32 %v1990_v42, %v1860_v47  ;;  %v1829_v26 = vadd.f32 %v1765_v48, %v1635_v45  ;;  %v1959_v50 = vsel %vm1893_vm10, %v7516_v29, 0.0  ;;  %v1603_v37 = vsel %vm1537_vm3, %v7508_v21, 0.0  ;;  %v2257_v42 = vld [vmem:[#allocation14 + $0x2c0] sm:$0xff]  ;;  %v2410_v43 = vld [vmem:[#allocation14 + $0x788] sm:$0xff] }
 0x2e2   : > { %v1667_v51 = vadd.f32 %v1603_v37, %v1473_v49  ;;  %vm1925_vm0 = vcmp.eq.s32.totalorder %v1343_v27, 17  ;;  %v1308_v52 = vsub.s32 %v7406_v17, %v7471_v2  ;;  %v1290_v53 = vadd.s32 128, %v7406_v17  ;;  %v2417_v27 = vld [vmem:[#allocation14 + $0x7c0] sm:$0xff]  ;;  %v2274_v44 = vld [vmem:[#allocation14 + $0x348] sm:$0xff] }
 0x2e3   : > { %2120 = vmatpush.msrb.mxu3 %v2054_v46  ;;  %v2023_v54 = vadd.f32 %v1959_v50, %v1829_v26  ;;  %v1797_v55 = vsel %vm1731_vm5, %v7514_v28, 0.0  ;;  %v1309_v56 = vsub.s32 %v7406_v17, %v7519_v32  ;;  %v1991_v58 = vsel %vm1925_vm0, %v7516_v29, 0.0  ;;  %v2249_v47 = vld [vmem:[#allocation14 + $0x280] sm:$0xff]  ;;  %v2402_v45 = vld [vmem:[#allocation14 + $0x748] sm:$0xff] }
 0x2e4   : > { %v1861_v57 = vadd.f32 %v1797_v55, %v1667_v51  ;;  %vm1372_vm6 = vcmp.eq.s32.totalorder %v1308_v52, 0  ;;  %vm1502_vm8 = vcmp.eq.s32.totalorder %v1308_v52, 1  ;;  %vm1696_vm9 = vcmp.eq.s32.totalorder %v1308_v52, 16  ;;  %v2266_v48 = vld [vmem:[#allocation14 + $0x308] sm:$0xff]  ;;  %v2377_v49 = vld [vmem:[#allocation14 + $0x680] sm:$0xff] }
 0x2e5   : > { %2140 = vmatpush.msra.mxu0 %v2023_v54  ;;  %v1438_v59 = vsel %vm1372_vm6, %v7473_v3, 0.0  ;;  %v1568_v25 = vsel %vm1502_vm8, %v7462_v62, 0.0  ;;  %vm1890_vm4 = vcmp.eq.s32.totalorder %v1308_v52, 17  ;;  %v1340_v10 = vsub.s32 %v1290_v53, %v7471_v2  ;;  %v2241_v46 = vld [vmem:[#allocation14 + $0x240] sm:$0xff]  ;;  %v2394_v26 = vld [vmem:[#allocation14 + $0x708] sm:$0xff] }
 0x2e6   : > { %v2055_v1 = vadd.f32 %v1991_v58, %v1861_v57  ;;  %v1632_v60 = vadd.f32 %v1568_v25, %v1438_v59  ;;  %v1762_v17 = vsel %vm1696_vm9, %v7479_v7, 0.0  ;;  %vm1373_vm11 = vcmp.eq.s32.totalorder %v1309_v56, 0  ;;  %v2258_v50 = vld [vmem:[#allocation14 + $0x2c8] sm:$0xff]  ;;  %v2369_v37 = vld [vmem:[#allocation14 + $0x640] sm:$0xff] }
 0x2e7   : > { %vm1503_vm12 = vcmp.eq.s32.totalorder %v1309_v56, 1  ;;  %vm1404_vm13 = vcmp.eq.s32.totalorder %v1340_v10, 0  ;;  %vm1534_vm14 = vcmp.eq.s32.totalorder %v1340_v10, 1  ;;  %vm1728_vm15 = vcmp.eq.s32.totalorder %v1340_v10, 16  ;;  %v2233_v51 = vld [vmem:[#allocation14 + $0x200] sm:$0xff]  ;;  %v2386_v52 = vld [vmem:[#allocation14 + $0x6c8] sm:$0xff] }
 0x2e8   : > { %2160 = vmatpush.msra.mxu1 %v2055_v1  ;;  %v1826_v61 = vadd.f32 %v1762_v17, %v1632_v60  ;;  %v1956_v63 = vsel %vm1890_vm4, %v7481_v8, 0.0  ;;  %v1470_v2 = vsel %vm1404_vm13, %v7473_v3, 0.0  ;;  %v1600_v0 = vsel %vm1534_vm14, %v7462_v62, 0.0  ;;  %v2361_v54 = vld [vmem:[#allocation14 + $0x600] sm:$0xff]  ;;  %v2242_v57 = vld [vmem:[#allocation14 + $0x248] sm:$0xff] }
 0x2e9   : > { %vm1922_vm7 = vcmp.eq.s32.totalorder %v1340_v10, 17  ;;  %v1664_v5 = vadd.f32 %v1600_v0, %v1470_v2  ;;  %v1439_v6 = vsel %vm1373_vm11, %v7498_v15, 0.0  ;;  %vm1697_vm1 = vcmp.eq.s32.totalorder %v1309_v56, 16  ;;  %v2225_v55 = vld [vmem:[#allocation14 + $0x1c0] sm:$0xff]  ;;  %v2370_v25 = vld [vmem:[#allocation14 + $0x648] sm:$0xff] }
 0x2ea   : > { %v2020_v4 = vadd.f32 %v1956_v63, %v1826_v61  ;;  %v1794_v11 = vsel %vm1728_vm15, %v7479_v7, 0.0  ;;  %v1569_v12 = vsel %vm1503_vm12, %v7508_v21, 0.0  ;;  %v1341_v13 = vsub.s32 %v1290_v53, %v7519_v32  ;;  %v2281_v7 = vld [vmem:[#allocation14 + $0x380] sm:$0xff]  ;;  %v2250_v53 = vld [vmem:[#allocation14 + $0x288] sm:$0xff] }
 0x2eb   : > { %v1858_v3 = vadd.f32 %v1794_v11, %v1664_v5  ;;  %v1988_v62 = vsel %vm1922_vm7, %v7481_v8, 0.0  ;;  %v1633_v16 = vadd.f32 %v1569_v12, %v1439_v6  ;;  %vm1891_vm10 = vcmp.eq.s32.totalorder %v1309_v56, 17  ;;  %v2378_v56 = vld [vmem:[#allocation14 + $0x688] sm:$0xff]  ;;  %v2353_v58 = vld [vmem:[#allocation14 + $0x5c0] sm:$0xff] }
 0x2ec   : > { %2101 = vmatpush.msrb.mxu2 %v2020_v4  ;;  %v1763_v18 = vsel %vm1697_vm1, %v7514_v28, 0.0  ;;  %vm1405_vm2 = vcmp.eq.s32.totalorder %v1341_v13, 0  ;;  %vm1535_vm3 = vcmp.eq.s32.totalorder %v1341_v13, 1  ;;  %vm1729_vm5 = vcmp.eq.s32.totalorder %v1341_v13, 16  ;;  %v2217_v59 = vld [vmem:[#allocation14 + $0x180] sm:$0xff]  ;;  %v2234_v1 = vld [vmem:[#allocation14 + $0x208] sm:$0xff] }
 0x2ed   : > { %2102 = vmatmul.f32.vlgmr.msrb.gmra.mxu2 %v2084_v9  ;;  %v2052_v19 = vadd.f32 %v1988_v62, %v1858_v3  ;;  %v1827_v20 = vadd.f32 %v1763_v18, %v1633_v16  ;;  %v1471_v22 = vsel %vm1405_vm2, %v7498_v15, 0.0  ;;  %v1601_v32 = vsel %vm1535_vm3, %v7508_v21, 0.0  ;;  %v2265_v21 = vld [vmem:[#allocation14 + $0x300] sm:$0xff]  ;;  %v2362_v17 = vld [vmem:[#allocation14 + $0x608] sm:$0xff] }
 0x2ee   : > { %2425 = vmatpush.msra.mxu2 %v2289_v14  ;;  %v1957_v24 = vsel %vm1891_vm10, %v7516_v29, 0.0  ;;  %v1665_v8 = vadd.f32 %v1601_v32, %v1471_v22  ;;  %vm1923_vm0 = vcmp.eq.s32.totalorder %v1341_v13, 17  ;;  %v1795_v33 = vsel %vm1729_vm5, %v7514_v28, 0.0  ;;  %v2393_v28 = vld [vmem:[#allocation14 + $0x700] sm:$0xff]  ;;  %v2226_v61 = vld [vmem:[#allocation14 + $0x1c8] sm:$0xff] }
 0x2ef   : > { %2121 = vmatpush.msrb.mxu3 %v2052_v19  ;;  %v2021_v30 = vadd.f32 %v1957_v24, %v1827_v20  ;;  %v1989_v15 = vsel %vm1923_vm0, %v7516_v29, 0.0  ;;  %v2385_v29 = vld [vmem:[#allocation14 + $0x6c0] sm:$0xff]  ;;  %v2354_v0 = vld [vmem:[#allocation14 + $0x5c8] sm:$0xff]  ;;  %v2291_v24 = vld [vmem:[#allocation14 + $0x3d0] sm:$0xff]  ;;  %vm2766_vm6 = vcmask 1044484   ;;  %vm2768_vm8 = vcmask 1046534  }
 0x2f0   : > { %2426 = vmatpush.msra.mxu2 %v2281_v7  ;;  %v1859_v34 = vadd.f32 %v1795_v33, %v1665_v8  ;;  %2122 = vmatmul.f32.vlgmr.msrb.gmra.mxu3 %v2085_v23  ;;  %v2345_v60 = vld [vmem:[#allocation14 + $0x580] sm:$0xff]  ;;  %v2218_v4 = vld [vmem:[#allocation14 + $0x188] sm:$0xff]  ;;  %v2283_v33 = vld [vmem:[#allocation14 + $0x390] sm:$0xff]  ;;  %vm2770_vm9 = vcmask 1045508   ;;  %vm2760_vm4 = vcmask 1040384   ;;  %vm2762_vm11 = vcmask 1042434  }
 0x2f1   : > { %2141 = vmatpush.msra.mxu0 %v2021_v30  ;;  %2445 = vmatpush.msra.mxu3 %v2417_v27  ;;  %v2209_v10 = vld [vmem:[#allocation14 + $0x140] sm:$0xff]  ;;  %v2210_v11 = vld [vmem:[#allocation14 + $0x148] sm:$0xff]  ;;  %v2419_v27 = vld [vmem:[#allocation14 + $0x7d0] sm:$0xff]  ;;  %vm2764_vm12 = vcmask 1041408   ;;  %vm2772_vm13 = vcmask 1043456   ;;  %vm6022_vm14 = vcmask 516096  }
 0x2f2   : > { %v2053_v38 = vadd.f32 %v1989_v15, %v1859_v34  ;;  %2142 = vmatmul.f32.vlgmr.msra.gmra.mxu0 %v2084_v9  ;;  %2427 = vmatpush.msra.mxu2 %v2273_v31  ;;  %v2337_v63 = vld [vmem:[#allocation14 + $0x540] sm:$0xff]  ;;  %v2346_v9 = vld [vmem:[#allocation14 + $0x588] sm:$0xff]  ;;  %v2411_v34 = vld [vmem:[#allocation14 + $0x790] sm:$0xff] }
 0x2f3   : > { %2446 = vmatpush.msra.mxu3 %v2409_v35  ;;  %2465 = vmatpush.msrb.mxu0 %v2290_v36  ;;  %v2201_v2 = vld [vmem:[#allocation14 + $0x100] sm:$0xff]  ;;  %v2338_v14 = vld [vmem:[#allocation14 + $0x548] sm:$0xff]  ;;  %v2275_v36 = vld [vmem:[#allocation14 + $0x350] sm:$0xff] }
 0x2f4   : > { %2161 = vmatpush.msra.mxu1 %v2053_v38  ;;  %2428 = vmatpush.msra.mxu2 %v2265_v21  ;;  %v2329_v5 = vld [vmem:[#allocation14 + $0x500] sm:$0xff]  ;;  %v2202_v3 = vld [vmem:[#allocation14 + $0x108] sm:$0xff]  ;;  %v2403_v21 = vld [vmem:[#allocation14 + $0x750] sm:$0xff] }
 0x2f5   : > { %2162 = vmatmul.f32.vlgmr.msra.gmra.mxu1 %v2085_v23  ;;  %2447 = vmatpush.msra.mxu3 %v2401_v39  ;;  %v2193_v6 = vld [vmem:[#allocation14 + $0xc0] sm:$0xff]  ;;  %v2330_v18 = vld [vmem:[#allocation14 + $0x508] sm:$0xff]  ;;  %v2420_v38 = vld [vmem:[#allocation14 + $0x7d8] sm:$0xff] }
 0x2f6   : > { %2485 = vmatpush.msrb.mxu1 %v2418_v40  ;;  %2466 = vmatpush.msrb.mxu0 %v2282_v41  ;;  %v2321_v12 = vld [vmem:[#allocation14 + $0x4c0] sm:$0xff]  ;;  %v2194_v7 = vld [vmem:[#allocation14 + $0xc8] sm:$0xff]  ;;  %v2292_v39 = vld [vmem:[#allocation14 + $0x3d8] sm:$0xff] }
 0x2f7   : > { %2448 = vmatpush.msra.mxu3 %v2393_v28  ;;  %2429 = vmatpush.msra.mxu2 %v2257_v42  ;;  %v2185_v13 = vld [vmem:[#allocation14 + $0x80] sm:$0xff]  ;;  %v2322_v22 = vld [vmem:[#allocation14 + $0x4c8] sm:$0xff]  ;;  %v2395_v40 = vld [vmem:[#allocation14 + $0x710] sm:$0xff] }
 0x2f8   : > { %2486 = vmatpush.msrb.mxu1 %v2410_v43  ;;  %2467 = vmatpush.msrb.mxu0 %v2274_v44  ;;  %v2313_v62 = vld [vmem:[#allocation14 + $0x480] sm:$0xff]  ;;  %v2186_v32 = vld [vmem:[#allocation14 + $0x88] sm:$0xff]  ;;  %v2267_v41 = vld [vmem:[#allocation14 + $0x310] sm:$0xff] }
 0x2f9   : > { %2449 = vmatpush.msra.mxu3 %v2385_v29  ;;  %2430 = vmatpush.msra.mxu2 %v2249_v47  ;;  %v2177_v16 = vld [vmem:[#allocation14 + $0x40] sm:$0xff]  ;;  %v2314_v8 = vld [vmem:[#allocation14 + $0x488] sm:$0xff]  ;;  %v2412_v28 = vld [vmem:[#allocation14 + $0x798] sm:$0xff] }
 0x2fa   : > { %2487 = vmatpush.msrb.mxu1 %v2402_v45  ;;  %2468 = vmatpush.msrb.mxu0 %v2266_v48  ;;  %v2305_v19 = vld [vmem:[#allocation14 + $0x440] sm:$0xff]  ;;  %v2178_v30 = vld [vmem:[#allocation14 + $0x48] sm:$0xff]  ;;  %v2284_v42 = vld [vmem:[#allocation14 + $0x398] sm:$0xff] }
 0x2fb   : > { %2450 = vmatpush.msra.mxu3 %v2377_v49  ;;  %2431 = vmatpush.msra.mxu2 %v2241_v46  ;;  %v2169_v20 = vld [vmem:[#allocation14] sm:$0xff]  ;;  %v2306_v31 = vld [vmem:[#allocation14 + $0x448] sm:$0xff]  ;;  %v2387_v43 = vld [vmem:[#allocation14 + $0x6d0] sm:$0xff] }
 0x2fc   : > { %2488 = vmatpush.msrb.mxu1 %v2394_v26  ;;  %2469 = vmatpush.msrb.mxu0 %v2258_v50  ;;  %v2297_v23 = vld [vmem:[#allocation14 + $0x400] sm:$0xff]  ;;  %v2170_v35 = vld [vmem:[#allocation14 + $0x8] sm:$0xff]  ;;  %v2259_v44 = vld [vmem:[#allocation14 + $0x2d0] sm:$0xff] }
 0x2fd   : > { %2451 = vmatpush.msra.mxu3 %v2369_v37  ;;  %2432 = vmatpush.msra.mxu2 %v2233_v51  ;;  %v2298_v15 = vld [vmem:[#allocation14 + $0x408] sm:$0xff]  ;;  %v2404_v29 = vld [vmem:[#allocation14 + $0x758] sm:$0xff]  ;;  %v2379_v45 = vld [vmem:[#allocation14 + $0x690] sm:$0xff] }
 0x2fe   : > { %2489 = vmatpush.msrb.mxu1 %v2386_v52  ;;  %2470 = vmatpush.msrb.mxu0 %v2250_v53  ;;  %v2276_v47 = vld [vmem:[#allocation14 + $0x358] sm:$0xff]  ;;  %v2251_v48 = vld [vmem:[#allocation14 + $0x290] sm:$0xff] }
 0x2ff   : > { %2452 = vmatpush.msra.mxu3 %v2361_v54  ;;  %2433 = vmatpush.msra.mxu2 %v2225_v55  ;;  %v2396_v49 = vld [vmem:[#allocation14 + $0x718] sm:$0xff]  ;;  %v2371_v26 = vld [vmem:[#allocation14 + $0x650] sm:$0xff] }
 0x300   : > { %2490 = vmatpush.msrb.mxu1 %v2378_v56  ;;  %2471 = vmatpush.msrb.mxu0 %v2242_v57  ;;  %v2268_v46 = vld [vmem:[#allocation14 + $0x318] sm:$0xff]  ;;  %v2243_v50 = vld [vmem:[#allocation14 + $0x250] sm:$0xff] }
 0x301   : > { %2453 = vmatpush.msra.mxu3 %v2353_v58  ;;  %2434 = vmatpush.msra.mxu2 %v2217_v59  ;;  %v2388_v37 = vld [vmem:[#allocation14 + $0x6d8] sm:$0xff]  ;;  %v2363_v52 = vld [vmem:[#allocation14 + $0x610] sm:$0xff] }
 0x302   : > { %2491 = vmatpush.msrb.mxu1 %v2370_v25  ;;  %2472 = vmatpush.msrb.mxu0 %v2234_v1  ;;  %v2260_v51 = vld [vmem:[#allocation14 + $0x2d8] sm:$0xff]  ;;  %v2235_v53 = vld [vmem:[#allocation14 + $0x210] sm:$0xff] }
 0x303   : > { %2454 = vmatpush.msra.mxu3 %v2345_v60  ;;  %2435 = vmatpush.msra.mxu2 %v2209_v10  ;;  %v2380_v54 = vld [vmem:[#allocation14 + $0x698] sm:$0xff]  ;;  %v2355_v56 = vld [vmem:[#allocation14 + $0x5d0] sm:$0xff] }
 0x304   : > { %2492 = vmatpush.msrb.mxu1 %v2362_v17  ;;  %2473 = vmatpush.msrb.mxu0 %v2226_v61  ;;  %v2252_v55 = vld [vmem:[#allocation14 + $0x298] sm:$0xff]  ;;  %v2227_v57 = vld [vmem:[#allocation14 + $0x1d0] sm:$0xff] }
 0x305   : > { %2455 = vmatpush.msra.mxu3 %v2337_v63  ;;  %2436 = vmatpush.msra.mxu2 %v2201_v2  ;;  %v2372_v58 = vld [vmem:[#allocation14 + $0x658] sm:$0xff]  ;;  %v2347_v25 = vld [vmem:[#allocation14 + $0x590] sm:$0xff] }
 0x306   : > { %2493 = vmatpush.msrb.mxu1 %v2354_v0  ;;  %2474 = vmatpush.msrb.mxu0 %v2218_v4  ;;  %v2244_v59 = vld [vmem:[#allocation14 + $0x258] sm:$0xff]  ;;  %v2219_v1 = vld [vmem:[#allocation14 + $0x190] sm:$0xff] }
 0x307   : > { %2456 = vmatpush.msra.mxu3 %v2329_v5  ;;  %2437 = vmatpush.msra.mxu2 %v2193_v6  ;;  %v2364_v60 = vld [vmem:[#allocation14 + $0x618] sm:$0xff]  ;;  %v2339_v17 = vld [vmem:[#allocation14 + $0x550] sm:$0xff] }
 0x308   : > { %2494 = vmatpush.msrb.mxu1 %v2346_v9  ;;  %2475 = vmatpush.msrb.mxu0 %v2210_v11  ;;  %v2236_v10 = vld [vmem:[#allocation14 + $0x218] sm:$0xff]  ;;  %v2211_v61 = vld [vmem:[#allocation14 + $0x150] sm:$0xff] }
 0x309   : > { %2457 = vmatpush.msra.mxu3 %v2321_v12  ;;  %2438 = vmatpush.msra.mxu2 %v2185_v13  ;;  %v2356_v63 = vld [vmem:[#allocation14 + $0x5d8] sm:$0xff]  ;;  %v2331_v0 = vld [vmem:[#allocation14 + $0x510] sm:$0xff] }
 0x30a   : > { %2495 = vmatpush.msrb.mxu1 %v2338_v14  ;;  %2476 = vmatpush.msrb.mxu0 %v2202_v3  ;;  %v2228_v2 = vld [vmem:[#allocation14 + $0x1d8] sm:$0xff]  ;;  %v2323_v6 = vld [vmem:[#allocation14 + $0x4d0] sm:$0xff] }
 0x30b   : > { %2458 = vmatpush.msra.mxu3 %v2313_v62  ;;  %2439 = vmatpush.msra.mxu2 %v2177_v16  ;;  %v2348_v4 = vld [vmem:[#allocation14 + $0x598] sm:$0xff]  ;;  %v2315_v12 = vld [vmem:[#allocation14 + $0x490] sm:$0xff] }
 0x30c   : > { %2496 = vmatpush.msrb.mxu1 %v2330_v18  ;;  %2477 = vmatpush.msrb.mxu0 %v2194_v7  ;;  %v2220_v5 = vld [vmem:[#allocation14 + $0x198] sm:$0xff]  ;;  %v2203_v62 = vld [vmem:[#allocation14 + $0x110] sm:$0xff] }
 0x30d   : > { %2459 = vmatpush.msra.mxu3 %v2305_v19  ;;  %2440 = vmatpush.msra.mxu2 %v2169_v20  ;;  %v2340_v9 = vld [vmem:[#allocation14 + $0x558] sm:$0xff]  ;;  %v2307_v16 = vld [vmem:[#allocation14 + $0x450] sm:$0xff] }
 0x30e   : > { %2497 = vmatpush.msrb.mxu1 %v2322_v22  ;;  %2478 = vmatpush.msrb.mxu0 %v2186_v32  ;;  %v2212_v11 = vld [vmem:[#allocation14 + $0x158] sm:$0xff]  ;;  %v2195_v19 = vld [vmem:[#allocation14 + $0xd0] sm:$0xff] }
 0x30f   : > { %2460 = vmatpush.msra.mxu3 %v2297_v23  ;;  %2505 = vmatpush.msrb.mxu2 %v2291_v24  ;;  %v2332_v13 = vld [vmem:[#allocation14 + $0x518] sm:$0xff]  ;;  %v2299_v20 = vld [vmem:[#allocation14 + $0x410] sm:$0xff] }
 0x310   : > { %2498 = vmatpush.msrb.mxu1 %v2314_v8  ;;  %2479 = vmatpush.msrb.mxu0 %v2178_v30  ;;  %v2324_v14 = vld [vmem:[#allocation14 + $0x4d8] sm:$0xff]  ;;  %v2187_v23 = vld [vmem:[#allocation14 + $0x90] sm:$0xff] }
 0x311   : > { %2525 = vmatpush.msrb.mxu3 %v2419_v27  ;;  %2506 = vmatpush.msrb.mxu2 %v2283_v33  ;;  %v2316_v3 = vld [vmem:[#allocation14 + $0x498] sm:$0xff]  ;;  %v2179_v8 = vld [vmem:[#allocation14 + $0x50] sm:$0xff] }
 0x312   : > { %2499 = vmatpush.msrb.mxu1 %v2306_v31  ;;  %2480 = vmatpush.msrb.mxu0 %v2170_v35  ;;  %v2204_v18 = vld [vmem:[#allocation14 + $0x118] sm:$0xff]  ;;  %v2171_v30 = vld [vmem:[#allocation14 + $0x10] sm:$0xff] }
 0x313   : > { %2526 = vmatpush.msrb.mxu3 %v2411_v34  ;;  %2507 = vmatpush.msrb.mxu2 %v2275_v36  ;;  %v2308_v7 = vld [vmem:[#allocation14 + $0x458] sm:$0xff] }
 0x314   : > { %2500 = vmatpush.msrb.mxu1 %v2298_v15  ;;  %2545 = vmatpush.msra.mxu0 %v2292_v39  ;;  %v2196_v22 = vld [vmem:[#allocation14 + $0xd8] sm:$0xff]  ;;  %v2421_v15 = vld [vmem:[#allocation14 + $0x7e0] sm:$0xff] }
 0x315   : > { %2527 = vmatpush.msrb.mxu3 %v2403_v21  ;;  %2508 = vmatpush.msrb.mxu2 %v2267_v41  ;;  %v2300_v32 = vld [vmem:[#allocation14 + $0x418] sm:$0xff]  ;;  %v2422_v21 = vld [vmem:[#allocation14 + $0x7e8] sm:$0xff] }
 0x316   : > { %2565 = vmatpush.msra.mxu1 %v2420_v38  ;;  %2546 = vmatpush.msra.mxu0 %v2284_v42  ;;  %v2188_v24 = vld [vmem:[#allocation14 + $0x98] sm:$0xff]  ;;  %v2414_v41 = vld [vmem:[#allocation14 + $0x7a8] sm:$0xff] }
 0x317   : > { %2528 = vmatpush.msrb.mxu3 %v2395_v40  ;;  %2509 = vmatpush.msrb.mxu2 %v2259_v44  ;;  %v2180_v27 = vld [vmem:[#allocation14 + $0x58] sm:$0xff]  ;;  %v2413_v40 = vld [vmem:[#allocation14 + $0x7a0] sm:$0xff]  ;;  %v2294_v42 = vld [vmem:[#allocation14 + $0x3e8] sm:$0xff] }
 0x318   : > { %2566 = vmatpush.msra.mxu1 %v2412_v28  ;;  %2547 = vmatpush.msra.mxu0 %v2276_v47  ;;  %v2172_v33 = vld [vmem:[#allocation14 + $0x18] sm:$0xff]  ;;  %v2293_v28 = vld [vmem:[#allocation14 + $0x3e0] sm:$0xff]  ;;  %v2406_v44 = vld [vmem:[#allocation14 + $0x768] sm:$0xff] }
 0x319   : > { %2529 = vmatpush.msrb.mxu3 %v2387_v43  ;;  %2510 = vmatpush.msrb.mxu2 %v2251_v48  ;;  %v2405_v43 = vld [vmem:[#allocation14 + $0x760] sm:$0xff]  ;;  %v2286_v47 = vld [vmem:[#allocation14 + $0x3a8] sm:$0xff] }
 0x31a   : > { %2567 = vmatpush.msra.mxu1 %v2404_v29  ;;  %2548 = vmatpush.msra.mxu0 %v2268_v46  ;;  %v2285_v29 = vld [vmem:[#allocation14 + $0x3a0] sm:$0xff]  ;;  %v2398_v48 = vld [vmem:[#allocation14 + $0x728] sm:$0xff] }
 0x31b   : > { %2530 = vmatpush.msrb.mxu3 %v2379_v45  ;;  %2511 = vmatpush.msrb.mxu2 %v2243_v50  ;;  %v2397_v45 = vld [vmem:[#allocation14 + $0x720] sm:$0xff]  ;;  %v2390_v46 = vld [vmem:[#allocation14 + $0x6e8] sm:$0xff] }
 0x31c   : > { %2568 = vmatpush.msra.mxu1 %v2396_v49  ;;  %2549 = vmatpush.msra.mxu0 %v2260_v51  ;;  %v2389_v49 = vld [vmem:[#allocation14 + $0x6e0] sm:$0xff]  ;;  %v2278_v50 = vld [vmem:[#allocation14 + $0x368] sm:$0xff] }
 0x31d   : > { %2531 = vmatpush.msrb.mxu3 %v2371_v26  ;;  %2512 = vmatpush.msrb.mxu2 %v2235_v53  ;;  %v2277_v26 = vld [vmem:[#allocation14 + $0x360] sm:$0xff]  ;;  %v2382_v51 = vld [vmem:[#allocation14 + $0x6a8] sm:$0xff] }
 0x31e   : > { %2569 = vmatpush.msra.mxu1 %v2388_v37  ;;  %2550 = vmatpush.msra.mxu0 %v2252_v55  ;;  %v2381_v37 = vld [vmem:[#allocation14 + $0x6a0] sm:$0xff]  ;;  %v2270_v53 = vld [vmem:[#allocation14 + $0x328] sm:$0xff] }
 0x31f   : > { %2532 = vmatpush.msrb.mxu3 %v2363_v52  ;;  %2513 = vmatpush.msrb.mxu2 %v2227_v57  ;;  %v2269_v52 = vld [vmem:[#allocation14 + $0x320] sm:$0xff]  ;;  %v2374_v55 = vld [vmem:[#allocation14 + $0x668] sm:$0xff] }
 0x320   : > { %2570 = vmatpush.msra.mxu1 %v2380_v54  ;;  %2551 = vmatpush.msra.mxu0 %v2244_v59  ;;  %v2373_v54 = vld [vmem:[#allocation14 + $0x660] sm:$0xff]  ;;  %v2366_v59 = vld [vmem:[#allocation14 + $0x628] sm:$0xff] }
 0x321   : > { %2533 = vmatpush.msrb.mxu3 %v2355_v56  ;;  %2514 = vmatpush.msrb.mxu2 %v2219_v1  ;;  %v2261_v56 = vld [vmem:[#allocation14 + $0x2e0] sm:$0xff] }
 0x322   : > { %2571 = vmatpush.msra.mxu1 %v2372_v58  ;;  %2552 = vmatpush.msra.mxu0 %v2236_v10  ;;  %v2365_v57 = vld [vmem:[#allocation14 + $0x620] sm:$0xff]  ;;  %v2262_v58 = vld [vmem:[#allocation14 + $0x2e8] sm:$0xff] }
 0x323   : > { %2534 = vmatpush.msrb.mxu3 %v2347_v25  ;;  %2515 = vmatpush.msrb.mxu2 %v2211_v61  ;;  %v2253_v25 = vld [vmem:[#allocation14 + $0x2a0] sm:$0xff]  ;;  %v2358_v10 = vld [vmem:[#allocation14 + $0x5e8] sm:$0xff] }
 0x324   : > { %2572 = vmatpush.msra.mxu1 %v2364_v60  ;;  %2553 = vmatpush.msra.mxu0 %v2228_v2  ;;  %v2357_v1 = vld [vmem:[#allocation14 + $0x5e0] sm:$0xff]  ;;  %v2254_v60 = vld [vmem:[#allocation14 + $0x2a8] sm:$0xff] }
 0x325   : > { %2535 = vmatpush.msrb.mxu3 %v2339_v17  ;;  %2516 = vmatpush.msrb.mxu2 %v2203_v62  ;;  %v2245_v17 = vld [vmem:[#allocation14 + $0x260] sm:$0xff]  ;;  %v2350_v2 = vld [vmem:[#allocation14 + $0x5a8] sm:$0xff] }
 0x326   : > { %2573 = vmatpush.msra.mxu1 %v2356_v63  ;;  %2554 = vmatpush.msra.mxu0 %v2220_v5  ;;  %v2349_v61 = vld [vmem:[#allocation14 + $0x5a0] sm:$0xff]  ;;  %v2246_v63 = vld [vmem:[#allocation14 + $0x268] sm:$0xff] }
 0x327   : > { %2536 = vmatpush.msrb.mxu3 %v2331_v0  ;;  %2517 = vmatpush.msrb.mxu2 %v2195_v19  ;;  %v2237_v0 = vld [vmem:[#allocation14 + $0x220] sm:$0xff]  ;;  %v2238_v5 = vld [vmem:[#allocation14 + $0x228] sm:$0xff] }
 0x328   : > { %2574 = vmatpush.msra.mxu1 %v2348_v4  ;;  %2555 = vmatpush.msra.mxu0 %v2212_v11  ;;  %v2341_v4 = vld [vmem:[#allocation14 + $0x560] sm:$0xff]  ;;  %v2222_v62 = vld [vmem:[#allocation14 + $0x1a8] sm:$0xff] }
 0x329   : > { %2537 = vmatpush.msrb.mxu3 %v2323_v6  ;;  %2518 = vmatpush.msrb.mxu2 %v2187_v23  ;;  %v2342_v6 = vld [vmem:[#allocation14 + $0x568] sm:$0xff]  ;;  %v2333_v11 = vld [vmem:[#allocation14 + $0x520] sm:$0xff] }
 0x32a   : > { %2575 = vmatpush.msra.mxu1 %v2340_v9  ;;  %2556 = vmatpush.msra.mxu0 %v2204_v18  ;;  %v2229_v9 = vld [vmem:[#allocation14 + $0x1e0] sm:$0xff]  ;;  %v2214_v19 = vld [vmem:[#allocation14 + $0x168] sm:$0xff] }
 0x32b   : > { %2538 = vmatpush.msrb.mxu3 %v2315_v12  ;;  %2519 = vmatpush.msrb.mxu2 %v2179_v8  ;;  %v2230_v12 = vld [vmem:[#allocation14 + $0x1e8] sm:$0xff]  ;;  %v2213_v18 = vld [vmem:[#allocation14 + $0x160] sm:$0xff] }
 0x32c   : > { %2576 = vmatpush.msra.mxu1 %v2332_v13  ;;  %2557 = vmatpush.msra.mxu0 %v2196_v22  ;;  %v2334_v13 = vld [vmem:[#allocation14 + $0x528] sm:$0xff]  ;;  %v2205_v22 = vld [vmem:[#allocation14 + $0x120] sm:$0xff] }
 0x32d   : > { %2539 = vmatpush.msrb.mxu3 %v2307_v16  ;;  %2520 = vmatpush.msrb.mxu2 %v2171_v30  ;;  %v2326_v16 = vld [vmem:[#allocation14 + $0x4e8] sm:$0xff]  ;;  %v2197_v8 = vld [vmem:[#allocation14 + $0xe0] sm:$0xff] }
 0x32e   : > { %2577 = vmatpush.msra.mxu1 %v2324_v14  ;;  %2558 = vmatpush.msra.mxu0 %v2188_v24  ;;  %v2221_v14 = vld [vmem:[#allocation14 + $0x1a0] sm:$0xff]  ;;  %v2206_v23 = vld [vmem:[#allocation14 + $0x128] sm:$0xff] }
 0x32f   : > { %2540 = vmatpush.msrb.mxu3 %v2299_v20  ;;  %v2318_v20 = vld [vmem:[#allocation14 + $0x4a8] sm:$0xff] }
 0x330   : > { %2578 = vmatpush.msra.mxu1 %v2316_v3  ;;  %2559 = vmatpush.msra.mxu0 %v2180_v27  ;;  %v2325_v3 = vld [vmem:[#allocation14 + $0x4e0] sm:$0xff]  ;;  %v2310_v24 = vld [vmem:[#allocation14 + $0x468] sm:$0xff] }
 0x331   : > { %v2301_v27 = vld [vmem:[#allocation14 + $0x420] sm:$0xff]  ;;  %v2198_v30 = vld [vmem:[#allocation14 + $0xe8] sm:$0xff] }
 0x332   : > { %2579 = vmatpush.msra.mxu1 %v2308_v7  ;;  %2560 = vmatpush.msra.mxu0 %v2172_v33  ;;  %v2317_v7 = vld [vmem:[#allocation14 + $0x4a0] sm:$0xff]  ;;  %v2302_v33 = vld [vmem:[#allocation14 + $0x428] sm:$0xff] }
 0x334   : > { %2580 = vmatpush.msra.mxu1 %v2300_v32  ;;  %v2309_v32 = vld [vmem:[#allocation14 + $0x460] sm:$0xff] }
 0x36f   : > { %v2143_v31 = vpop.f32.mrf.mxu0 }
 0x370   : > { %v2103_v34 = vpop.f32.mrf.mxu2 }
 0x372   : > { %v2163_v35 = vpop.f32.mrf.mxu1 }
 0x373   : > { %v7934_v36 = vadd.f32 %v2163_v35, %v2143_v31  ;;  %v2123_v38 = vpop.f32.mrf.mxu3  ;;  %v2423_v31 = vld [vmem:[#allocation14 + $0x7f0] sm:$0xff]  ;;  %v2189_v35 = vld [vmem:[#allocation14 + $0xa0] sm:$0xff] }
 0x374   : > { %v7936_v39 = vadd.f32 %v2123_v38, %v2103_v34  ;;  %v2424_v34 = vld [vmem:[#allocation14 + $0x7f8] sm:$0xff] }
 0x375   : > { %2167 = vst [vmem:[%s7932_s23 + $0x8] sm:$0xff] %v7934_v36  ;;  %2461 = vmatmul.f32.vlgmr.msra.gmra.mxu3 %v7934_v36  ;;  %2501 = vmatmul.f32.vlgmr.msrb.gmra.mxu1 %v7934_v36  ;;  %v2416_v38 = vld [vmem:[#allocation14 + $0x7b8] sm:$0xff] }
 0x376   : > { %2605 = vmatpush.msra.mxu3 %v2421_v15  ;;  %2645 = vmatpush.msrb.mxu1 %v2422_v21  ;;  %2166 = vst [vmem:[%s7932_s23] sm:$0xff] %v7936_v39  ;;  %v2190_v15 = vld [vmem:[#allocation14 + $0xa8] sm:$0xff]  ;;  %v2415_v21 = vld [vmem:[#allocation14 + $0x7b0] sm:$0xff] }
 0x377   : > { %2441 = vmatmul.f32.vlgmr.msra.gmra.mxu2 %v7936_v39  ;;  %2481 = vmatmul.f32.vlgmr.msrb.gmra.mxu0 %v7936_v39 }
 0x378   : > { %2606 = vmatpush.msra.mxu3 %v2413_v40  ;;  %2646 = vmatpush.msrb.mxu1 %v2414_v41  ;;  %v2181_v40 = vld [vmem:[#allocation14 + $0x60] sm:$0xff]  ;;  %v2182_v41 = vld [vmem:[#allocation14 + $0x68] sm:$0xff] }
 0x379   : > { %2585 = vmatpush.msra.mxu2 %v2293_v28  ;;  %2625 = vmatpush.msrb.mxu0 %v2294_v42  ;;  %v2407_v28 = vld [vmem:[#allocation14 + $0x770] sm:$0xff]  ;;  %v2408_v42 = vld [vmem:[#allocation14 + $0x778] sm:$0xff] }
 0x37a   : > { %2607 = vmatpush.msra.mxu3 %v2405_v43  ;;  %2647 = vmatpush.msrb.mxu1 %v2406_v44  ;;  %v2173_v43 = vld [vmem:[#allocation14 + $0x20] sm:$0xff]  ;;  %v2174_v44 = vld [vmem:[#allocation14 + $0x28] sm:$0xff] }
 0x37b   : > { %2586 = vmatpush.msra.mxu2 %v2285_v29  ;;  %2626 = vmatpush.msrb.mxu0 %v2286_v47  ;;  %v2295_v29 = vld [vmem:[#allocation14 + $0x3f0] sm:$0xff] }
 0x37c   : > { %2608 = vmatpush.msra.mxu3 %v2397_v45  ;;  %2648 = vmatpush.msrb.mxu1 %v2398_v48  ;;  %v2399_v47 = vld [vmem:[#allocation14 + $0x730] sm:$0xff]  ;;  %v2296_v45 = vld [vmem:[#allocation14 + $0x3f8] sm:$0xff] }
 0x37d   : > { %2541 = vmatmul.f32.vlgmr.msrb.gmra.mxu3 %v7934_v36  ;;  %2581 = vmatmul.f32.vlgmr.msra.gmra.mxu1 %v7934_v36  ;;  %v2400_v48 = vld [vmem:[#allocation14 + $0x738] sm:$0xff] }
 0x37e   : > { %2609 = vmatpush.msra.mxu3 %v2389_v49  ;;  %2649 = vmatpush.msrb.mxu1 %v2390_v46  ;;  %v2287_v49 = vld [vmem:[#allocation14 + $0x3b0] sm:$0xff] }
 0x37f   : > { %2587 = vmatpush.msra.mxu2 %v2277_v26  ;;  %2627 = vmatpush.msrb.mxu0 %v2278_v50  ;;  %v2391_v46 = vld [vmem:[#allocation14 + $0x6f0] sm:$0xff]  ;;  %v2288_v26 = vld [vmem:[#allocation14 + $0x3b8] sm:$0xff] }
 0x380   : > { %2610 = vmatpush.msra.mxu3 %v2381_v37  ;;  %2650 = vmatpush.msrb.mxu1 %v2382_v51  ;;  %v2392_v50 = vld [vmem:[#allocation14 + $0x6f8] sm:$0xff]  ;;  %v2279_v37 = vld [vmem:[#allocation14 + $0x370] sm:$0xff] }
 0x381   : > { %2588 = vmatpush.msra.mxu2 %v2269_v52  ;;  %2628 = vmatpush.msrb.mxu0 %v2270_v53  ;;  %v2383_v51 = vld [vmem:[#allocation14 + $0x6b0] sm:$0xff]  ;;  %v2280_v52 = vld [vmem:[#allocation14 + $0x378] sm:$0xff] }
 0x382   : > { %2611 = vmatpush.msra.mxu3 %v2373_v54  ;;  %2651 = vmatpush.msrb.mxu1 %v2374_v55  ;;  %v2384_v53 = vld [vmem:[#allocation14 + $0x6b8] sm:$0xff]  ;;  %v2271_v54 = vld [vmem:[#allocation14 + $0x330] sm:$0xff] }
 0x383   : > { %2521 = vmatmul.f32.vlgmr.msrb.gmra.mxu2 %v7936_v39  ;;  %2561 = vmatmul.f32.vlgmr.msra.gmra.mxu0 %v7936_v39  ;;  %v2375_v55 = vld [vmem:[#allocation14 + $0x670] sm:$0xff] }
 0x384   : > { %2589 = vmatpush.msra.mxu2 %v2261_v56  ;;  %2612 = vmatpush.msra.mxu3 %v2365_v57  ;;  %v2272_v56 = vld [vmem:[#allocation14 + $0x338] sm:$0xff] }
 0x385   : > { %2629 = vmatpush.msrb.mxu0 %v2262_v58  ;;  %2652 = vmatpush.msrb.mxu1 %v2366_v59  ;;  %v2376_v57 = vld [vmem:[#allocation14 + $0x678] sm:$0xff]  ;;  %v2263_v58 = vld [vmem:[#allocation14 + $0x2f0] sm:$0xff] }
 0x386   : > { %2590 = vmatpush.msra.mxu2 %v2253_v25  ;;  %2613 = vmatpush.msra.mxu3 %v2357_v1  ;;  %v2367_v59 = vld [vmem:[#allocation14 + $0x630] sm:$0xff]  ;;  %v2264_v25 = vld [vmem:[#allocation14 + $0x2f8] sm:$0xff] }
 0x387   : > { %2630 = vmatpush.msrb.mxu0 %v2254_v60  ;;  %2653 = vmatpush.msrb.mxu1 %v2358_v10  ;;  %v2368_v1 = vld [vmem:[#allocation14 + $0x638] sm:$0xff]  ;;  %v2255_v60 = vld [vmem:[#allocation14 + $0x2b0] sm:$0xff] }
 0x388   : > { %2591 = vmatpush.msra.mxu2 %v2245_v17  ;;  %2614 = vmatpush.msra.mxu3 %v2349_v61  ;;  %v2359_v10 = vld [vmem:[#allocation14 + $0x5f0] sm:$0xff]  ;;  %v2256_v17 = vld [vmem:[#allocation14 + $0x2b8] sm:$0xff] }
 0x389   : > { %2631 = vmatpush.msrb.mxu0 %v2246_v63  ;;  %2654 = vmatpush.msrb.mxu1 %v2350_v2  ;;  %v2360_v61 = vld [vmem:[#allocation14 + $0x5f8] sm:$0xff]  ;;  %v2247_v63 = vld [vmem:[#allocation14 + $0x270] sm:$0xff] }
 0x38a   : > { %2592 = vmatpush.msra.mxu2 %v2237_v0  ;;  %2615 = vmatpush.msra.mxu3 %v2341_v4  ;;  %v2351_v2 = vld [vmem:[#allocation14 + $0x5b0] sm:$0xff]  ;;  %v2248_v0 = vld [vmem:[#allocation14 + $0x278] sm:$0xff] }
 0x38b   : > { %2632 = vmatpush.msrb.mxu0 %v2238_v5  ;;  %2655 = vmatpush.msrb.mxu1 %v2342_v6  ;;  %v2352_v4 = vld [vmem:[#allocation14 + $0x5b8] sm:$0xff]  ;;  %v2239_v5 = vld [vmem:[#allocation14 + $0x230] sm:$0xff] }
 0x38c   : > { %2593 = vmatpush.msra.mxu2 %v2229_v9  ;;  %2616 = vmatpush.msra.mxu3 %v2333_v11  ;;  %v2343_v6 = vld [vmem:[#allocation14 + $0x570] sm:$0xff]  ;;  %v2240_v9 = vld [vmem:[#allocation14 + $0x238] sm:$0xff] }
 0x38d   : > { %2633 = vmatpush.msrb.mxu0 %v2230_v12  ;;  %2656 = vmatpush.msrb.mxu1 %v2334_v13  ;;  %v2344_v11 = vld [vmem:[#allocation14 + $0x578] sm:$0xff]  ;;  %v2231_v12 = vld [vmem:[#allocation14 + $0x1f0] sm:$0xff] }
 0x38e   : > { %2594 = vmatpush.msra.mxu2 %v2221_v14  ;;  %2617 = vmatpush.msra.mxu3 %v2325_v3  ;;  %v2335_v13 = vld [vmem:[#allocation14 + $0x530] sm:$0xff]  ;;  %v2232_v14 = vld [vmem:[#allocation14 + $0x1f8] sm:$0xff] }
 0x38f   : > { %2634 = vmatpush.msrb.mxu0 %v2222_v62  ;;  %2657 = vmatpush.msrb.mxu1 %v2326_v16  ;;  %v2336_v3 = vld [vmem:[#allocation14 + $0x538] sm:$0xff]  ;;  %v2223_v62 = vld [vmem:[#allocation14 + $0x1b0] sm:$0xff] }
 0x390   : > { %2595 = vmatpush.msra.mxu2 %v2213_v18  ;;  %2618 = vmatpush.msra.mxu3 %v2317_v7  ;;  %v2327_v16 = vld [vmem:[#allocation14 + $0x4f0] sm:$0xff]  ;;  %v2224_v18 = vld [vmem:[#allocation14 + $0x1b8] sm:$0xff] }
 0x391   : > { %2635 = vmatpush.msrb.mxu0 %v2214_v19  ;;  %2658 = vmatpush.msrb.mxu1 %v2318_v20  ;;  %v2328_v7 = vld [vmem:[#allocation14 + $0x4f8] sm:$0xff]  ;;  %v2215_v19 = vld [vmem:[#allocation14 + $0x170] sm:$0xff] }
 0x392   : > { %2596 = vmatpush.msra.mxu2 %v2205_v22  ;;  %2619 = vmatpush.msra.mxu3 %v2309_v32  ;;  %v2319_v20 = vld [vmem:[#allocation14 + $0x4b0] sm:$0xff]  ;;  %v2216_v22 = vld [vmem:[#allocation14 + $0x178] sm:$0xff] }
 0x393   : > { %2636 = vmatpush.msrb.mxu0 %v2206_v23  ;;  %2659 = vmatpush.msrb.mxu1 %v2310_v24  ;;  %v2320_v32 = vld [vmem:[#allocation14 + $0x4b8] sm:$0xff]  ;;  %v2207_v23 = vld [vmem:[#allocation14 + $0x130] sm:$0xff] }
 0x394   : > { %2597 = vmatpush.msra.mxu2 %v2197_v8  ;;  %2620 = vmatpush.msra.mxu3 %v2301_v27  ;;  %v2311_v24 = vld [vmem:[#allocation14 + $0x470] sm:$0xff]  ;;  %v2208_v8 = vld [vmem:[#allocation14 + $0x138] sm:$0xff] }
 0x395   : > { %2637 = vmatpush.msrb.mxu0 %v2198_v30  ;;  %2660 = vmatpush.msrb.mxu1 %v2302_v33  ;;  %v2312_v27 = vld [vmem:[#allocation14 + $0x478] sm:$0xff]  ;;  %v2199_v30 = vld [vmem:[#allocation14 + $0xf0] sm:$0xff] }
 0x396   : > { %2621 = vmatmul.f32.vlgmr.msra.gmra.mxu3 %v7934_v36  ;;  %2661 = vmatmul.f32.vlgmr.msrb.gmra.mxu1 %v7934_v36  ;;  %v2303_v33 = vld [vmem:[#allocation14 + $0x430] sm:$0xff] }
 0x397   : > { %2685 = vmatpush.msrb.mxu3 %v2423_v31  ;;  %2725 = vmatpush.msra.mxu1 %v2424_v34  ;;  %v2200_v31 = vld [vmem:[#allocation14 + $0xf8] sm:$0xff] }
 0x398   : > { %2598 = vmatpush.msra.mxu2 %v2189_v35  ;;  %2638 = vmatpush.msrb.mxu0 %v2190_v15  ;;  %v2304_v34 = vld [vmem:[#allocation14 + $0x438] sm:$0xff]  ;;  %v3025_v35 = vld [vmem:[#allocation14 + $0xfc0] sm:$0xff]  ;;  %v3026_v15 = vld [vmem:[#allocation14 + $0xfc8] sm:$0xff] }
 0x399   : > { %2686 = vmatpush.msrb.mxu3 %v2415_v21  ;;  %2726 = vmatpush.msra.mxu1 %v2416_v38  ;;  %v2191_v21 = vld [vmem:[#allocation14 + $0xb0] sm:$0xff]  ;;  %v2192_v38 = vld [vmem:[#allocation14 + $0xb8] sm:$0xff] }
 0x39a   : > { %2599 = vmatpush.msra.mxu2 %v2181_v40  ;;  %2639 = vmatpush.msrb.mxu0 %v2182_v41  ;;  %v3017_v40 = vld [vmem:[#allocation14 + $0xf80] sm:$0xff]  ;;  %v3018_v41 = vld [vmem:[#allocation14 + $0xf88] sm:$0xff] }
 0x39b   : > { %2687 = vmatpush.msrb.mxu3 %v2407_v28  ;;  %2727 = vmatpush.msra.mxu1 %v2408_v42  ;;  %v2183_v28 = vld [vmem:[#allocation14 + $0x70] sm:$0xff]  ;;  %v2184_v42 = vld [vmem:[#allocation14 + $0x78] sm:$0xff] }
 0x39c   : > { %2600 = vmatpush.msra.mxu2 %v2173_v43  ;;  %2640 = vmatpush.msrb.mxu0 %v2174_v44  ;;  %v3009_v43 = vld [vmem:[#allocation14 + $0xf40] sm:$0xff]  ;;  %v3010_v44 = vld [vmem:[#allocation14 + $0xf48] sm:$0xff] }
 0x39d   : > { %2601 = vmatmul.f32.vlgmr.msra.gmra.mxu2 %v7936_v39  ;;  %2641 = vmatmul.f32.vlgmr.msrb.gmra.mxu0 %v7936_v39 }
 0x39e   : > { %2665 = vmatpush.msrb.mxu2 %v2295_v29  ;;  %2688 = vmatpush.msrb.mxu3 %v2399_v47  ;;  %v2175_v29 = vld [vmem:[#allocation14 + $0x30] sm:$0xff]  ;;  %v2176_v47 = vld [vmem:[#allocation14 + $0x38] sm:$0xff] }
 0x39f   : > { %2705 = vmatpush.msra.mxu0 %v2296_v45  ;;  %2728 = vmatpush.msra.mxu1 %v2400_v48  ;;  %v2897_v45 = vld [vmem:[#allocation14 + $0xbc0] sm:$0xff] }
 0x3a0   : > { %2666 = vmatpush.msrb.mxu2 %v2287_v49  ;;  %2689 = vmatpush.msrb.mxu3 %v2391_v46  ;;  %v3001_v48 = vld [vmem:[#allocation14 + $0xf00] sm:$0xff]  ;;  %v2898_v49 = vld [vmem:[#allocation14 + $0xbc8] sm:$0xff] }
 0x3a1   : > { %2706 = vmatpush.msra.mxu0 %v2288_v26  ;;  %2729 = vmatpush.msra.mxu1 %v2392_v50  ;;  %v3002_v46 = vld [vmem:[#allocation14 + $0xf08] sm:$0xff]  ;;  %v2889_v26 = vld [vmem:[#allocation14 + $0xb80] sm:$0xff] }
 0x3a2   : > { %2667 = vmatpush.msrb.mxu2 %v2279_v37  ;;  %2690 = vmatpush.msrb.mxu3 %v2383_v51  ;;  %v2993_v50 = vld [vmem:[#allocation14 + $0xec0] sm:$0xff]  ;;  %v2890_v37 = vld [vmem:[#allocation14 + $0xb88] sm:$0xff] }
 0x3a3   : > { %2707 = vmatpush.msra.mxu0 %v2280_v52  ;;  %2730 = vmatpush.msra.mxu1 %v2384_v53  ;;  %v2994_v51 = vld [vmem:[#allocation14 + $0xec8] sm:$0xff]  ;;  %v2881_v52 = vld [vmem:[#allocation14 + $0xb40] sm:$0xff] }
 0x3a4   : > { %2668 = vmatpush.msrb.mxu2 %v2271_v54  ;;  %2691 = vmatpush.msrb.mxu3 %v2375_v55  ;;  %v2985_v53 = vld [vmem:[#allocation14 + $0xe80] sm:$0xff]  ;;  %v2882_v54 = vld [vmem:[#allocation14 + $0xb48] sm:$0xff] }
 0x3a5   : > { %2708 = vmatpush.msra.mxu0 %v2272_v56  ;;  %2731 = vmatpush.msra.mxu1 %v2376_v57  ;;  %v2986_v55 = vld [vmem:[#allocation14 + $0xe88] sm:$0xff]  ;;  %v2873_v56 = vld [vmem:[#allocation14 + $0xb00] sm:$0xff] }
 0x3a6   : > { %2669 = vmatpush.msrb.mxu2 %v2263_v58  ;;  %2692 = vmatpush.msrb.mxu3 %v2367_v59  ;;  %v2977_v57 = vld [vmem:[#allocation14 + $0xe40] sm:$0xff]  ;;  %v2874_v58 = vld [vmem:[#allocation14 + $0xb08] sm:$0xff] }
 0x3a7   : > { %2709 = vmatpush.msra.mxu0 %v2264_v25  ;;  %2732 = vmatpush.msra.mxu1 %v2368_v1  ;;  %v2978_v59 = vld [vmem:[#allocation14 + $0xe48] sm:$0xff]  ;;  %v2865_v25 = vld [vmem:[#allocation14 + $0xac0] sm:$0xff] }
 0x3a8   : > { %2670 = vmatpush.msrb.mxu2 %v2255_v60  ;;  %2693 = vmatpush.msrb.mxu3 %v2359_v10  ;;  %v2969_v1 = vld [vmem:[#allocation14 + $0xe00] sm:$0xff]  ;;  %v2866_v60 = vld [vmem:[#allocation14 + $0xac8] sm:$0xff] }
 0x3a9   : > { %2710 = vmatpush.msra.mxu0 %v2256_v17  ;;  %2733 = vmatpush.msra.mxu1 %v2360_v61  ;;  %v2970_v10 = vld [vmem:[#allocation14 + $0xe08] sm:$0xff]  ;;  %v2857_v17 = vld [vmem:[#allocation14 + $0xa80] sm:$0xff] }
 0x3aa   : > { %2671 = vmatpush.msrb.mxu2 %v2247_v63  ;;  %2694 = vmatpush.msrb.mxu3 %v2351_v2  ;;  %v2961_v61 = vld [vmem:[#allocation14 + $0xdc0] sm:$0xff]  ;;  %v2858_v63 = vld [vmem:[#allocation14 + $0xa88] sm:$0xff] }
 0x3ab   : > { %2711 = vmatpush.msra.mxu0 %v2248_v0  ;;  %2734 = vmatpush.msra.mxu1 %v2352_v4  ;;  %v2962_v2 = vld [vmem:[#allocation14 + $0xdc8] sm:$0xff]  ;;  %v2849_v0 = vld [vmem:[#allocation14 + $0xa40] sm:$0xff] }
 0x3ac   : > { %2672 = vmatpush.msrb.mxu2 %v2239_v5  ;;  %2695 = vmatpush.msrb.mxu3 %v2343_v6  ;;  %v2953_v4 = vld [vmem:[#allocation14 + $0xd80] sm:$0xff]  ;;  %v2850_v5 = vld [vmem:[#allocation14 + $0xa48] sm:$0xff] }
 0x3ad   : > { %2712 = vmatpush.msra.mxu0 %v2240_v9  ;;  %2735 = vmatpush.msra.mxu1 %v2344_v11  ;;  %v2954_v6 = vld [vmem:[#allocation14 + $0xd88] sm:$0xff]  ;;  %v2841_v9 = vld [vmem:[#allocation14 + $0xa00] sm:$0xff] }
 0x3ae   : > { %2673 = vmatpush.msrb.mxu2 %v2231_v12  ;;  %2696 = vmatpush.msrb.mxu3 %v2335_v13  ;;  %v2945_v11 = vld [vmem:[#allocation14 + $0xd40] sm:$0xff]  ;;  %v2842_v12 = vld [vmem:[#allocation14 + $0xa08] sm:$0xff] }
 0x3af   : > { %2713 = vmatpush.msra.mxu0 %v2232_v14  ;;  %2736 = vmatpush.msra.mxu1 %v2336_v3  ;;  %v2946_v13 = vld [vmem:[#allocation14 + $0xd48] sm:$0xff]  ;;  %v2833_v14 = vld [vmem:[#allocation14 + $0x9c0] sm:$0xff] }
 0x3b0   : > { %2674 = vmatpush.msrb.mxu2 %v2223_v62  ;;  %2697 = vmatpush.msrb.mxu3 %v2327_v16  ;;  %v2937_v3 = vld [vmem:[#allocation14 + $0xd00] sm:$0xff]  ;;  %v2834_v62 = vld [vmem:[#allocation14 + $0x9c8] sm:$0xff] }
 0x3b1   : > { %2714 = vmatpush.msra.mxu0 %v2224_v18  ;;  %2737 = vmatpush.msra.mxu1 %v2328_v7  ;;  %v2938_v16 = vld [vmem:[#allocation14 + $0xd08] sm:$0xff]  ;;  %v2825_v18 = vld [vmem:[#allocation14 + $0x980] sm:$0xff] }
 0x3b2   : > { %2675 = vmatpush.msrb.mxu2 %v2215_v19  ;;  %2698 = vmatpush.msrb.mxu3 %v2319_v20  ;;  %v2929_v7 = vld [vmem:[#allocation14 + $0xcc0] sm:$0xff]  ;;  %v2826_v19 = vld [vmem:[#allocation14 + $0x988] sm:$0xff] }
 0x3b3   : > { %2715 = vmatpush.msra.mxu0 %v2216_v22  ;;  %2738 = vmatpush.msra.mxu1 %v2320_v32  ;;  %v2930_v20 = vld [vmem:[#allocation14 + $0xcc8] sm:$0xff]  ;;  %v2817_v22 = vld [vmem:[#allocation14 + $0x940] sm:$0xff] }
 0x3b4   : > { %2676 = vmatpush.msrb.mxu2 %v2207_v23  ;;  %2699 = vmatpush.msrb.mxu3 %v2311_v24  ;;  %v2921_v32 = vld [vmem:[#allocation14 + $0xc80] sm:$0xff]  ;;  %v2818_v23 = vld [vmem:[#allocation14 + $0x948] sm:$0xff] }
 0x3b5   : > { %2716 = vmatpush.msra.mxu0 %v2208_v8  ;;  %2739 = vmatpush.msra.mxu1 %v2312_v27  ;;  %v2922_v24 = vld [vmem:[#allocation14 + $0xc88] sm:$0xff]  ;;  %v2809_v8 = vld [vmem:[#allocation14 + $0x900] sm:$0xff] }
 0x3b6   : > { %2677 = vmatpush.msrb.mxu2 %v2199_v30  ;;  %2700 = vmatpush.msrb.mxu3 %v2303_v33  ;;  %v2913_v27 = vld [vmem:[#allocation14 + $0xc40] sm:$0xff]  ;;  %v2810_v30 = vld [vmem:[#allocation14 + $0x908] sm:$0xff] }
 0x3b7   : > { %2717 = vmatpush.msra.mxu0 %v2200_v31  ;;  %2740 = vmatpush.msra.mxu1 %v2304_v34  ;;  %v2914_v33 = vld [vmem:[#allocation14 + $0xc48] sm:$0xff]  ;;  %v2801_v31 = vld [vmem:[#allocation14 + $0x8c0] sm:$0xff] }
 0x3b8   : > { %2701 = vmatmul.f32.vlgmr.msrb.gmra.mxu3 %v7934_v36  ;;  %2741 = vmatmul.f32.vlgmr.msra.gmra.mxu1 %v7934_v36  ;;  %v2905_v34 = vld [vmem:[#allocation14 + $0xc00] sm:$0xff] }
 0x3b9   : > { %3059 = vmatpush.msra.mxu3 %v3025_v35  ;;  %3099 = vmatpush.msrb.mxu1 %v3026_v15  ;;  %v2802_v35 = vld [vmem:[#allocation14 + $0x8c8] sm:$0xff] }
 0x3ba   : > { %2678 = vmatpush.msrb.mxu2 %v2191_v21  ;;  %2718 = vmatpush.msra.mxu0 %v2192_v38  ;;  %v2906_v15 = vld [vmem:[#allocation14 + $0xc08] sm:$0xff]  ;;  %v7959_v21 = vrot.slane %v7934_v36, 1  ;;  %v3027_v38 = vld [vmem:[#allocation14 + $0xfd0] sm:$0xff] }
 0x3bb   : > { %3060 = vmatpush.msra.mxu3 %v3017_v40  ;;  %3100 = vmatpush.msrb.mxu1 %v3018_v41  ;;  %v3028_v40 = vld [vmem:[#allocation14 + $0xfd8] sm:$0xff]  ;;  %v2793_v41 = vld [vmem:[#allocation14 + $0x880] sm:$0xff]  ;;  %v3011_v36 = vld [vmem:[#allocation14 + $0xf50] sm:$0xff] }
 0x3bc   : > { %2679 = vmatpush.msrb.mxu2 %v2183_v28  ;;  %2719 = vmatpush.msra.mxu0 %v2184_v42  ;;  %v2794_v28 = vld [vmem:[#allocation14 + $0x888] sm:$0xff]  ;;  %v3019_v42 = vld [vmem:[#allocation14 + $0xf90] sm:$0xff] }
 0x3bd   : > { %3061 = vmatpush.msra.mxu3 %v3009_v43  ;;  %3101 = vmatpush.msrb.mxu1 %v3010_v44  ;;  %v3020_v43 = vld [vmem:[#allocation14 + $0xf98] sm:$0xff]  ;;  %v2785_v44 = vld [vmem:[#allocation14 + $0x840] sm:$0xff] }
 0x3be   : > { %2680 = vmatpush.msrb.mxu2 %v2175_v29  ;;  %2720 = vmatpush.msra.mxu0 %v2176_v47  ;;  %v2786_v29 = vld [vmem:[#allocation14 + $0x848] sm:$0xff]  ;;  %v3012_v47 = vld [vmem:[#allocation14 + $0xf58] sm:$0xff] }
 0x3bf   : > { %2681 = vmatmul.f32.vlgmr.msrb.gmra.mxu2 %v7936_v39  ;;  %2721 = vmatmul.f32.vlgmr.msra.gmra.mxu0 %v7936_v39 }
 0x3c0   : > { %3039 = vmatpush.msra.mxu2 %v2897_v45  ;;  %3062 = vmatpush.msra.mxu3 %v3001_v48  ;;  %v2777_v45 = vld [vmem:[#allocation14 + $0x800] sm:$0xff]  ;;  %v2778_v48 = vld [vmem:[#allocation14 + $0x808] sm:$0xff] }
 0x3c1   : > { %3079 = vmatpush.msrb.mxu0 %v2898_v49  ;;  %3102 = vmatpush.msrb.mxu1 %v3002_v46  ;;  %v7964_v49 = vrot.slane %v7936_v39, 1  ;;  %v2899_v46 = vld [vmem:[#allocation14 + $0xbd0] sm:$0xff] }
 0x3c2   : > { %3040 = vmatpush.msra.mxu2 %v2889_v26  ;;  %3063 = vmatpush.msra.mxu3 %v2993_v50  ;;  %v3003_v26 = vld [vmem:[#allocation14 + $0xf10] sm:$0xff]  ;;  %v2900_v50 = vld [vmem:[#allocation14 + $0xbd8] sm:$0xff] }
 0x3c3   : > { %3080 = vmatpush.msrb.mxu0 %v2890_v37  ;;  %3103 = vmatpush.msrb.mxu1 %v2994_v51  ;;  %v3004_v37 = vld [vmem:[#allocation14 + $0xf18] sm:$0xff]  ;;  %v2891_v51 = vld [vmem:[#allocation14 + $0xb90] sm:$0xff] }
 0x3c4   : > { %3041 = vmatpush.msra.mxu2 %v2881_v52  ;;  %3064 = vmatpush.msra.mxu3 %v2985_v53  ;;  %v2995_v52 = vld [vmem:[#allocation14 + $0xed0] sm:$0xff]  ;;  %v2892_v53 = vld [vmem:[#allocation14 + $0xb98] sm:$0xff] }
 0x3c5   : > { %3081 = vmatpush.msrb.mxu0 %v2882_v54  ;;  %3104 = vmatpush.msrb.mxu1 %v2986_v55  ;;  %v2996_v54 = vld [vmem:[#allocation14 + $0xed8] sm:$0xff]  ;;  %v2883_v39 = vld [vmem:[#allocation14 + $0xb50] sm:$0xff] }
 0x3c6   : > { %3042 = vmatpush.msra.mxu2 %v2873_v56  ;;  %3065 = vmatpush.msra.mxu3 %v2977_v57  ;;  %v2987_v55 = vld [vmem:[#allocation14 + $0xe90] sm:$0xff]  ;;  %v2884_v56 = vld [vmem:[#allocation14 + $0xb58] sm:$0xff] }
 0x3c7   : > { %3082 = vmatpush.msrb.mxu0 %v2874_v58  ;;  %3105 = vmatpush.msrb.mxu1 %v2978_v59  ;;  %v2988_v57 = vld [vmem:[#allocation14 + $0xe98] sm:$0xff]  ;;  %v2875_v58 = vld [vmem:[#allocation14 + $0xb10] sm:$0xff] }
 0x3c8   : > { %3043 = vmatpush.msra.mxu2 %v2865_v25  ;;  %3066 = vmatpush.msra.mxu3 %v2969_v1  ;;  %v2979_v59 = vld [vmem:[#allocation14 + $0xe50] sm:$0xff]  ;;  %v2876_v25 = vld [vmem:[#allocation14 + $0xb18] sm:$0xff] }
 0x3c9   : > { %3083 = vmatpush.msrb.mxu0 %v2866_v60  ;;  %3106 = vmatpush.msrb.mxu1 %v2970_v10  ;;  %v2980_v1 = vld [vmem:[#allocation14 + $0xe58] sm:$0xff]  ;;  %v2867_v60 = vld [vmem:[#allocation14 + $0xad0] sm:$0xff] }
 0x3ca   : > { %3044 = vmatpush.msra.mxu2 %v2857_v17  ;;  %3067 = vmatpush.msra.mxu3 %v2961_v61  ;;  %v2971_v10 = vld [vmem:[#allocation14 + $0xe10] sm:$0xff]  ;;  %v2868_v17 = vld [vmem:[#allocation14 + $0xad8] sm:$0xff] }
 0x3cb   : > { %3084 = vmatpush.msrb.mxu0 %v2858_v63  ;;  %3107 = vmatpush.msrb.mxu1 %v2962_v2  ;;  %v2972_v61 = vld [vmem:[#allocation14 + $0xe18] sm:$0xff]  ;;  %v2859_v63 = vld [vmem:[#allocation14 + $0xa90] sm:$0xff] }
 0x3cc   : > { %3045 = vmatpush.msra.mxu2 %v2849_v0  ;;  %3068 = vmatpush.msra.mxu3 %v2953_v4  ;;  %v2963_v2 = vld [vmem:[#allocation14 + $0xdd0] sm:$0xff]  ;;  %v2860_v0 = vld [vmem:[#allocation14 + $0xa98] sm:$0xff] }
 0x3cd   : > { %3085 = vmatpush.msrb.mxu0 %v2850_v5  ;;  %3108 = vmatpush.msrb.mxu1 %v2954_v6  ;;  %v2964_v4 = vld [vmem:[#allocation14 + $0xdd8] sm:$0xff]  ;;  %v2851_v5 = vld [vmem:[#allocation14 + $0xa50] sm:$0xff] }
 0x3ce   : > { %3046 = vmatpush.msra.mxu2 %v2841_v9  ;;  %3069 = vmatpush.msra.mxu3 %v2945_v11  ;;  %v2955_v6 = vld [vmem:[#allocation14 + $0xd90] sm:$0xff]  ;;  %v2852_v9 = vld [vmem:[#allocation14 + $0xa58] sm:$0xff] }
 0x3cf   : > { %3086 = vmatpush.msrb.mxu0 %v2842_v12  ;;  %3109 = vmatpush.msrb.mxu1 %v2946_v13  ;;  %v2956_v11 = vld [vmem:[#allocation14 + $0xd98] sm:$0xff]  ;;  %v2843_v12 = vld [vmem:[#allocation14 + $0xa10] sm:$0xff] }
 0x3d0   : > { %3047 = vmatpush.msra.mxu2 %v2833_v14  ;;  %3070 = vmatpush.msra.mxu3 %v2937_v3  ;;  %v2947_v13 = vld [vmem:[#allocation14 + $0xd50] sm:$0xff]  ;;  %v2844_v14 = vld [vmem:[#allocation14 + $0xa18] sm:$0xff] }
 0x3d1   : > { %3087 = vmatpush.msrb.mxu0 %v2834_v62  ;;  %3110 = vmatpush.msrb.mxu1 %v2938_v16  ;;  %v2948_v3 = vld [vmem:[#allocation14 + $0xd58] sm:$0xff]  ;;  %v2835_v62 = vld [vmem:[#allocation14 + $0x9d0] sm:$0xff] }
 0x3d2   : > { %3048 = vmatpush.msra.mxu2 %v2825_v18  ;;  %3071 = vmatpush.msra.mxu3 %v2929_v7  ;;  %v2939_v16 = vld [vmem:[#allocation14 + $0xd10] sm:$0xff]  ;;  %v2836_v18 = vld [vmem:[#allocation14 + $0x9d8] sm:$0xff] }
 0x3d3   : > { %3088 = vmatpush.msrb.mxu0 %v2826_v19  ;;  %3111 = vmatpush.msrb.mxu1 %v2930_v20  ;;  %v2940_v7 = vld [vmem:[#allocation14 + $0xd18] sm:$0xff]  ;;  %v2827_v19 = vld [vmem:[#allocation14 + $0x990] sm:$0xff] }
 0x3d4   : > { %3049 = vmatpush.msra.mxu2 %v2817_v22  ;;  %3072 = vmatpush.msra.mxu3 %v2921_v32  ;;  %v2931_v20 = vld [vmem:[#allocation14 + $0xcd0] sm:$0xff]  ;;  %v2828_v22 = vld [vmem:[#allocation14 + $0x998] sm:$0xff] }
 0x3d5   : > { %3089 = vmatpush.msrb.mxu0 %v2818_v23  ;;  %3112 = vmatpush.msrb.mxu1 %v2922_v24  ;;  %v2932_v32 = vld [vmem:[#allocation14 + $0xcd8] sm:$0xff]  ;;  %v2819_v23 = vld [vmem:[#allocation14 + $0x950] sm:$0xff] }
 0x3d6   : > { %3050 = vmatpush.msra.mxu2 %v2809_v8  ;;  %3073 = vmatpush.msra.mxu3 %v2913_v27  ;;  %v2923_v24 = vld [vmem:[#allocation14 + $0xc90] sm:$0xff]  ;;  %v2820_v8 = vld [vmem:[#allocation14 + $0x958] sm:$0xff] }
 0x3d7   : > { %3090 = vmatpush.msrb.mxu0 %v2810_v30  ;;  %3113 = vmatpush.msrb.mxu1 %v2914_v33  ;;  %v2924_v27 = vld [vmem:[#allocation14 + $0xc98] sm:$0xff]  ;;  %v2811_v30 = vld [vmem:[#allocation14 + $0x910] sm:$0xff] }
 0x3d8   : > { %3051 = vmatpush.msra.mxu2 %v2801_v31  ;;  %3074 = vmatpush.msra.mxu3 %v2905_v34  ;;  %v2915_v33 = vld [vmem:[#allocation14 + $0xc50] sm:$0xff]  ;;  %v2812_v31 = vld [vmem:[#allocation14 + $0x918] sm:$0xff] }
 0x3d9   : > { %3091 = vmatpush.msrb.mxu0 %v2802_v35  ;;  %3114 = vmatpush.msrb.mxu1 %v2906_v15  ;;  %v2916_v34 = vld [vmem:[#allocation14 + $0xc58] sm:$0xff]  ;;  %v2803_v35 = vld [vmem:[#allocation14 + $0x8d0] sm:$0xff] }
 0x3da   : > { %3075 = vmatmul.f32.vlgmr.msra.gmra.mxu3 %v7959_v21  ;;  %3115 = vmatmul.f32.vlgmr.msrb.gmra.mxu1 %v7959_v21  ;;  %v2907_v15 = vld [vmem:[#allocation14 + $0xc10] sm:$0xff] }
 0x3db   : > { %3139 = vmatpush.msrb.mxu3 %v3027_v38  ;;  %3179 = vmatpush.msra.mxu1 %v3028_v40  ;;  %v2804_v38 = vld [vmem:[#allocation14 + $0x8d8] sm:$0xff] }
 0x3dc   : > { %3052 = vmatpush.msra.mxu2 %v2793_v41  ;;  %3092 = vmatpush.msrb.mxu0 %v2794_v28  ;;  %v2908_v40 = vld [vmem:[#allocation14 + $0xc18] sm:$0xff]  ;;  %v3029_v41 = vld [vmem:[#allocation14 + $0xfe0] sm:$0xff]  ;;  %v3030_v28 = vld [vmem:[#allocation14 + $0xfe8] sm:$0xff] }
 0x3dd   : > { %3140 = vmatpush.msrb.mxu3 %v3019_v42  ;;  %3180 = vmatpush.msra.mxu1 %v3020_v43  ;;  %v2795_v42 = vld [vmem:[#allocation14 + $0x890] sm:$0xff]  ;;  %v2796_v43 = vld [vmem:[#allocation14 + $0x898] sm:$0xff] }
 0x3de   : > { %3053 = vmatpush.msra.mxu2 %v2785_v44  ;;  %3093 = vmatpush.msrb.mxu0 %v2786_v29  ;;  %v3021_v44 = vld [vmem:[#allocation14 + $0xfa0] sm:$0xff]  ;;  %v3022_v29 = vld [vmem:[#allocation14 + $0xfa8] sm:$0xff] }
 0x3df   : > { %3141 = vmatpush.msrb.mxu3 %v3011_v36  ;;  %3181 = vmatpush.msra.mxu1 %v3012_v47  ;;  %v2787_v36 = vld [vmem:[#allocation14 + $0x850] sm:$0xff]  ;;  %v2788_v47 = vld [vmem:[#allocation14 + $0x858] sm:$0xff] }
 0x3e0   : > { %3054 = vmatpush.msra.mxu2 %v2777_v45  ;;  %3094 = vmatpush.msrb.mxu0 %v2778_v48  ;;  %v3013_v45 = vld [vmem:[#allocation14 + $0xf60] sm:$0xff]  ;;  %v3014_v48 = vld [vmem:[#allocation14 + $0xf68] sm:$0xff] }
 0x3e1   : > { %3055 = vmatmul.f32.vlgmr.msra.gmra.mxu2 %v7964_v49  ;;  %3095 = vmatmul.f32.vlgmr.msrb.gmra.mxu0 %v7964_v49 }
 0x3e2   : > { %3119 = vmatpush.msrb.mxu2 %v2899_v46  ;;  %3142 = vmatpush.msrb.mxu3 %v3003_v26  ;;  %v2779_v46 = vld [vmem:[#allocation14 + $0x810] sm:$0xff]  ;;  %v2780_v26 = vld [vmem:[#allocation14 + $0x818] sm:$0xff] }
 0x3e3   : > { %3159 = vmatpush.msra.mxu0 %v2900_v50  ;;  %3182 = vmatpush.msra.mxu1 %v3004_v37  ;;  %v2901_v50 = vld [vmem:[#allocation14 + $0xbe0] sm:$0xff] }
 0x3e4   : > { %3120 = vmatpush.msrb.mxu2 %v2891_v51  ;;  %3143 = vmatpush.msrb.mxu3 %v2995_v52  ;;  %v3005_v37 = vld [vmem:[#allocation14 + $0xf20] sm:$0xff]  ;;  %v2902_v51 = vld [vmem:[#allocation14 + $0xbe8] sm:$0xff] }
 0x3e5   : > { %3160 = vmatpush.msra.mxu0 %v2892_v53  ;;  %3183 = vmatpush.msra.mxu1 %v2996_v54  ;;  %v3006_v52 = vld [vmem:[#allocation14 + $0xf28] sm:$0xff]  ;;  %v2893_v53 = vld [vmem:[#allocation14 + $0xba0] sm:$0xff] }
 0x3e6   : > { %3121 = vmatpush.msrb.mxu2 %v2883_v39  ;;  %3144 = vmatpush.msrb.mxu3 %v2987_v55  ;;  %v2997_v54 = vld [vmem:[#allocation14 + $0xee0] sm:$0xff]  ;;  %v2894_v39 = vld [vmem:[#allocation14 + $0xba8] sm:$0xff] }
 0x3e7   : > { %3161 = vmatpush.msra.mxu0 %v2884_v56  ;;  %3184 = vmatpush.msra.mxu1 %v2988_v57  ;;  %v2998_v55 = vld [vmem:[#allocation14 + $0xee8] sm:$0xff]  ;;  %v2885_v56 = vld [vmem:[#allocation14 + $0xb60] sm:$0xff] }
 0x3e8   : > { %3122 = vmatpush.msrb.mxu2 %v2875_v58  ;;  %3145 = vmatpush.msrb.mxu3 %v2979_v59  ;;  %v2989_v57 = vld [vmem:[#allocation14 + $0xea0] sm:$0xff]  ;;  %v2886_v58 = vld [vmem:[#allocation14 + $0xb68] sm:$0xff] }
 0x3e9   : > { %3162 = vmatpush.msra.mxu0 %v2876_v25  ;;  %3185 = vmatpush.msra.mxu1 %v2980_v1  ;;  %v2990_v59 = vld [vmem:[#allocation14 + $0xea8] sm:$0xff]  ;;  %v2877_v25 = vld [vmem:[#allocation14 + $0xb20] sm:$0xff] }
 0x3ea   : > { %3123 = vmatpush.msrb.mxu2 %v2867_v60  ;;  %3146 = vmatpush.msrb.mxu3 %v2971_v10  ;;  %v2981_v1 = vld [vmem:[#allocation14 + $0xe60] sm:$0xff] }
 0x3eb   : > { %3163 = vmatpush.msra.mxu0 %v2868_v17  ;;  %3186 = vmatpush.msra.mxu1 %v2972_v61  ;;  %v2878_v17 = vld [vmem:[#allocation14 + $0xb28] sm:$0xff] }
 0x3ec   : > { %3124 = vmatpush.msrb.mxu2 %v2859_v63  ;;  %3147 = vmatpush.msrb.mxu3 %v2963_v2  ;;  %v2982_v61 = vld [vmem:[#allocation14 + $0xe68] sm:$0xff]  ;;  %v2869_v63 = vld [vmem:[#allocation14 + $0xae0] sm:$0xff] }
 0x3ed   : > { %3164 = vmatpush.msra.mxu0 %v2860_v0  ;;  %3187 = vmatpush.msra.mxu1 %v2964_v4  ;;  %v2973_v2 = vld [vmem:[#allocation14 + $0xe20] sm:$0xff]  ;;  %v2870_v0 = vld [vmem:[#allocation14 + $0xae8] sm:$0xff] }
 0x3ee   : > { %3125 = vmatpush.msrb.mxu2 %v2851_v5  ;;  %3148 = vmatpush.msrb.mxu3 %v2955_v6  ;;  %v2974_v4 = vld [vmem:[#allocation14 + $0xe28] sm:$0xff]  ;;  %v2861_v5 = vld [vmem:[#allocation14 + $0xaa0] sm:$0xff] }
 0x3ef   : > { %3165 = vmatpush.msra.mxu0 %v2852_v9  ;;  %3188 = vmatpush.msra.mxu1 %v2956_v11  ;;  %v2965_v6 = vld [vmem:[#allocation14 + $0xde0] sm:$0xff]  ;;  %v2862_v9 = vld [vmem:[#allocation14 + $0xaa8] sm:$0xff] }
 0x3f0   : > { %3126 = vmatpush.msrb.mxu2 %v2843_v12  ;;  %3149 = vmatpush.msrb.mxu3 %v2947_v13  ;;  %v2966_v11 = vld [vmem:[#allocation14 + $0xde8] sm:$0xff]  ;;  %v2853_v12 = vld [vmem:[#allocation14 + $0xa60] sm:$0xff] }
 0x3f1   : > { %3166 = vmatpush.msra.mxu0 %v2844_v14  ;;  %3189 = vmatpush.msra.mxu1 %v2948_v3  ;;  %v2957_v13 = vld [vmem:[#allocation14 + $0xda0] sm:$0xff] }
 0x3f2   : > { %3127 = vmatpush.msrb.mxu2 %v2835_v62  ;;  %3150 = vmatpush.msrb.mxu3 %v2939_v16  ;;  %v7972_v60 = vpop.f32.mrf.mxu1  ;;  %v2854_v62 = vld [vmem:[#allocation14 + $0xa68] sm:$0xff] }
 0x3f3   : > { %3167 = vmatpush.msra.mxu0 %v2836_v18  ;;  %3190 = vmatpush.msra.mxu1 %v2940_v7  ;;  %v2958_v16 = vld [vmem:[#allocation14 + $0xda8] sm:$0xff]  ;;  %v2845_v18 = vld [vmem:[#allocation14 + $0xa20] sm:$0xff] }
 0x3f4   : > { %3128 = vmatpush.msrb.mxu2 %v2827_v19  ;;  %3151 = vmatpush.msrb.mxu3 %v2931_v20  ;;  %v7974_v10 = vpop.f32.mrf.mxu0  ;;  %v2949_v7 = vld [vmem:[#allocation14 + $0xd60] sm:$0xff]  ;;  %v2846_v19 = vld [vmem:[#allocation14 + $0xa28] sm:$0xff] }
 0x3f5   : > { %3168 = vmatpush.msra.mxu0 %v2828_v22  ;;  %3191 = vmatpush.msra.mxu1 %v2932_v32  ;;  %v2950_v20 = vld [vmem:[#allocation14 + $0xd68] sm:$0xff]  ;;  %v2837_v22 = vld [vmem:[#allocation14 + $0x9e0] sm:$0xff] }
 0x3f6   : > { %3129 = vmatpush.msrb.mxu2 %v2819_v23  ;;  %3152 = vmatpush.msrb.mxu3 %v2923_v24  ;;  %v2941_v32 = vld [vmem:[#allocation14 + $0xd20] sm:$0xff] }
 0x3f7   : > { %3169 = vmatpush.msra.mxu0 %v2820_v8  ;;  %3192 = vmatpush.msra.mxu1 %v2924_v27  ;;  %v2838_v8 = vld [vmem:[#allocation14 + $0x9e8] sm:$0xff] }
 0x3f8   : > { %3130 = vmatpush.msrb.mxu2 %v2811_v30  ;;  %3153 = vmatpush.msrb.mxu3 %v2915_v33  ;;  %v7976_v14 = vpop.f32.mrf.mxu3  ;;  %v2942_v27 = vld [vmem:[#allocation14 + $0xd28] sm:$0xff]  ;;  %v2829_v30 = vld [vmem:[#allocation14 + $0x9a0] sm:$0xff] }
 0x3f9   : > { %3170 = vmatpush.msra.mxu0 %v2812_v31  ;;  %3193 = vmatpush.msra.mxu1 %v2916_v34  ;;  %v2933_v33 = vld [vmem:[#allocation14 + $0xce0] sm:$0xff]  ;;  %v2830_v31 = vld [vmem:[#allocation14 + $0x9a8] sm:$0xff] }
 0x3fa   : > { %3131 = vmatpush.msrb.mxu2 %v2803_v35  ;;  %3154 = vmatpush.msrb.mxu3 %v2907_v15  ;;  %v7978_v3 = vpop.f32.mrf.mxu2  ;;  %v7980_v23 = vpop.f32.mrf.mxu1  ;;  %v2934_v34 = vld [vmem:[#allocation14 + $0xce8] sm:$0xff]  ;;  %v2821_v35 = vld [vmem:[#allocation14 + $0x960] sm:$0xff] }
 0x3fb   : > { %3171 = vmatpush.msra.mxu0 %v2804_v38  ;;  %3194 = vmatpush.msra.mxu1 %v2908_v40  ;;  %v2925_v15 = vld [vmem:[#allocation14 + $0xca0] sm:$0xff]  ;;  %v2822_v38 = vld [vmem:[#allocation14 + $0x968] sm:$0xff] }
 0x3fc   : > { %3155 = vmatmul.f32.vlgmr.msrb.gmra.mxu3 %v7959_v21  ;;  %3195 = vmatmul.f32.vlgmr.msra.gmra.mxu1 %v7959_v21  ;;  %v2926_v40 = vld [vmem:[#allocation14 + $0xca8] sm:$0xff] }
 0x3fd   : > { %3219 = vmatpush.msra.mxu3 %v3029_v41  ;;  %3259 = vmatpush.msrb.mxu1 %v3030_v28  ;;  %v2813_v41 = vld [vmem:[#allocation14 + $0x920] sm:$0xff] }
 0x3fe   : > { %3132 = vmatpush.msrb.mxu2 %v2795_v42  ;;  %3172 = vmatpush.msra.mxu0 %v2796_v43  ;;  %v2917_v28 = vld [vmem:[#allocation14 + $0xc60] sm:$0xff] }
 0x3ff   : > { %3220 = vmatpush.msra.mxu3 %v3021_v44  ;;  %3260 = vmatpush.msrb.mxu1 %v3022_v29  ;;  %v2814_v44 = vld [vmem:[#allocation14 + $0x928] sm:$0xff] }
 0x400   : > { %3133 = vmatpush.msrb.mxu2 %v2787_v36  ;;  %3173 = vmatpush.msra.mxu0 %v2788_v47  ;;  %v7982_v24 = vpop.f32.mrf.mxu0  ;;  %v7984_v42 = vpop.f32.mrf.mxu3  ;;  %v2918_v29 = vld [vmem:[#allocation14 + $0xc68] sm:$0xff]  ;;  %v2805_v36 = vld [vmem:[#allocation14 + $0x8e0] sm:$0xff] }
 0x401   : > { %3221 = vmatpush.msra.mxu3 %v3013_v45  ;;  %3261 = vmatpush.msrb.mxu1 %v3014_v48  ;;  %v2909_v47 = vld [vmem:[#allocation14 + $0xc20] sm:$0xff]  ;;  %v2806_v45 = vld [vmem:[#allocation14 + $0x8e8] sm:$0xff] }
 0x402   : > { %3134 = vmatpush.msrb.mxu2 %v2779_v46  ;;  %3174 = vmatpush.msra.mxu0 %v2780_v26  ;;  %v2910_v48 = vld [vmem:[#allocation14 + $0xc28] sm:$0xff] }
 0x403   : > { %3135 = vmatmul.f32.vlgmr.msrb.gmra.mxu2 %v7964_v49  ;;  %3175 = vmatmul.f32.vlgmr.msra.gmra.mxu0 %v7964_v49 }
 0x404   : > { %3199 = vmatpush.msra.mxu2 %v2901_v50  ;;  %3222 = vmatpush.msra.mxu3 %v3005_v37  ;;  %v3031_v37 = vld [vmem:[#allocation14 + $0xff0] sm:$0xff] }
 0x405   : > { %3239 = vmatpush.msrb.mxu0 %v2902_v51  ;;  %3262 = vmatpush.msrb.mxu1 %v3006_v52  ;;  %v3032_v51 = vld [vmem:[#allocation14 + $0xff8] sm:$0xff]  ;;  %v2797_v52 = vld [vmem:[#allocation14 + $0x8a0] sm:$0xff] }
 0x406   : > { %3200 = vmatpush.msra.mxu2 %v2893_v53  ;;  %3223 = vmatpush.msra.mxu3 %v2997_v54  ;;  %v7986_v43 = vpop.f32.mrf.mxu2  ;;  %v2798_v53 = vld [vmem:[#allocation14 + $0x8a8] sm:$0xff]  ;;  %v3023_v54 = vld [vmem:[#allocation14 + $0xfb0] sm:$0xff] }
 0x407   : > { %3240 = vmatpush.msrb.mxu0 %v2894_v39  ;;  %3263 = vmatpush.msrb.mxu1 %v2998_v55  ;;  %v3024_v39 = vld [vmem:[#allocation14 + $0xfb8] sm:$0xff]  ;;  %v2789_v55 = vld [vmem:[#allocation14 + $0x860] sm:$0xff] }
 0x408   : > { %3201 = vmatpush.msra.mxu2 %v2885_v56  ;;  %3224 = vmatpush.msra.mxu3 %v2989_v57  ;;  %v2790_v56 = vld [vmem:[#allocation14 + $0x868] sm:$0xff]  ;;  %v3015_v57 = vld [vmem:[#allocation14 + $0xf70] sm:$0xff] }
 0x409   : > { %3241 = vmatpush.msrb.mxu0 %v2886_v58  ;;  %3264 = vmatpush.msrb.mxu1 %v2990_v59  ;;  %v3016_v58 = vld [vmem:[#allocation14 + $0xf78] sm:$0xff] }
 0x40a   : > { %3202 = vmatpush.msra.mxu2 %v2877_v25  ;;  %3225 = vmatpush.msra.mxu3 %v2981_v1  ;;  %v2781_v1 = vld [vmem:[#allocation14 + $0x820] sm:$0xff] }
 0x40b   : > { %3242 = vmatpush.msrb.mxu0 %v2878_v17  ;;  %3265 = vmatpush.msrb.mxu1 %v2982_v61  ;;  %v2782_v17 = vld [vmem:[#allocation14 + $0x828] sm:$0xff] }
 0x40c   : > { %3203 = vmatpush.msra.mxu2 %v2869_v63  ;;  %3226 = vmatpush.msra.mxu3 %v2973_v2  ;;  %v2903_v63 = vld [vmem:[#allocation14 + $0xbf0] sm:$0xff] }
 0x40d   : > { %3243 = vmatpush.msrb.mxu0 %v2870_v0  ;;  %3266 = vmatpush.msrb.mxu1 %v2974_v4  ;;  %v3007_v2 = vld [vmem:[#allocation14 + $0xf30] sm:$0xff] }
 0x40e   : > { %3204 = vmatpush.msra.mxu2 %v2861_v5  ;;  %3227 = vmatpush.msra.mxu3 %v2965_v6  ;;  %v2904_v5 = vld [vmem:[#allocation14 + $0xbf8] sm:$0xff] }
 0x40f   : > { %3244 = vmatpush.msrb.mxu0 %v2862_v9  ;;  %3267 = vmatpush.msrb.mxu1 %v2966_v11  ;;  %v3008_v6 = vld [vmem:[#allocation14 + $0xf38] sm:$0xff]  ;;  %v2895_v9 = vld [vmem:[#allocation14 + $0xbb0] sm:$0xff] }
 0x410   : > { %3205 = vmatpush.msra.mxu2 %v2853_v12  ;;  %3228 = vmatpush.msra.mxu3 %v2957_v13  ;;  %v2999_v11 = vld [vmem:[#allocation14 + $0xef0] sm:$0xff]  ;;  %v2896_v13 = vld [vmem:[#allocation14 + $0xbb8] sm:$0xff] }
 0x411   : > { %3245 = vmatpush.msrb.mxu0 %v2854_v62  ;;  %3268 = vmatpush.msrb.mxu1 %v2958_v16  ;;  %v3000_v62 = vld [vmem:[#allocation14 + $0xef8] sm:$0xff]  ;;  %v2887_v16 = vld [vmem:[#allocation14 + $0xb70] sm:$0xff] }
 0x412   : > { %3206 = vmatpush.msra.mxu2 %v2845_v18  ;;  %3229 = vmatpush.msra.mxu3 %v2949_v7  ;;  %v2991_v18 = vld [vmem:[#allocation14 + $0xeb0] sm:$0xff]  ;;  %v2888_v7 = vld [vmem:[#allocation14 + $0xb78] sm:$0xff] }
 0x413   : > { %3246 = vmatpush.msrb.mxu0 %v2846_v19  ;;  %3269 = vmatpush.msrb.mxu1 %v2950_v20  ;;  %v2662_v46 = vpop.f32.mrf.mxu1  ;;  %v2992_v19 = vld [vmem:[#allocation14 + $0xeb8] sm:$0xff]  ;;  %v2879_v20 = vld [vmem:[#allocation14 + $0xb30] sm:$0xff] }
 0x414   : > { %3207 = vmatpush.msra.mxu2 %v2837_v22  ;;  %3230 = vmatpush.msra.mxu3 %v2941_v32  ;;  %v2983_v22 = vld [vmem:[#allocation14 + $0xe70] sm:$0xff]  ;;  %v2880_v32 = vld [vmem:[#allocation14 + $0xb38] sm:$0xff] }
 0x415   : > { %3247 = vmatpush.msrb.mxu0 %v2838_v8  ;;  %3270 = vmatpush.msrb.mxu1 %v2942_v27  ;;  %v2984_v8 = vld [vmem:[#allocation14 + $0xe78] sm:$0xff]  ;;  %v2871_v27 = vld [vmem:[#allocation14 + $0xaf0] sm:$0xff] }
 0x416   : > { %3208 = vmatpush.msra.mxu2 %v2829_v30  ;;  %3231 = vmatpush.msra.mxu3 %v2933_v33  ;;  %v2975_v30 = vld [vmem:[#allocation14 + $0xe30] sm:$0xff]  ;;  %v2872_v33 = vld [vmem:[#allocation14 + $0xaf8] sm:$0xff] }
 0x417   : > { %3248 = vmatpush.msrb.mxu0 %v2830_v31  ;;  %3271 = vmatpush.msrb.mxu1 %v2934_v34  ;;  %v2976_v31 = vld [vmem:[#allocation14 + $0xe38] sm:$0xff]  ;;  %v2863_v34 = vld [vmem:[#allocation14 + $0xab0] sm:$0xff] }
 0x418   : > { %3209 = vmatpush.msra.mxu2 %v2821_v35  ;;  %3232 = vmatpush.msra.mxu3 %v2925_v15  ;;  %v2967_v35 = vld [vmem:[#allocation14 + $0xdf0] sm:$0xff]  ;;  %v2864_v15 = vld [vmem:[#allocation14 + $0xab8] sm:$0xff] }
 0x419   : > { %3249 = vmatpush.msrb.mxu0 %v2822_v38  ;;  %3272 = vmatpush.msrb.mxu1 %v2926_v40  ;;  %v2622_v59 = vpop.f32.mrf.mxu3  ;;  %v2968_v38 = vld [vmem:[#allocation14 + $0xdf8] sm:$0xff]  ;;  %v2855_v40 = vld [vmem:[#allocation14 + $0xa70] sm:$0xff] }
 0x41a   : > { %3210 = vmatpush.msra.mxu2 %v2813_v41  ;;  %3233 = vmatpush.msra.mxu3 %v2917_v28  ;;  %v2642_v26 = vpop.f32.mrf.mxu0  ;;  %v2959_v41 = vld [vmem:[#allocation14 + $0xdb0] sm:$0xff]  ;;  %v2856_v28 = vld [vmem:[#allocation14 + $0xa78] sm:$0xff] }
 0x41b   : > { %3250 = vmatpush.msrb.mxu0 %v2814_v44  ;;  %3273 = vmatpush.msrb.mxu1 %v2918_v29  ;;  %v2663_v50 = vadd.f32 %v2662_v46, %v2642_v26  ;;  %v2960_v44 = vld [vmem:[#allocation14 + $0xdb8] sm:$0xff]  ;;  %v2847_v29 = vld [vmem:[#allocation14 + $0xa30] sm:$0xff] }
 0x41c   : > { %3211 = vmatpush.msra.mxu2 %v2805_v36  ;;  %3234 = vmatpush.msra.mxu3 %v2909_v47  ;;  %v2951_v36 = vld [vmem:[#allocation14 + $0xd70] sm:$0xff]  ;;  %v2848_v47 = vld [vmem:[#allocation14 + $0xa38] sm:$0xff] }
 0x41d   : > { %3251 = vmatpush.msrb.mxu0 %v2806_v45  ;;  %3274 = vmatpush.msrb.mxu1 %v2910_v48  ;;  %v2757_v0 = vrot.slane %v2663_v50, 3  ;;  %v2952_v45 = vld [vmem:[#allocation14 + $0xd78] sm:$0xff]  ;;  %v2839_v48 = vld [vmem:[#allocation14 + $0x9f0] sm:$0xff] }
 0x41e   : > { %3235 = vmatmul.f32.vlgmr.msra.gmra.mxu3 %v7959_v21  ;;  %3275 = vmatmul.f32.vlgmr.msrb.gmra.mxu1 %v7959_v21  ;;  %v2943_v46 = vld [vmem:[#allocation14 + $0xd30] sm:$0xff]  ;;  %v2840_v26 = vld [vmem:[#allocation14 + $0x9f8] sm:$0xff] }
 0x41f   : > { %3299 = vmatpush.msrb.mxu3 %v3031_v37  ;;  %3339 = vmatpush.msra.mxu1 %v3032_v51  ;;  %v2944_v50 = vld [vmem:[#allocation14 + $0xd38] sm:$0xff]  ;;  %v2831_v37 = vld [vmem:[#allocation14 + $0x9b0] sm:$0xff] }
 0x420   : > { %3212 = vmatpush.msra.mxu2 %v2797_v52  ;;  %3252 = vmatpush.msrb.mxu0 %v2798_v53  ;;  %v2602_v25 = vpop.f32.mrf.mxu2  ;;  %v2935_v51 = vld [vmem:[#allocation14 + $0xcf0] sm:$0xff]  ;;  %v2832_v52 = vld [vmem:[#allocation14 + $0x9b8] sm:$0xff] }
 0x421   : > { %3300 = vmatpush.msrb.mxu3 %v3023_v54  ;;  %3340 = vmatpush.msra.mxu1 %v3024_v39  ;;  %v2623_v61 = vadd.f32 %v2622_v59, %v2602_v25  ;;  %v2936_v53 = vld [vmem:[#allocation14 + $0xcf8] sm:$0xff]  ;;  %v2823_v54 = vld [vmem:[#allocation14 + $0x970] sm:$0xff] }
 0x422   : > { %3213 = vmatpush.msra.mxu2 %v2789_v55  ;;  %3253 = vmatpush.msrb.mxu0 %v2790_v56  ;;  %v2927_v39 = vld [vmem:[#allocation14 + $0xcb0] sm:$0xff]  ;;  %v2824_v55 = vld [vmem:[#allocation14 + $0x978] sm:$0xff] }
 0x423   : > { %3301 = vmatpush.msrb.mxu3 %v3015_v57  ;;  %3341 = vmatpush.msra.mxu1 %v3016_v58  ;;  %v2756_v4 = vrot.slane %v2623_v61, 4  ;;  %v2928_v56 = vld [vmem:[#allocation14 + $0xcb8] sm:$0xff]  ;;  %v2815_v57 = vld [vmem:[#allocation14 + $0x930] sm:$0xff] }
 0x424   : > { %3214 = vmatpush.msra.mxu2 %v2781_v1  ;;  %3254 = vmatpush.msrb.mxu0 %v2782_v17  ;;  %v2919_v58 = vld [vmem:[#allocation14 + $0xc70] sm:$0xff]  ;;  %v2816_v59 = vld [vmem:[#allocation14 + $0x938] sm:$0xff] }
 0x425   : > { %3215 = vmatmul.f32.vlgmr.msra.gmra.mxu2 %v7964_v49  ;;  %3255 = vmatmul.f32.vlgmr.msrb.gmra.mxu0 %v7964_v49  ;;  %v7993_v12 = vsel %vm2766_vm6, %v2756_v4, %v2757_v0  ;;  %v2920_v25 = vld [vmem:[#allocation14 + $0xc78] sm:$0xff]  ;;  %v2807_v1 = vld [vmem:[#allocation14 + $0x8f0] sm:$0xff] }
 0x426   : > { %3279 = vmatpush.msrb.mxu2 %v2903_v63  ;;  %3302 = vmatpush.msrb.mxu3 %v3007_v2  ;;  %v2911_v17 = vld [vmem:[#allocation14 + $0xc30] sm:$0xff]  ;;  %v2808_v61 = vld [vmem:[#allocation14 + $0x8f8] sm:$0xff] }
 0x427   : > { %3319 = vmatpush.msra.mxu0 %v2904_v5  ;;  %3342 = vmatpush.msra.mxu1 %v3008_v6  ;;  %v2912_v63 = vld [vmem:[#allocation14 + $0xc38] sm:$0xff]  ;;  %v3632_v5 = vld [vmem:[#allocation14 + $0x17c0] sm:$0xff]  ;;  %v3633_v6 = vld [vmem:[#allocation14 + $0x17c8] sm:$0xff] }
 0x428   : > { %3280 = vmatpush.msrb.mxu2 %v2895_v9  ;;  %3303 = vmatpush.msrb.mxu3 %v2999_v11  ;;  %v2799_v9 = vld [vmem:[#allocation14 + $0x8b0] sm:$0xff]  ;;  %v2800_v11 = vld [vmem:[#allocation14 + $0x8b8] sm:$0xff] }
 0x429   : > { %3320 = vmatpush.msra.mxu0 %v2896_v13  ;;  %3343 = vmatpush.msra.mxu1 %v3000_v62  ;;  %v3624_v13 = vld [vmem:[#allocation14 + $0x1780] sm:$0xff]  ;;  %v3625_v62 = vld [vmem:[#allocation14 + $0x1788] sm:$0xff] }
 0x42a   : > { %3281 = vmatpush.msrb.mxu2 %v2887_v16  ;;  %3304 = vmatpush.msrb.mxu3 %v2991_v18  ;;  %v2791_v16 = vld [vmem:[#allocation14 + $0x870] sm:$0xff]  ;;  %v2792_v18 = vld [vmem:[#allocation14 + $0x878] sm:$0xff] }
 0x42b   : > { %3321 = vmatpush.msra.mxu0 %v2888_v7  ;;  %3344 = vmatpush.msra.mxu1 %v2992_v19  ;;  %v3616_v7 = vld [vmem:[#allocation14 + $0x1740] sm:$0xff]  ;;  %v3617_v19 = vld [vmem:[#allocation14 + $0x1748] sm:$0xff] }
 0x42c   : > { %3282 = vmatpush.msrb.mxu2 %v2879_v20  ;;  %3305 = vmatpush.msrb.mxu3 %v2983_v22 }
 0x42d   : > { %3322 = vmatpush.msra.mxu0 %v2880_v32  ;;  %3345 = vmatpush.msra.mxu1 %v2984_v8  ;;  %v2783_v32 = vld [vmem:[#allocation14 + $0x830] sm:$0xff]  ;;  %v2784_v8 = vld [vmem:[#allocation14 + $0x838] sm:$0xff] }
 0x42e   : > { %3283 = vmatpush.msrb.mxu2 %v2871_v27  ;;  %3306 = vmatpush.msrb.mxu3 %v2975_v30  ;;  %v3608_v30 = vld [vmem:[#allocation14 + $0x1700] sm:$0xff] }
 0x42f   : > { %3323 = vmatpush.msra.mxu0 %v2872_v33  ;;  %3346 = vmatpush.msra.mxu1 %v2976_v31 }
 0x430   : > { %3284 = vmatpush.msrb.mxu2 %v2863_v34  ;;  %3307 = vmatpush.msrb.mxu3 %v2967_v35  ;;  %v3505_v34 = vld [vmem:[#allocation14 + $0x13c8] sm:$0xff] }
 0x431   : > { %3324 = vmatpush.msra.mxu0 %v2864_v15  ;;  %3347 = vmatpush.msra.mxu1 %v2968_v38  ;;  %v3609_v35 = vld [vmem:[#allocation14 + $0x1708] sm:$0xff]  ;;  %v3496_v15 = vld [vmem:[#allocation14 + $0x1380] sm:$0xff] }
 0x432   : > { %3285 = vmatpush.msrb.mxu2 %v2855_v40  ;;  %3308 = vmatpush.msrb.mxu3 %v2959_v41  ;;  %v3600_v38 = vld [vmem:[#allocation14 + $0x16c0] sm:$0xff]  ;;  %v3497_v41 = vld [vmem:[#allocation14 + $0x1388] sm:$0xff] }
 0x433   : > { %3325 = vmatpush.msra.mxu0 %v2856_v28  ;;  %3348 = vmatpush.msra.mxu1 %v2960_v44  ;;  %v3601_v28 = vld [vmem:[#allocation14 + $0x16c8] sm:$0xff] }
 0x434   : > { %3286 = vmatpush.msrb.mxu2 %v2847_v29  ;;  %3309 = vmatpush.msrb.mxu3 %v2951_v36  ;;  %v3488_v29 = vld [vmem:[#allocation14 + $0x1340] sm:$0xff] }
 0x435   : > { %3326 = vmatpush.msra.mxu0 %v2848_v47  ;;  %3349 = vmatpush.msra.mxu1 %v2952_v45  ;;  %v2742_v2 = vpop.f32.mrf.mxu1  ;;  %v3592_v36 = vld [vmem:[#allocation14 + $0x1680] sm:$0xff]  ;;  %v3489_v47 = vld [vmem:[#allocation14 + $0x1348] sm:$0xff] }
 0x436   : > { %3287 = vmatpush.msrb.mxu2 %v2839_v48  ;;  %3310 = vmatpush.msrb.mxu3 %v2943_v46  ;;  %v3480_v45 = vld [vmem:[#allocation14 + $0x1300] sm:$0xff]  ;;  %v3481_v46 = vld [vmem:[#allocation14 + $0x1308] sm:$0xff] }
 0x437   : > { %3327 = vmatpush.msra.mxu0 %v2840_v26  ;;  %3350 = vmatpush.msra.mxu1 %v2944_v50  ;;  %v3584_v48 = vld [vmem:[#allocation14 + $0x1640] sm:$0xff]  ;;  %v3585_v26 = vld [vmem:[#allocation14 + $0x1648] sm:$0xff] }
 0x438   : > { %3288 = vmatpush.msrb.mxu2 %v2831_v37  ;;  %3311 = vmatpush.msrb.mxu3 %v2935_v51  ;;  %v3576_v50 = vld [vmem:[#allocation14 + $0x1600] sm:$0xff]  ;;  %v3473_v37 = vld [vmem:[#allocation14 + $0x12c8] sm:$0xff] }
 0x439   : > { %3328 = vmatpush.msra.mxu0 %v2832_v52  ;;  %3351 = vmatpush.msra.mxu1 %v2936_v53  ;;  %v3577_v51 = vld [vmem:[#allocation14 + $0x1608] sm:$0xff]  ;;  %v3464_v52 = vld [vmem:[#allocation14 + $0x1280] sm:$0xff] }
 0x43a   : > { %3289 = vmatpush.msrb.mxu2 %v2823_v54  ;;  %3312 = vmatpush.msrb.mxu3 %v2927_v39  ;;  %v3568_v53 = vld [vmem:[#allocation14 + $0x15c0] sm:$0xff]  ;;  %v3465_v54 = vld [vmem:[#allocation14 + $0x1288] sm:$0xff] }
 0x43b   : > { %3329 = vmatpush.msra.mxu0 %v2824_v55  ;;  %3352 = vmatpush.msra.mxu1 %v2928_v56  ;;  %v2702_v20 = vpop.f32.mrf.mxu3  ;;  %v3569_v39 = vld [vmem:[#allocation14 + $0x15c8] sm:$0xff]  ;;  %v3456_v55 = vld [vmem:[#allocation14 + $0x1240] sm:$0xff] }
 0x43c   : > { %3290 = vmatpush.msrb.mxu2 %v2815_v57  ;;  %3313 = vmatpush.msrb.mxu3 %v2919_v58  ;;  %v2722_v0 = vpop.f32.mrf.mxu0  ;;  %v3560_v56 = vld [vmem:[#allocation14 + $0x1580] sm:$0xff]  ;;  %v3457_v57 = vld [vmem:[#allocation14 + $0x1248] sm:$0xff] }
 0x43d   : > { %3330 = vmatpush.msra.mxu0 %v2816_v59  ;;  %3353 = vmatpush.msra.mxu1 %v2920_v25  ;;  %v2743_v4 = vadd.f32 %v2742_v2, %v2722_v0  ;;  %v3561_v58 = vld [vmem:[#allocation14 + $0x1588] sm:$0xff]  ;;  %v3448_v59 = vld [vmem:[#allocation14 + $0x1200] sm:$0xff] }
 0x43e   : > { %3291 = vmatpush.msrb.mxu2 %v2807_v1  ;;  %3314 = vmatpush.msrb.mxu3 %v2911_v17  ;;  %v3552_v25 = vld [vmem:[#allocation14 + $0x1540] sm:$0xff]  ;;  %v3449_v1 = vld [vmem:[#allocation14 + $0x1208] sm:$0xff] }
 0x43f   : > { %3331 = vmatpush.msra.mxu0 %v2808_v61  ;;  %3354 = vmatpush.msra.mxu1 %v2912_v63  ;;  %v2759_v33 = vrot.slane %v2743_v4, 1  ;;  %v3553_v17 = vld [vmem:[#allocation14 + $0x1548] sm:$0xff]  ;;  %v3440_v61 = vld [vmem:[#allocation14 + $0x11c0] sm:$0xff] }
 0x440   : > { %3315 = vmatmul.f32.vlgmr.msrb.gmra.mxu3 %v7959_v21  ;;  %3355 = vmatmul.f32.vlgmr.msra.gmra.mxu1 %v7959_v21  ;;  %v3504_v21 = vld [vmem:[#allocation14 + $0x13c0] sm:$0xff]  ;;  %v3441_v2 = vld [vmem:[#allocation14 + $0x11c8] sm:$0xff] }
 0x441   : > { %3664 = vmatpush.msra.mxu3 %v3632_v5  ;;  %3704 = vmatpush.msrb.mxu1 %v3633_v6  ;;  %v3544_v63 = vld [vmem:[#allocation14 + $0x1500] sm:$0xff]  ;;  %v3545_v0 = vld [vmem:[#allocation14 + $0x1508] sm:$0xff] }
 0x442   : > { %3292 = vmatpush.msrb.mxu2 %v2799_v9  ;;  %3332 = vmatpush.msra.mxu0 %v2800_v11  ;;  %v2682_v22 = vpop.f32.mrf.mxu2  ;;  %v3432_v4 = vld [vmem:[#allocation14 + $0x1180] sm:$0xff]  ;;  %v3433_v6 = vld [vmem:[#allocation14 + $0x1188] sm:$0xff] }
 0x443   : > { %3665 = vmatpush.msra.mxu3 %v3624_v13  ;;  %3705 = vmatpush.msrb.mxu1 %v3625_v62  ;;  %v2703_v27 = vadd.f32 %v2702_v20, %v2682_v22  ;;  %v3536_v5 = vld [vmem:[#allocation14 + $0x14c0] sm:$0xff]  ;;  %v3537_v9 = vld [vmem:[#allocation14 + $0x14c8] sm:$0xff] }
 0x444   : > { %3293 = vmatpush.msrb.mxu2 %v2791_v16  ;;  %3333 = vmatpush.msra.mxu0 %v2792_v18  ;;  %v3424_v11 = vld [vmem:[#allocation14 + $0x1140] sm:$0xff]  ;;  %v3425_v62 = vld [vmem:[#allocation14 + $0x1148] sm:$0xff] }
 0x445   : > { %3666 = vmatpush.msra.mxu3 %v3616_v7  ;;  %3706 = vmatpush.msrb.mxu1 %v3617_v19  ;;  %v2758_v31 = vrot.slane %v2703_v27, 2  ;;  %v3528_v13 = vld [vmem:[#allocation14 + $0x1480] sm:$0xff]  ;;  %v3529_v16 = vld [vmem:[#allocation14 + $0x1488] sm:$0xff] }
 0x446   : > { %3294 = vmatpush.msrb.mxu2 %v2783_v32  ;;  %3334 = vmatpush.msra.mxu0 %v2784_v8  ;;  %v3416_v18 = vld [vmem:[#allocation14 + $0x1100] sm:$0xff]  ;;  %v3417_v19 = vld [vmem:[#allocation14 + $0x1108] sm:$0xff] }
 0x447   : > { %3295 = vmatmul.f32.vlgmr.msrb.gmra.mxu2 %v7964_v49  ;;  %3335 = vmatmul.f32.vlgmr.msra.gmra.mxu0 %v7964_v49  ;;  %v2769_v40 = vsel %vm2768_vm8, %v2758_v31, %v2759_v33  ;;  %v3593_v49 = vld [vmem:[#allocation14 + $0x1688] sm:$0xff]  ;;  %v3520_v7 = vld [vmem:[#allocation14 + $0x1440] sm:$0xff] }
 0x448   : > { %3644 = vmatpush.msra.mxu2 %v3504_v21  ;;  %3667 = vmatpush.msra.mxu3 %v3608_v30  ;;  %v8002_v44 = vsel %vm2770_vm9, %v7993_v12, %v2769_v40  ;;  %v3472_v12 = vld [vmem:[#allocation14 + $0x12c0] sm:$0xff]  ;;  %v3521_v20 = vld [vmem:[#allocation14 + $0x1448] sm:$0xff] }
 0x449   : > { %3684 = vmatpush.msrb.mxu0 %v3505_v34  ;;  %3707 = vmatpush.msrb.mxu1 %v3609_v35  ;;  %v3408_v22 = vld [vmem:[#allocation14 + $0x10c0] sm:$0xff]  ;;  %v3409_v8 = vld [vmem:[#allocation14 + $0x10c8] sm:$0xff]  ;;  %v3634_v35 = vld [vmem:[#allocation14 + $0x17d0] sm:$0xff] }
 0x44a   : > { %3645 = vmatpush.msra.mxu2 %v3496_v15  ;;  %3668 = vmatpush.msra.mxu3 %v3600_v38  ;;  %v3512_v32 = vld [vmem:[#allocation14 + $0x1400] sm:$0xff]  ;;  %v3513_v27 = vld [vmem:[#allocation14 + $0x1408] sm:$0xff]  ;;  %v3635_v15 = vld [vmem:[#allocation14 + $0x17d8] sm:$0xff] }
 0x44b   : > { %3685 = vmatpush.msrb.mxu0 %v3497_v41  ;;  %3708 = vmatpush.msrb.mxu1 %v3601_v28  ;;  %v6551_v31 = vld [vmem:[%s7932_s23 + $0x8] sm:$0xff]  ;;  %v3400_v38 = vld [vmem:[#allocation14 + $0x1080] sm:$0xff]  ;;  %v3627_v28 = vld [vmem:[#allocation14 + $0x1798] sm:$0xff] }
 0x44c   : > { %3646 = vmatpush.msra.mxu2 %v3488_v29  ;;  %3669 = vmatpush.msra.mxu3 %v3592_v36  ;;  %v8005_v34 = vrot.slane %v6551_v31, 2  ;;  %v3401_v40 = vld [vmem:[#allocation14 + $0x1088] sm:$0xff]  ;;  %v3626_v41 = vld [vmem:[#allocation14 + $0x1790] sm:$0xff]  ;;  %v3392_v29 = vld [vmem:[#allocation14 + $0x1040] sm:$0xff] }
 0x44d   : > { %3686 = vmatpush.msrb.mxu0 %v3489_v47  ;;  %3709 = vmatpush.msrb.mxu1 %v3593_v49  ;;  %v3393_v36 = vld [vmem:[#allocation14 + $0x1048] sm:$0xff]  ;;  %v3618_v47 = vld [vmem:[#allocation14 + $0x1750] sm:$0xff]  ;;  %v3619_v49 = vld [vmem:[#allocation14 + $0x1758] sm:$0xff] }
 0x44e   : > { %3647 = vmatpush.msra.mxu2 %v3480_v45  ;;  %3670 = vmatpush.msra.mxu3 %v3584_v48  ;;  %v3443_v31 = vld [vmem:[#allocation14 + $0x11d8] sm:$0xff] }
 0x44f   : > { %3687 = vmatpush.msrb.mxu0 %v3481_v46  ;;  %3710 = vmatpush.msrb.mxu1 %v3585_v26  ;;  %v3384_v46 = vld [vmem:[#allocation14 + $0x1000] sm:$0xff]  ;;  %v3385_v26 = vld [vmem:[#allocation14 + $0x1008] sm:$0xff] }
 0x450   : > { %3648 = vmatpush.msra.mxu2 %v3472_v12  ;;  %3671 = vmatpush.msra.mxu3 %v3576_v50 }
 0x451   : > { %3688 = vmatpush.msrb.mxu0 %v3473_v37  ;;  %3711 = vmatpush.msrb.mxu1 %v3577_v51  ;;  %v6552_v37 = vld [vmem:[%s7932_s23] sm:$0xff] }
 0x452   : > { %3649 = vmatpush.msra.mxu2 %v3464_v52  ;;  %3672 = vmatpush.msra.mxu3 %v3568_v53  ;;  %v8010_v51 = vrot.slane %v6552_v37, 2  ;;  %v3506_v52 = vld [vmem:[#allocation14 + $0x13d0] sm:$0xff]  ;;  %v3515_v37 = vld [vmem:[#allocation14 + $0x1418] sm:$0xff] }
 0x453   : > { %3689 = vmatpush.msrb.mxu0 %v3465_v54  ;;  %3712 = vmatpush.msrb.mxu1 %v3569_v39  ;;  %v3610_v53 = vld [vmem:[#allocation14 + $0x1710] sm:$0xff]  ;;  %v3507_v39 = vld [vmem:[#allocation14 + $0x13d8] sm:$0xff] }
 0x454   : > { %3650 = vmatpush.msra.mxu2 %v3456_v55  ;;  %3673 = vmatpush.msra.mxu3 %v3560_v56  ;;  %v3611_v55 = vld [vmem:[#allocation14 + $0x1718] sm:$0xff]  ;;  %v3498_v56 = vld [vmem:[#allocation14 + $0x1390] sm:$0xff] }
 0x455   : > { %3690 = vmatpush.msrb.mxu0 %v3457_v57  ;;  %3713 = vmatpush.msrb.mxu1 %v3561_v58  ;;  %v3602_v57 = vld [vmem:[#allocation14 + $0x16d0] sm:$0xff]  ;;  %v3499_v58 = vld [vmem:[#allocation14 + $0x1398] sm:$0xff] }
 0x456   : > { %3651 = vmatpush.msra.mxu2 %v3448_v59  ;;  %3674 = vmatpush.msra.mxu3 %v3552_v25  ;;  %v3603_v59 = vld [vmem:[#allocation14 + $0x16d8] sm:$0xff]  ;;  %v3490_v25 = vld [vmem:[#allocation14 + $0x1350] sm:$0xff] }
 0x457   : > { %3691 = vmatpush.msrb.mxu0 %v3449_v1  ;;  %3714 = vmatpush.msrb.mxu1 %v3553_v17  ;;  %v3116_v21 = vpop.f32.mrf.mxu1  ;;  %v3594_v1 = vld [vmem:[#allocation14 + $0x1690] sm:$0xff]  ;;  %v3491_v17 = vld [vmem:[#allocation14 + $0x1358] sm:$0xff] }
 0x458   : > { %3652 = vmatpush.msra.mxu2 %v3440_v61  ;;  %3675 = vmatpush.msra.mxu3 %v3544_v63  ;;  %v3595_v61 = vld [vmem:[#allocation14 + $0x1698] sm:$0xff]  ;;  %v3482_v63 = vld [vmem:[#allocation14 + $0x1310] sm:$0xff] }
 0x459   : > { %3692 = vmatpush.msrb.mxu0 %v3441_v2  ;;  %3715 = vmatpush.msrb.mxu1 %v3545_v0  ;;  %v3586_v2 = vld [vmem:[#allocation14 + $0x1650] sm:$0xff]  ;;  %v3483_v0 = vld [vmem:[#allocation14 + $0x1318] sm:$0xff] }
 0x45a   : > { %3653 = vmatpush.msra.mxu2 %v3432_v4  ;;  %3676 = vmatpush.msra.mxu3 %v3536_v5  ;;  %v3587_v4 = vld [vmem:[#allocation14 + $0x1658] sm:$0xff]  ;;  %v3474_v5 = vld [vmem:[#allocation14 + $0x12d0] sm:$0xff] }
 0x45b   : > { %3693 = vmatpush.msrb.mxu0 %v3433_v6  ;;  %3716 = vmatpush.msrb.mxu1 %v3537_v9  ;;  %v3578_v6 = vld [vmem:[#allocation14 + $0x1610] sm:$0xff]  ;;  %v3475_v9 = vld [vmem:[#allocation14 + $0x12d8] sm:$0xff] }
 0x45c   : > { %3654 = vmatpush.msra.mxu2 %v3424_v11  ;;  %3677 = vmatpush.msra.mxu3 %v3528_v13  ;;  %v3579_v11 = vld [vmem:[#allocation14 + $0x1618] sm:$0xff]  ;;  %v3466_v13 = vld [vmem:[#allocation14 + $0x1290] sm:$0xff] }
 0x45d   : > { %3694 = vmatpush.msrb.mxu0 %v3425_v62  ;;  %3717 = vmatpush.msrb.mxu1 %v3529_v16  ;;  %v3076_v45 = vpop.f32.mrf.mxu3  ;;  %v3570_v62 = vld [vmem:[#allocation14 + $0x15d0] sm:$0xff]  ;;  %v3467_v16 = vld [vmem:[#allocation14 + $0x1298] sm:$0xff] }
 0x45e   : > { %3655 = vmatpush.msra.mxu2 %v3416_v18  ;;  %3678 = vmatpush.msra.mxu3 %v3520_v7  ;;  %v3096_v30 = vpop.f32.mrf.mxu0  ;;  %v3571_v18 = vld [vmem:[#allocation14 + $0x15d8] sm:$0xff]  ;;  %v3458_v7 = vld [vmem:[#allocation14 + $0x1250] sm:$0xff] }
 0x45f   : > { %3695 = vmatpush.msrb.mxu0 %v3417_v19  ;;  %3718 = vmatpush.msrb.mxu1 %v3521_v20  ;;  %v3117_v33 = vadd.f32 %v3116_v21, %v3096_v30  ;;  %v3562_v19 = vld [vmem:[#allocation14 + $0x1590] sm:$0xff]  ;;  %v3459_v20 = vld [vmem:[#allocation14 + $0x1258] sm:$0xff] }
 0x460   : > { %3656 = vmatpush.msra.mxu2 %v3408_v22  ;;  %3679 = vmatpush.msra.mxu3 %v3512_v32  ;;  %v3563_v22 = vld [vmem:[#allocation14 + $0x1598] sm:$0xff]  ;;  %v3450_v32 = vld [vmem:[#allocation14 + $0x1210] sm:$0xff] }
 0x461   : > { %3696 = vmatpush.msrb.mxu0 %v3409_v8  ;;  %3719 = vmatpush.msrb.mxu1 %v3513_v27  ;;  %v3367_v12 = vrot.slane %v3117_v33, 7  ;;  %v3554_v8 = vld [vmem:[#allocation14 + $0x1550] sm:$0xff]  ;;  %v3451_v27 = vld [vmem:[#allocation14 + $0x1218] sm:$0xff] }
 0x462   : > { %3680 = vmatmul.f32.vlgmr.msra.gmra.mxu3 %v8005_v34  ;;  %3720 = vmatmul.f32.vlgmr.msrb.gmra.mxu1 %v8005_v34  ;;  %v3555_v21 = vld [vmem:[#allocation14 + $0x1558] sm:$0xff]  ;;  %v3442_v30 = vld [vmem:[#allocation14 + $0x11d0] sm:$0xff] }
 0x463   : > { %3744 = vmatpush.msrb.mxu3 %v3634_v35  ;;  %3784 = vmatpush.msra.mxu1 %v3635_v15  ;;  %v3546_v33 = vld [vmem:[#allocation14 + $0x1510] sm:$0xff]  ;;  %v3547_v35 = vld [vmem:[#allocation14 + $0x1518] sm:$0xff] }
 0x464   : > { %3657 = vmatpush.msra.mxu2 %v3400_v38  ;;  %3697 = vmatpush.msrb.mxu0 %v3401_v40  ;;  %v3056_v48 = vpop.f32.mrf.mxu2  ;;  %v3434_v15 = vld [vmem:[#allocation14 + $0x1190] sm:$0xff]  ;;  %v3435_v40 = vld [vmem:[#allocation14 + $0x1198] sm:$0xff] }
 0x465   : > { %3745 = vmatpush.msrb.mxu3 %v3626_v41  ;;  %3785 = vmatpush.msra.mxu1 %v3627_v28  ;;  %v3077_v50 = vadd.f32 %v3076_v45, %v3056_v48  ;;  %v3538_v38 = vld [vmem:[#allocation14 + $0x14d0] sm:$0xff]  ;;  %v3539_v41 = vld [vmem:[#allocation14 + $0x14d8] sm:$0xff] }
 0x466   : > { %3658 = vmatpush.msra.mxu2 %v3392_v29  ;;  %3698 = vmatpush.msrb.mxu0 %v3393_v36  ;;  %v3426_v28 = vld [vmem:[#allocation14 + $0x1150] sm:$0xff]  ;;  %v3427_v36 = vld [vmem:[#allocation14 + $0x1158] sm:$0xff] }
 0x467   : > { %3746 = vmatpush.msrb.mxu3 %v3618_v47  ;;  %3786 = vmatpush.msra.mxu1 %v3619_v49  ;;  %v8013_v54 = vsel %vm2760_vm4, %v3077_v50, %v3367_v12  ;;  %v3530_v29 = vld [vmem:[#allocation14 + $0x1490] sm:$0xff]  ;;  %v3531_v47 = vld [vmem:[#allocation14 + $0x1498] sm:$0xff] }
 0x468   : > { %3659 = vmatpush.msra.mxu2 %v3384_v46  ;;  %3699 = vmatpush.msrb.mxu0 %v3385_v26  ;;  %v3418_v49 = vld [vmem:[#allocation14 + $0x1110] sm:$0xff]  ;;  %v3419_v48 = vld [vmem:[#allocation14 + $0x1118] sm:$0xff] }
 0x469   : > { %3660 = vmatmul.f32.vlgmr.msra.gmra.mxu2 %v8010_v51  ;;  %3700 = vmatmul.f32.vlgmr.msrb.gmra.mxu0 %v8010_v51  ;;  %v3522_v45 = vld [vmem:[#allocation14 + $0x1450] sm:$0xff]  ;;  %v3523_v46 = vld [vmem:[#allocation14 + $0x1458] sm:$0xff] }
 0x46a   : > { %3724 = vmatpush.msrb.mxu2 %v3506_v52  ;;  %3747 = vmatpush.msrb.mxu3 %v3610_v53  ;;  %v3410_v26 = vld [vmem:[#allocation14 + $0x10d0] sm:$0xff]  ;;  %v3411_v50 = vld [vmem:[#allocation14 + $0x10d8] sm:$0xff] }
 0x46b   : > { %3764 = vmatpush.msra.mxu0 %v3507_v39  ;;  %3787 = vmatpush.msra.mxu1 %v3611_v55  ;;  %v3514_v12 = vld [vmem:[#allocation14 + $0x1410] sm:$0xff]  ;;  %v3636_v55 = vld [vmem:[#allocation14 + $0x17e0] sm:$0xff] }
 0x46c   : > { %3725 = vmatpush.msrb.mxu2 %v3498_v56  ;;  %3748 = vmatpush.msrb.mxu3 %v3602_v57  ;;  %v3637_v56 = vld [vmem:[#allocation14 + $0x17e8] sm:$0xff]  ;;  %v3402_v57 = vld [vmem:[#allocation14 + $0x1090] sm:$0xff] }
 0x46d   : > { %3765 = vmatpush.msra.mxu0 %v3499_v58  ;;  %3788 = vmatpush.msra.mxu1 %v3603_v59  ;;  %v3403_v58 = vld [vmem:[#allocation14 + $0x1098] sm:$0xff]  ;;  %v3628_v59 = vld [vmem:[#allocation14 + $0x17a0] sm:$0xff] }
 0x46e   : > { %3726 = vmatpush.msrb.mxu2 %v3490_v25  ;;  %3749 = vmatpush.msrb.mxu3 %v3594_v1  ;;  %v3629_v25 = vld [vmem:[#allocation14 + $0x17a8] sm:$0xff]  ;;  %v3394_v1 = vld [vmem:[#allocation14 + $0x1050] sm:$0xff] }
 0x46f   : > { %3766 = vmatpush.msra.mxu0 %v3491_v17  ;;  %3789 = vmatpush.msra.mxu1 %v3595_v61  ;;  %v3395_v17 = vld [vmem:[#allocation14 + $0x1058] sm:$0xff]  ;;  %v3620_v61 = vld [vmem:[#allocation14 + $0x1760] sm:$0xff] }
 0x470   : > { %3727 = vmatpush.msrb.mxu2 %v3482_v63  ;;  %3750 = vmatpush.msrb.mxu3 %v3586_v2  ;;  %v3621_v63 = vld [vmem:[#allocation14 + $0x1768] sm:$0xff] }
 0x471   : > { %3767 = vmatpush.msra.mxu0 %v3483_v0  ;;  %3790 = vmatpush.msra.mxu1 %v3587_v4  ;;  %v3386_v4 = vld [vmem:[#allocation14 + $0x1010] sm:$0xff] }
 0x472   : > { %3728 = vmatpush.msrb.mxu2 %v3474_v5  ;;  %3751 = vmatpush.msrb.mxu3 %v3578_v6  ;;  %v3387_v5 = vld [vmem:[#allocation14 + $0x1018] sm:$0xff] }
 0x473   : > { %3768 = vmatpush.msra.mxu0 %v3475_v9  ;;  %3791 = vmatpush.msra.mxu1 %v3579_v11  ;;  %v3508_v9 = vld [vmem:[#allocation14 + $0x13e0] sm:$0xff] }
 0x474   : > { %3729 = vmatpush.msrb.mxu2 %v3466_v13  ;;  %3752 = vmatpush.msrb.mxu3 %v3570_v62  ;;  %v3612_v11 = vld [vmem:[#allocation14 + $0x1720] sm:$0xff] }
 0x475   : > { %3769 = vmatpush.msra.mxu0 %v3467_v16  ;;  %3792 = vmatpush.msra.mxu1 %v3571_v18  ;;  %v3509_v16 = vld [vmem:[#allocation14 + $0x13e8] sm:$0xff] }
 0x476   : > { %3730 = vmatpush.msrb.mxu2 %v3458_v7  ;;  %3753 = vmatpush.msrb.mxu3 %v3562_v19  ;;  %v3613_v18 = vld [vmem:[#allocation14 + $0x1728] sm:$0xff]  ;;  %v3500_v7 = vld [vmem:[#allocation14 + $0x13a0] sm:$0xff] }
 0x477   : > { %3770 = vmatpush.msra.mxu0 %v3459_v20  ;;  %3793 = vmatpush.msra.mxu1 %v3563_v22  ;;  %v3604_v19 = vld [vmem:[#allocation14 + $0x16e0] sm:$0xff]  ;;  %v3501_v22 = vld [vmem:[#allocation14 + $0x13a8] sm:$0xff] }
 0x478   : > { %3731 = vmatpush.msrb.mxu2 %v3450_v32  ;;  %3754 = vmatpush.msrb.mxu3 %v3554_v8  ;;  %v3605_v32 = vld [vmem:[#allocation14 + $0x16e8] sm:$0xff] }
 0x479   : > { %3771 = vmatpush.msra.mxu0 %v3451_v27  ;;  %3794 = vmatpush.msra.mxu1 %v3555_v21  ;;  %v3196_v52 = vpop.f32.mrf.mxu1  ;;  %v3492_v27 = vld [vmem:[#allocation14 + $0x1360] sm:$0xff] }
 0x47a   : > { %3732 = vmatpush.msrb.mxu2 %v3442_v30  ;;  %3755 = vmatpush.msrb.mxu3 %v3546_v33  ;;  %v3596_v21 = vld [vmem:[#allocation14 + $0x16a0] sm:$0xff]  ;;  %v3493_v30 = vld [vmem:[#allocation14 + $0x1368] sm:$0xff] }
 0x47b   : > { %3772 = vmatpush.msra.mxu0 %v3443_v31  ;;  %3795 = vmatpush.msra.mxu1 %v3547_v35  ;;  %v3597_v33 = vld [vmem:[#allocation14 + $0x16a8] sm:$0xff]  ;;  %v3484_v31 = vld [vmem:[#allocation14 + $0x1320] sm:$0xff] }
 0x47c   : > { %3733 = vmatpush.msrb.mxu2 %v3434_v15  ;;  %3756 = vmatpush.msrb.mxu3 %v3538_v38  ;;  %v3588_v35 = vld [vmem:[#allocation14 + $0x1660] sm:$0xff]  ;;  %v3485_v15 = vld [vmem:[#allocation14 + $0x1328] sm:$0xff] }
 0x47d   : > { %3773 = vmatpush.msra.mxu0 %v3435_v40  ;;  %3796 = vmatpush.msra.mxu1 %v3539_v41  ;;  %v3589_v38 = vld [vmem:[#allocation14 + $0x1668] sm:$0xff]  ;;  %v3580_v40 = vld [vmem:[#allocation14 + $0x1620] sm:$0xff] }
 0x47e   : > { %3734 = vmatpush.msrb.mxu2 %v3426_v28  ;;  %3757 = vmatpush.msrb.mxu3 %v3530_v29  ;;  %v3477_v41 = vld [vmem:[#allocation14 + $0x12e8] sm:$0xff]  ;;  %v3468_v29 = vld [vmem:[#allocation14 + $0x12a0] sm:$0xff] }
 0x47f   : > { %3774 = vmatpush.msra.mxu0 %v3427_v36  ;;  %3797 = vmatpush.msra.mxu1 %v3531_v47  ;;  %v3156_v2 = vpop.f32.mrf.mxu3  ;;  %v3581_v28 = vld [vmem:[#allocation14 + $0x1628] sm:$0xff]  ;;  %v3572_v36 = vld [vmem:[#allocation14 + $0x15e0] sm:$0xff] }
 0x480   : > { %3735 = vmatpush.msrb.mxu2 %v3418_v49  ;;  %3758 = vmatpush.msrb.mxu3 %v3522_v45  ;;  %v3176_v53 = vpop.f32.mrf.mxu0  ;;  %v3469_v47 = vld [vmem:[#allocation14 + $0x12a8] sm:$0xff]  ;;  %v3460_v45 = vld [vmem:[#allocation14 + $0x1260] sm:$0xff] }
 0x481   : > { %3775 = vmatpush.msra.mxu0 %v3419_v48  ;;  %3798 = vmatpush.msra.mxu1 %v3523_v46  ;;  %v3197_v39 = vadd.f32 %v3196_v52, %v3176_v53  ;;  %v3573_v49 = vld [vmem:[#allocation14 + $0x15e8] sm:$0xff]  ;;  %v3564_v48 = vld [vmem:[#allocation14 + $0x15a0] sm:$0xff] }
 0x482   : > { %3736 = vmatpush.msrb.mxu2 %v3410_v26  ;;  %3759 = vmatpush.msrb.mxu3 %v3514_v12  ;;  %v3461_v46 = vld [vmem:[#allocation14 + $0x1268] sm:$0xff]  ;;  %v3452_v12 = vld [vmem:[#allocation14 + $0x1220] sm:$0xff] }
 0x483   : > { %3776 = vmatpush.msra.mxu0 %v3411_v50  ;;  %3799 = vmatpush.msra.mxu1 %v3515_v37  ;;  %v3369_v13 = vrot.slane %v3197_v39, 5  ;;  %v3565_v26 = vld [vmem:[#allocation14 + $0x15a8] sm:$0xff]  ;;  %v3556_v50 = vld [vmem:[#allocation14 + $0x1560] sm:$0xff] }
 0x484   : > { %3760 = vmatmul.f32.vlgmr.msrb.gmra.mxu3 %v8005_v34  ;;  %3800 = vmatmul.f32.vlgmr.msra.gmra.mxu1 %v8005_v34  ;;  %v3453_v37 = vld [vmem:[#allocation14 + $0x1228] sm:$0xff]  ;;  %v3444_v53 = vld [vmem:[#allocation14 + $0x11e0] sm:$0xff] }
 0x485   : > { %3824 = vmatpush.msra.mxu3 %v3636_v55  ;;  %3864 = vmatpush.msrb.mxu1 %v3637_v56  ;;  %v3557_v52 = vld [vmem:[#allocation14 + $0x1568] sm:$0xff]  ;;  %v3548_v39 = vld [vmem:[#allocation14 + $0x1520] sm:$0xff] }
 0x486   : > { %3737 = vmatpush.msrb.mxu2 %v3402_v57  ;;  %3777 = vmatpush.msra.mxu0 %v3403_v58  ;;  %v3136_v0 = vpop.f32.mrf.mxu2  ;;  %v3445_v55 = vld [vmem:[#allocation14 + $0x11e8] sm:$0xff]  ;;  %v3436_v57 = vld [vmem:[#allocation14 + $0x11a0] sm:$0xff] }
 0x487   : > { %3825 = vmatpush.msra.mxu3 %v3628_v59  ;;  %3865 = vmatpush.msrb.mxu1 %v3629_v25  ;;  %v3157_v6 = vadd.f32 %v3156_v2, %v3136_v0  ;;  %v3549_v56 = vld [vmem:[#allocation14 + $0x1528] sm:$0xff]  ;;  %v3540_v58 = vld [vmem:[#allocation14 + $0x14e0] sm:$0xff] }
 0x488   : > { %3738 = vmatpush.msrb.mxu2 %v3394_v1  ;;  %3778 = vmatpush.msra.mxu0 %v3395_v17  ;;  %v3437_v59 = vld [vmem:[#allocation14 + $0x11a8] sm:$0xff]  ;;  %v3428_v1 = vld [vmem:[#allocation14 + $0x1160] sm:$0xff] }
 0x489   : > { %3826 = vmatpush.msra.mxu3 %v3620_v61  ;;  %3866 = vmatpush.msrb.mxu1 %v3621_v63  ;;  %v3368_v62 = vrot.slane %v3157_v6, 6  ;;  %v3541_v25 = vld [vmem:[#allocation14 + $0x14e8] sm:$0xff]  ;;  %v3532_v17 = vld [vmem:[#allocation14 + $0x14a0] sm:$0xff] }
 0x48a   : > { %3739 = vmatpush.msrb.mxu2 %v3386_v4  ;;  %3779 = vmatpush.msra.mxu0 %v3387_v5  ;;  %v3429_v61 = vld [vmem:[#allocation14 + $0x1168] sm:$0xff]  ;;  %v3420_v2 = vld [vmem:[#allocation14 + $0x1120] sm:$0xff] }
 0x48b   : > { %3740 = vmatmul.f32.vlgmr.msrb.gmra.mxu2 %v8010_v51  ;;  %3780 = vmatmul.f32.vlgmr.msra.gmra.mxu0 %v8010_v51  ;;  %v3375_v20 = vsel %vm2762_vm11, %v3368_v62, %v3369_v13  ;;  %v3533_v63 = vld [vmem:[#allocation14 + $0x14a8] sm:$0xff]  ;;  %v3524_v0 = vld [vmem:[#allocation14 + $0x1460] sm:$0xff] }
 0x48c   : > { %3804 = vmatpush.msra.mxu2 %v3508_v9  ;;  %3827 = vmatpush.msra.mxu3 %v3612_v11  ;;  %v8024_v8 = vsel %vm2764_vm12, %v8013_v54, %v3375_v20  ;;  %v3476_v54 = vld [vmem:[#allocation14 + $0x12e0] sm:$0xff]  ;;  %v3421_v4 = vld [vmem:[#allocation14 + $0x1128] sm:$0xff] }
 0x48d   : > { %3844 = vmatpush.msrb.mxu0 %v3509_v16  ;;  %3867 = vmatpush.msrb.mxu1 %v3613_v18  ;;  %v3525_v5 = vld [vmem:[#allocation14 + $0x1468] sm:$0xff]  ;;  %v3412_v6 = vld [vmem:[#allocation14 + $0x10e0] sm:$0xff] }
 0x48e   : > { %3805 = vmatpush.msra.mxu2 %v3500_v7  ;;  %3828 = vmatpush.msra.mxu3 %v3604_v19  ;;  %v3516_v9 = vld [vmem:[#allocation14 + $0x1420] sm:$0xff]  ;;  %v3413_v11 = vld [vmem:[#allocation14 + $0x10e8] sm:$0xff]  ;;  %v3638_v7 = vld [vmem:[#allocation14 + $0x17f0] sm:$0xff] }
 0x48f   : > { %3845 = vmatpush.msrb.mxu0 %v3501_v22  ;;  %3868 = vmatpush.msrb.mxu1 %v3605_v32  ;;  %v3517_v13 = vld [vmem:[#allocation14 + $0x1428] sm:$0xff]  ;;  %v3639_v19 = vld [vmem:[#allocation14 + $0x17f8] sm:$0xff]  ;;  %v3404_v20 = vld [vmem:[#allocation14 + $0x10a0] sm:$0xff] }
 0x490   : > { %3806 = vmatpush.msra.mxu2 %v3492_v27  ;;  %3829 = vmatpush.msra.mxu3 %v3596_v21  ;;  %v3405_v22 = vld [vmem:[#allocation14 + $0x10a8] sm:$0xff]  ;;  %v3630_v32 = vld [vmem:[#allocation14 + $0x17b0] sm:$0xff]  ;;  %v3631_v27 = vld [vmem:[#allocation14 + $0x17b8] sm:$0xff] }
 0x491   : > { %3846 = vmatpush.msrb.mxu0 %v3493_v30  ;;  %3869 = vmatpush.msrb.mxu1 %v3597_v33  ;;  %v3396_v21 = vld [vmem:[#allocation14 + $0x1060] sm:$0xff]  ;;  %v3397_v30 = vld [vmem:[#allocation14 + $0x1068] sm:$0xff]  ;;  %v3622_v33 = vld [vmem:[#allocation14 + $0x1770] sm:$0xff] }
 0x492   : > { %3807 = vmatpush.msra.mxu2 %v3484_v31  ;;  %3830 = vmatpush.msra.mxu3 %v3588_v35  ;;  %v3623_v31 = vld [vmem:[#allocation14 + $0x1778] sm:$0xff] }
 0x493   : > { %3847 = vmatpush.msrb.mxu0 %v3485_v15  ;;  %3870 = vmatpush.msrb.mxu1 %v3589_v38  ;;  %v3388_v38 = vld [vmem:[#allocation14 + $0x1020] sm:$0xff] }
 0x494   : > { %3808 = vmatpush.msra.mxu2 %v3476_v54  ;;  %3831 = vmatpush.msra.mxu3 %v3580_v40  ;;  %v3389_v54 = vld [vmem:[#allocation14 + $0x1028] sm:$0xff] }
 0x495   : > { %3848 = vmatpush.msrb.mxu0 %v3477_v41  ;;  %3871 = vmatpush.msrb.mxu1 %v3581_v28  ;;  %v3510_v41 = vld [vmem:[#allocation14 + $0x13f0] sm:$0xff] }
 0x496   : > { %3809 = vmatpush.msra.mxu2 %v3468_v29  ;;  %3832 = vmatpush.msra.mxu3 %v3572_v36  ;;  %v3614_v28 = vld [vmem:[#allocation14 + $0x1730] sm:$0xff] }
 0x497   : > { %3849 = vmatpush.msrb.mxu0 %v3469_v47  ;;  %3872 = vmatpush.msrb.mxu1 %v3573_v49  ;;  %v3511_v47 = vld [vmem:[#allocation14 + $0x13f8] sm:$0xff] }
 0x498   : > { %3810 = vmatpush.msra.mxu2 %v3460_v45  ;;  %3833 = vmatpush.msra.mxu3 %v3564_v48  ;;  %v3615_v49 = vld [vmem:[#allocation14 + $0x1738] sm:$0xff]  ;;  %v3502_v45 = vld [vmem:[#allocation14 + $0x13b0] sm:$0xff] }
 0x499   : > { %3850 = vmatpush.msrb.mxu0 %v3461_v46  ;;  %3873 = vmatpush.msrb.mxu1 %v3565_v26  ;;  %v3606_v48 = vld [vmem:[#allocation14 + $0x16f0] sm:$0xff]  ;;  %v3503_v26 = vld [vmem:[#allocation14 + $0x13b8] sm:$0xff] }
 0x49a   : > { %3811 = vmatpush.msra.mxu2 %v3452_v12  ;;  %3834 = vmatpush.msra.mxu3 %v3556_v50  ;;  %v3607_v12 = vld [vmem:[#allocation14 + $0x16f8] sm:$0xff]  ;;  %v3494_v50 = vld [vmem:[#allocation14 + $0x1370] sm:$0xff] }
 0x49b   : > { %3851 = vmatpush.msrb.mxu0 %v3453_v37  ;;  %3874 = vmatpush.msrb.mxu1 %v3557_v52  ;;  %v3276_v62 = vpop.f32.mrf.mxu1  ;;  %v3598_v37 = vld [vmem:[#allocation14 + $0x16b0] sm:$0xff]  ;;  %v3495_v52 = vld [vmem:[#allocation14 + $0x1378] sm:$0xff] }
 0x49c   : > { %3812 = vmatpush.msra.mxu2 %v3444_v53  ;;  %3835 = vmatpush.msra.mxu3 %v3548_v39  ;;  %v3599_v53 = vld [vmem:[#allocation14 + $0x16b8] sm:$0xff]  ;;  %v3486_v39 = vld [vmem:[#allocation14 + $0x1330] sm:$0xff] }
 0x49d   : > { %3852 = vmatpush.msrb.mxu0 %v3445_v55  ;;  %3875 = vmatpush.msrb.mxu1 %v3549_v56  ;;  %v3590_v55 = vld [vmem:[#allocation14 + $0x1670] sm:$0xff]  ;;  %v3487_v56 = vld [vmem:[#allocation14 + $0x1338] sm:$0xff] }
 0x49e   : > { %3813 = vmatpush.msra.mxu2 %v3436_v57  ;;  %3836 = vmatpush.msra.mxu3 %v3540_v58  ;;  %v3591_v57 = vld [vmem:[#allocation14 + $0x1678] sm:$0xff]  ;;  %v3478_v58 = vld [vmem:[#allocation14 + $0x12f0] sm:$0xff] }
 0x49f   : > { %3853 = vmatpush.msrb.mxu0 %v3437_v59  ;;  %3876 = vmatpush.msrb.mxu1 %v3541_v25  ;;  %v3582_v59 = vld [vmem:[#allocation14 + $0x1630] sm:$0xff]  ;;  %v3479_v25 = vld [vmem:[#allocation14 + $0x12f8] sm:$0xff] }
 0x4a0   : > { %3814 = vmatpush.msra.mxu2 %v3428_v1  ;;  %3837 = vmatpush.msra.mxu3 %v3532_v17  ;;  %v3583_v1 = vld [vmem:[#allocation14 + $0x1638] sm:$0xff]  ;;  %v3470_v17 = vld [vmem:[#allocation14 + $0x12b0] sm:$0xff] }
 0x4a1   : > { %3854 = vmatpush.msrb.mxu0 %v3429_v61  ;;  %3877 = vmatpush.msrb.mxu1 %v3533_v63  ;;  %v3236_v35 = vpop.f32.mrf.mxu3  ;;  %v3574_v61 = vld [vmem:[#allocation14 + $0x15f0] sm:$0xff]  ;;  %v3471_v63 = vld [vmem:[#allocation14 + $0x12b8] sm:$0xff] }
 0x4a2   : > { %3815 = vmatpush.msra.mxu2 %v3420_v2  ;;  %3838 = vmatpush.msra.mxu3 %v3524_v0  ;;  %v3256_v16 = vpop.f32.mrf.mxu0  ;;  %v3575_v2 = vld [vmem:[#allocation14 + $0x15f8] sm:$0xff]  ;;  %v3462_v0 = vld [vmem:[#allocation14 + $0x1270] sm:$0xff] }
 0x4a3   : > { %3855 = vmatpush.msrb.mxu0 %v3421_v4  ;;  %3878 = vmatpush.msrb.mxu1 %v3525_v5  ;;  %v3277_v18 = vadd.f32 %v3276_v62, %v3256_v16  ;;  %v3566_v4 = vld [vmem:[#allocation14 + $0x15b0] sm:$0xff]  ;;  %v3463_v5 = vld [vmem:[#allocation14 + $0x1278] sm:$0xff] }
 0x4a4   : > { %3816 = vmatpush.msra.mxu2 %v3412_v6  ;;  %3839 = vmatpush.msra.mxu3 %v3516_v9  ;;  %v3567_v6 = vld [vmem:[#allocation14 + $0x15b8] sm:$0xff]  ;;  %v3454_v9 = vld [vmem:[#allocation14 + $0x1230] sm:$0xff] }
 0x4a5   : > { %3856 = vmatpush.msrb.mxu0 %v3413_v11  ;;  %3879 = vmatpush.msrb.mxu1 %v3517_v13  ;;  %v3371_v29 = vrot.slane %v3277_v18, 3  ;;  %v3558_v11 = vld [vmem:[#allocation14 + $0x1570] sm:$0xff]  ;;  %v3455_v13 = vld [vmem:[#allocation14 + $0x1238] sm:$0xff] }
 0x4a6   : > { %3840 = vmatmul.f32.vlgmr.msra.gmra.mxu3 %v8005_v34  ;;  %3880 = vmatmul.f32.vlgmr.msrb.gmra.mxu1 %v8005_v34  ;;  %v3559_v62 = vld [vmem:[#allocation14 + $0x1578] sm:$0xff]  ;;  %v3446_v16 = vld [vmem:[#allocation14 + $0x11f0] sm:$0xff] }
 0x4a7   : > { %3904 = vmatpush.msrb.mxu3 %v3638_v7  ;;  %3944 = vmatpush.msra.mxu1 %v3639_v19  ;;  %v3550_v18 = vld [vmem:[#allocation14 + $0x1530] sm:$0xff]  ;;  %v3447_v7 = vld [vmem:[#allocation14 + $0x11f8] sm:$0xff] }
 0x4a8   : > { %3817 = vmatpush.msra.mxu2 %v3404_v20  ;;  %3857 = vmatpush.msrb.mxu0 %v3405_v22  ;;  %v3216_v15 = vpop.f32.mrf.mxu2  ;;  %v3551_v19 = vld [vmem:[#allocation14 + $0x1538] sm:$0xff]  ;;  %v3438_v20 = vld [vmem:[#allocation14 + $0x11b0] sm:$0xff] }
 0x4a9   : > { %3905 = vmatpush.msrb.mxu3 %v3630_v32  ;;  %3945 = vmatpush.msra.mxu1 %v3631_v27  ;;  %v3237_v40 = vadd.f32 %v3236_v35, %v3216_v15  ;;  %v3542_v22 = vld [vmem:[#allocation14 + $0x14f0] sm:$0xff]  ;;  %v3439_v32 = vld [vmem:[#allocation14 + $0x11b8] sm:$0xff]  ;;  %v2543_v35 = vadd.f32 %v7984_v42, %v7986_v43  ;;  %v2503_v42 = vadd.f32 %v7972_v60, %v7974_v10  ;;  %v4229_v10 = vld [vmem:[#allocation14 + $0x1f80] sm:$0xff] }
 0x4aa   : > { %3818 = vmatpush.msra.mxu2 %v3396_v21  ;;  %3858 = vmatpush.msrb.mxu0 %v3397_v30  ;;  %v3543_v27 = vld [vmem:[#allocation14 + $0x14f8] sm:$0xff]  ;;  %v3430_v21 = vld [vmem:[#allocation14 + $0x1170] sm:$0xff] }
 0x4ab   : > { %3906 = vmatpush.msrb.mxu3 %v3622_v33  ;;  %3946 = vmatpush.msra.mxu1 %v3623_v31  ;;  %v3370_v36 = vrot.slane %v3237_v40, 4  ;;  %v3534_v30 = vld [vmem:[#allocation14 + $0x14b0] sm:$0xff]  ;;  %v3431_v33 = vld [vmem:[#allocation14 + $0x1178] sm:$0xff]  ;;  %v2754_v43 = vrot.slane %v2543_v35, 6  ;;  %v4182_v35 = vld [vmem:[#allocation14 + $0x1e08] sm:$0xff] }
 0x4ac   : > { %3819 = vmatpush.msra.mxu2 %v3388_v38  ;;  %3859 = vmatpush.msrb.mxu0 %v3389_v54  ;;  %v3535_v31 = vld [vmem:[#allocation14 + $0x14b8] sm:$0xff]  ;;  %v3422_v15 = vld [vmem:[#allocation14 + $0x1130] sm:$0xff] }
 0x4ad   : > { %3820 = vmatmul.f32.vlgmr.msra.gmra.mxu2 %v8010_v51  ;;  %3860 = vmatmul.f32.vlgmr.msrb.gmra.mxu0 %v8010_v51  ;;  %v8031_v46 = vsel %vm2766_vm6, %v3370_v36, %v3371_v29  ;;  %v3526_v38 = vld [vmem:[#allocation14 + $0x1470] sm:$0xff]  ;;  %v3423_v54 = vld [vmem:[#allocation14 + $0x1138] sm:$0xff] }
 0x4ae   : > { %3884 = vmatpush.msrb.mxu2 %v3510_v41  ;;  %3907 = vmatpush.msrb.mxu3 %v3614_v28  ;;  %v3527_v40 = vld [vmem:[#allocation14 + $0x1478] sm:$0xff]  ;;  %v2583_v41 = vadd.f32 %v7980_v23, %v7982_v24  ;;  %v3414_v28 = vld [vmem:[#allocation14 + $0x10f0] sm:$0xff]  ;;  %v2463_v23 = vadd.f32 %v7976_v14, %v7978_v3  ;;  %v4221_v3 = vld [vmem:[#allocation14 + $0x1f40] sm:$0xff] }
 0x4af   : > { %3924 = vmatpush.msra.mxu0 %v3511_v47  ;;  %3947 = vmatpush.msra.mxu1 %v3615_v49  ;;  %v3518_v29 = vld [vmem:[#allocation14 + $0x1430] sm:$0xff]  ;;  %v3415_v36 = vld [vmem:[#allocation14 + $0x10f8] sm:$0xff]  ;;  %v4237_v49 = vld [vmem:[#allocation14 + $0x1fc0] sm:$0xff] }
 0x4b0   : > { %3885 = vmatpush.msrb.mxu2 %v3502_v45  ;;  %3908 = vmatpush.msrb.mxu3 %v3606_v48  ;;  %v3519_v47 = vld [vmem:[#allocation14 + $0x1438] sm:$0xff]  ;;  %v4238_v45 = vld [vmem:[#allocation14 + $0x1fc8] sm:$0xff]  ;;  %v2755_v24 = vrot.slane %v2583_v41, 5  ;;  %v4061_v41 = vld [vmem:[#allocation14 + $0x1a40] sm:$0xff] }
 0x4b1   : > { %3925 = vmatpush.msra.mxu0 %v3503_v26  ;;  %3948 = vmatpush.msra.mxu1 %v3607_v12  ;;  %v3406_v26 = vld [vmem:[#allocation14 + $0x10b0] sm:$0xff]  ;;  %v3407_v12 = vld [vmem:[#allocation14 + $0x10b8] sm:$0xff] }
 0x4b2   : > { %3886 = vmatpush.msrb.mxu2 %v3494_v50  ;;  %3909 = vmatpush.msrb.mxu3 %v3598_v37  ;;  %v4230_v50 = vld [vmem:[#allocation14 + $0x1f88] sm:$0xff]  ;;  %v2753_v37 = vrot.slane %v2503_v42, 7  ;;  %v4157_v42 = vld [vmem:[#allocation14 + $0x1d40] sm:$0xff] }
 0x4b3   : > { %3926 = vmatpush.msra.mxu0 %v3495_v52  ;;  %3949 = vmatpush.msra.mxu1 %v3599_v53  ;;  %v2763_v52 = vsel %vm2762_vm11, %v2754_v43, %v2755_v24  ;;  %v3398_v53 = vld [vmem:[#allocation14 + $0x1070] sm:$0xff]  ;;  %v4054_v43 = vld [vmem:[#allocation14 + $0x1a08] sm:$0xff] }
 0x4b4   : > { %3887 = vmatpush.msrb.mxu2 %v3486_v39  ;;  %3910 = vmatpush.msrb.mxu3 %v3590_v55  ;;  %v3399_v39 = vld [vmem:[#allocation14 + $0x1078] sm:$0xff]  ;;  %v4222_v55 = vld [vmem:[#allocation14 + $0x1f48] sm:$0xff] }
 0x4b5   : > { %3927 = vmatpush.msra.mxu0 %v3487_v56  ;;  %3950 = vmatpush.msra.mxu1 %v3591_v57  ;;  %v4150_v24 = vld [vmem:[#allocation14 + $0x1d08] sm:$0xff] }
 0x4b6   : > { %3888 = vmatpush.msrb.mxu2 %v3478_v58  ;;  %3911 = vmatpush.msrb.mxu3 %v3582_v59  ;;  %v3390_v58 = vld [vmem:[#allocation14 + $0x1030] sm:$0xff]  ;;  %v3391_v59 = vld [vmem:[#allocation14 + $0x1038] sm:$0xff] }
 0x4b7   : > { %3928 = vmatpush.msra.mxu0 %v3479_v25  ;;  %3951 = vmatpush.msra.mxu1 %v3583_v1 }
 0x4b8   : > { %3889 = vmatpush.msrb.mxu2 %v3470_v17  ;;  %3912 = vmatpush.msrb.mxu3 %v3574_v61  ;;  %v2168_v17 = vld [vmem:[#allocation16] sm:$0xff] }
 0x4b9   : > { %3929 = vmatpush.msra.mxu0 %v3471_v63  ;;  %3952 = vmatpush.msra.mxu1 %v3575_v2  ;;  %v4109_v63 = vld [vmem:[#allocation14 + $0x1bc0] sm:$0xff] }
 0x4ba   : > { %3890 = vmatpush.msrb.mxu2 %v3462_v0  ;;  %3913 = vmatpush.msrb.mxu3 %v3566_v4  ;;  %v4213_v2 = vld [vmem:[#allocation14 + $0x1f00] sm:$0xff] }
 0x4bb   : > { %3930 = vmatpush.msra.mxu0 %v3463_v5  ;;  %3953 = vmatpush.msra.mxu1 %v3567_v6  ;;  %v4110_v5 = vld [vmem:[#allocation14 + $0x1bc8] sm:$0xff] }
 0x4bc   : > { %3891 = vmatpush.msrb.mxu2 %v3454_v9  ;;  %3914 = vmatpush.msrb.mxu3 %v3558_v11  ;;  %v4214_v6 = vld [vmem:[#allocation14 + $0x1f08] sm:$0xff]  ;;  %v4101_v9 = vld [vmem:[#allocation14 + $0x1b80] sm:$0xff] }
 0x4bd   : > { %3931 = vmatpush.msra.mxu0 %v3455_v13  ;;  %3954 = vmatpush.msra.mxu1 %v3559_v62  ;;  %v3356_v60 = vpop.f32.mrf.mxu1  ;;  %v4205_v11 = vld [vmem:[#allocation14 + $0x1ec0] sm:$0xff] }
 0x4be   : > { %3892 = vmatpush.msrb.mxu2 %v3446_v16  ;;  %3915 = vmatpush.msrb.mxu3 %v3550_v18  ;;  %v4206_v16 = vld [vmem:[#allocation14 + $0x1ec8] sm:$0xff] }
 0x4bf   : > { %3932 = vmatpush.msra.mxu0 %v3447_v7  ;;  %3955 = vmatpush.msra.mxu1 %v3551_v19  ;;  %v4093_v7 = vld [vmem:[#allocation14 + $0x1b40] sm:$0xff] }
 0x4c0   : > { %3893 = vmatpush.msrb.mxu2 %v3438_v20  ;;  %3916 = vmatpush.msrb.mxu3 %v3542_v22  ;;  %v4197_v19 = vld [vmem:[#allocation14 + $0x1e80] sm:$0xff]  ;;  %v4198_v22 = vld [vmem:[#allocation14 + $0x1e88] sm:$0xff] }
 0x4c1   : > { %3933 = vmatpush.msra.mxu0 %v3439_v32  ;;  %3956 = vmatpush.msra.mxu1 %v3543_v27  ;;  %v4085_v27 = vld [vmem:[#allocation14 + $0x1b00] sm:$0xff] }
 0x4c2   : > { %3894 = vmatpush.msrb.mxu2 %v3430_v21  ;;  %3917 = vmatpush.msrb.mxu3 %v3534_v30  ;;  %v4189_v21 = vld [vmem:[#allocation14 + $0x1e40] sm:$0xff]  ;;  %v4190_v30 = vld [vmem:[#allocation14 + $0x1e48] sm:$0xff] }
 0x4c3   : > { %3934 = vmatpush.msra.mxu0 %v3431_v33  ;;  %3957 = vmatpush.msra.mxu1 %v3535_v31  ;;  %v3316_v56 = vpop.f32.mrf.mxu3  ;;  %v4077_v33 = vld [vmem:[#allocation14 + $0x1ac0] sm:$0xff] }
 0x4c4   : > { %3895 = vmatpush.msrb.mxu2 %v3422_v15  ;;  %3918 = vmatpush.msrb.mxu3 %v3526_v38  ;;  %v3336_v48 = vpop.f32.mrf.mxu0  ;;  %v4181_v31 = vld [vmem:[#allocation14 + $0x1e00] sm:$0xff] }
 0x4c5   : > { %3935 = vmatpush.msra.mxu0 %v3423_v54  ;;  %3958 = vmatpush.msra.mxu1 %v3527_v40  ;;  %v3357_v14 = vadd.f32 %v3356_v60, %v3336_v48  ;;  %v4069_v15 = vld [vmem:[#allocation14 + $0x1a80] sm:$0xff]  ;;  %v4070_v54 = vld [vmem:[#allocation14 + $0x1a88] sm:$0xff] }
 0x4c6   : > { %3896 = vmatpush.msrb.mxu2 %v3414_v28  ;;  %3919 = vmatpush.msrb.mxu3 %v3518_v29  ;;  %v4173_v38 = vld [vmem:[#allocation14 + $0x1dc0] sm:$0xff]  ;;  %v4174_v40 = vld [vmem:[#allocation14 + $0x1dc8] sm:$0xff] }
 0x4c7   : > { %3936 = vmatpush.msra.mxu0 %v3415_v36  ;;  %3959 = vmatpush.msra.mxu1 %v3519_v47  ;;  %v3373_v0 = vrot.slane %v3357_v14, 1  ;;  %v4165_v28 = vld [vmem:[#allocation14 + $0x1d80] sm:$0xff]  ;;  %v4062_v29 = vld [vmem:[#allocation14 + $0x1a48] sm:$0xff] }
 0x4c8   : > { %3920 = vmatmul.f32.vlgmr.msrb.gmra.mxu3 %v8005_v34  ;;  %3960 = vmatmul.f32.vlgmr.msra.gmra.mxu1 %v8005_v34  ;;  %v2761_v34 = vsel %vm2760_vm4, %v2463_v23, %v2753_v37  ;;  %v4166_v36 = vld [vmem:[#allocation14 + $0x1d88] sm:$0xff]  ;;  %v4053_v47 = vld [vmem:[#allocation14 + $0x1a00] sm:$0xff] }
 0x4c9   : > { %4269 = vmatpush.msra.mxu3 %v4237_v49  ;;  %4309 = vmatpush.msrb.mxu1 %v4238_v45  ;;  %v2765_v1 = vsel %vm2764_vm12, %v2761_v34, %v2763_v52  ;;  %v4158_v49 = vld [vmem:[#allocation14 + $0x1d48] sm:$0xff]  ;;  %v4045_v45 = vld [vmem:[#allocation14 + $0x19c0] sm:$0xff] }
 0x4ca   : > { %3897 = vmatpush.msrb.mxu2 %v3406_v26  ;;  %3937 = vmatpush.msra.mxu0 %v3407_v12  ;;  %v3296_v57 = vpop.f32.mrf.mxu2  ;;  %v2773_v61 = vsel %vm2772_vm13, %v2765_v1, %v8002_v44  ;;  %v4102_v44 = vld [vmem:[#allocation14 + $0x1b88] sm:$0xff]  ;;  %v4149_v48 = vld [vmem:[#allocation14 + $0x1d00] sm:$0xff]  ;;  %v4239_v1 = vld [vmem:[#allocation14 + $0x1fd0] sm:$0xff] }
 0x4cb   : > { %4270 = vmatpush.msra.mxu3 %v4229_v10  ;;  %4310 = vmatpush.msrb.mxu1 %v4230_v50  ;;  %v3317_v25 = vadd.f32 %v3316_v56, %v3296_v57  ;;  %v2775_v62 = vadd.f32 %v2773_v61, %v2168_v17  ;;  %v4046_v23 = vld [vmem:[#allocation14 + $0x19c8] sm:$0xff]  ;;  %v4037_v26 = vld [vmem:[#allocation14 + $0x1980] sm:$0xff]  ;;  %v4240_v17 = vld [vmem:[#allocation14 + $0x1fd8] sm:$0xff] }
 0x4cc   : > { %3898 = vmatpush.msrb.mxu2 %v3398_v53  ;;  %3938 = vmatpush.msra.mxu0 %v3399_v39  ;;  %v4141_v12 = vld [vmem:[#allocation14 + $0x1cc0] sm:$0xff]  ;;  %v4038_v60 = vld [vmem:[#allocation14 + $0x1988] sm:$0xff] }
 0x4cd   : > { %4271 = vmatpush.msra.mxu3 %v4221_v3  ;;  %4311 = vmatpush.msrb.mxu1 %v4222_v55  ;;  %v3372_v4 = vrot.slane %v3317_v25, 2  ;;  %v4142_v10 = vld [vmem:[#allocation14 + $0x1cc8] sm:$0xff]  ;;  %v4029_v50 = vld [vmem:[#allocation14 + $0x1940] sm:$0xff] }
 0x4ce   : > { %3899 = vmatpush.msrb.mxu2 %v3390_v58  ;;  %3939 = vmatpush.msra.mxu0 %v3391_v59  ;;  %v4133_v37 = vld [vmem:[#allocation14 + $0x1c80] sm:$0xff]  ;;  %v4030_v52 = vld [vmem:[#allocation14 + $0x1948] sm:$0xff] }
 0x4cf   : > { %3900 = vmatmul.f32.vlgmr.msrb.gmra.mxu2 %v8010_v51  ;;  %3940 = vmatmul.f32.vlgmr.msra.gmra.mxu0 %v8010_v51  ;;  %v3378_v13 = vsel %vm2768_vm8, %v3372_v4, %v3373_v0  ;;  %v4094_v51 = vld [vmem:[#allocation14 + $0x1b48] sm:$0xff]  ;;  %v4021_v39 = vld [vmem:[#allocation14 + $0x1900] sm:$0xff]  ;;  %v4232_v0 = vld [vmem:[#allocation14 + $0x1f98] sm:$0xff] }
 0x4d0   : > { %4249 = vmatpush.msra.mxu2 %v4109_v63  ;;  %4272 = vmatpush.msra.mxu3 %v4213_v2  ;;  %v3379_v18 = vsel %vm2770_vm9, %v8031_v46, %v3378_v13  ;;  %v4086_v46 = vld [vmem:[#allocation14 + $0x1b08] sm:$0xff]  ;;  %v4125_v14 = vld [vmem:[#allocation14 + $0x1c40] sm:$0xff]  ;;  %v4231_v2 = vld [vmem:[#allocation14 + $0x1f90] sm:$0xff] }
 0x4d1   : > { %4289 = vmatpush.msrb.mxu0 %v4110_v5  ;;  %4312 = vmatpush.msrb.mxu1 %v4214_v6  ;;  %v3380_v20 = vsel %vm2772_vm13, %v8024_v8, %v3379_v18  ;;  %v4078_v8 = vld [vmem:[#allocation14 + $0x1ac8] sm:$0xff]  ;;  %v4013_v56 = vld [vmem:[#allocation14 + $0x18c0] sm:$0xff]  ;;  %v4223_v6 = vld [vmem:[#allocation14 + $0x1f50] sm:$0xff] }
 0x4d2   : > { %4250 = vmatpush.msra.mxu2 %v4101_v9  ;;  %4273 = vmatpush.msra.mxu3 %v4205_v11  ;;  %v8055_v32 = vadd.f32 %v3380_v20, %v2775_v62  ;;  %v4134_v53 = vld [vmem:[#allocation14 + $0x1c88] sm:$0xff]  ;;  %v4117_v57 = vld [vmem:[#allocation14 + $0x1c00] sm:$0xff]  ;;  %v4224_v9 = vld [vmem:[#allocation14 + $0x1f58] sm:$0xff] }
 0x4d3   : > { %4290 = vmatpush.msrb.mxu0 %v4102_v44  ;;  %4313 = vmatpush.msrb.mxu1 %v4206_v16  ;;  %v4022_v3 = vld [vmem:[#allocation14 + $0x1908] sm:$0xff]  ;;  %v4005_v61 = vld [vmem:[#allocation14 + $0x1880] sm:$0xff]  ;;  %v4111_v16 = vld [vmem:[#allocation14 + $0x1bd0] sm:$0xff] }
 0x4d4   : > { %4251 = vmatpush.msra.mxu2 %v4093_v7  ;;  %4274 = vmatpush.msra.mxu3 %v4197_v19  ;;  %v4126_v55 = vld [vmem:[#allocation14 + $0x1c48] sm:$0xff]  ;;  %v3997_v4 = vld [vmem:[#allocation14 + $0x1840] sm:$0xff]  ;;  %v4215_v18 = vld [vmem:[#allocation14 + $0x1f10] sm:$0xff] }
 0x4d5   : > { %4291 = vmatpush.msrb.mxu0 %v4094_v51  ;;  %4314 = vmatpush.msrb.mxu1 %v4198_v22  ;;  %v4014_v34 = vld [vmem:[#allocation14 + $0x18c8] sm:$0xff]  ;;  %v3989_v11 = vld [vmem:[#allocation14 + $0x1800] sm:$0xff]  ;;  %v4112_v7 = vld [vmem:[#allocation14 + $0x1bd8] sm:$0xff] }
 0x4d6   : > { %4252 = vmatpush.msra.mxu2 %v4085_v27  ;;  %4275 = vmatpush.msra.mxu3 %v4189_v21  ;;  %v4118_v58 = vld [vmem:[#allocation14 + $0x1c08] sm:$0xff]  ;;  %v4216_v19 = vld [vmem:[#allocation14 + $0x1f18] sm:$0xff]  ;;  %v4103_v20 = vld [vmem:[#allocation14 + $0x1b90] sm:$0xff] }
 0x4d7   : > { %4292 = vmatpush.msrb.mxu0 %v4086_v46  ;;  %4315 = vmatpush.msrb.mxu1 %v4190_v30  ;;  %v6553_v59 = vld [vmem:[%s7932_s23 + $0x8] sm:$0xff]  ;;  %v6554_v62 = vld [vmem:[%s7932_s23] sm:$0xff]  ;;  %v4104_v22 = vld [vmem:[#allocation14 + $0x1b98] sm:$0xff] }
 0x4d8   : > { %4253 = vmatpush.msra.mxu2 %v4077_v33  ;;  %4276 = vmatpush.msra.mxu3 %v4181_v31  ;;  %v8058_v25 = vrot.slane %v6553_v59, 3  ;;  %v4006_v63 = vld [vmem:[#allocation14 + $0x1888] sm:$0xff]  ;;  %v8063_v44 = vrot.slane %v6554_v62, 3  ;;  %v4207_v51 = vld [vmem:[#allocation14 + $0x1ed0] sm:$0xff]  ;;  %v4208_v27 = vld [vmem:[#allocation14 + $0x1ed8] sm:$0xff] }
 0x4d9   : > { %4293 = vmatpush.msrb.mxu0 %v4078_v8  ;;  %4316 = vmatpush.msrb.mxu1 %v4182_v35  ;;  %v3998_v5 = vld [vmem:[#allocation14 + $0x1848] sm:$0xff]  ;;  %v4095_v21 = vld [vmem:[#allocation14 + $0x1b50] sm:$0xff]  ;;  %v4096_v30 = vld [vmem:[#allocation14 + $0x1b58] sm:$0xff] }
 0x4da   : > { %4254 = vmatpush.msra.mxu2 %v4069_v15  ;;  %4277 = vmatpush.msra.mxu3 %v4173_v38  ;;  %v3990_v13 = vld [vmem:[#allocation14 + $0x1808] sm:$0xff]  ;;  %v4199_v46 = vld [vmem:[#allocation14 + $0x1e90] sm:$0xff]  ;;  %v4200_v33 = vld [vmem:[#allocation14 + $0x1e98] sm:$0xff] }
 0x4db   : > { %4294 = vmatpush.msrb.mxu0 %v4070_v54  ;;  %4317 = vmatpush.msrb.mxu1 %v4174_v40  ;;  %v4087_v31 = vld [vmem:[#allocation14 + $0x1b10] sm:$0xff]  ;;  %v4088_v35 = vld [vmem:[#allocation14 + $0x1b18] sm:$0xff]  ;;  %v4225_v62 = vld [vmem:[#allocation14 + $0x1f60] sm:$0xff] }
 0x4dc   : > { %4255 = vmatpush.msra.mxu2 %v4061_v41  ;;  %4278 = vmatpush.msra.mxu3 %v4165_v28  ;;  %v4191_v8 = vld [vmem:[#allocation14 + $0x1e50] sm:$0xff]  ;;  %v4192_v15 = vld [vmem:[#allocation14 + $0x1e58] sm:$0xff] }
 0x4dd   : > { %4295 = vmatpush.msrb.mxu0 %v4062_v29  ;;  %4318 = vmatpush.msrb.mxu1 %v4166_v36  ;;  %v4079_v38 = vld [vmem:[#allocation14 + $0x1ad0] sm:$0xff]  ;;  %v4080_v40 = vld [vmem:[#allocation14 + $0x1ad8] sm:$0xff] }
 0x4de   : > { %4256 = vmatpush.msra.mxu2 %v4053_v47  ;;  %4279 = vmatpush.msra.mxu3 %v4157_v42  ;;  %v4183_v54 = vld [vmem:[#allocation14 + $0x1e10] sm:$0xff]  ;;  %v4184_v41 = vld [vmem:[#allocation14 + $0x1e18] sm:$0xff] }
 0x4df   : > { %4296 = vmatpush.msrb.mxu0 %v4054_v43  ;;  %4319 = vmatpush.msrb.mxu1 %v4158_v49  ;;  %v4071_v28 = vld [vmem:[#allocation14 + $0x1a90] sm:$0xff]  ;;  %v4072_v36 = vld [vmem:[#allocation14 + $0x1a98] sm:$0xff] }
 0x4e0   : > { %4257 = vmatpush.msra.mxu2 %v4045_v45  ;;  %4280 = vmatpush.msra.mxu3 %v4149_v48  ;;  %v4175_v29 = vld [vmem:[#allocation14 + $0x1dd0] sm:$0xff]  ;;  %v4176_v47 = vld [vmem:[#allocation14 + $0x1dd8] sm:$0xff] }
 0x4e1   : > { %4297 = vmatpush.msrb.mxu0 %v4046_v23  ;;  %4320 = vmatpush.msrb.mxu1 %v4150_v24  ;;  %v4063_v42 = vld [vmem:[#allocation14 + $0x1a50] sm:$0xff]  ;;  %v4064_v49 = vld [vmem:[#allocation14 + $0x1a58] sm:$0xff] }
 0x4e2   : > { %4258 = vmatpush.msra.mxu2 %v4037_v26  ;;  %4281 = vmatpush.msra.mxu3 %v4141_v12  ;;  %v4167_v43 = vld [vmem:[#allocation14 + $0x1d90] sm:$0xff]  ;;  %v4168_v45 = vld [vmem:[#allocation14 + $0x1d98] sm:$0xff] }
 0x4e3   : > { %4298 = vmatpush.msrb.mxu0 %v4038_v60  ;;  %4321 = vmatpush.msrb.mxu1 %v4142_v10  ;;  %v4055_v48 = vld [vmem:[#allocation14 + $0x1a10] sm:$0xff]  ;;  %v4056_v24 = vld [vmem:[#allocation14 + $0x1a18] sm:$0xff] }
 0x4e4   : > { %4259 = vmatpush.msra.mxu2 %v4029_v50  ;;  %4282 = vmatpush.msra.mxu3 %v4133_v37  ;;  %v4159_v23 = vld [vmem:[#allocation14 + $0x1d50] sm:$0xff]  ;;  %v4160_v26 = vld [vmem:[#allocation14 + $0x1d58] sm:$0xff] }
 0x4e5   : > { %4299 = vmatpush.msrb.mxu0 %v4030_v52  ;;  %4322 = vmatpush.msrb.mxu1 %v4134_v53  ;;  %v4047_v12 = vld [vmem:[#allocation14 + $0x19d0] sm:$0xff]  ;;  %v4048_v10 = vld [vmem:[#allocation14 + $0x19d8] sm:$0xff] }
 0x4e6   : > { %4260 = vmatpush.msra.mxu2 %v4021_v39  ;;  %4283 = vmatpush.msra.mxu3 %v4125_v14  ;;  %v4151_v60 = vld [vmem:[#allocation14 + $0x1d10] sm:$0xff]  ;;  %v4152_v50 = vld [vmem:[#allocation14 + $0x1d18] sm:$0xff] }
 0x4e7   : > { %4300 = vmatpush.msrb.mxu0 %v4022_v3  ;;  %4323 = vmatpush.msrb.mxu1 %v4126_v55  ;;  %v4039_v37 = vld [vmem:[#allocation14 + $0x1990] sm:$0xff]  ;;  %v4040_v53 = vld [vmem:[#allocation14 + $0x1998] sm:$0xff] }
 0x4e8   : > { %4261 = vmatpush.msra.mxu2 %v4013_v56  ;;  %4284 = vmatpush.msra.mxu3 %v4117_v57  ;;  %v4143_v52 = vld [vmem:[#allocation14 + $0x1cd0] sm:$0xff]  ;;  %v4144_v39 = vld [vmem:[#allocation14 + $0x1cd8] sm:$0xff] }
 0x4e9   : > { %4301 = vmatpush.msrb.mxu0 %v4014_v34  ;;  %4324 = vmatpush.msrb.mxu1 %v4118_v58  ;;  %v4031_v14 = vld [vmem:[#allocation14 + $0x1950] sm:$0xff]  ;;  %v4032_v55 = vld [vmem:[#allocation14 + $0x1958] sm:$0xff] }
 0x4ea   : > { %4285 = vmatmul.f32.vlgmr.msra.gmra.mxu3 %v8058_v25  ;;  %4325 = vmatmul.f32.vlgmr.msrb.gmra.mxu1 %v8058_v25  ;;  %v4135_v3 = vld [vmem:[#allocation14 + $0x1c90] sm:$0xff]  ;;  %v4136_v56 = vld [vmem:[#allocation14 + $0x1c98] sm:$0xff] }
 0x4eb   : > { %4349 = vmatpush.msrb.mxu3 %v4239_v1  ;;  %4389 = vmatpush.msra.mxu1 %v4240_v17  ;;  %v4023_v57 = vld [vmem:[#allocation14 + $0x1910] sm:$0xff]  ;;  %v4024_v58 = vld [vmem:[#allocation14 + $0x1918] sm:$0xff] }
 0x4ec   : > { %4262 = vmatpush.msra.mxu2 %v4005_v61  ;;  %4302 = vmatpush.msrb.mxu0 %v4006_v63  ;;  %v4127_v34 = vld [vmem:[#allocation14 + $0x1c50] sm:$0xff]  ;;  %v4128_v59 = vld [vmem:[#allocation14 + $0x1c58] sm:$0xff] }
 0x4ed   : > { %4350 = vmatpush.msrb.mxu3 %v4231_v2  ;;  %4390 = vmatpush.msra.mxu1 %v4232_v0  ;;  %v4015_v1 = vld [vmem:[#allocation14 + $0x18d0] sm:$0xff]  ;;  %v4016_v61 = vld [vmem:[#allocation14 + $0x18d8] sm:$0xff]  ;;  %v4241_v2 = vld [vmem:[#allocation14 + $0x1fe0] sm:$0xff] }
 0x4ee   : > { %4263 = vmatpush.msra.mxu2 %v3997_v4  ;;  %4303 = vmatpush.msrb.mxu0 %v3998_v5  ;;  %v4119_v17 = vld [vmem:[#allocation14 + $0x1c10] sm:$0xff]  ;;  %v4120_v63 = vld [vmem:[#allocation14 + $0x1c18] sm:$0xff]  ;;  %v4242_v0 = vld [vmem:[#allocation14 + $0x1fe8] sm:$0xff] }
 0x4ef   : > { %4351 = vmatpush.msrb.mxu3 %v4223_v6  ;;  %4391 = vmatpush.msra.mxu1 %v4224_v9  ;;  %v4007_v4 = vld [vmem:[#allocation14 + $0x1890] sm:$0xff]  ;;  %v4008_v5 = vld [vmem:[#allocation14 + $0x1898] sm:$0xff]  ;;  %v4233_v6 = vld [vmem:[#allocation14 + $0x1fa0] sm:$0xff] }
 0x4f0   : > { %4264 = vmatpush.msra.mxu2 %v3989_v11  ;;  %4304 = vmatpush.msrb.mxu0 %v3990_v13  ;;  %v4234_v9 = vld [vmem:[#allocation14 + $0x1fa8] sm:$0xff]  ;;  %v3999_v11 = vld [vmem:[#allocation14 + $0x1850] sm:$0xff]  ;;  %v4000_v13 = vld [vmem:[#allocation14 + $0x1858] sm:$0xff] }
 0x4f1   : > { %4265 = vmatmul.f32.vlgmr.msra.gmra.mxu2 %v8063_v44  ;;  %4305 = vmatmul.f32.vlgmr.msrb.gmra.mxu0 %v8063_v44 }
 0x4f2   : > { %4329 = vmatpush.msrb.mxu2 %v4111_v16  ;;  %4352 = vmatpush.msrb.mxu3 %v4215_v18  ;;  %v4226_v16 = vld [vmem:[#allocation14 + $0x1f68] sm:$0xff]  ;;  %v3991_v18 = vld [vmem:[#allocation14 + $0x1810] sm:$0xff] }
 0x4f3   : > { %4369 = vmatpush.msra.mxu0 %v4112_v7  ;;  %4392 = vmatpush.msra.mxu1 %v4216_v19  ;;  %v3992_v7 = vld [vmem:[#allocation14 + $0x1818] sm:$0xff]  ;;  %v4113_v19 = vld [vmem:[#allocation14 + $0x1be0] sm:$0xff] }
 0x4f4   : > { %4330 = vmatpush.msrb.mxu2 %v4103_v20  ;;  %4353 = vmatpush.msrb.mxu3 %v4207_v51  ;;  %v4217_v20 = vld [vmem:[#allocation14 + $0x1f20] sm:$0xff]  ;;  %v4114_v51 = vld [vmem:[#allocation14 + $0x1be8] sm:$0xff] }
 0x4f5   : > { %4370 = vmatpush.msra.mxu0 %v4104_v22  ;;  %4393 = vmatpush.msra.mxu1 %v4208_v27  ;;  %v4218_v22 = vld [vmem:[#allocation14 + $0x1f28] sm:$0xff]  ;;  %v4105_v27 = vld [vmem:[#allocation14 + $0x1ba0] sm:$0xff] }
 0x4f6   : > { %4331 = vmatpush.msrb.mxu2 %v4095_v21  ;;  %4354 = vmatpush.msrb.mxu3 %v4199_v46  ;;  %v4209_v21 = vld [vmem:[#allocation14 + $0x1ee0] sm:$0xff]  ;;  %v4106_v46 = vld [vmem:[#allocation14 + $0x1ba8] sm:$0xff] }
 0x4f7   : > { %4371 = vmatpush.msra.mxu0 %v4096_v30  ;;  %4394 = vmatpush.msra.mxu1 %v4200_v33  ;;  %v4210_v30 = vld [vmem:[#allocation14 + $0x1ee8] sm:$0xff]  ;;  %v4097_v33 = vld [vmem:[#allocation14 + $0x1b60] sm:$0xff] }
 0x4f8   : > { %4332 = vmatpush.msrb.mxu2 %v4087_v31  ;;  %4355 = vmatpush.msrb.mxu3 %v4191_v8  ;;  %v4201_v31 = vld [vmem:[#allocation14 + $0x1ea0] sm:$0xff]  ;;  %v4098_v8 = vld [vmem:[#allocation14 + $0x1b68] sm:$0xff] }
 0x4f9   : > { %4372 = vmatpush.msra.mxu0 %v4088_v35  ;;  %4395 = vmatpush.msra.mxu1 %v4192_v15  ;;  %v4202_v35 = vld [vmem:[#allocation14 + $0x1ea8] sm:$0xff]  ;;  %v4089_v15 = vld [vmem:[#allocation14 + $0x1b20] sm:$0xff] }
 0x4fa   : > { %4333 = vmatpush.msrb.mxu2 %v4079_v38  ;;  %4356 = vmatpush.msrb.mxu3 %v4183_v54  ;;  %v4193_v38 = vld [vmem:[#allocation14 + $0x1e60] sm:$0xff]  ;;  %v4090_v54 = vld [vmem:[#allocation14 + $0x1b28] sm:$0xff] }
 0x4fb   : > { %4373 = vmatpush.msra.mxu0 %v4080_v40  ;;  %4396 = vmatpush.msra.mxu1 %v4184_v41  ;;  %v4194_v40 = vld [vmem:[#allocation14 + $0x1e68] sm:$0xff]  ;;  %v4081_v41 = vld [vmem:[#allocation14 + $0x1ae0] sm:$0xff] }
 0x4fc   : > { %4334 = vmatpush.msrb.mxu2 %v4071_v28  ;;  %4357 = vmatpush.msrb.mxu3 %v4175_v29  ;;  %v4185_v28 = vld [vmem:[#allocation14 + $0x1e20] sm:$0xff]  ;;  %v4082_v29 = vld [vmem:[#allocation14 + $0x1ae8] sm:$0xff] }
 0x4fd   : > { %4374 = vmatpush.msra.mxu0 %v4072_v36  ;;  %4397 = vmatpush.msra.mxu1 %v4176_v47  ;;  %v4186_v36 = vld [vmem:[#allocation14 + $0x1e28] sm:$0xff]  ;;  %v4073_v47 = vld [vmem:[#allocation14 + $0x1aa0] sm:$0xff] }
 0x4fe   : > { %4335 = vmatpush.msrb.mxu2 %v4063_v42  ;;  %4358 = vmatpush.msrb.mxu3 %v4167_v43  ;;  %v4177_v42 = vld [vmem:[#allocation14 + $0x1de0] sm:$0xff]  ;;  %v4074_v43 = vld [vmem:[#allocation14 + $0x1aa8] sm:$0xff] }
 0x4ff   : > { %4375 = vmatpush.msra.mxu0 %v4064_v49  ;;  %4398 = vmatpush.msra.mxu1 %v4168_v45  ;;  %v4178_v49 = vld [vmem:[#allocation14 + $0x1de8] sm:$0xff]  ;;  %v4065_v45 = vld [vmem:[#allocation14 + $0x1a60] sm:$0xff] }
 0x500   : > { %4336 = vmatpush.msrb.mxu2 %v4055_v48  ;;  %4359 = vmatpush.msrb.mxu3 %v4159_v23  ;;  %v4169_v48 = vld [vmem:[#allocation14 + $0x1da0] sm:$0xff]  ;;  %v4066_v23 = vld [vmem:[#allocation14 + $0x1a68] sm:$0xff] }
 0x501   : > { %4376 = vmatpush.msra.mxu0 %v4056_v24  ;;  %4399 = vmatpush.msra.mxu1 %v4160_v26  ;;  %v4170_v24 = vld [vmem:[#allocation14 + $0x1da8] sm:$0xff]  ;;  %v4057_v26 = vld [vmem:[#allocation14 + $0x1a20] sm:$0xff] }
 0x502   : > { %4337 = vmatpush.msrb.mxu2 %v4047_v12  ;;  %4360 = vmatpush.msrb.mxu3 %v4151_v60  ;;  %v4161_v12 = vld [vmem:[#allocation14 + $0x1d60] sm:$0xff]  ;;  %v4058_v60 = vld [vmem:[#allocation14 + $0x1a28] sm:$0xff] }
 0x503   : > { %4377 = vmatpush.msra.mxu0 %v4048_v10  ;;  %4400 = vmatpush.msra.mxu1 %v4152_v50  ;;  %v4162_v10 = vld [vmem:[#allocation14 + $0x1d68] sm:$0xff]  ;;  %v4049_v50 = vld [vmem:[#allocation14 + $0x19e0] sm:$0xff] }
 0x504   : > { %4338 = vmatpush.msrb.mxu2 %v4039_v37  ;;  %4361 = vmatpush.msrb.mxu3 %v4143_v52  ;;  %v4153_v37 = vld [vmem:[#allocation14 + $0x1d20] sm:$0xff]  ;;  %v4050_v52 = vld [vmem:[#allocation14 + $0x19e8] sm:$0xff] }
 0x505   : > { %4378 = vmatpush.msra.mxu0 %v4040_v53  ;;  %4401 = vmatpush.msra.mxu1 %v4144_v39  ;;  %v4154_v53 = vld [vmem:[#allocation14 + $0x1d28] sm:$0xff]  ;;  %v4041_v39 = vld [vmem:[#allocation14 + $0x19a0] sm:$0xff] }
 0x506   : > { %4339 = vmatpush.msrb.mxu2 %v4031_v14  ;;  %4362 = vmatpush.msrb.mxu3 %v4135_v3  ;;  %v4145_v14 = vld [vmem:[#allocation14 + $0x1ce0] sm:$0xff]  ;;  %v4042_v3 = vld [vmem:[#allocation14 + $0x19a8] sm:$0xff] }
 0x507   : > { %4379 = vmatpush.msra.mxu0 %v4032_v55  ;;  %4402 = vmatpush.msra.mxu1 %v4136_v56  ;;  %v4146_v55 = vld [vmem:[#allocation14 + $0x1ce8] sm:$0xff]  ;;  %v4033_v56 = vld [vmem:[#allocation14 + $0x1960] sm:$0xff] }
 0x508   : > { %4340 = vmatpush.msrb.mxu2 %v4023_v57  ;;  %4363 = vmatpush.msrb.mxu3 %v4127_v34  ;;  %v4137_v57 = vld [vmem:[#allocation14 + $0x1ca0] sm:$0xff]  ;;  %v4034_v34 = vld [vmem:[#allocation14 + $0x1968] sm:$0xff] }
 0x509   : > { %4380 = vmatpush.msra.mxu0 %v4024_v58  ;;  %4403 = vmatpush.msra.mxu1 %v4128_v59  ;;  %v4138_v58 = vld [vmem:[#allocation14 + $0x1ca8] sm:$0xff]  ;;  %v4025_v59 = vld [vmem:[#allocation14 + $0x1920] sm:$0xff] }
 0x50a   : > { %4341 = vmatpush.msrb.mxu2 %v4015_v1  ;;  %4364 = vmatpush.msrb.mxu3 %v4119_v17  ;;  %v4129_v1 = vld [vmem:[#allocation14 + $0x1c60] sm:$0xff]  ;;  %v4026_v17 = vld [vmem:[#allocation14 + $0x1928] sm:$0xff] }
 0x50b   : > { %4381 = vmatpush.msra.mxu0 %v4016_v61  ;;  %4404 = vmatpush.msra.mxu1 %v4120_v63  ;;  %v4130_v61 = vld [vmem:[#allocation14 + $0x1c68] sm:$0xff]  ;;  %v4017_v63 = vld [vmem:[#allocation14 + $0x18e0] sm:$0xff] }
 0x50c   : > { %4365 = vmatmul.f32.vlgmr.msrb.gmra.mxu3 %v8058_v25  ;;  %4405 = vmatmul.f32.vlgmr.msra.gmra.mxu1 %v8058_v25 }
 0x50d   : > { %4429 = vmatpush.msra.mxu3 %v4241_v2  ;;  %4469 = vmatpush.msrb.mxu1 %v4242_v0  ;;  %v4121_v2 = vld [vmem:[#allocation14 + $0x1c20] sm:$0xff]  ;;  %v4018_v0 = vld [vmem:[#allocation14 + $0x18e8] sm:$0xff] }
 0x50e   : > { %4342 = vmatpush.msrb.mxu2 %v4007_v4  ;;  %4382 = vmatpush.msra.mxu0 %v4008_v5  ;;  %v4122_v4 = vld [vmem:[#allocation14 + $0x1c28] sm:$0xff]  ;;  %v4243_v5 = vld [vmem:[#allocation14 + $0x1ff0] sm:$0xff] }
 0x50f   : > { %4430 = vmatpush.msra.mxu3 %v4233_v6  ;;  %4470 = vmatpush.msrb.mxu1 %v4234_v9  ;;  %v4244_v6 = vld [vmem:[#allocation14 + $0x1ff8] sm:$0xff]  ;;  %v4009_v9 = vld [vmem:[#allocation14 + $0x18a0] sm:$0xff] }
 0x510   : > { %4343 = vmatpush.msrb.mxu2 %v3999_v11  ;;  %4383 = vmatpush.msra.mxu0 %v4000_v13  ;;  %v4010_v11 = vld [vmem:[#allocation14 + $0x18a8] sm:$0xff]  ;;  %v4235_v13 = vld [vmem:[#allocation14 + $0x1fb0] sm:$0xff] }
 0x511   : > { %4431 = vmatpush.msra.mxu3 %v4225_v62  ;;  %4471 = vmatpush.msrb.mxu1 %v4226_v16  ;;  %v4236_v62 = vld [vmem:[#allocation14 + $0x1fb8] sm:$0xff]  ;;  %v4001_v16 = vld [vmem:[#allocation14 + $0x1860] sm:$0xff] }
 0x512   : > { %4344 = vmatpush.msrb.mxu2 %v3991_v18  ;;  %4384 = vmatpush.msra.mxu0 %v3992_v7  ;;  %v4002_v18 = vld [vmem:[#allocation14 + $0x1868] sm:$0xff]  ;;  %v4227_v7 = vld [vmem:[#allocation14 + $0x1f70] sm:$0xff] }
 0x513   : > { %4345 = vmatmul.f32.vlgmr.msrb.gmra.mxu2 %v8063_v44  ;;  %4385 = vmatmul.f32.vlgmr.msra.gmra.mxu0 %v8063_v44 }
 0x514   : > { %4409 = vmatpush.msra.mxu2 %v4113_v19  ;;  %4432 = vmatpush.msra.mxu3 %v4217_v20  ;;  %v4228_v19 = vld [vmem:[#allocation14 + $0x1f78] sm:$0xff]  ;;  %v3993_v20 = vld [vmem:[#allocation14 + $0x1820] sm:$0xff] }
 0x515   : > { %4449 = vmatpush.msrb.mxu0 %v4114_v51  ;;  %4472 = vmatpush.msrb.mxu1 %v4218_v22  ;;  %v3994_v51 = vld [vmem:[#allocation14 + $0x1828] sm:$0xff]  ;;  %v4115_v22 = vld [vmem:[#allocation14 + $0x1bf0] sm:$0xff] }
 0x516   : > { %4410 = vmatpush.msra.mxu2 %v4105_v27  ;;  %4433 = vmatpush.msra.mxu3 %v4209_v21  ;;  %v4219_v27 = vld [vmem:[#allocation14 + $0x1f30] sm:$0xff]  ;;  %v4116_v21 = vld [vmem:[#allocation14 + $0x1bf8] sm:$0xff] }
 0x517   : > { %4450 = vmatpush.msrb.mxu0 %v4106_v46  ;;  %4473 = vmatpush.msrb.mxu1 %v4210_v30  ;;  %v4220_v46 = vld [vmem:[#allocation14 + $0x1f38] sm:$0xff]  ;;  %v4107_v30 = vld [vmem:[#allocation14 + $0x1bb0] sm:$0xff] }
 0x518   : > { %4411 = vmatpush.msra.mxu2 %v4097_v33  ;;  %4434 = vmatpush.msra.mxu3 %v4201_v31  ;;  %v4211_v33 = vld [vmem:[#allocation14 + $0x1ef0] sm:$0xff]  ;;  %v4108_v31 = vld [vmem:[#allocation14 + $0x1bb8] sm:$0xff] }
 0x519   : > { %4451 = vmatpush.msrb.mxu0 %v4098_v8  ;;  %4474 = vmatpush.msrb.mxu1 %v4202_v35  ;;  %v4212_v8 = vld [vmem:[#allocation14 + $0x1ef8] sm:$0xff]  ;;  %v4099_v35 = vld [vmem:[#allocation14 + $0x1b70] sm:$0xff] }
 0x51a   : > { %4412 = vmatpush.msra.mxu2 %v4089_v15  ;;  %4435 = vmatpush.msra.mxu3 %v4193_v38  ;;  %v4203_v15 = vld [vmem:[#allocation14 + $0x1eb0] sm:$0xff]  ;;  %v4100_v38 = vld [vmem:[#allocation14 + $0x1b78] sm:$0xff] }
 0x51b   : > { %4452 = vmatpush.msrb.mxu0 %v4090_v54  ;;  %4475 = vmatpush.msrb.mxu1 %v4194_v40  ;;  %v4204_v54 = vld [vmem:[#allocation14 + $0x1eb8] sm:$0xff]  ;;  %v4091_v40 = vld [vmem:[#allocation14 + $0x1b30] sm:$0xff] }
 0x51c   : > { %4413 = vmatpush.msra.mxu2 %v4081_v41  ;;  %4436 = vmatpush.msra.mxu3 %v4185_v28  ;;  %v4195_v41 = vld [vmem:[#allocation14 + $0x1e70] sm:$0xff]  ;;  %v4092_v28 = vld [vmem:[#allocation14 + $0x1b38] sm:$0xff] }
 0x51d   : > { %4453 = vmatpush.msrb.mxu0 %v4082_v29  ;;  %4476 = vmatpush.msrb.mxu1 %v4186_v36  ;;  %v4196_v29 = vld [vmem:[#allocation14 + $0x1e78] sm:$0xff]  ;;  %v4083_v36 = vld [vmem:[#allocation14 + $0x1af0] sm:$0xff] }
 0x51e   : > { %4414 = vmatpush.msra.mxu2 %v4073_v47  ;;  %4437 = vmatpush.msra.mxu3 %v4177_v42  ;;  %v4187_v47 = vld [vmem:[#allocation14 + $0x1e30] sm:$0xff]  ;;  %v4084_v42 = vld [vmem:[#allocation14 + $0x1af8] sm:$0xff] }
 0x51f   : > { %4454 = vmatpush.msrb.mxu0 %v4074_v43  ;;  %4477 = vmatpush.msrb.mxu1 %v4178_v49  ;;  %v4188_v43 = vld [vmem:[#allocation14 + $0x1e38] sm:$0xff]  ;;  %v4075_v49 = vld [vmem:[#allocation14 + $0x1ab0] sm:$0xff] }
 0x520   : > { %4415 = vmatpush.msra.mxu2 %v4065_v45  ;;  %4438 = vmatpush.msra.mxu3 %v4169_v48  ;;  %v4179_v45 = vld [vmem:[#allocation14 + $0x1df0] sm:$0xff]  ;;  %v4076_v48 = vld [vmem:[#allocation14 + $0x1ab8] sm:$0xff] }
 0x521   : > { %4455 = vmatpush.msrb.mxu0 %v4066_v23  ;;  %4478 = vmatpush.msrb.mxu1 %v4170_v24  ;;  %v4180_v23 = vld [vmem:[#allocation14 + $0x1df8] sm:$0xff]  ;;  %v4067_v24 = vld [vmem:[#allocation14 + $0x1a70] sm:$0xff] }
 0x522   : > { %4416 = vmatpush.msra.mxu2 %v4057_v26  ;;  %4439 = vmatpush.msra.mxu3 %v4161_v12  ;;  %v4171_v26 = vld [vmem:[#allocation14 + $0x1db0] sm:$0xff]  ;;  %v4068_v12 = vld [vmem:[#allocation14 + $0x1a78] sm:$0xff] }
 0x523   : > { %4456 = vmatpush.msrb.mxu0 %v4058_v60  ;;  %4479 = vmatpush.msrb.mxu1 %v4162_v10  ;;  %v4172_v60 = vld [vmem:[#allocation14 + $0x1db8] sm:$0xff]  ;;  %v4059_v10 = vld [vmem:[#allocation14 + $0x1a30] sm:$0xff] }
 0x524   : > { %4417 = vmatpush.msra.mxu2 %v4049_v50  ;;  %4440 = vmatpush.msra.mxu3 %v4153_v37  ;;  %v4163_v50 = vld [vmem:[#allocation14 + $0x1d70] sm:$0xff]  ;;  %v4060_v37 = vld [vmem:[#allocation14 + $0x1a38] sm:$0xff] }
 0x525   : > { %4457 = vmatpush.msrb.mxu0 %v4050_v52  ;;  %4480 = vmatpush.msrb.mxu1 %v4154_v53  ;;  %v4164_v52 = vld [vmem:[#allocation14 + $0x1d78] sm:$0xff]  ;;  %v4051_v53 = vld [vmem:[#allocation14 + $0x19f0] sm:$0xff] }
 0x526   : > { %4418 = vmatpush.msra.mxu2 %v4041_v39  ;;  %4441 = vmatpush.msra.mxu3 %v4145_v14  ;;  %v4155_v39 = vld [vmem:[#allocation14 + $0x1d30] sm:$0xff]  ;;  %v4052_v14 = vld [vmem:[#allocation14 + $0x19f8] sm:$0xff] }
 0x527   : > { %4458 = vmatpush.msrb.mxu0 %v4042_v3  ;;  %4481 = vmatpush.msrb.mxu1 %v4146_v55  ;;  %v4156_v3 = vld [vmem:[#allocation14 + $0x1d38] sm:$0xff]  ;;  %v4043_v55 = vld [vmem:[#allocation14 + $0x19b0] sm:$0xff] }
 0x528   : > { %4419 = vmatpush.msra.mxu2 %v4033_v56  ;;  %4442 = vmatpush.msra.mxu3 %v4137_v57  ;;  %v4147_v56 = vld [vmem:[#allocation14 + $0x1cf0] sm:$0xff]  ;;  %v4044_v57 = vld [vmem:[#allocation14 + $0x19b8] sm:$0xff] }
 0x529   : > { %4459 = vmatpush.msrb.mxu0 %v4034_v34  ;;  %4482 = vmatpush.msrb.mxu1 %v4138_v58  ;;  %v4148_v34 = vld [vmem:[#allocation14 + $0x1cf8] sm:$0xff]  ;;  %v4035_v58 = vld [vmem:[#allocation14 + $0x1970] sm:$0xff] }
 0x52a   : > { %4420 = vmatpush.msra.mxu2 %v4025_v59  ;;  %4443 = vmatpush.msra.mxu3 %v4129_v1  ;;  %v4139_v59 = vld [vmem:[#allocation14 + $0x1cb0] sm:$0xff]  ;;  %v4036_v1 = vld [vmem:[#allocation14 + $0x1978] sm:$0xff] }
 0x52b   : > { %4460 = vmatpush.msrb.mxu0 %v4026_v17  ;;  %4483 = vmatpush.msrb.mxu1 %v4130_v61  ;;  %v4140_v17 = vld [vmem:[#allocation14 + $0x1cb8] sm:$0xff]  ;;  %v4027_v61 = vld [vmem:[#allocation14 + $0x1930] sm:$0xff] }
 0x52c   : > { %4421 = vmatpush.msra.mxu2 %v4017_v63  ;;  %4444 = vmatpush.msra.mxu3 %v4121_v2  ;;  %v4131_v63 = vld [vmem:[#allocation14 + $0x1c70] sm:$0xff]  ;;  %v4028_v2 = vld [vmem:[#allocation14 + $0x1938] sm:$0xff] }
 0x52d   : > { %4461 = vmatpush.msrb.mxu0 %v4018_v0  ;;  %4484 = vmatpush.msrb.mxu1 %v4122_v4  ;;  %v4132_v0 = vld [vmem:[#allocation14 + $0x1c78] sm:$0xff]  ;;  %v4019_v4 = vld [vmem:[#allocation14 + $0x18f0] sm:$0xff] }
 0x52e   : > { %4445 = vmatmul.f32.vlgmr.msra.gmra.mxu3 %v8058_v25  ;;  %4485 = vmatmul.f32.vlgmr.msrb.gmra.mxu1 %v8058_v25 }
 0x52f   : > { %4509 = vmatpush.msrb.mxu3 %v4243_v5  ;;  %4549 = vmatpush.msra.mxu1 %v4244_v6  ;;  %v4123_v5 = vld [vmem:[#allocation14 + $0x1c30] sm:$0xff]  ;;  %v4020_v6 = vld [vmem:[#allocation14 + $0x18f8] sm:$0xff] }
 0x530   : > { %4422 = vmatpush.msra.mxu2 %v4009_v9  ;;  %4462 = vmatpush.msrb.mxu0 %v4010_v11  ;;  %v4124_v9 = vld [vmem:[#allocation14 + $0x1c38] sm:$0xff]  ;;  %v4011_v11 = vld [vmem:[#allocation14 + $0x18b0] sm:$0xff] }
 0x531   : > { %4510 = vmatpush.msrb.mxu3 %v4235_v13  ;;  %4550 = vmatpush.msra.mxu1 %v4236_v62  ;;  %v4012_v13 = vld [vmem:[#allocation14 + $0x18b8] sm:$0xff]  ;;  %v4003_v62 = vld [vmem:[#allocation14 + $0x1870] sm:$0xff] }
 0x532   : > { %4423 = vmatpush.msra.mxu2 %v4001_v16  ;;  %4463 = vmatpush.msrb.mxu0 %v4002_v18  ;;  %v4004_v16 = vld [vmem:[#allocation14 + $0x1878] sm:$0xff]  ;;  %v3995_v18 = vld [vmem:[#allocation14 + $0x1830] sm:$0xff] }
 0x533   : > { %4511 = vmatpush.msrb.mxu3 %v4227_v7  ;;  %4551 = vmatpush.msra.mxu1 %v4228_v19  ;;  %v3996_v7 = vld [vmem:[#allocation14 + $0x1838] sm:$0xff] }
 0x534   : > { %4424 = vmatpush.msra.mxu2 %v3993_v20  ;;  %4464 = vmatpush.msrb.mxu0 %v3994_v51  ;;  %v4624_v19 = vld [vmem:[#allocation17 + $0xf0] sm:$0xff] }
 0x535   : > { %4425 = vmatmul.f32.vlgmr.msra.gmra.mxu2 %v8063_v44  ;;  %4465 = vmatmul.f32.vlgmr.msrb.gmra.mxu0 %v8063_v44  ;;  %v4656_v20 = vld [vmem:[#allocation17 + $0x1f0] sm:$0xff] }
 0x536   : > { %4489 = vmatpush.msrb.mxu2 %v4115_v22  ;;  %4512 = vmatpush.msrb.mxu3 %v4219_v27  ;;  %v4688_v51 = vld [vmem:[#allocation17 + $0x2f0] sm:$0xff]  ;;  %v4622_v22 = vld [vmem:[#allocation17 + $0xe0] sm:$0xff] }
 0x537   : > { %4529 = vmatpush.msra.mxu0 %v4116_v21  ;;  %4552 = vmatpush.msra.mxu1 %v4220_v46  ;;  %v4654_v27 = vld [vmem:[#allocation17 + $0x1e0] sm:$0xff] }
 0x538   : > { %4490 = vmatpush.msrb.mxu2 %v4107_v30  ;;  %4513 = vmatpush.msrb.mxu3 %v4211_v33  ;;  %v4686_v21 = vld [vmem:[#allocation17 + $0x2e0] sm:$0xff]  ;;  %v4620_v30 = vld [vmem:[#allocation17 + $0xd0] sm:$0xff] }
 0x539   : > { %4530 = vmatpush.msra.mxu0 %v4108_v31  ;;  %4553 = vmatpush.msra.mxu1 %v4212_v8  ;;  %v4718_v46 = vld [vmem:[#allocation17 + $0x3e0] sm:$0xff]  ;;  %v4652_v33 = vld [vmem:[#allocation17 + $0x1d0] sm:$0xff] }
 0x53a   : > { %4491 = vmatpush.msrb.mxu2 %v4099_v35  ;;  %4514 = vmatpush.msrb.mxu3 %v4203_v15  ;;  %v4684_v31 = vld [vmem:[#allocation17 + $0x2d0] sm:$0xff]  ;;  %v4650_v35 = vld [vmem:[#allocation17 + $0x1c0] sm:$0xff] }
 0x53b   : > { %4531 = vmatpush.msra.mxu0 %v4100_v38  ;;  %4554 = vmatpush.msra.mxu1 %v4204_v54  ;;  %v4716_v8 = vld [vmem:[#allocation17 + $0x3d0] sm:$0xff]  ;;  %v4682_v15 = vld [vmem:[#allocation17 + $0x2c0] sm:$0xff] }
 0x53c   : > { %4492 = vmatpush.msrb.mxu2 %v4091_v40  ;;  %4515 = vmatpush.msrb.mxu3 %v4195_v41  ;;  %v4714_v38 = vld [vmem:[#allocation17 + $0x3c0] sm:$0xff]  ;;  %v4616_v54 = vld [vmem:[#allocation17 + $0xb0] sm:$0xff] }
 0x53d   : > { %4532 = vmatpush.msra.mxu0 %v4092_v28  ;;  %4555 = vmatpush.msra.mxu1 %v4196_v29  ;;  %v4648_v40 = vld [vmem:[#allocation17 + $0x1b0] sm:$0xff]  ;;  %v4614_v29 = vld [vmem:[#allocation17 + $0xa0] sm:$0xff] }
 0x53e   : > { %4493 = vmatpush.msrb.mxu2 %v4083_v36  ;;  %4516 = vmatpush.msrb.mxu3 %v4187_v47  ;;  %v4680_v41 = vld [vmem:[#allocation17 + $0x2b0] sm:$0xff]  ;;  %v4646_v36 = vld [vmem:[#allocation17 + $0x1a0] sm:$0xff] }
 0x53f   : > { %4533 = vmatpush.msra.mxu0 %v4084_v42  ;;  %4556 = vmatpush.msra.mxu1 %v4188_v43  ;;  %v4712_v28 = vld [vmem:[#allocation17 + $0x3b0] sm:$0xff]  ;;  %v4678_v47 = vld [vmem:[#allocation17 + $0x2a0] sm:$0xff] }
 0x540   : > { %4494 = vmatpush.msrb.mxu2 %v4075_v49  ;;  %4517 = vmatpush.msrb.mxu3 %v4179_v45  ;;  %v4710_v42 = vld [vmem:[#allocation17 + $0x3a0] sm:$0xff]  ;;  %v4612_v43 = vld [vmem:[#allocation17 + $0x90] sm:$0xff] }
 0x541   : > { %4534 = vmatpush.msra.mxu0 %v4076_v48  ;;  %4557 = vmatpush.msra.mxu1 %v4180_v23  ;;  %v4644_v49 = vld [vmem:[#allocation17 + $0x190] sm:$0xff]  ;;  %v4610_v23 = vld [vmem:[#allocation17 + $0x80] sm:$0xff] }
 0x542   : > { %4495 = vmatpush.msrb.mxu2 %v4067_v24  ;;  %4518 = vmatpush.msrb.mxu3 %v4171_v26  ;;  %v4676_v45 = vld [vmem:[#allocation17 + $0x290] sm:$0xff]  ;;  %v4642_v24 = vld [vmem:[#allocation17 + $0x180] sm:$0xff] }
 0x543   : > { %4535 = vmatpush.msra.mxu0 %v4068_v12  ;;  %4558 = vmatpush.msra.mxu1 %v4172_v60  ;;  %v4708_v48 = vld [vmem:[#allocation17 + $0x390] sm:$0xff]  ;;  %v4674_v26 = vld [vmem:[#allocation17 + $0x280] sm:$0xff] }
 0x544   : > { %4496 = vmatpush.msrb.mxu2 %v4059_v10  ;;  %4519 = vmatpush.msrb.mxu3 %v4163_v50  ;;  %v4706_v12 = vld [vmem:[#allocation17 + $0x380] sm:$0xff]  ;;  %v4608_v60 = vld [vmem:[#allocation17 + $0x70] sm:$0xff] }
 0x545   : > { %4536 = vmatpush.msra.mxu0 %v4060_v37  ;;  %4559 = vmatpush.msra.mxu1 %v4164_v52  ;;  %v4640_v10 = vld [vmem:[#allocation17 + $0x170] sm:$0xff]  ;;  %v4606_v52 = vld [vmem:[#allocation17 + $0x60] sm:$0xff] }
 0x546   : > { %4497 = vmatpush.msrb.mxu2 %v4051_v53  ;;  %4520 = vmatpush.msrb.mxu3 %v4155_v39  ;;  %v4672_v50 = vld [vmem:[#allocation17 + $0x270] sm:$0xff]  ;;  %v4638_v53 = vld [vmem:[#allocation17 + $0x160] sm:$0xff] }
 0x547   : > { %4537 = vmatpush.msra.mxu0 %v4052_v14  ;;  %4560 = vmatpush.msra.mxu1 %v4156_v3  ;;  %v4704_v37 = vld [vmem:[#allocation17 + $0x370] sm:$0xff]  ;;  %v4670_v39 = vld [vmem:[#allocation17 + $0x260] sm:$0xff] }
 0x548   : > { %4498 = vmatpush.msrb.mxu2 %v4043_v55  ;;  %4521 = vmatpush.msrb.mxu3 %v4147_v56  ;;  %v4702_v14 = vld [vmem:[#allocation17 + $0x360] sm:$0xff]  ;;  %v4604_v3 = vld [vmem:[#allocation17 + $0x50] sm:$0xff] }
 0x549   : > { %4538 = vmatpush.msra.mxu0 %v4044_v57  ;;  %4561 = vmatpush.msra.mxu1 %v4148_v34  ;;  %v4636_v55 = vld [vmem:[#allocation17 + $0x150] sm:$0xff]  ;;  %v8079_v57 = vpop.f32.mrf.mxu0 }
 0x54a   : > { %4499 = vmatpush.msrb.mxu2 %v4035_v58  ;;  %4522 = vmatpush.msrb.mxu3 %v4139_v59  ;;  %v4668_v56 = vld [vmem:[#allocation17 + $0x250] sm:$0xff]  ;;  %v4602_v58 = vld [vmem:[#allocation17 + $0x40] sm:$0xff] }
 0x54b   : > { %4539 = vmatpush.msra.mxu0 %v4036_v1  ;;  %4562 = vmatpush.msra.mxu1 %v4140_v17  ;;  %v4700_v34 = vld [vmem:[#allocation17 + $0x350] sm:$0xff]  ;;  %v4634_v59 = vld [vmem:[#allocation17 + $0x140] sm:$0xff] }
 0x54c   : > { %4500 = vmatpush.msrb.mxu2 %v4027_v61  ;;  %4523 = vmatpush.msrb.mxu3 %v4131_v63  ;;  %v4666_v1 = vld [vmem:[#allocation17 + $0x240] sm:$0xff]  ;;  %v4600_v61 = vld [vmem:[#allocation17 + $0x30] sm:$0xff]  ;;  %v8081_v63 = vpop.f32.mrf.mxu1 }
 0x54d   : > { %4540 = vmatpush.msra.mxu0 %v4028_v2  ;;  %4563 = vmatpush.msra.mxu1 %v4132_v0  ;;  %v4698_v17 = vld [vmem:[#allocation17 + $0x340] sm:$0xff]  ;;  %v4632_v2 = vld [vmem:[#allocation17 + $0x130] sm:$0xff] }
 0x54e   : > { %4501 = vmatpush.msrb.mxu2 %v4019_v4  ;;  %4524 = vmatpush.msrb.mxu3 %v4123_v5  ;;  %v4664_v0 = vld [vmem:[#allocation17 + $0x230] sm:$0xff]  ;;  %v4598_v5 = vld [vmem:[#allocation17 + $0x20] sm:$0xff] }
 0x54f   : > { %4541 = vmatpush.msra.mxu0 %v4020_v6  ;;  %4564 = vmatpush.msra.mxu1 %v4124_v9  ;;  %v4696_v4 = vld [vmem:[#allocation17 + $0x330] sm:$0xff]  ;;  %v4630_v6 = vld [vmem:[#allocation17 + $0x120] sm:$0xff]  ;;  %v8083_v9 = vpop.f32.mrf.mxu3 }
 0x550   : > { %4525 = vmatmul.f32.vlgmr.msrb.gmra.mxu3 %v8058_v25  ;;  %4565 = vmatmul.f32.vlgmr.msra.gmra.mxu1 %v8058_v25  ;;  %v4720_v25 = vld [vmem:[#allocation17 + $0x3f0] sm:$0xff] }
 0x551   : > { %4502 = vmatpush.msrb.mxu2 %v4011_v11  ;;  %4542 = vmatpush.msra.mxu0 %v4012_v13  ;;  %v8085_v11 = vpop.f32.mrf.mxu2  ;;  %v4662_v13 = vld [vmem:[#allocation17 + $0x220] sm:$0xff] }
 0x552   : > { %4893 = vmatpush.msra.mxu3 %v4656_v20  ;;  %4933 = vmatpush.msrb.mxu1 %v4720_v25  ;;  %v4594_v20 = vld [vmem:[#allocation17] sm:$0xff]  ;;  %v8087_v25 = vpop.f32.mrf.mxu0 }
 0x553   : > { %4503 = vmatpush.msrb.mxu2 %v4003_v62  ;;  %4543 = vmatpush.msra.mxu0 %v4004_v16  ;;  %v4694_v62 = vld [vmem:[#allocation17 + $0x320] sm:$0xff]  ;;  %v4596_v16 = vld [vmem:[#allocation17 + $0x10] sm:$0xff] }
 0x554   : > { %4894 = vmatpush.msra.mxu3 %v4654_v27  ;;  %4934 = vmatpush.msrb.mxu1 %v4718_v46  ;;  %v4690_v27 = vld [vmem:[#allocation17 + $0x300] sm:$0xff]  ;;  %v4784_v46 = vld [vmem:[#allocation17 + $0x5f0] sm:$0xff] }
 0x555   : > { %4504 = vmatpush.msrb.mxu2 %v3995_v18  ;;  %4544 = vmatpush.msra.mxu0 %v3996_v7  ;;  %v4628_v18 = vld [vmem:[#allocation17 + $0x110] sm:$0xff] }
 0x556   : > { %4505 = vmatmul.f32.vlgmr.msrb.gmra.mxu2 %v8063_v44  ;;  %4545 = vmatmul.f32.vlgmr.msra.gmra.mxu0 %v8063_v44  ;;  %v4618_v44 = vld [vmem:[#allocation17 + $0xc0] sm:$0xff]  ;;  %v4660_v7 = vld [vmem:[#allocation17 + $0x210] sm:$0xff] }
 0x557   : > { %4873 = vmatpush.msra.mxu2 %v4624_v19  ;;  %4913 = vmatpush.msrb.mxu0 %v4688_v51  ;;  %v4692_v19 = vld [vmem:[#allocation17 + $0x310] sm:$0xff]  ;;  %v4626_v51 = vld [vmem:[#allocation17 + $0x100] sm:$0xff] }
 0x558   : > { %4895 = vmatpush.msra.mxu3 %v4652_v33  ;;  %4935 = vmatpush.msrb.mxu1 %v4716_v8  ;;  %v4816_v33 = vld [vmem:[#allocation17 + $0x6f0] sm:$0xff]  ;;  %v4750_v8 = vld [vmem:[#allocation17 + $0x4e0] sm:$0xff] }
 0x559   : > { %4874 = vmatpush.msra.mxu2 %v4622_v22  ;;  %4914 = vmatpush.msrb.mxu0 %v4686_v21  ;;  %v4658_v22 = vld [vmem:[#allocation17 + $0x200] sm:$0xff]  ;;  %v4752_v21 = vld [vmem:[#allocation17 + $0x4f0] sm:$0xff] }
 0x55a   : > { %4896 = vmatpush.msra.mxu3 %v4650_v35  ;;  %4936 = vmatpush.msrb.mxu1 %v4714_v38  ;;  %v8091_v35 = vpop.f32.mrf.mxu3  ;;  %v4814_v38 = vld [vmem:[#allocation17 + $0x6e0] sm:$0xff] }
 0x55b   : > { %4875 = vmatpush.msra.mxu2 %v4620_v30  ;;  %4915 = vmatpush.msrb.mxu0 %v4684_v31  ;;  %v8089_v30 = vpop.f32.mrf.mxu1  ;;  %v4848_v31 = vld [vmem:[#allocation17 + $0x7f0] sm:$0xff] }
 0x55c   : > { %4897 = vmatpush.msra.mxu3 %v4648_v40  ;;  %4937 = vmatpush.msrb.mxu1 %v4712_v28  ;;  %v4748_v40 = vld [vmem:[#allocation17 + $0x4d0] sm:$0xff] }
 0x55d   : > { %4876 = vmatpush.msra.mxu2 %v4618_v44  ;;  %4916 = vmatpush.msrb.mxu0 %v4682_v15  ;;  %v4782_v44 = vld [vmem:[#allocation17 + $0x5e0] sm:$0xff]  ;;  %v8093_v15 = vpop.f32.mrf.mxu2  ;;  %v4812_v28 = vld [vmem:[#allocation17 + $0x6d0] sm:$0xff] }
 0x55e   : > { %4898 = vmatpush.msra.mxu3 %v4646_v36  ;;  %4938 = vmatpush.msrb.mxu1 %v4710_v42  ;;  %v8095_v36 = vpop.f32.mrf.mxu0  ;;  %v4778_v42 = vld [vmem:[#allocation17 + $0x5c0] sm:$0xff] }
 0x55f   : > { %4877 = vmatpush.msra.mxu2 %v4616_v54  ;;  %4917 = vmatpush.msrb.mxu0 %v4680_v41  ;;  %v4846_v54 = vld [vmem:[#allocation17 + $0x7e0] sm:$0xff]  ;;  %v4780_v41 = vld [vmem:[#allocation17 + $0x5d0] sm:$0xff] }
 0x560   : > { %4899 = vmatpush.msra.mxu3 %v4644_v49  ;;  %4939 = vmatpush.msrb.mxu1 %v4708_v48  ;;  %v4842_v49 = vld [vmem:[#allocation17 + $0x7c0] sm:$0xff]  ;;  %v4776_v48 = vld [vmem:[#allocation17 + $0x5b0] sm:$0xff] }
 0x561   : > { %4878 = vmatpush.msra.mxu2 %v4614_v29  ;;  %4918 = vmatpush.msrb.mxu0 %v4678_v47  ;;  %v4844_v29 = vld [vmem:[#allocation17 + $0x7d0] sm:$0xff]  ;;  %v4746_v47 = vld [vmem:[#allocation17 + $0x4c0] sm:$0xff] }
 0x562   : > { %4900 = vmatpush.msra.mxu3 %v4642_v24  ;;  %4940 = vmatpush.msrb.mxu1 %v4706_v12  ;;  %v4808_v24 = vld [vmem:[#allocation17 + $0x6b0] sm:$0xff]  ;;  %v4742_v12 = vld [vmem:[#allocation17 + $0x4a0] sm:$0xff] }
 0x563   : > { %4879 = vmatpush.msra.mxu2 %v4612_v43  ;;  %4919 = vmatpush.msrb.mxu0 %v4676_v45  ;;  %v4810_v43 = vld [vmem:[#allocation17 + $0x6c0] sm:$0xff]  ;;  %v4744_v45 = vld [vmem:[#allocation17 + $0x4b0] sm:$0xff] }
 0x564   : > { %4901 = vmatpush.msra.mxu3 %v4640_v10  ;;  %4941 = vmatpush.msrb.mxu1 %v4704_v37  ;;  %v8099_v10 = vpop.f32.mrf.mxu3  ;;  %v4806_v37 = vld [vmem:[#allocation17 + $0x6a0] sm:$0xff] }
 0x565   : > { %4880 = vmatpush.msra.mxu2 %v4610_v23  ;;  %4920 = vmatpush.msrb.mxu0 %v4674_v26  ;;  %v8097_v23 = vpop.f32.mrf.mxu1  ;;  %v4840_v26 = vld [vmem:[#allocation17 + $0x7b0] sm:$0xff] }
 0x566   : > { %4902 = vmatpush.msra.mxu3 %v4638_v53  ;;  %4942 = vmatpush.msrb.mxu1 %v4702_v14  ;;  %v4740_v53 = vld [vmem:[#allocation17 + $0x490] sm:$0xff] }
 0x567   : > { %4881 = vmatpush.msra.mxu2 %v4608_v60  ;;  %4921 = vmatpush.msrb.mxu0 %v4672_v50  ;;  %v4774_v60 = vld [vmem:[#allocation17 + $0x5a0] sm:$0xff]  ;;  %v8101_v50 = vpop.f32.mrf.mxu2  ;;  %v4804_v14 = vld [vmem:[#allocation17 + $0x690] sm:$0xff] }
 0x568   : > { %4903 = vmatpush.msra.mxu3 %v4636_v55  ;;  %4943 = vmatpush.msrb.mxu1 %v4700_v34  ;;  %v8103_v55 = vpop.f32.mrf.mxu0  ;;  %v4770_v34 = vld [vmem:[#allocation17 + $0x580] sm:$0xff] }
 0x569   : > { %4882 = vmatpush.msra.mxu2 %v4606_v52  ;;  %4922 = vmatpush.msrb.mxu0 %v4670_v39  ;;  %v4838_v52 = vld [vmem:[#allocation17 + $0x7a0] sm:$0xff]  ;;  %v4772_v39 = vld [vmem:[#allocation17 + $0x590] sm:$0xff] }
 0x56a   : > { %4904 = vmatpush.msra.mxu3 %v4634_v59  ;;  %4944 = vmatpush.msrb.mxu1 %v4698_v17  ;;  %v4834_v59 = vld [vmem:[#allocation17 + $0x780] sm:$0xff]  ;;  %v4768_v17 = vld [vmem:[#allocation17 + $0x570] sm:$0xff] }
 0x56b   : > { %4883 = vmatpush.msra.mxu2 %v4604_v3  ;;  %4923 = vmatpush.msrb.mxu0 %v4668_v56  ;;  %v4836_v3 = vld [vmem:[#allocation17 + $0x790] sm:$0xff]  ;;  %v4738_v56 = vld [vmem:[#allocation17 + $0x480] sm:$0xff] }
 0x56c   : > { %4905 = vmatpush.msra.mxu3 %v4632_v2  ;;  %4945 = vmatpush.msrb.mxu1 %v4696_v4  ;;  %v4800_v2 = vld [vmem:[#allocation17 + $0x670] sm:$0xff]  ;;  %v8107_v4 = vpop.f32.mrf.mxu3 }
 0x56d   : > { %4884 = vmatpush.msra.mxu2 %v4602_v58  ;;  %4924 = vmatpush.msrb.mxu0 %v4666_v1  ;;  %v4802_v58 = vld [vmem:[#allocation17 + $0x680] sm:$0xff]  ;;  %v4736_v1 = vld [vmem:[#allocation17 + $0x470] sm:$0xff] }
 0x56e   : > { %4906 = vmatpush.msra.mxu3 %v4630_v6  ;;  %4946 = vmatpush.msrb.mxu1 %v4694_v62  ;;  %v4734_v6 = vld [vmem:[#allocation17 + $0x460] sm:$0xff] }
 0x56f   : > { %4885 = vmatpush.msra.mxu2 %v4600_v61  ;;  %4925 = vmatpush.msrb.mxu0 %v4664_v0  ;;  %v8105_v61 = vpop.f32.mrf.mxu1  ;;  %v4832_v0 = vld [vmem:[#allocation17 + $0x770] sm:$0xff]  ;;  %v4798_v62 = vld [vmem:[#allocation17 + $0x660] sm:$0xff] }
 0x570   : > { %4907 = vmatpush.msra.mxu3 %v4628_v18  ;;  %4947 = vmatpush.msrb.mxu1 %v4692_v19  ;;  %v4732_v18 = vld [vmem:[#allocation17 + $0x450] sm:$0xff] }
 0x571   : > { %4886 = vmatpush.msra.mxu2 %v4598_v5  ;;  %4926 = vmatpush.msrb.mxu0 %v4662_v13  ;;  %v8109_v5 = vpop.f32.mrf.mxu2  ;;  %v4766_v13 = vld [vmem:[#allocation17 + $0x560] sm:$0xff]  ;;  %v4796_v19 = vld [vmem:[#allocation17 + $0x650] sm:$0xff] }
 0x572   : > { %4908 = vmatpush.msra.mxu3 %v4626_v51  ;;  %4948 = vmatpush.msrb.mxu1 %v4690_v27  ;;  %v8111_v51 = vpop.f32.mrf.mxu0  ;;  %v4762_v27 = vld [vmem:[#allocation17 + $0x540] sm:$0xff] }
 0x573   : > { %4887 = vmatpush.msra.mxu2 %v4596_v16  ;;  %4927 = vmatpush.msrb.mxu0 %v4660_v7  ;;  %v4830_v16 = vld [vmem:[#allocation17 + $0x760] sm:$0xff]  ;;  %v4764_v7 = vld [vmem:[#allocation17 + $0x550] sm:$0xff] }
 0x574   : > { %4973 = vmatpush.msrb.mxu3 %v4784_v46  ;;  %5013 = vmatpush.msra.mxu1 %v4848_v31  ;;  %v4826_v46 = vld [vmem:[#allocation17 + $0x740] sm:$0xff]  ;;  %v4728_v31 = vld [vmem:[#allocation17 + $0x430] sm:$0xff] }
 0x575   : > { %4888 = vmatpush.msra.mxu2 %v4594_v20  ;;  %4928 = vmatpush.msrb.mxu0 %v4658_v22  ;;  %v4828_v20 = vld [vmem:[#allocation17 + $0x750] sm:$0xff]  ;;  %v4730_v22 = vld [vmem:[#allocation17 + $0x440] sm:$0xff] }
 0x576   : > { %4974 = vmatpush.msrb.mxu3 %v4782_v44  ;;  %5014 = vmatpush.msra.mxu1 %v4846_v54  ;;  %v4792_v44 = vld [vmem:[#allocation17 + $0x630] sm:$0xff]  ;;  %v8115_v54 = vpop.f32.mrf.mxu3 }
 0x577   : > { %4953 = vmatpush.msrb.mxu2 %v4752_v21  ;;  %4993 = vmatpush.msra.mxu0 %v4816_v33  ;;  %v4794_v21 = vld [vmem:[#allocation17 + $0x640] sm:$0xff]  ;;  %v8113_v33 = vpop.f32.mrf.mxu1 }
 0x578   : > { %4975 = vmatpush.msrb.mxu3 %v4780_v41  ;;  %5015 = vmatpush.msra.mxu1 %v4844_v29  ;;  %v4726_v41 = vld [vmem:[#allocation17 + $0x420] sm:$0xff] }
 0x579   : > { %4954 = vmatpush.msrb.mxu2 %v4750_v8  ;;  %4994 = vmatpush.msra.mxu0 %v4814_v38  ;;  %v4760_v8 = vld [vmem:[#allocation17 + $0x530] sm:$0xff]  ;;  %v4790_v29 = vld [vmem:[#allocation17 + $0x620] sm:$0xff] }
 0x57a   : > { %4976 = vmatpush.msrb.mxu3 %v4778_v42  ;;  %5016 = vmatpush.msra.mxu1 %v4842_v49  ;;  %v4824_v38 = vld [vmem:[#allocation17 + $0x730] sm:$0xff] }
 0x57b   : > { %4955 = vmatpush.msrb.mxu2 %v4748_v40  ;;  %4995 = vmatpush.msra.mxu0 %v4812_v28  ;;  %v8117_v40 = vpop.f32.mrf.mxu2  ;;  %v4758_v28 = vld [vmem:[#allocation17 + $0x520] sm:$0xff]  ;;  %v4724_v42 = vld [vmem:[#allocation17 + $0x410] sm:$0xff] }
 0x57c   : > { %4977 = vmatpush.msrb.mxu3 %v4776_v48  ;;  %5017 = vmatpush.msra.mxu1 %v4840_v26  ;;  %v4788_v49 = vld [vmem:[#allocation17 + $0x610] sm:$0xff]  ;;  %v4722_v48 = vld [vmem:[#allocation17 + $0x400] sm:$0xff] }
 0x57d   : > { %4956 = vmatpush.msrb.mxu2 %v4746_v47  ;;  %4996 = vmatpush.msra.mxu0 %v4810_v43  ;;  %v4822_v47 = vld [vmem:[#allocation17 + $0x720] sm:$0xff]  ;;  %v4756_v43 = vld [vmem:[#allocation17 + $0x510] sm:$0xff] }
 0x57e   : > { %4978 = vmatpush.msrb.mxu3 %v4774_v60  ;;  %5018 = vmatpush.msra.mxu1 %v4838_v52  ;;  %v4818_v60 = vld [vmem:[#allocation17 + $0x700] sm:$0xff] }
 0x57f   : > { %4957 = vmatpush.msrb.mxu2 %v4744_v45  ;;  %4997 = vmatpush.msra.mxu0 %v4808_v24  ;;  %v4820_v45 = vld [vmem:[#allocation17 + $0x710] sm:$0xff]  ;;  %v4754_v24 = vld [vmem:[#allocation17 + $0x500] sm:$0xff] }
 0x580   : > { %4979 = vmatpush.msrb.mxu3 %v4772_v39  ;;  %5019 = vmatpush.msra.mxu1 %v4836_v3  ;;  %v3922_v39 = vadd.f32 %v8107_v4, %v8109_v5  ;;  %v3762_v3 = vadd.f32 %v8091_v35, %v8093_v15  ;;  %v3682_v15 = vadd.f32 %v8083_v9, %v8085_v11 }
 0x581   : > { %4958 = vmatpush.msrb.mxu2 %v4742_v12  ;;  %4998 = vmatpush.msra.mxu0 %v4806_v37  ;;  %v4786_v12 = vld [vmem:[#allocation17 + $0x600] sm:$0xff]  ;;  %v4327_v9 = vadd.f32 %v8113_v33, %v8111_v51 }
 0x582   : > { %4980 = vmatpush.msrb.mxu3 %v4770_v34  ;;  %5020 = vmatpush.msra.mxu1 %v4834_v59  ;;  %v3962_v34 = vadd.f32 %v8105_v61, %v8103_v55  ;;  %v3802_v59 = vadd.f32 %v8089_v30, %v8087_v25  ;;  %v3973_v35 = vrot.slane %v3762_v3, 6  ;;  %v4719_v3 = vld [vmem:[#allocation17 + $0x3e8] sm:$0xff] }
 0x583   : > { %4959 = vmatpush.msrb.mxu2 %v4740_v53  ;;  %4999 = vmatpush.msra.mxu0 %v4804_v14 }
 0x584   : > { %4981 = vmatpush.msrb.mxu3 %v4768_v17  ;;  %5021 = vmatpush.msra.mxu1 %v4832_v0  ;;  %v3882_v17 = vadd.f32 %v8097_v23, %v8095_v36  ;;  %v3974_v55 = vrot.slane %v3802_v59, 5  ;;  %v4717_v59 = vld [vmem:[#allocation17 + $0x3d8] sm:$0xff] }
 0x585   : > { %4960 = vmatpush.msrb.mxu2 %v4738_v56  ;;  %5000 = vmatpush.msra.mxu0 %v4802_v58  ;;  %v3842_v56 = vadd.f32 %v8099_v10, %v8101_v50  ;;  %v3978_v50 = vrot.slane %v3962_v34, 1  ;;  %v4653_v34 = vld [vmem:[#allocation17 + $0x1d8] sm:$0xff] }
 0x586   : > { %4982 = vmatpush.msrb.mxu3 %v4766_v13  ;;  %5022 = vmatpush.msra.mxu1 %v4830_v16 }
 0x587   : > { %4961 = vmatpush.msrb.mxu2 %v4736_v1  ;;  %5001 = vmatpush.msra.mxu0 %v4800_v2  ;;  %v3722_v1 = vadd.f32 %v8081_v63, %v8079_v57  ;;  %v3977_v2 = vrot.slane %v3922_v39, 2  ;;  %v3975_v10 = vrot.slane %v3842_v56, 4  ;;  %v3980_v57 = vsel %vm2762_vm11, %v3973_v35, %v3974_v55  ;;  %v4655_v39 = vld [vmem:[#allocation17 + $0x1e8] sm:$0xff]  ;;  %v4621_v56 = vld [vmem:[#allocation17 + $0xd8] sm:$0xff] }
 0x588   : > { %4983 = vmatpush.msrb.mxu3 %v4764_v7  ;;  %5023 = vmatpush.msra.mxu1 %v4828_v20  ;;  %v4649_v55 = vld [vmem:[#allocation17 + $0x1b8] sm:$0xff] }
 0x589   : > { %4962 = vmatpush.msrb.mxu2 %v4734_v6  ;;  %5002 = vmatpush.msra.mxu0 %v4798_v62  ;;  %v4406_v37 = vpop.f32.mrf.mxu1  ;;  %v3972_v5 = vrot.slane %v3722_v1, 7  ;;  %v3976_v6 = vrot.slane %v3882_v17, 3  ;;  %v3983_v25 = vsel %vm2768_vm8, %v3977_v2, %v3978_v50  ;;  %v4619_v1 = vld [vmem:[#allocation17 + $0xc8] sm:$0xff]  ;;  %v4617_v50 = vld [vmem:[#allocation17 + $0xb8] sm:$0xff] }
 0x58a   : > { %4984 = vmatpush.msrb.mxu3 %v4762_v27  ;;  %5024 = vmatpush.msra.mxu1 %v4826_v46  ;;  %v4287_v27 = vadd.f32 %v8115_v54, %v8117_v40  ;;  %v4651_v17 = vld [vmem:[#allocation17 + $0x1c8] sm:$0xff] }
 0x58b   : > { %4963 = vmatpush.msrb.mxu2 %v4732_v18  ;;  %5003 = vmatpush.msra.mxu0 %v4796_v19  ;;  %v3979_v23 = vsel %vm2760_vm4, %v3682_v15, %v3972_v5  ;;  %v3982_v13 = vsel %vm2766_vm6, %v3975_v10, %v3976_v6  ;;  %v4683_v2 = vld [vmem:[#allocation17 + $0x2c8] sm:$0xff]  ;;  %v4713_v5 = vld [vmem:[#allocation17 + $0x3b8] sm:$0xff] }
 0x58c   : > { %4985 = vmatpush.msrb.mxu3 %v4760_v8  ;;  %5025 = vmatpush.msra.mxu1 %v4824_v38  ;;  %v3984_v62 = vsel %vm2770_vm9, %v3982_v13, %v3983_v25  ;;  %v3981_v19 = vsel %vm2764_vm12, %v3979_v23, %v3980_v57  ;;  %v4615_v6 = vld [vmem:[#allocation17 + $0xa8] sm:$0xff]  ;;  %v4677_v23 = vld [vmem:[#allocation17 + $0x298] sm:$0xff] }
 0x58d   : > { %4964 = vmatpush.msrb.mxu2 %v4730_v22  ;;  %5004 = vmatpush.msra.mxu0 %v4794_v21  ;;  %v3985_v8 = vsel %vm2772_vm13, %v3981_v19, %v3984_v62  ;;  %v4647_v25 = vld [vmem:[#allocation17 + $0x1a8] sm:$0xff]  ;;  %v4709_v13 = vld [vmem:[#allocation17 + $0x398] sm:$0xff] }
 0x58e   : > { %4986 = vmatpush.msrb.mxu3 %v4758_v28  ;;  %5026 = vmatpush.msra.mxu1 %v4822_v47  ;;  %v4711_v57 = vld [vmem:[#allocation17 + $0x3a8] sm:$0xff]  ;;  %v4673_v19 = vld [vmem:[#allocation17 + $0x278] sm:$0xff] }
 0x58f   : > { %4965 = vmatpush.msrb.mxu2 %v4728_v31  ;;  %5005 = vmatpush.msra.mxu0 %v4792_v44  ;;  %v4366_v52 = vpop.f32.mrf.mxu3  ;;  %v4577_v44 = vrot.slane %v4327_v9, 7  ;;  %v4611_v9 = vld [vmem:[#allocation17 + $0x88] sm:$0xff] }
 0x590   : > { %v4386_v26 = vpop.f32.mrf.mxu0  ;;  %4987 = vmatpush.msrb.mxu3 %v4756_v43  ;;  %5027 = vmatpush.msra.mxu1 %v4820_v45  ;;  %v4675_v62 = vld [vmem:[#allocation17 + $0x288] sm:$0xff] }
 0x591   : > { %4966 = vmatpush.msrb.mxu2 %v4726_v41  ;;  %5006 = vmatpush.msra.mxu0 %v4790_v29  ;;  %v4407_v63 = vadd.f32 %v4406_v37, %v4386_v26  ;;  %v4584_v28 = vsel %vm2760_vm4, %v4287_v27, %v4577_v44  ;;  %v4657_v37 = vld [vmem:[#allocation17 + $0x1f8] sm:$0xff]  ;;  %v4639_v27 = vld [vmem:[#allocation17 + $0x168] sm:$0xff] }
 0x592   : > { %4988 = vmatpush.msrb.mxu3 %v4754_v24  ;;  %5028 = vmatpush.msra.mxu1 %v4818_v60  ;;  %v4625_v60 = vld [vmem:[#allocation17 + $0xf8] sm:$0xff] }
 0x593   : > { %4967 = vmatpush.msrb.mxu2 %v4724_v42  ;;  %5007 = vmatpush.msra.mxu0 %v4788_v49  ;;  %v4579_v21 = vrot.slane %v4407_v63, 5  ;;  %v3987_v42 = vadd.f32 %v3985_v8, %v8055_v32  ;;  %v4689_v32 = vld [vmem:[#allocation17 + $0x2f8] sm:$0xff] }
 0x594   : > { %v4613_v63 = vld [vmem:[#allocation17 + $0x98] sm:$0xff] }
 0x595   : > { %4968 = vmatpush.msrb.mxu2 %v4722_v48  ;;  %5008 = vmatpush.msra.mxu0 %v4786_v12  ;;  %v4637_v8 = vld [vmem:[#allocation17 + $0x158] sm:$0xff] }
 0x596   : > { %v4346_v53 = vpop.f32.mrf.mxu2  ;;  %v4669_v44 = vld [vmem:[#allocation17 + $0x258] sm:$0xff] }
 0x597   : > { %v4367_v61 = vadd.f32 %v4366_v52, %v4346_v53  ;;  %v4721_v52 = vld [vmem:[#allocation17 + $0x3f8] sm:$0xff]  ;;  %v4623_v53 = vld [vmem:[#allocation17 + $0xe8] sm:$0xff] }
 0x599   : > { %v4578_v16 = vrot.slane %v4367_v61, 6  ;;  %v4681_v61 = vld [vmem:[#allocation17 + $0x2b8] sm:$0xff] }
 0x59b   : > { %v4585_v51 = vsel %vm2762_vm11, %v4578_v16, %v4579_v21  ;;  %v4707_v16 = vld [vmem:[#allocation17 + $0x388] sm:$0xff] }
 0x59c   : > { %v4586_v54 = vsel %vm2764_vm12, %v4584_v28, %v4585_v51  ;;  %v4671_v21 = vld [vmem:[#allocation17 + $0x268] sm:$0xff]  ;;  %v4701_v51 = vld [vmem:[#allocation17 + $0x358] sm:$0xff] }
 0x59d   : > { %v4699_v28 = vld [vmem:[#allocation17 + $0x348] sm:$0xff] }
 0x5ab   : > { %v4486_v58 = vpop.f32.mrf.mxu1 }
 0x5b1   : > { %v4446_v0 = vpop.f32.mrf.mxu3 }
 0x5b2   : > { %v4466_v14 = vpop.f32.mrf.mxu0 }
 0x5b3   : > { %v4487_v18 = vadd.f32 %v4486_v58, %v4466_v14  ;;  %v4687_v14 = vld [vmem:[#allocation17 + $0x2e8] sm:$0xff]  ;;  %v4685_v58 = vld [vmem:[#allocation17 + $0x2d8] sm:$0xff] }
 0x5b5   : > { %v4581_v33 = vrot.slane %v4487_v18, 3  ;;  %v4609_v18 = vld [vmem:[#allocation17 + $0x78] sm:$0xff] }
 0x5b8   : > { %v4426_v4 = vpop.f32.mrf.mxu2 }
 0x5b9   : > { %v4447_v36 = vadd.f32 %v4446_v0, %v4426_v4  ;;  %v4715_v0 = vld [vmem:[#allocation17 + $0x3c8] sm:$0xff] }
 0x5bb   : > { %v4580_v46 = vrot.slane %v4447_v36, 4  ;;  %v4645_v36 = vld [vmem:[#allocation17 + $0x198] sm:$0xff] }
 0x5bd   : > { %v4587_v29 = vsel %vm2766_vm6, %v4580_v46, %v4581_v33  ;;  %v4703_v46 = vld [vmem:[#allocation17 + $0x368] sm:$0xff] }
 0x5be   : > { %v4603_v33 = vld [vmem:[#allocation17 + $0x48] sm:$0xff] }
 0x5cd   : > { %v4566_v11 = vpop.f32.mrf.mxu1 }
 0x5d3   : > { %v4546_v30 = vpop.f32.mrf.mxu0  ;;  %v4526_v20 = vpop.f32.mrf.mxu3 }
 0x5d4   : > { %v4567_v7 = vadd.f32 %v4566_v11, %v4546_v30  ;;  %v4679_v30 = vld [vmem:[#allocation17 + $0x2a8] sm:$0xff] }
 0x5d5   : > { %v4643_v11 = vld [vmem:[#allocation17 + $0x188] sm:$0xff] }
 0x5d6   : > { %v4583_v38 = vrot.slane %v4567_v7, 1  ;;  %v4641_v7 = vld [vmem:[#allocation17 + $0x178] sm:$0xff] }
 0x5d9   : > { %v4506_v22 = vpop.f32.mrf.mxu2 }
 0x5da   : > { %v4527_v31 = vadd.f32 %v4526_v20, %v4506_v22  ;;  %v4705_v20 = vld [vmem:[#allocation17 + $0x378] sm:$0xff]  ;;  %v4607_v22 = vld [vmem:[#allocation17 + $0x68] sm:$0xff] }
 0x5dc   : > { %v4582_v41 = vrot.slane %v4527_v31, 2  ;;  %v4605_v31 = vld [vmem:[#allocation17 + $0x58] sm:$0xff] }
 0x5de   : > { %v4588_v47 = vsel %vm2768_vm8, %v4582_v41, %v4583_v38  ;;  %v4635_v38 = vld [vmem:[#allocation17 + $0x148] sm:$0xff] }
 0x5df   : > { %v4589_v40 = vsel %vm2770_vm9, %v4587_v29, %v4588_v47  ;;  %v4667_v41 = vld [vmem:[#allocation17 + $0x248] sm:$0xff]  ;;  %v4601_v29 = vld [vmem:[#allocation17 + $0x38] sm:$0xff] }
 0x5e0   : > { %v4590_v43 = vsel %vm2772_vm13, %v4586_v54, %v4589_v40  ;;  %v4633_v47 = vld [vmem:[#allocation17 + $0x138] sm:$0xff]  ;;  %v4599_v40 = vld [vmem:[#allocation17 + $0x28] sm:$0xff] }
 0x5e1   : > { %v4592_v49 = vadd.f32 %v4590_v43, %v3987_v42  ;;  %v4665_v42 = vld [vmem:[#allocation17 + $0x238] sm:$0xff]  ;;  %v4631_v43 = vld [vmem:[#allocation17 + $0x128] sm:$0xff] }
 0x5e2   : > { %v4697_v54 = vld [vmem:[#allocation17 + $0x338] sm:$0xff] }
 0x5e3   : > { %v8154_v45 = vmax.f32 %v4592_v49, 0.0  ;;  %v4663_v49 = vld [vmem:[#allocation17 + $0x228] sm:$0xff] }
 0x5e5   : > { %v4852_v48 = vperm.slane %v8154_v45, 0  ;;  %v4853_v24 = vperm.slane %v8154_v45, 1  ;;  %v4854_v26 = vperm.slane %v8154_v45, 2  ;;  %v4855_v12 = vperm.slane %v8154_v45, 3 }
 0x5e6   : > { %v4856_v4 = vperm.slane %v8154_v45, 4  ;;  %v4857_v35 = vperm.slane %v8154_v45, 5  ;;  %v4858_v15 = vperm.slane %v8154_v45, 6  ;;  %v4859_v10 = vperm.slane %v8154_v45, 7  ;;  %v5219_v45 = vld [vmem:[#allocation20 + $0xc0] sm:$0xff] }
 0x5e7   : > { %4889 = vmatmul.f32.vlgmr.msra.gmra.mxu2 %v4852_v48  ;;  %4909 = vmatmul.f32.vlgmr.msra.gmra.mxu3 %v4853_v24 }
 0x5e8   : > { %4929 = vmatmul.f32.vlgmr.msrb.gmra.mxu0 %v4854_v26  ;;  %4949 = vmatmul.f32.vlgmr.msrb.gmra.mxu1 %v4855_v12 }
 0x5e9   : > { %5033 = vmatpush.msra.mxu2 %v4625_v60  ;;  %5053 = vmatpush.msra.mxu3 %v4657_v37  ;;  %v4695_v60 = vld [vmem:[#allocation17 + $0x328] sm:$0xff]  ;;  %v4597_v37 = vld [vmem:[#allocation17 + $0x18] sm:$0xff] }
 0x5ea   : > { %5073 = vmatpush.msrb.mxu0 %v4689_v32  ;;  %5093 = vmatpush.msrb.mxu1 %v4721_v52  ;;  %v4629_v32 = vld [vmem:[#allocation17 + $0x118] sm:$0xff] }
 0x5eb   : > { %5034 = vmatpush.msra.mxu2 %v4623_v53  ;;  %5054 = vmatpush.msra.mxu3 %v4655_v39  ;;  %v4661_v52 = vld [vmem:[#allocation17 + $0x218] sm:$0xff]  ;;  %v4595_v39 = vld [vmem:[#allocation17 + $0x8] sm:$0xff] }
 0x5ec   : > { %5074 = vmatpush.msrb.mxu0 %v4687_v14  ;;  %5094 = vmatpush.msrb.mxu1 %v4719_v3  ;;  %v4693_v53 = vld [vmem:[#allocation17 + $0x318] sm:$0xff]  ;;  %v4627_v14 = vld [vmem:[#allocation17 + $0x108] sm:$0xff] }
 0x5ed   : > { %5035 = vmatpush.msra.mxu2 %v4621_v56  ;;  %5055 = vmatpush.msra.mxu3 %v4653_v34  ;;  %v4659_v3 = vld [vmem:[#allocation17 + $0x208] sm:$0xff]  ;;  %v4753_v34 = vld [vmem:[#allocation17 + $0x4f8] sm:$0xff] }
 0x5ee   : > { %5075 = vmatpush.msrb.mxu0 %v4685_v58  ;;  %5095 = vmatpush.msrb.mxu1 %v4717_v59  ;;  %v4691_v56 = vld [vmem:[#allocation17 + $0x308] sm:$0xff]  ;;  %v4785_v58 = vld [vmem:[#allocation17 + $0x5f8] sm:$0xff] }
 0x5ef   : > { %5036 = vmatpush.msra.mxu2 %v4619_v1  ;;  %5056 = vmatpush.msra.mxu3 %v4651_v17  ;;  %v4817_v59 = vld [vmem:[#allocation17 + $0x6f8] sm:$0xff]  ;;  %v4751_v17 = vld [vmem:[#allocation17 + $0x4e8] sm:$0xff] }
 0x5f0   : > { %5076 = vmatpush.msrb.mxu0 %v4683_v2  ;;  %5096 = vmatpush.msrb.mxu1 %v4715_v0  ;;  %v4849_v1 = vld [vmem:[#allocation17 + $0x7f8] sm:$0xff]  ;;  %v4783_v2 = vld [vmem:[#allocation17 + $0x5e8] sm:$0xff] }
 0x5f1   : > { %4969 = vmatmul.f32.vlgmr.msrb.gmra.mxu2 %v4856_v4  ;;  %4989 = vmatmul.f32.vlgmr.msrb.gmra.mxu3 %v4857_v35  ;;  %v4815_v0 = vld [vmem:[#allocation17 + $0x6e8] sm:$0xff] }
 0x5f2   : > { %5009 = vmatmul.f32.vlgmr.msra.gmra.mxu0 %v4858_v15  ;;  %5029 = vmatmul.f32.vlgmr.msra.gmra.mxu1 %v4859_v10 }
 0x5f3   : > { %5037 = vmatpush.msra.mxu2 %v4617_v50  ;;  %5057 = vmatpush.msra.mxu3 %v4649_v55  ;;  %v4847_v50 = vld [vmem:[#allocation17 + $0x7e8] sm:$0xff]  ;;  %v4781_v55 = vld [vmem:[#allocation17 + $0x5d8] sm:$0xff] }
 0x5f4   : > { %5077 = vmatpush.msrb.mxu0 %v4681_v61  ;;  %5097 = vmatpush.msrb.mxu1 %v4713_v5  ;;  %v4845_v61 = vld [vmem:[#allocation17 + $0x7d8] sm:$0xff]  ;;  %v4779_v5 = vld [vmem:[#allocation17 + $0x5c8] sm:$0xff] }
 0x5f5   : > { %5038 = vmatpush.msra.mxu2 %v4615_v6  ;;  %5058 = vmatpush.msra.mxu3 %v4647_v25  ;;  %v4843_v6 = vld [vmem:[#allocation17 + $0x7c8] sm:$0xff]  ;;  %v4745_v25 = vld [vmem:[#allocation17 + $0x4b8] sm:$0xff] }
 0x5f6   : > { %5078 = vmatpush.msrb.mxu0 %v4679_v30  ;;  %5098 = vmatpush.msrb.mxu1 %v4711_v57  ;;  %v4777_v30 = vld [vmem:[#allocation17 + $0x5b8] sm:$0xff] }
 0x5f7   : > { %5039 = vmatpush.msra.mxu2 %v4613_v63  ;;  %5059 = vmatpush.msra.mxu3 %v4645_v36  ;;  %v4809_v57 = vld [vmem:[#allocation17 + $0x6b8] sm:$0xff]  ;;  %v4743_v36 = vld [vmem:[#allocation17 + $0x4a8] sm:$0xff] }
 0x5f8   : > { %5079 = vmatpush.msrb.mxu0 %v4677_v23  ;;  %5099 = vmatpush.msrb.mxu1 %v4709_v13  ;;  %v4841_v63 = vld [vmem:[#allocation17 + $0x7b8] sm:$0xff]  ;;  %v4775_v23 = vld [vmem:[#allocation17 + $0x5a8] sm:$0xff] }
 0x5f9   : > { %5040 = vmatpush.msra.mxu2 %v4611_v9  ;;  %5060 = vmatpush.msra.mxu3 %v4643_v11  ;;  %v4807_v13 = vld [vmem:[#allocation17 + $0x6a8] sm:$0xff]  ;;  %v4741_v11 = vld [vmem:[#allocation17 + $0x498] sm:$0xff] }
 0x5fa   : > { %5080 = vmatpush.msrb.mxu0 %v4675_v62  ;;  %5100 = vmatpush.msrb.mxu1 %v4707_v16  ;;  %v4839_v9 = vld [vmem:[#allocation17 + $0x7a8] sm:$0xff]  ;;  %v4773_v62 = vld [vmem:[#allocation17 + $0x598] sm:$0xff] }
 0x5fb   : > { %5041 = vmatpush.msra.mxu2 %v4609_v18  ;;  %5061 = vmatpush.msra.mxu3 %v4641_v7  ;;  %v4805_v16 = vld [vmem:[#allocation17 + $0x698] sm:$0xff]  ;;  %v4739_v7 = vld [vmem:[#allocation17 + $0x488] sm:$0xff] }
 0x5fc   : > { %5081 = vmatpush.msrb.mxu0 %v4673_v19  ;;  %5101 = vmatpush.msrb.mxu1 %v4705_v20  ;;  %v4837_v18 = vld [vmem:[#allocation17 + $0x798] sm:$0xff]  ;;  %v4771_v19 = vld [vmem:[#allocation17 + $0x588] sm:$0xff] }
 0x5fd   : > { %5042 = vmatpush.msra.mxu2 %v4607_v22  ;;  %5062 = vmatpush.msra.mxu3 %v4639_v27  ;;  %v4803_v20 = vld [vmem:[#allocation17 + $0x688] sm:$0xff]  ;;  %v4737_v27 = vld [vmem:[#allocation17 + $0x478] sm:$0xff] }
 0x5fe   : > { %5082 = vmatpush.msrb.mxu0 %v4671_v21  ;;  %5102 = vmatpush.msrb.mxu1 %v4703_v46  ;;  %v4835_v22 = vld [vmem:[#allocation17 + $0x788] sm:$0xff]  ;;  %v4769_v21 = vld [vmem:[#allocation17 + $0x578] sm:$0xff] }
 0x5ff   : > { %5043 = vmatpush.msra.mxu2 %v4605_v31  ;;  %5063 = vmatpush.msra.mxu3 %v4637_v8  ;;  %v4801_v46 = vld [vmem:[#allocation17 + $0x678] sm:$0xff]  ;;  %v4735_v8 = vld [vmem:[#allocation17 + $0x468] sm:$0xff] }
 0x600   : > { %5083 = vmatpush.msrb.mxu0 %v4669_v44  ;;  %5103 = vmatpush.msrb.mxu1 %v4701_v51  ;;  %v4833_v31 = vld [vmem:[#allocation17 + $0x778] sm:$0xff]  ;;  %v4767_v44 = vld [vmem:[#allocation17 + $0x568] sm:$0xff] }
 0x601   : > { %5044 = vmatpush.msra.mxu2 %v4603_v33  ;;  %5064 = vmatpush.msra.mxu3 %v4635_v38  ;;  %v4799_v51 = vld [vmem:[#allocation17 + $0x668] sm:$0xff]  ;;  %v4733_v38 = vld [vmem:[#allocation17 + $0x458] sm:$0xff] }
 0x602   : > { %5084 = vmatpush.msrb.mxu0 %v4667_v41  ;;  %5104 = vmatpush.msrb.mxu1 %v4699_v28  ;;  %v4831_v33 = vld [vmem:[#allocation17 + $0x768] sm:$0xff]  ;;  %v4765_v41 = vld [vmem:[#allocation17 + $0x558] sm:$0xff] }
 0x603   : > { %5045 = vmatpush.msra.mxu2 %v4601_v29  ;;  %5065 = vmatpush.msra.mxu3 %v4633_v47  ;;  %v4797_v28 = vld [vmem:[#allocation17 + $0x658] sm:$0xff]  ;;  %v4731_v47 = vld [vmem:[#allocation17 + $0x448] sm:$0xff] }
 0x604   : > { %5085 = vmatpush.msrb.mxu0 %v4665_v42  ;;  %5105 = vmatpush.msrb.mxu1 %v4697_v54  ;;  %v4829_v29 = vld [vmem:[#allocation17 + $0x758] sm:$0xff]  ;;  %v4763_v42 = vld [vmem:[#allocation17 + $0x548] sm:$0xff] }
 0x605   : > { %5046 = vmatpush.msra.mxu2 %v4599_v40  ;;  %5066 = vmatpush.msra.mxu3 %v4631_v43  ;;  %v4795_v54 = vld [vmem:[#allocation17 + $0x648] sm:$0xff]  ;;  %v4729_v43 = vld [vmem:[#allocation17 + $0x438] sm:$0xff] }
 0x606   : > { %5086 = vmatpush.msrb.mxu0 %v4663_v49  ;;  %5106 = vmatpush.msrb.mxu1 %v4695_v60  ;;  %v4827_v40 = vld [vmem:[#allocation17 + $0x748] sm:$0xff]  ;;  %v4761_v49 = vld [vmem:[#allocation17 + $0x538] sm:$0xff] }
 0x607   : > { %5047 = vmatpush.msra.mxu2 %v4597_v37  ;;  %5067 = vmatpush.msra.mxu3 %v4629_v32  ;;  %v4793_v60 = vld [vmem:[#allocation17 + $0x638] sm:$0xff]  ;;  %v4727_v32 = vld [vmem:[#allocation17 + $0x428] sm:$0xff] }
 0x608   : > { %5087 = vmatpush.msrb.mxu0 %v4661_v52  ;;  %5107 = vmatpush.msrb.mxu1 %v4693_v53  ;;  %v4825_v37 = vld [vmem:[#allocation17 + $0x738] sm:$0xff]  ;;  %v4759_v52 = vld [vmem:[#allocation17 + $0x528] sm:$0xff] }
 0x609   : > { %5048 = vmatpush.msra.mxu2 %v4595_v39  ;;  %5068 = vmatpush.msra.mxu3 %v4627_v14  ;;  %v4791_v53 = vld [vmem:[#allocation17 + $0x628] sm:$0xff]  ;;  %v4725_v14 = vld [vmem:[#allocation17 + $0x418] sm:$0xff] }
 0x60a   : > { %5088 = vmatpush.msrb.mxu0 %v4659_v3  ;;  %5108 = vmatpush.msrb.mxu1 %v4691_v56  ;;  %v4823_v39 = vld [vmem:[#allocation17 + $0x728] sm:$0xff]  ;;  %v4757_v3 = vld [vmem:[#allocation17 + $0x518] sm:$0xff] }
 0x60b   : > { %5049 = vmatmul.f32.vlgmr.msra.gmra.mxu2 %v4852_v48  ;;  %5069 = vmatmul.f32.vlgmr.msra.gmra.mxu3 %v4853_v24  ;;  %v4749_v48 = vld [vmem:[#allocation17 + $0x4d8] sm:$0xff] }
 0x60c   : > { %5089 = vmatmul.f32.vlgmr.msrb.gmra.mxu0 %v4854_v26  ;;  %5109 = vmatmul.f32.vlgmr.msrb.gmra.mxu1 %v4855_v12  ;;  %v4813_v24 = vld [vmem:[#allocation17 + $0x6d8] sm:$0xff]  ;;  %v4747_v26 = vld [vmem:[#allocation17 + $0x4c8] sm:$0xff] }
 0x60d   : > { %5113 = vmatpush.msrb.mxu2 %v4753_v34  ;;  %5133 = vmatpush.msrb.mxu3 %v4785_v58  ;;  %v4811_v12 = vld [vmem:[#allocation17 + $0x6c8] sm:$0xff]  ;;  %v4789_v56 = vld [vmem:[#allocation17 + $0x618] sm:$0xff] }
 0x60e   : > { %5153 = vmatpush.msra.mxu0 %v4817_v59  ;;  %5173 = vmatpush.msra.mxu1 %v4849_v1  ;;  %v4821_v34 = vld [vmem:[#allocation17 + $0x718] sm:$0xff]  ;;  %v4723_v58 = vld [vmem:[#allocation17 + $0x408] sm:$0xff] }
 0x60f   : > { %5114 = vmatpush.msrb.mxu2 %v4751_v17  ;;  %5134 = vmatpush.msrb.mxu3 %v4783_v2  ;;  %v4755_v59 = vld [vmem:[#allocation17 + $0x508] sm:$0xff]  ;;  %v5225_v2 = vld [vmem:[#allocation20 + $0xf0] sm:$0xff] }
 0x610   : > { %5154 = vmatpush.msra.mxu0 %v4815_v0  ;;  %5174 = vmatpush.msra.mxu1 %v4847_v50  ;;  %v4787_v1 = vld [vmem:[#allocation17 + $0x608] sm:$0xff]  ;;  %v5257_v0 = vld [vmem:[#allocation20 + $0x1f0] sm:$0xff]  ;;  %v5226_v50 = vld [vmem:[#allocation20 + $0xf8] sm:$0xff] }
 0x611   : > { %5115 = vmatpush.msrb.mxu2 %v4749_v48  ;;  %5135 = vmatpush.msrb.mxu3 %v4781_v55  ;;  %v4819_v17 = vld [vmem:[#allocation17 + $0x708] sm:$0xff]  ;;  %v5258_v48 = vld [vmem:[#allocation20 + $0x1f8] sm:$0xff] }
 0x612   : > { %5155 = vmatpush.msra.mxu0 %v4813_v24  ;;  %5175 = vmatpush.msra.mxu1 %v4845_v61  ;;  %v5223_v55 = vld [vmem:[#allocation20 + $0xe0] sm:$0xff]  ;;  %v5224_v61 = vld [vmem:[#allocation20 + $0xe8] sm:$0xff] }
 0x613   : > { %5116 = vmatpush.msrb.mxu2 %v4747_v26  ;;  %5136 = vmatpush.msrb.mxu3 %v4779_v5  ;;  %v5255_v24 = vld [vmem:[#allocation20 + $0x1e0] sm:$0xff]  ;;  %v5256_v26 = vld [vmem:[#allocation20 + $0x1e8] sm:$0xff]  ;;  %v5222_v5 = vld [vmem:[#allocation20 + $0xd8] sm:$0xff] }
 0x614   : > { %5156 = vmatpush.msra.mxu0 %v4811_v12  ;;  %5176 = vmatpush.msra.mxu1 %v4843_v6  ;;  %v5254_v12 = vld [vmem:[#allocation20 + $0x1d8] sm:$0xff]  ;;  %v5252_v6 = vld [vmem:[#allocation20 + $0x1c8] sm:$0xff] }
 0x615   : > { %5117 = vmatpush.msrb.mxu2 %v4745_v25  ;;  %5137 = vmatpush.msrb.mxu3 %v4777_v30  ;;  %v5217_v25 = vld [vmem:[#allocation20 + $0xb0] sm:$0xff] }
 0x616   : > { %5157 = vmatpush.msra.mxu0 %v4809_v57  ;;  %5177 = vmatpush.msra.mxu1 %v4841_v63  ;;  %v5249_v30 = vld [vmem:[#allocation20 + $0x1b0] sm:$0xff]  ;;  %v5218_v57 = vld [vmem:[#allocation20 + $0xb8] sm:$0xff] }
 0x617   : > { %5118 = vmatpush.msrb.mxu2 %v4743_v36  ;;  %5138 = vmatpush.msrb.mxu3 %v4775_v23  ;;  %v5250_v63 = vld [vmem:[#allocation20 + $0x1b8] sm:$0xff]  ;;  %v5215_v36 = vld [vmem:[#allocation20 + $0xa0] sm:$0xff] }
 0x618   : > { %5158 = vmatpush.msra.mxu0 %v4807_v13  ;;  %5178 = vmatpush.msra.mxu1 %v4839_v9  ;;  %v5247_v23 = vld [vmem:[#allocation20 + $0x1a0] sm:$0xff]  ;;  %v5216_v13 = vld [vmem:[#allocation20 + $0xa8] sm:$0xff] }
 0x619   : > { %5119 = vmatpush.msrb.mxu2 %v4741_v11  ;;  %5139 = vmatpush.msrb.mxu3 %v4773_v62  ;;  %v5248_v9 = vld [vmem:[#allocation20 + $0x1a8] sm:$0xff]  ;;  %v5213_v11 = vld [vmem:[#allocation20 + $0x90] sm:$0xff] }
 0x61a   : > { %5159 = vmatpush.msra.mxu0 %v4805_v16  ;;  %5179 = vmatpush.msra.mxu1 %v4837_v18  ;;  %v5245_v62 = vld [vmem:[#allocation20 + $0x190] sm:$0xff]  ;;  %v5214_v16 = vld [vmem:[#allocation20 + $0x98] sm:$0xff] }
 0x61b   : > { %5120 = vmatpush.msrb.mxu2 %v4739_v7  ;;  %5140 = vmatpush.msrb.mxu3 %v4771_v19  ;;  %v5246_v18 = vld [vmem:[#allocation20 + $0x198] sm:$0xff]  ;;  %v5211_v7 = vld [vmem:[#allocation20 + $0x80] sm:$0xff] }
 0x61c   : > { %5160 = vmatpush.msra.mxu0 %v4803_v20  ;;  %5180 = vmatpush.msra.mxu1 %v4835_v22  ;;  %v5243_v19 = vld [vmem:[#allocation20 + $0x180] sm:$0xff]  ;;  %v5212_v20 = vld [vmem:[#allocation20 + $0x88] sm:$0xff] }
 0x61d   : > { %5121 = vmatpush.msrb.mxu2 %v4737_v27  ;;  %5141 = vmatpush.msrb.mxu3 %v4769_v21  ;;  %v5244_v22 = vld [vmem:[#allocation20 + $0x188] sm:$0xff]  ;;  %v5209_v27 = vld [vmem:[#allocation20 + $0x70] sm:$0xff] }
 0x61e   : > { %5161 = vmatpush.msra.mxu0 %v4801_v46  ;;  %5181 = vmatpush.msra.mxu1 %v4833_v31  ;;  %v5241_v21 = vld [vmem:[#allocation20 + $0x170] sm:$0xff]  ;;  %v5210_v46 = vld [vmem:[#allocation20 + $0x78] sm:$0xff] }
 0x61f   : > { %5122 = vmatpush.msrb.mxu2 %v4735_v8  ;;  %5142 = vmatpush.msrb.mxu3 %v4767_v44  ;;  %v5242_v31 = vld [vmem:[#allocation20 + $0x178] sm:$0xff]  ;;  %v5207_v8 = vld [vmem:[#allocation20 + $0x60] sm:$0xff] }
 0x620   : > { %5162 = vmatpush.msra.mxu0 %v4799_v51  ;;  %5182 = vmatpush.msra.mxu1 %v4831_v33  ;;  %v5239_v44 = vld [vmem:[#allocation20 + $0x160] sm:$0xff]  ;;  %v5208_v51 = vld [vmem:[#allocation20 + $0x68] sm:$0xff] }
 0x621   : > { %5123 = vmatpush.msrb.mxu2 %v4733_v38  ;;  %5143 = vmatpush.msrb.mxu3 %v4765_v41  ;;  %v5240_v33 = vld [vmem:[#allocation20 + $0x168] sm:$0xff]  ;;  %v5205_v38 = vld [vmem:[#allocation20 + $0x50] sm:$0xff] }
 0x622   : > { %5163 = vmatpush.msra.mxu0 %v4797_v28  ;;  %5183 = vmatpush.msra.mxu1 %v4829_v29  ;;  %v5237_v41 = vld [vmem:[#allocation20 + $0x150] sm:$0xff]  ;;  %v5206_v28 = vld [vmem:[#allocation20 + $0x58] sm:$0xff] }
 0x623   : > { %5124 = vmatpush.msrb.mxu2 %v4731_v47  ;;  %5144 = vmatpush.msrb.mxu3 %v4763_v42  ;;  %v5238_v29 = vld [vmem:[#allocation20 + $0x158] sm:$0xff]  ;;  %v5203_v47 = vld [vmem:[#allocation20 + $0x40] sm:$0xff] }
 0x624   : > { %5164 = vmatpush.msra.mxu0 %v4795_v54  ;;  %5184 = vmatpush.msra.mxu1 %v4827_v40  ;;  %v5235_v42 = vld [vmem:[#allocation20 + $0x140] sm:$0xff]  ;;  %v5204_v54 = vld [vmem:[#allocation20 + $0x48] sm:$0xff] }
 0x625   : > { %5125 = vmatpush.msrb.mxu2 %v4729_v43  ;;  %5145 = vmatpush.msrb.mxu3 %v4761_v49  ;;  %v5236_v40 = vld [vmem:[#allocation20 + $0x148] sm:$0xff]  ;;  %v5201_v43 = vld [vmem:[#allocation20 + $0x30] sm:$0xff] }
 0x626   : > { %5165 = vmatpush.msra.mxu0 %v4793_v60  ;;  %5185 = vmatpush.msra.mxu1 %v4825_v37  ;;  %v5233_v49 = vld [vmem:[#allocation20 + $0x130] sm:$0xff]  ;;  %v5202_v60 = vld [vmem:[#allocation20 + $0x38] sm:$0xff] }
 0x627   : > { %5126 = vmatpush.msrb.mxu2 %v4727_v32  ;;  %5146 = vmatpush.msrb.mxu3 %v4759_v52  ;;  %v5234_v37 = vld [vmem:[#allocation20 + $0x138] sm:$0xff]  ;;  %v5199_v32 = vld [vmem:[#allocation20 + $0x20] sm:$0xff] }
 0x628   : > { %5166 = vmatpush.msra.mxu0 %v4791_v53  ;;  %5186 = vmatpush.msra.mxu1 %v4823_v39  ;;  %v5231_v52 = vld [vmem:[#allocation20 + $0x120] sm:$0xff]  ;;  %v5200_v53 = vld [vmem:[#allocation20 + $0x28] sm:$0xff] }
 0x629   : > { %5127 = vmatpush.msrb.mxu2 %v4725_v14  ;;  %5147 = vmatpush.msrb.mxu3 %v4757_v3  ;;  %v5232_v39 = vld [vmem:[#allocation20 + $0x128] sm:$0xff]  ;;  %v5197_v14 = vld [vmem:[#allocation20 + $0x10] sm:$0xff] }
 0x62a   : > { %5167 = vmatpush.msra.mxu0 %v4789_v56  ;;  %5187 = vmatpush.msra.mxu1 %v4821_v34  ;;  %v5229_v3 = vld [vmem:[#allocation20 + $0x110] sm:$0xff]  ;;  %v8196_v56 = vld [vmem:[#allocation19] sm:$0x3] }
 0x62b   : > { %5128 = vmatpush.msrb.mxu2 %v4723_v58  ;;  %5148 = vmatpush.msrb.mxu3 %v4755_v59  ;;  %v5198_v34 = vld [vmem:[#allocation20 + $0x18] sm:$0xff]  ;;  %v4869_v59 = vperm.slane %v8196_v56, 0 }
 0x62c   : > { %5168 = vmatpush.msra.mxu0 %v4787_v1  ;;  %5188 = vmatpush.msra.mxu1 %v4819_v17  ;;  %v5230_v58 = vld [vmem:[#allocation20 + $0x118] sm:$0xff]  ;;  %v5195_v1 = vld [vmem:[#allocation20] sm:$0xff] }
 0x62d   : > { %5129 = vmatmul.f32.vlgmr.msrb.gmra.mxu2 %v4856_v4  ;;  %5149 = vmatmul.f32.vlgmr.msrb.gmra.mxu3 %v4857_v35  ;;  %v5221_v4 = vld [vmem:[#allocation20 + $0xd0] sm:$0xff]  ;;  %v5227_v17 = vld [vmem:[#allocation20 + $0x100] sm:$0xff] }
 0x62e   : > { %5169 = vmatmul.f32.vlgmr.msra.gmra.mxu0 %v4858_v15  ;;  %5189 = vmatmul.f32.vlgmr.msra.gmra.mxu1 %v4859_v10  ;;  %v5253_v35 = vld [vmem:[#allocation20 + $0x1d0] sm:$0xff]  ;;  %v5251_v15 = vld [vmem:[#allocation20 + $0x1c0] sm:$0xff]  ;;  %v5220_v10 = vld [vmem:[#allocation20 + $0xc8] sm:$0xff] }
 0x62f   : > { %5469 = vmatpush.xpose.msra.mxu2 %v5225_v2  ;;  %5509 = vmatpush.xpose.msrb.mxu0 %v5257_v0  ;;  %v5289_v2 = vld [vmem:[#allocation20 + $0x2f0] sm:$0xff] }
 0x630   : > { %5489 = vmatpush.xpose.msra.mxu3 %v5226_v50  ;;  %5529 = vmatpush.xpose.msrb.mxu1 %v5258_v48  ;;  %v5321_v0 = vld [vmem:[#allocation20 + $0x3f0] sm:$0xff]  ;;  %v5196_v48 = vld [vmem:[#allocation20 + $0x8] sm:$0xff] }
 0x633   : > { %5470 = vmatpush.xpose.msra.mxu2 %v5223_v55  ;;  %5510 = vmatpush.xpose.msrb.mxu0 %v5255_v24  ;;  %v5228_v55 = vld [vmem:[#allocation20 + $0x108] sm:$0xff] }
 0x634   : > { %5490 = vmatpush.xpose.msra.mxu3 %v5224_v61  ;;  %5530 = vmatpush.xpose.msrb.mxu1 %v5256_v26  ;;  %v5290_v61 = vld [vmem:[#allocation20 + $0x2f8] sm:$0xff] }
 0x635   : > { %v5322_v26 = vld [vmem:[#allocation20 + $0x3f8] sm:$0xff] }
 0x637   : > { %5471 = vmatpush.xpose.msra.mxu2 %v5221_v4  ;;  %5511 = vmatpush.xpose.msrb.mxu0 %v5253_v35  ;;  %v5287_v35 = vld [vmem:[#allocation20 + $0x2e0] sm:$0xff] }
 0x638   : > { %5491 = vmatpush.xpose.msra.mxu3 %v5222_v5  ;;  %5531 = vmatpush.xpose.msrb.mxu1 %v5254_v12  ;;  %v5319_v5 = vld [vmem:[#allocation20 + $0x3e0] sm:$0xff] }
 0x63b   : > { %5472 = vmatpush.xpose.msra.mxu2 %v5219_v45  ;;  %5512 = vmatpush.xpose.msrb.mxu0 %v5251_v15 }
 0x63c   : > { %5492 = vmatpush.xpose.msra.mxu3 %v5220_v10  ;;  %5532 = vmatpush.xpose.msrb.mxu1 %v5252_v6  ;;  %v5288_v10 = vld [vmem:[#allocation20 + $0x2e8] sm:$0xff] }
 0x63d   : > { %v5320_v6 = vld [vmem:[#allocation20 + $0x3e8] sm:$0xff] }
 0x63f   : > { %5473 = vmatpush.xpose.msra.mxu2 %v5217_v25  ;;  %5513 = vmatpush.xpose.msrb.mxu0 %v5249_v30  ;;  %v5285_v30 = vld [vmem:[#allocation20 + $0x2d0] sm:$0xff] }
 0x640   : > { %5493 = vmatpush.xpose.msra.mxu3 %v5218_v57  ;;  %5533 = vmatpush.xpose.msrb.mxu1 %v5250_v63  ;;  %v5317_v57 = vld [vmem:[#allocation20 + $0x3d0] sm:$0xff] }
 0x643   : > { %5474 = vmatpush.xpose.msra.mxu2 %v5215_v36  ;;  %5514 = vmatpush.xpose.msrb.mxu0 %v5247_v23  ;;  %v5286_v36 = vld [vmem:[#allocation20 + $0x2d8] sm:$0xff] }
 0x644   : > { %5494 = vmatpush.xpose.msra.mxu3 %v5216_v13  ;;  %5534 = vmatpush.xpose.msrb.mxu1 %v5248_v9  ;;  %v5318_v23 = vld [vmem:[#allocation20 + $0x3d8] sm:$0xff]  ;;  %v5283_v9 = vld [vmem:[#allocation20 + $0x2c0] sm:$0xff] }
 0x647   : > { %5475 = vmatpush.xpose.msra.mxu2 %v5213_v11  ;;  %5515 = vmatpush.xpose.msrb.mxu0 %v5245_v62  ;;  %v5315_v11 = vld [vmem:[#allocation20 + $0x3c0] sm:$0xff] }
 0x648   : > { %5495 = vmatpush.xpose.msra.mxu3 %v5214_v16  ;;  %5535 = vmatpush.xpose.msrb.mxu1 %v5246_v18 }
 0x64b   : > { %5476 = vmatpush.xpose.msra.mxu2 %v5211_v7  ;;  %5516 = vmatpush.xpose.msrb.mxu0 %v5243_v19  ;;  %v5284_v7 = vld [vmem:[#allocation20 + $0x2c8] sm:$0xff] }
 0x64c   : > { %5496 = vmatpush.xpose.msra.mxu3 %v5212_v20  ;;  %5536 = vmatpush.xpose.msrb.mxu1 %v5244_v22  ;;  %v5316_v19 = vld [vmem:[#allocation20 + $0x3c8] sm:$0xff] }
 0x64f   : > { %5477 = vmatpush.xpose.msra.mxu2 %v5209_v27  ;;  %5517 = vmatpush.xpose.msrb.mxu0 %v5241_v21  ;;  %v5281_v27 = vld [vmem:[#allocation20 + $0x2b0] sm:$0xff] }
 0x650   : > { %5497 = vmatpush.xpose.msra.mxu3 %v5210_v46  ;;  %5537 = vmatpush.xpose.msrb.mxu1 %v5242_v31  ;;  %v5313_v21 = vld [vmem:[#allocation20 + $0x3b0] sm:$0xff] }
 0x653   : > { %5478 = vmatpush.xpose.msra.mxu2 %v5207_v8  ;;  %5518 = vmatpush.xpose.msrb.mxu0 %v5239_v44  ;;  %v5282_v8 = vld [vmem:[#allocation20 + $0x2b8] sm:$0xff] }
 0x654   : > { %5498 = vmatpush.xpose.msra.mxu3 %v5208_v51  ;;  %5538 = vmatpush.xpose.msrb.mxu1 %v5240_v33  ;;  %v5314_v44 = vld [vmem:[#allocation20 + $0x3b8] sm:$0xff]  ;;  %v5279_v33 = vld [vmem:[#allocation20 + $0x2a0] sm:$0xff] }
 0x657   : > { %5479 = vmatpush.xpose.msra.mxu2 %v5205_v38  ;;  %5519 = vmatpush.xpose.msrb.mxu0 %v5237_v41  ;;  %v5311_v38 = vld [vmem:[#allocation20 + $0x3a0] sm:$0xff]  ;;  %v5280_v41 = vld [vmem:[#allocation20 + $0x2a8] sm:$0xff] }
 0x658   : > { %5499 = vmatpush.xpose.msra.mxu3 %v5206_v28  ;;  %5539 = vmatpush.xpose.msrb.mxu1 %v5238_v29  ;;  %v5312_v28 = vld [vmem:[#allocation20 + $0x3a8] sm:$0xff]  ;;  %v5277_v29 = vld [vmem:[#allocation20 + $0x290] sm:$0xff] }
 0x65b   : > { %5480 = vmatpush.xpose.msra.mxu2 %v5203_v47  ;;  %5520 = vmatpush.xpose.msrb.mxu0 %v5235_v42  ;;  %v5309_v47 = vld [vmem:[#allocation20 + $0x390] sm:$0xff]  ;;  %v5278_v42 = vld [vmem:[#allocation20 + $0x298] sm:$0xff] }
 0x65c   : > { %5500 = vmatpush.xpose.msra.mxu3 %v5204_v54  ;;  %5540 = vmatpush.xpose.msrb.mxu1 %v5236_v40  ;;  %v5310_v54 = vld [vmem:[#allocation20 + $0x398] sm:$0xff]  ;;  %v5275_v40 = vld [vmem:[#allocation20 + $0x280] sm:$0xff] }
 0x65f   : > { %5481 = vmatpush.xpose.msra.mxu2 %v5201_v43  ;;  %5521 = vmatpush.xpose.msrb.mxu0 %v5233_v49  ;;  %v5307_v43 = vld [vmem:[#allocation20 + $0x380] sm:$0xff]  ;;  %v5276_v49 = vld [vmem:[#allocation20 + $0x288] sm:$0xff] }
 0x660   : > { %5501 = vmatpush.xpose.msra.mxu3 %v5202_v60  ;;  %5541 = vmatpush.xpose.msrb.mxu1 %v5234_v37  ;;  %v5308_v60 = vld [vmem:[#allocation20 + $0x388] sm:$0xff]  ;;  %v5273_v37 = vld [vmem:[#allocation20 + $0x270] sm:$0xff] }
 0x663   : > { %5482 = vmatpush.xpose.msra.mxu2 %v5199_v32  ;;  %5522 = vmatpush.xpose.msrb.mxu0 %v5231_v52  ;;  %v5305_v32 = vld [vmem:[#allocation20 + $0x370] sm:$0xff]  ;;  %v5274_v52 = vld [vmem:[#allocation20 + $0x278] sm:$0xff] }
 0x664   : > { %5502 = vmatpush.xpose.msra.mxu3 %v5200_v53  ;;  %5542 = vmatpush.xpose.msrb.mxu1 %v5232_v39  ;;  %v5306_v53 = vld [vmem:[#allocation20 + $0x378] sm:$0xff]  ;;  %v5271_v39 = vld [vmem:[#allocation20 + $0x260] sm:$0xff] }
 0x665   : > { %v4930_v45 = vpop.f32.mrf.mxu0  ;;  %v4950_v25 = vpop.f32.mrf.mxu1 }
 0x667   : > { %5483 = vmatpush.xpose.msra.mxu2 %v5197_v14  ;;  %5523 = vmatpush.xpose.msrb.mxu0 %v5229_v3  ;;  %v5303_v14 = vld [vmem:[#allocation20 + $0x360] sm:$0xff]  ;;  %v5272_v3 = vld [vmem:[#allocation20 + $0x268] sm:$0xff] }
 0x668   : > { %5503 = vmatpush.xpose.msra.mxu3 %v5198_v34  ;;  %5543 = vmatpush.xpose.msrb.mxu1 %v5230_v58  ;;  %v5304_v34 = vld [vmem:[#allocation20 + $0x368] sm:$0xff]  ;;  %v5269_v58 = vld [vmem:[#allocation20 + $0x250] sm:$0xff] }
 0x66a   : > { %v4890_v50 = vpop.f32.mrf.mxu2  ;;  %v4910_v4 = vpop.f32.mrf.mxu3 }
 0x66b   : > { %5484 = vmatpush.xpose.msra.mxu2 %v5195_v1  ;;  %5524 = vmatpush.xpose.msrb.mxu0 %v5227_v17  ;;  %v4891_v24 = vadd.f32 %v4890_v50, %v4869_v59  ;;  %v5301_v59 = vld [vmem:[#allocation20 + $0x350] sm:$0xff]  ;;  %v5270_v1 = vld [vmem:[#allocation20 + $0x258] sm:$0xff]  ;;  %v5268_v50 = vld [vmem:[#allocation20 + $0x248] sm:$0xff] }
 0x66c   : > { %5504 = vmatpush.xpose.msra.mxu3 %v5196_v48  ;;  %5544 = vmatpush.xpose.msrb.mxu1 %v5228_v55  ;;  %v5302_v17 = vld [vmem:[#allocation20 + $0x358] sm:$0xff]  ;;  %v5300_v48 = vld [vmem:[#allocation20 + $0x348] sm:$0xff]  ;;  %v5265_v55 = vld [vmem:[#allocation20 + $0x230] sm:$0xff] }
 0x66d   : > { %v4911_v12 = vadd.f32 %v4910_v4, %v4891_v24  ;;  %v5297_v24 = vld [vmem:[#allocation20 + $0x330] sm:$0xff]  ;;  %v5263_v4 = vld [vmem:[#allocation20 + $0x220] sm:$0xff] }
 0x66f   : > { %5549 = vmatpush.xpose.msrb.mxu2 %v5289_v2  ;;  %5589 = vmatpush.xpose.msra.mxu0 %v5321_v0  ;;  %v4931_v15 = vadd.f32 %v4930_v45, %v4911_v12  ;;  %v5010_v20 = vpop.f32.mrf.mxu0  ;;  %v5030_v46 = vpop.f32.mrf.mxu1  ;;  %v5267_v2 = vld [vmem:[#allocation20 + $0x240] sm:$0xff]  ;;  %v5264_v12 = vld [vmem:[#allocation20 + $0x228] sm:$0xff] }
 0x670   : > { %5569 = vmatpush.xpose.msrb.mxu3 %v5290_v61  ;;  %5609 = vmatpush.xpose.msra.mxu1 %v5322_v26  ;;  %v5299_v0 = vld [vmem:[#allocation20 + $0x340] sm:$0xff]  ;;  %v5266_v61 = vld [vmem:[#allocation20 + $0x238] sm:$0xff]  ;;  %v5296_v45 = vld [vmem:[#allocation20 + $0x328] sm:$0xff] }
 0x671   : > { %v4951_v63 = vadd.f32 %v4950_v25, %v4931_v15  ;;  %v5298_v26 = vld [vmem:[#allocation20 + $0x338] sm:$0xff] }
 0x673   : > { %5550 = vmatpush.xpose.msrb.mxu2 %v5287_v35  ;;  %5590 = vmatpush.xpose.msra.mxu0 %v5319_v5  ;;  %v5295_v35 = vld [vmem:[#allocation20 + $0x320] sm:$0xff]  ;;  %v4870_v5 = vperm.slane %v8196_v56, 1 }
 0x674   : > { %5570 = vmatpush.xpose.msrb.mxu3 %v5288_v10  ;;  %5610 = vmatpush.xpose.msra.mxu1 %v5320_v6  ;;  %v4970_v13 = vpop.f32.mrf.mxu2  ;;  %v4990_v16 = vpop.f32.mrf.mxu3  ;;  %v5261_v10 = vld [vmem:[#allocation20 + $0x210] sm:$0xff] }
 0x675   : > { %v4971_v62 = vadd.f32 %v4970_v13, %v4951_v63  ;;  %v5293_v6 = vld [vmem:[#allocation20 + $0x310] sm:$0xff]  ;;  %v5259_v63 = vld [vmem:[#allocation20 + $0x200] sm:$0xff] }
 0x676   : > { %v5353_v13 = vld [vmem:[#allocation20 + $0x4f0] sm:$0xff] }
 0x677   : > { %5551 = vmatpush.xpose.msrb.mxu2 %v5285_v30  ;;  %5591 = vmatpush.xpose.msra.mxu0 %v5317_v57  ;;  %v4991_v18 = vadd.f32 %v4990_v16, %v4971_v62  ;;  %v5262_v30 = vld [vmem:[#allocation20 + $0x218] sm:$0xff]  ;;  %v5292_v62 = vld [vmem:[#allocation20 + $0x308] sm:$0xff] }
 0x678   : > { %5571 = vmatpush.xpose.msrb.mxu3 %v5286_v36  ;;  %5611 = vmatpush.xpose.msra.mxu1 %v5318_v23  ;;  %v5294_v57 = vld [vmem:[#allocation20 + $0x318] sm:$0xff]  ;;  %v5291_v36 = vld [vmem:[#allocation20 + $0x300] sm:$0xff] }
 0x679   : > { %v5011_v22 = vadd.f32 %v5010_v20, %v4991_v18  ;;  %v5351_v18 = vld [vmem:[#allocation20 + $0x4e0] sm:$0xff] }
 0x67b   : > { %5552 = vmatpush.xpose.msrb.mxu2 %v5283_v9  ;;  %5592 = vmatpush.xpose.msra.mxu0 %v5315_v11  ;;  %v5031_v31 = vadd.f32 %v5030_v46, %v5011_v22  ;;  %v5385_v9 = vld [vmem:[#allocation20 + $0x5f0] sm:$0xff]  ;;  %v5260_v11 = vld [vmem:[#allocation20 + $0x208] sm:$0xff] }
 0x67c   : > { %5572 = vmatpush.xpose.msrb.mxu3 %v5284_v7  ;;  %5612 = vmatpush.xpose.msra.mxu1 %v5316_v19  ;;  %v5383_v7 = vld [vmem:[#allocation20 + $0x5e0] sm:$0xff]  ;;  %v5349_v22 = vld [vmem:[#allocation20 + $0x4d0] sm:$0xff] }
 0x67d   : > { %v8199_v51 = vmax.f32 %v5031_v31, 0.0 }
 0x67f   : > { %5553 = vmatpush.xpose.msrb.mxu2 %v5281_v27  ;;  %5593 = vmatpush.xpose.msra.mxu0 %v5313_v21  ;;  %v5381_v27 = vld [vmem:[#allocation20 + $0x5d0] sm:$0xff] }
 0x680   : > { %5573 = vmatpush.xpose.msrb.mxu3 %v5282_v8  ;;  %5613 = vmatpush.xpose.msra.mxu1 %v5314_v44  ;;  %v5347_v44 = vld [vmem:[#allocation20 + $0x4c0] sm:$0xff] }
 0x681   : > { %5485 = vmatmul.f32.vlgmr.msra.gmra.mxu2 %v8199_v51  ;;  %5525 = vmatmul.f32.vlgmr.msrb.gmra.mxu0 %v8199_v51 }
 0x683   : > { %5554 = vmatpush.xpose.msrb.mxu2 %v5279_v33  ;;  %5594 = vmatpush.xpose.msra.mxu0 %v5311_v38  ;;  %v5379_v33 = vld [vmem:[#allocation20 + $0x5c0] sm:$0xff] }
 0x684   : > { %5574 = vmatpush.xpose.msrb.mxu3 %v5280_v41  ;;  %5614 = vmatpush.xpose.msra.mxu1 %v5312_v28 }
 0x687   : > { %5555 = vmatpush.xpose.msrb.mxu2 %v5277_v29  ;;  %5595 = vmatpush.xpose.msra.mxu0 %v5309_v47  ;;  %v5345_v47 = vld [vmem:[#allocation20 + $0x4b0] sm:$0xff] }
 0x688   : > { %5575 = vmatpush.xpose.msrb.mxu3 %v5278_v42  ;;  %5615 = vmatpush.xpose.msra.mxu1 %v5310_v54  ;;  %v5377_v42 = vld [vmem:[#allocation20 + $0x5b0] sm:$0xff] }
 0x689   : > { %v5090_v16 = vpop.f32.mrf.mxu0  ;;  %v5110_v20 = vpop.f32.mrf.mxu1 }
 0x68b   : > { %5556 = vmatpush.xpose.msrb.mxu2 %v5275_v40  ;;  %5596 = vmatpush.xpose.msra.mxu0 %v5307_v43  ;;  %v5354_v43 = vld [vmem:[#allocation20 + $0x4f8] sm:$0xff] }
 0x68c   : > { %5576 = vmatpush.xpose.msrb.mxu3 %v5276_v49  ;;  %5616 = vmatpush.xpose.msra.mxu1 %v5308_v60  ;;  %v5386_v49 = vld [vmem:[#allocation20 + $0x5f8] sm:$0xff]  ;;  %v5343_v60 = vld [vmem:[#allocation20 + $0x4a0] sm:$0xff] }
 0x68e   : > { %v5050_v15 = vpop.f32.mrf.mxu2  ;;  %v5070_v23 = vpop.f32.mrf.mxu3 }
 0x68f   : > { %5557 = vmatpush.xpose.msrb.mxu2 %v5273_v37  ;;  %5597 = vmatpush.xpose.msra.mxu0 %v5305_v32  ;;  %v5051_v25 = vadd.f32 %v5050_v15, %v4870_v5  ;;  %v5375_v37 = vld [vmem:[#allocation20 + $0x5a0] sm:$0xff]  ;;  %v5352_v32 = vld [vmem:[#allocation20 + $0x4e8] sm:$0xff]  ;;  %v5374_v5 = vld [vmem:[#allocation20 + $0x598] sm:$0xff] }
 0x690   : > { %5577 = vmatpush.xpose.msrb.mxu3 %v5274_v52  ;;  %5617 = vmatpush.xpose.msra.mxu1 %v5306_v53  ;;  %v5384_v52 = vld [vmem:[#allocation20 + $0x5e8] sm:$0xff]  ;;  %v5341_v53 = vld [vmem:[#allocation20 + $0x490] sm:$0xff] }
 0x691   : > { %v5071_v56 = vadd.f32 %v5070_v23, %v5051_v25  ;;  %v5340_v15 = vld [vmem:[#allocation20 + $0x488] sm:$0xff]  ;;  %v5361_v25 = vld [vmem:[#allocation20 + $0x530] sm:$0xff] }
 0x692   : > { %v5336_v23 = vld [vmem:[#allocation20 + $0x468] sm:$0xff] }
 0x693   : > { %5558 = vmatpush.xpose.msrb.mxu2 %v5271_v39  ;;  %5598 = vmatpush.xpose.msra.mxu0 %v5303_v14  ;;  %v5091_v19 = vadd.f32 %v5090_v16, %v5071_v56  ;;  %v5373_v39 = vld [vmem:[#allocation20 + $0x590] sm:$0xff]  ;;  %v5350_v14 = vld [vmem:[#allocation20 + $0x4d8] sm:$0xff]  ;;  %v5323_v16 = vld [vmem:[#allocation20 + $0x400] sm:$0xff] }
 0x694   : > { %5578 = vmatpush.xpose.msrb.mxu3 %v5272_v3  ;;  %5618 = vmatpush.xpose.msra.mxu1 %v5304_v34  ;;  %v5382_v3 = vld [vmem:[#allocation20 + $0x5d8] sm:$0xff]  ;;  %v5339_v34 = vld [vmem:[#allocation20 + $0x480] sm:$0xff]  ;;  %v5357_v56 = vld [vmem:[#allocation20 + $0x510] sm:$0xff] }
 0x695   : > { %v5111_v21 = vadd.f32 %v5110_v20, %v5091_v19  ;;  %v5449_v19 = vld [vmem:[#allocation20 + $0x7f0] sm:$0xff]  ;;  %v5332_v20 = vld [vmem:[#allocation20 + $0x448] sm:$0xff] }
 0x697   : > { %5559 = vmatpush.xpose.msrb.mxu2 %v5269_v58  ;;  %5599 = vmatpush.xpose.msra.mxu0 %v5301_v59  ;;  %v5371_v58 = vld [vmem:[#allocation20 + $0x580] sm:$0xff]  ;;  %v5348_v59 = vld [vmem:[#allocation20 + $0x4c8] sm:$0xff] }
 0x698   : > { %5579 = vmatpush.xpose.msrb.mxu3 %v5270_v1  ;;  %5619 = vmatpush.xpose.msra.mxu1 %v5302_v17  ;;  %v5380_v1 = vld [vmem:[#allocation20 + $0x5c8] sm:$0xff]  ;;  %v5337_v17 = vld [vmem:[#allocation20 + $0x470] sm:$0xff] }
 0x69b   : > { %5560 = vmatpush.xpose.msrb.mxu2 %v5267_v2  ;;  %5600 = vmatpush.xpose.msra.mxu0 %v5299_v0  ;;  %v5369_v2 = vld [vmem:[#allocation20 + $0x570] sm:$0xff]  ;;  %v5346_v0 = vld [vmem:[#allocation20 + $0x4b8] sm:$0xff] }
 0x69c   : > { %5580 = vmatpush.xpose.msrb.mxu3 %v5268_v50  ;;  %5620 = vmatpush.xpose.msra.mxu1 %v5300_v48  ;;  %v5378_v50 = vld [vmem:[#allocation20 + $0x5b8] sm:$0xff]  ;;  %v5335_v48 = vld [vmem:[#allocation20 + $0x460] sm:$0xff] }
 0x69f   : > { %5561 = vmatpush.xpose.msrb.mxu2 %v5265_v55  ;;  %5601 = vmatpush.xpose.msra.mxu0 %v5297_v24  ;;  %v5367_v55 = vld [vmem:[#allocation20 + $0x560] sm:$0xff]  ;;  %v5344_v24 = vld [vmem:[#allocation20 + $0x4a8] sm:$0xff] }
 0x6a0   : > { %5581 = vmatpush.xpose.msrb.mxu3 %v5266_v61  ;;  %5621 = vmatpush.xpose.msra.mxu1 %v5298_v26  ;;  %v5376_v61 = vld [vmem:[#allocation20 + $0x5a8] sm:$0xff]  ;;  %v5333_v26 = vld [vmem:[#allocation20 + $0x450] sm:$0xff] }
 0x6a3   : > { %5562 = vmatpush.xpose.msrb.mxu2 %v5263_v4  ;;  %5602 = vmatpush.xpose.msra.mxu0 %v5295_v35  ;;  %v5365_v4 = vld [vmem:[#allocation20 + $0x550] sm:$0xff]  ;;  %v5342_v35 = vld [vmem:[#allocation20 + $0x498] sm:$0xff] }
 0x6a4   : > { %5582 = vmatpush.xpose.msrb.mxu3 %v5264_v12  ;;  %5622 = vmatpush.xpose.msra.mxu1 %v5296_v45  ;;  %v5331_v12 = vld [vmem:[#allocation20 + $0x440] sm:$0xff] }
 0x6a5   : > { %v5363_v45 = vld [vmem:[#allocation20 + $0x540] sm:$0xff] }
 0x6a7   : > { %5563 = vmatpush.xpose.msrb.mxu2 %v5261_v10  ;;  %5603 = vmatpush.xpose.msra.mxu0 %v5293_v6  ;;  %v5372_v10 = vld [vmem:[#allocation20 + $0x588] sm:$0xff]  ;;  %v5329_v6 = vld [vmem:[#allocation20 + $0x430] sm:$0xff] }
 0x6a8   : > { %5583 = vmatpush.xpose.msrb.mxu3 %v5262_v30  ;;  %5623 = vmatpush.xpose.msra.mxu1 %v5294_v57  ;;  %v5338_v30 = vld [vmem:[#allocation20 + $0x478] sm:$0xff] }
 0x6a9   : > { %v5370_v57 = vld [vmem:[#allocation20 + $0x578] sm:$0xff] }
 0x6ab   : > { %5564 = vmatpush.xpose.msrb.mxu2 %v5259_v63  ;;  %5604 = vmatpush.xpose.msra.mxu0 %v5291_v36  ;;  %v5170_v41 = vpop.f32.mrf.mxu0  ;;  %v5190_v29 = vpop.f32.mrf.mxu1  ;;  %v5327_v63 = vld [vmem:[#allocation20 + $0x420] sm:$0xff] }
 0x6ac   : > { %5584 = vmatpush.xpose.msrb.mxu3 %v5260_v11  ;;  %5624 = vmatpush.xpose.msra.mxu1 %v5292_v62  ;;  %v5359_v36 = vld [vmem:[#allocation20 + $0x520] sm:$0xff]  ;;  %v5334_v11 = vld [vmem:[#allocation20 + $0x458] sm:$0xff] }
 0x6ad   : > { %v5366_v62 = vld [vmem:[#allocation20 + $0x558] sm:$0xff] }
 0x6ae   : > { %5565 = vmatmul.f32.vlgmr.msrb.gmra.mxu2 %v8199_v51  ;;  %5605 = vmatmul.f32.vlgmr.msra.gmra.mxu0 %v8199_v51 }
 0x6af   : > { %5629 = vmatpush.xpose.msra.mxu2 %v5353_v13  ;;  %5669 = vmatpush.xpose.msrb.mxu0 %v5385_v9  ;;  %v5368_v13 = vld [vmem:[#allocation20 + $0x568] sm:$0xff]  ;;  %v5325_v9 = vld [vmem:[#allocation20 + $0x410] sm:$0xff] }
 0x6b0   : > { %v5130_v46 = vpop.f32.mrf.mxu2  ;;  %v5150_v8 = vpop.f32.mrf.mxu3 }
 0x6b1   : > { %v5131_v31 = vadd.f32 %v5130_v46, %v5111_v21  ;;  %v5447_v21 = vld [vmem:[#allocation20 + $0x7e0] sm:$0xff]  ;;  %v5330_v46 = vld [vmem:[#allocation20 + $0x438] sm:$0xff] }
 0x6b3   : > { %5630 = vmatpush.xpose.msra.mxu2 %v5351_v18  ;;  %5670 = vmatpush.xpose.msrb.mxu0 %v5383_v7  ;;  %v5151_v38 = vadd.f32 %v5150_v8, %v5131_v31  ;;  %v5355_v18 = vld [vmem:[#allocation20 + $0x500] sm:$0xff]  ;;  %v5417_v7 = vld [vmem:[#allocation20 + $0x6f0] sm:$0xff]  ;;  %v5362_v31 = vld [vmem:[#allocation20 + $0x538] sm:$0xff] }
 0x6b4   : > { %v5413_v8 = vld [vmem:[#allocation20 + $0x6d0] sm:$0xff] }
 0x6b5   : > { %v5171_v28 = vadd.f32 %v5170_v41, %v5151_v38  ;;  %v5360_v38 = vld [vmem:[#allocation20 + $0x528] sm:$0xff]  ;;  %v5411_v41 = vld [vmem:[#allocation20 + $0x6c0] sm:$0xff] }
 0x6b7   : > { %5631 = vmatpush.xpose.msra.mxu2 %v5349_v22  ;;  %5671 = vmatpush.xpose.msrb.mxu0 %v5381_v27  ;;  %v5191_v54 = vadd.f32 %v5190_v29, %v5171_v28  ;;  %v5364_v22 = vld [vmem:[#allocation20 + $0x548] sm:$0xff]  ;;  %v5415_v27 = vld [vmem:[#allocation20 + $0x6e0] sm:$0xff]  ;;  %v5326_v29 = vld [vmem:[#allocation20 + $0x418] sm:$0xff] }
 0x6b8   : > { %v5443_v28 = vld [vmem:[#allocation20 + $0x7c0] sm:$0xff] }
 0x6b9   : > { %v8206_v40 = vmax.f32 %v5191_v54, 0.0  ;;  %v5441_v54 = vld [vmem:[#allocation20 + $0x7b0] sm:$0xff] }
 0x6bb   : > { %5632 = vmatpush.xpose.msra.mxu2 %v5347_v44  ;;  %5672 = vmatpush.xpose.msrb.mxu0 %v5379_v33  ;;  %v5445_v44 = vld [vmem:[#allocation20 + $0x7d0] sm:$0xff]  ;;  %v5328_v33 = vld [vmem:[#allocation20 + $0x428] sm:$0xff] }
 0x6bc   : > { %5505 = vmatmul.f32.vlgmr.msra.gmra.mxu3 %v8206_v40  ;;  %5545 = vmatmul.f32.vlgmr.msrb.gmra.mxu1 %v8206_v40 }
 0x6bd   : > { %5649 = vmatpush.xpose.msra.mxu3 %v5354_v43  ;;  %5689 = vmatpush.xpose.msrb.mxu1 %v5386_v49  ;;  %v5324_v43 = vld [vmem:[#allocation20 + $0x408] sm:$0xff] }
 0x6be   : > { %v5356_v49 = vld [vmem:[#allocation20 + $0x508] sm:$0xff] }
 0x6bf   : > { %5633 = vmatpush.xpose.msra.mxu2 %v5345_v47  ;;  %5673 = vmatpush.xpose.msrb.mxu0 %v5377_v42  ;;  %v5358_v47 = vld [vmem:[#allocation20 + $0x518] sm:$0xff]  ;;  %v5409_v42 = vld [vmem:[#allocation20 + $0x6b0] sm:$0xff] }
 0x6c1   : > { %5650 = vmatpush.xpose.msra.mxu3 %v5352_v32  ;;  %5690 = vmatpush.xpose.msrb.mxu1 %v5384_v52  ;;  %v5439_v32 = vld [vmem:[#allocation20 + $0x7a0] sm:$0xff]  ;;  %v5450_v52 = vld [vmem:[#allocation20 + $0x7f8] sm:$0xff] }
 0x6c3   : > { %5634 = vmatpush.xpose.msra.mxu2 %v5343_v60  ;;  %5674 = vmatpush.xpose.msrb.mxu0 %v5375_v37  ;;  %v5407_v60 = vld [vmem:[#allocation20 + $0x6a0] sm:$0xff]  ;;  %v5418_v37 = vld [vmem:[#allocation20 + $0x6f8] sm:$0xff] }
 0x6c4   : > { %5585 = vmatmul.f32.vlgmr.msrb.gmra.mxu3 %v8206_v40  ;;  %5625 = vmatmul.f32.vlgmr.msra.gmra.mxu1 %v8206_v40 }
 0x6c5   : > { %5651 = vmatpush.xpose.msra.mxu3 %v5350_v14  ;;  %5691 = vmatpush.xpose.msrb.mxu1 %v5382_v3  ;;  %v5437_v14 = vld [vmem:[#allocation20 + $0x790] sm:$0xff]  ;;  %v5448_v3 = vld [vmem:[#allocation20 + $0x7e8] sm:$0xff] }
 0x6c7   : > { %5635 = vmatpush.xpose.msra.mxu2 %v5341_v53  ;;  %5675 = vmatpush.xpose.msrb.mxu0 %v5373_v39  ;;  %v5405_v53 = vld [vmem:[#allocation20 + $0x690] sm:$0xff]  ;;  %v5416_v39 = vld [vmem:[#allocation20 + $0x6e8] sm:$0xff] }
 0x6c9   : > { %5652 = vmatpush.xpose.msra.mxu3 %v5348_v59  ;;  %5692 = vmatpush.xpose.msrb.mxu1 %v5380_v1  ;;  %v5435_v59 = vld [vmem:[#allocation20 + $0x780] sm:$0xff]  ;;  %v5446_v1 = vld [vmem:[#allocation20 + $0x7d8] sm:$0xff] }
 0x6cb   : > { %5636 = vmatpush.xpose.msra.mxu2 %v5339_v34  ;;  %5676 = vmatpush.xpose.msrb.mxu0 %v5371_v58  ;;  %v5403_v34 = vld [vmem:[#allocation20 + $0x680] sm:$0xff]  ;;  %v5414_v58 = vld [vmem:[#allocation20 + $0x6d8] sm:$0xff] }
 0x6cd   : > { %5653 = vmatpush.xpose.msra.mxu3 %v5346_v0  ;;  %5693 = vmatpush.xpose.msrb.mxu1 %v5378_v50  ;;  %v5433_v0 = vld [vmem:[#allocation20 + $0x770] sm:$0xff]  ;;  %v5444_v50 = vld [vmem:[#allocation20 + $0x7c8] sm:$0xff] }
 0x6cf   : > { %5637 = vmatpush.xpose.msra.mxu2 %v5337_v17  ;;  %5677 = vmatpush.xpose.msrb.mxu0 %v5369_v2  ;;  %v5401_v17 = vld [vmem:[#allocation20 + $0x670] sm:$0xff]  ;;  %v5412_v2 = vld [vmem:[#allocation20 + $0x6c8] sm:$0xff] }
 0x6d1   : > { %5654 = vmatpush.xpose.msra.mxu3 %v5344_v24  ;;  %5694 = vmatpush.xpose.msrb.mxu1 %v5376_v61  ;;  %v5431_v24 = vld [vmem:[#allocation20 + $0x760] sm:$0xff]  ;;  %v5442_v61 = vld [vmem:[#allocation20 + $0x7b8] sm:$0xff] }
 0x6d3   : > { %5638 = vmatpush.xpose.msra.mxu2 %v5335_v48  ;;  %5678 = vmatpush.xpose.msrb.mxu0 %v5367_v55  ;;  %v5399_v48 = vld [vmem:[#allocation20 + $0x660] sm:$0xff]  ;;  %v5410_v55 = vld [vmem:[#allocation20 + $0x6b8] sm:$0xff] }
 0x6d5   : > { %5655 = vmatpush.xpose.msra.mxu3 %v5342_v35  ;;  %5695 = vmatpush.xpose.msrb.mxu1 %v5374_v5  ;;  %v5429_v35 = vld [vmem:[#allocation20 + $0x750] sm:$0xff]  ;;  %v5440_v5 = vld [vmem:[#allocation20 + $0x7a8] sm:$0xff] }
 0x6d7   : > { %5639 = vmatpush.xpose.msra.mxu2 %v5333_v26  ;;  %5679 = vmatpush.xpose.msrb.mxu0 %v5365_v4  ;;  %v5397_v26 = vld [vmem:[#allocation20 + $0x650] sm:$0xff]  ;;  %v5408_v4 = vld [vmem:[#allocation20 + $0x6a8] sm:$0xff] }
 0x6d9   : > { %5656 = vmatpush.xpose.msra.mxu3 %v5340_v15  ;;  %5696 = vmatpush.xpose.msrb.mxu1 %v5372_v10  ;;  %v5427_v15 = vld [vmem:[#allocation20 + $0x740] sm:$0xff]  ;;  %v5438_v10 = vld [vmem:[#allocation20 + $0x798] sm:$0xff] }
 0x6db   : > { %5640 = vmatpush.xpose.msra.mxu2 %v5331_v12  ;;  %5680 = vmatpush.xpose.msrb.mxu0 %v5363_v45  ;;  %v5395_v12 = vld [vmem:[#allocation20 + $0x640] sm:$0xff]  ;;  %v5406_v45 = vld [vmem:[#allocation20 + $0x698] sm:$0xff] }
 0x6dd   : > { %5657 = vmatpush.xpose.msra.mxu3 %v5338_v30  ;;  %5697 = vmatpush.xpose.msrb.mxu1 %v5370_v57  ;;  %v5425_v30 = vld [vmem:[#allocation20 + $0x730] sm:$0xff]  ;;  %v5436_v57 = vld [vmem:[#allocation20 + $0x788] sm:$0xff] }
 0x6df   : > { %5641 = vmatpush.xpose.msra.mxu2 %v5329_v6  ;;  %5681 = vmatpush.xpose.msrb.mxu0 %v5361_v25  ;;  %v5393_v6 = vld [vmem:[#allocation20 + $0x630] sm:$0xff]  ;;  %v5404_v25 = vld [vmem:[#allocation20 + $0x688] sm:$0xff] }
 0x6e1   : > { %5658 = vmatpush.xpose.msra.mxu3 %v5336_v23  ;;  %5698 = vmatpush.xpose.msrb.mxu1 %v5368_v13  ;;  %v5423_v23 = vld [vmem:[#allocation20 + $0x720] sm:$0xff]  ;;  %v5434_v13 = vld [vmem:[#allocation20 + $0x778] sm:$0xff] }
 0x6e3   : > { %5642 = vmatpush.xpose.msra.mxu2 %v5327_v63  ;;  %5682 = vmatpush.xpose.msrb.mxu0 %v5359_v36  ;;  %v5391_v63 = vld [vmem:[#allocation20 + $0x620] sm:$0xff]  ;;  %v5402_v36 = vld [vmem:[#allocation20 + $0x678] sm:$0xff] }
 0x6e5   : > { %5659 = vmatpush.xpose.msra.mxu3 %v5334_v11  ;;  %5699 = vmatpush.xpose.msrb.mxu1 %v5366_v62  ;;  %v5421_v11 = vld [vmem:[#allocation20 + $0x710] sm:$0xff]  ;;  %v5432_v62 = vld [vmem:[#allocation20 + $0x768] sm:$0xff] }
 0x6e7   : > { %5643 = vmatpush.xpose.msra.mxu2 %v5325_v9  ;;  %5683 = vmatpush.xpose.msrb.mxu0 %v5357_v56  ;;  %v5389_v9 = vld [vmem:[#allocation20 + $0x610] sm:$0xff]  ;;  %v5400_v56 = vld [vmem:[#allocation20 + $0x668] sm:$0xff] }
 0x6e9   : > { %5660 = vmatpush.xpose.msra.mxu3 %v5332_v20  ;;  %5700 = vmatpush.xpose.msrb.mxu1 %v5364_v22  ;;  %v5853_v20 = vld [vmem:[#allocation23 + $0x1c0] sm:$0xff]  ;;  %v5855_v22 = vld [vmem:[#allocation23 + $0x1d0] sm:$0xff] }
 0x6eb   : > { %5644 = vmatpush.xpose.msra.mxu2 %v5323_v16  ;;  %5684 = vmatpush.xpose.msrb.mxu0 %v5355_v18  ;;  %v5387_v16 = vld [vmem:[#allocation20 + $0x600] sm:$0xff]  ;;  %v5398_v18 = vld [vmem:[#allocation20 + $0x658] sm:$0xff] }
 0x6ed   : > { %5661 = vmatpush.xpose.msra.mxu3 %v5330_v46  ;;  %5701 = vmatpush.xpose.msrb.mxu1 %v5362_v31  ;;  %v5845_v46 = vld [vmem:[#allocation23 + $0x180] sm:$0xff]  ;;  %v5847_v31 = vld [vmem:[#allocation23 + $0x190] sm:$0xff] }
 0x6ee   : > { %5645 = vmatmul.f32.vlgmr.msra.gmra.mxu2 %v8199_v51  ;;  %5685 = vmatmul.f32.vlgmr.msrb.gmra.mxu0 %v8199_v51 }
 0x6ef   : > { %5709 = vmatpush.xpose.msrb.mxu2 %v5417_v7  ;;  %5749 = vmatpush.xpose.msra.mxu0 %v5449_v19  ;;  %v5419_v7 = vld [vmem:[#allocation20 + $0x700] sm:$0xff]  ;;  %v5430_v19 = vld [vmem:[#allocation20 + $0x758] sm:$0xff] }
 0x6f1   : > { %5662 = vmatpush.xpose.msra.mxu3 %v5328_v33  ;;  %5702 = vmatpush.xpose.msrb.mxu1 %v5360_v38  ;;  %v5837_v33 = vld [vmem:[#allocation23 + $0x140] sm:$0xff]  ;;  %v5839_v38 = vld [vmem:[#allocation23 + $0x150] sm:$0xff] }
 0x6f3   : > { %5710 = vmatpush.xpose.msrb.mxu2 %v5415_v27  ;;  %5750 = vmatpush.xpose.msra.mxu0 %v5447_v21  ;;  %v5396_v27 = vld [vmem:[#allocation20 + $0x648] sm:$0xff] }
 0x6f4   : > { %v5428_v21 = vld [vmem:[#allocation20 + $0x748] sm:$0xff] }
 0x6f5   : > { %5663 = vmatpush.xpose.msra.mxu3 %v5326_v29  ;;  %5703 = vmatpush.xpose.msrb.mxu1 %v5358_v47  ;;  %v5829_v29 = vld [vmem:[#allocation23 + $0x100] sm:$0xff]  ;;  %v5831_v47 = vld [vmem:[#allocation23 + $0x110] sm:$0xff] }
 0x6f7   : > { %5711 = vmatpush.xpose.msrb.mxu2 %v5413_v8  ;;  %5751 = vmatpush.xpose.msra.mxu0 %v5445_v44  ;;  %v5394_v8 = vld [vmem:[#allocation20 + $0x638] sm:$0xff] }
 0x6f8   : > { %v5426_v44 = vld [vmem:[#allocation20 + $0x738] sm:$0xff] }
 0x6f9   : > { %5664 = vmatpush.xpose.msra.mxu3 %v5324_v43  ;;  %5704 = vmatpush.xpose.msrb.mxu1 %v5356_v49  ;;  %v5823_v43 = vld [vmem:[#allocation23 + $0xd0] sm:$0xff]  ;;  %v5388_v49 = vld [vmem:[#allocation20 + $0x608] sm:$0xff] }
 0x6fb   : > { %5712 = vmatpush.xpose.msrb.mxu2 %v5411_v41  ;;  %5752 = vmatpush.xpose.msra.mxu0 %v5443_v28  ;;  %v5392_v41 = vld [vmem:[#allocation20 + $0x628] sm:$0xff] }
 0x6fc   : > { %5665 = vmatmul.f32.vlgmr.msra.gmra.mxu3 %v8206_v40  ;;  %5705 = vmatmul.f32.vlgmr.msrb.gmra.mxu1 %v8206_v40  ;;  %v5424_v28 = vld [vmem:[#allocation20 + $0x728] sm:$0xff] }
 0x6fd   : > { %5729 = vmatpush.xpose.msrb.mxu3 %v5418_v37  ;;  %5769 = vmatpush.xpose.msra.mxu1 %v5450_v52  ;;  %v5854_v37 = vld [vmem:[#allocation23 + $0x1c8] sm:$0xff]  ;;  %v5813_v52 = vld [vmem:[#allocation23 + $0x80] sm:$0xff] }
 0x6ff   : > { %5713 = vmatpush.xpose.msrb.mxu2 %v5409_v42  ;;  %5753 = vmatpush.xpose.msra.mxu0 %v5441_v54  ;;  %v5390_v42 = vld [vmem:[#allocation20 + $0x618] sm:$0xff]  ;;  %v5821_v54 = vld [vmem:[#allocation23 + $0xc0] sm:$0xff] }
 0x701   : > { %5730 = vmatpush.xpose.msrb.mxu3 %v5416_v39  ;;  %5770 = vmatpush.xpose.msra.mxu1 %v5448_v3  ;;  %v8218_v39 = vld [vmem:[#allocation22] sm:$0xff] }
 0x702   : > { %v5453_v3 = vperm.slane %v8218_v39, 0 }
 0x703   : > { %5714 = vmatpush.xpose.msrb.mxu2 %v5407_v60  ;;  %5754 = vmatpush.xpose.msra.mxu0 %v5439_v32  ;;  %v5420_v60 = vld [vmem:[#allocation20 + $0x708] sm:$0xff]  ;;  %v5856_v32 = vld [vmem:[#allocation23 + $0x1d8] sm:$0xff] }
 0x705   : > { %5731 = vmatpush.xpose.msrb.mxu3 %v5414_v58  ;;  %5771 = vmatpush.xpose.msra.mxu1 %v5446_v1  ;;  %v5805_v58 = vld [vmem:[#allocation23 + $0x40] sm:$0xff]  ;;  %v5807_v1 = vld [vmem:[#allocation23 + $0x50] sm:$0xff] }
 0x707   : > { %5715 = vmatpush.xpose.msrb.mxu2 %v5405_v53  ;;  %5755 = vmatpush.xpose.msra.mxu0 %v5437_v14  ;;  %v5815_v53 = vld [vmem:[#allocation23 + $0x90] sm:$0xff]  ;;  %v5846_v14 = vld [vmem:[#allocation23 + $0x188] sm:$0xff] }
 0x709   : > { %5732 = vmatpush.xpose.msrb.mxu3 %v5412_v2  ;;  %5772 = vmatpush.xpose.msra.mxu1 %v5444_v50  ;;  %v5797_v50 = vld [vmem:[#allocation23] sm:$0xff] }
 0x70b   : > { %5716 = vmatpush.xpose.msrb.mxu2 %v5403_v34  ;;  %5756 = vmatpush.xpose.msra.mxu0 %v5435_v59  ;;  %v5848_v34 = vld [vmem:[#allocation23 + $0x198] sm:$0xff]  ;;  %v5486_v59 = vpop.f32.mrf.mxu2 }
 0x70c   : > { %v5487_v2 = vadd.f32 %v5486_v59, %v5453_v3  ;;  %v5457_v3 = vperm.slane %v8218_v39, 4 }
 0x70d   : > { %5733 = vmatpush.xpose.msrb.mxu3 %v5410_v55  ;;  %5773 = vmatpush.xpose.msra.mxu1 %v5442_v61  ;;  %v5799_v55 = vld [vmem:[#allocation23 + $0x10] sm:$0xff]  ;;  %v5830_v61 = vld [vmem:[#allocation23 + $0x108] sm:$0xff] }
 0x70f   : > { %5717 = vmatpush.xpose.msrb.mxu2 %v5401_v17  ;;  %5757 = vmatpush.xpose.msra.mxu0 %v5433_v0  ;;  %v5838_v17 = vld [vmem:[#allocation23 + $0x148] sm:$0xff]  ;;  %v5840_v0 = vld [vmem:[#allocation23 + $0x158] sm:$0xff] }
 0x711   : > { %5734 = vmatpush.xpose.msrb.mxu3 %v5408_v4  ;;  %5774 = vmatpush.xpose.msra.mxu1 %v5440_v5  ;;  %v5526_v5 = vpop.f32.mrf.mxu0 }
 0x713   : > { %5718 = vmatpush.xpose.msrb.mxu2 %v5399_v48  ;;  %5758 = vmatpush.xpose.msra.mxu0 %v5431_v24 }
 0x715   : > { %5735 = vmatpush.xpose.msrb.mxu3 %v5406_v45  ;;  %5775 = vmatpush.xpose.msra.mxu1 %v5438_v10  ;;  %v5822_v45 = vld [vmem:[#allocation23 + $0xc8] sm:$0xff]  ;;  %v5824_v10 = vld [vmem:[#allocation23 + $0xd8] sm:$0xff] }
 0x717   : > { %5719 = vmatpush.xpose.msrb.mxu2 %v5397_v26  ;;  %5759 = vmatpush.xpose.msra.mxu0 %v5429_v35  ;;  %v5455_v26 = vperm.slane %v8218_v39, 2 }
 0x719   : > { %5736 = vmatpush.xpose.msrb.mxu3 %v5404_v25  ;;  %5776 = vmatpush.xpose.msra.mxu1 %v5436_v57  ;;  %v5849_v57 = vld [vmem:[#allocation23 + $0x1a0] sm:$0xff] }
 0x71b   : > { %5720 = vmatpush.xpose.msrb.mxu2 %v5395_v12  ;;  %5760 = vmatpush.xpose.msra.mxu0 %v5427_v15 }
 0x71d   : > { %5737 = vmatpush.xpose.msrb.mxu3 %v5402_v36  ;;  %5777 = vmatpush.xpose.msra.mxu1 %v5434_v13  ;;  %v5454_v13 = vperm.slane %v8218_v39, 1 }
 0x71f   : > { %5721 = vmatpush.xpose.msrb.mxu2 %v5393_v6  ;;  %5761 = vmatpush.xpose.msra.mxu0 %v5425_v30  ;;  %v5857_v6 = vld [vmem:[#allocation23 + $0x1e0] sm:$0xff] }
 0x721   : > { %5738 = vmatpush.xpose.msrb.mxu3 %v5400_v56  ;;  %5778 = vmatpush.xpose.msra.mxu1 %v5432_v62  ;;  %v5841_v62 = vld [vmem:[#allocation23 + $0x160] sm:$0xff] }
 0x723   : > { %5722 = vmatpush.xpose.msrb.mxu2 %v5391_v63  ;;  %5762 = vmatpush.xpose.msra.mxu0 %v5423_v23  ;;  %v5814_v63 = vld [vmem:[#allocation23 + $0x88] sm:$0xff]  ;;  %v5816_v23 = vld [vmem:[#allocation23 + $0x98] sm:$0xff] }
 0x725   : > { %5739 = vmatpush.xpose.msrb.mxu3 %v5398_v18  ;;  %5779 = vmatpush.xpose.msra.mxu1 %v5430_v19  ;;  %v5527_v18 = vadd.f32 %v5526_v5, %v5454_v13  ;;  %v5812_v5 = vld [vmem:[#allocation23 + $0x78] sm:$0xff] }
 0x727   : > { %5723 = vmatpush.xpose.msrb.mxu2 %v5389_v9  ;;  %5763 = vmatpush.xpose.msra.mxu0 %v5421_v11  ;;  %v5456_v9 = vperm.slane %v8218_v39, 3  ;;  %v5806_v11 = vld [vmem:[#allocation23 + $0x48] sm:$0xff] }
 0x729   : > { %5740 = vmatpush.xpose.msrb.mxu3 %v5396_v27  ;;  %5780 = vmatpush.xpose.msra.mxu1 %v5428_v21  ;;  %v5798_v27 = vld [vmem:[#allocation23 + $0x8] sm:$0xff] }
 0x72b   : > { %5724 = vmatpush.xpose.msrb.mxu2 %v5387_v16  ;;  %5764 = vmatpush.xpose.msra.mxu0 %v5419_v7  ;;  %v5606_v56 = vpop.f32.mrf.mxu0  ;;  %v5808_v16 = vld [vmem:[#allocation23 + $0x58] sm:$0xff] }
 0x72c   : > { %v5607_v19 = vadd.f32 %v5606_v56, %v5456_v9 }
 0x72d   : > { %5741 = vmatpush.xpose.msrb.mxu3 %v5394_v8  ;;  %5781 = vmatpush.xpose.msra.mxu1 %v5426_v44  ;;  %v5825_v8 = vld [vmem:[#allocation23 + $0xe0] sm:$0xff] }
 0x72e   : > { %5725 = vmatmul.f32.vlgmr.msrb.gmra.mxu2 %v8199_v51  ;;  %5765 = vmatmul.f32.vlgmr.msra.gmra.mxu0 %v8199_v51  ;;  %v5422_v51 = vld [vmem:[#allocation20 + $0x718] sm:$0xff] }
 0x72f   : > { %5870 = vmatpush.xpose.msra.mxu2 %v5853_v20  ;;  %5910 = vmatpush.xpose.msrb.mxu0 %v5855_v22  ;;  %v5833_v20 = vld [vmem:[#allocation23 + $0x120] sm:$0xff] }
 0x731   : > { %5742 = vmatpush.xpose.msrb.mxu3 %v5392_v41  ;;  %5782 = vmatpush.xpose.msra.mxu1 %v5424_v28  ;;  %v5566_v35 = vpop.f32.mrf.mxu2  ;;  %v5842_v41 = vld [vmem:[#allocation23 + $0x168] sm:$0xff]  ;;  %v5817_v28 = vld [vmem:[#allocation23 + $0xa0] sm:$0xff] }
 0x732   : > { %v5567_v15 = vadd.f32 %v5566_v35, %v5455_v26  ;;  %v5828_v26 = vld [vmem:[#allocation23 + $0xf8] sm:$0xff]  ;;  %v5827_v35 = vld [vmem:[#allocation23 + $0xf0] sm:$0xff] }
 0x733   : > { %5871 = vmatpush.xpose.msra.mxu2 %v5845_v46  ;;  %5911 = vmatpush.xpose.msrb.mxu0 %v5847_v31  ;;  %v5800_v46 = vld [vmem:[#allocation23 + $0x18] sm:$0xff]  ;;  %v5858_v31 = vld [vmem:[#allocation23 + $0x1e8] sm:$0xff] }
 0x735   : > { %5743 = vmatpush.xpose.msrb.mxu3 %v5390_v42  ;;  %5783 = vmatpush.xpose.msra.mxu1 %v5422_v51  ;;  %v5826_v42 = vld [vmem:[#allocation23 + $0xe8] sm:$0xff]  ;;  %v5801_v51 = vld [vmem:[#allocation23 + $0x20] sm:$0xff] }
 0x737   : > { %5872 = vmatpush.xpose.msra.mxu2 %v5837_v33  ;;  %5912 = vmatpush.xpose.msrb.mxu0 %v5839_v38  ;;  %v5850_v38 = vld [vmem:[#allocation23 + $0x1a8] sm:$0xff] }
 0x739   : > { %5744 = vmatpush.xpose.msrb.mxu3 %v5388_v49  ;;  %5784 = vmatpush.xpose.msra.mxu1 %v5420_v60  ;;  %v5546_v12 = vpop.f32.mrf.mxu1  ;;  %v5852_v49 = vld [vmem:[#allocation23 + $0x1b8] sm:$0xff]  ;;  %v5810_v60 = vld [vmem:[#allocation23 + $0x68] sm:$0xff] }
 0x73a   : > { %v5547_v22 = vadd.f32 %v5546_v12, %v5527_v18  ;;  %v5819_v12 = vld [vmem:[#allocation23 + $0xb0] sm:$0xff] }
 0x73b   : > { %5873 = vmatpush.xpose.msra.mxu2 %v5829_v29  ;;  %5913 = vmatpush.xpose.msrb.mxu0 %v5831_v47  ;;  %v5809_v29 = vld [vmem:[#allocation23 + $0x60] sm:$0xff]  ;;  %v5834_v47 = vld [vmem:[#allocation23 + $0x128] sm:$0xff] }
 0x73c   : > { %5745 = vmatmul.f32.vlgmr.msrb.gmra.mxu3 %v8206_v40  ;;  %5785 = vmatmul.f32.vlgmr.msra.gmra.mxu1 %v8206_v40  ;;  %v5832_v40 = vld [vmem:[#allocation23 + $0x118] sm:$0xff]  ;;  %v5790_v44 = vmax.f32 %v5547_v22, 0.0 }
 0x73d   : > { %5890 = vmatpush.xpose.msra.mxu3 %v5854_v37  ;;  %5930 = vmatpush.xpose.msrb.mxu1 %v5856_v32  ;;  %v5802_v37 = vld [vmem:[#allocation23 + $0x28] sm:$0xff]  ;;  %v5458_v32 = vperm.slane %v8218_v39, 5 }
 0x73f   : > { %5874 = vmatpush.xpose.msra.mxu2 %v5821_v54  ;;  %5914 = vmatpush.xpose.msrb.mxu0 %v5823_v43  ;;  %v5506_v48 = vpop.f32.mrf.mxu3  ;;  %v5860_v54 = vld [vmem:[#allocation23 + $0x1f8] sm:$0xff]  ;;  %v5818_v43 = vld [vmem:[#allocation23 + $0xa8] sm:$0xff] }
 0x740   : > { %v5507_v24 = vadd.f32 %v5506_v48, %v5487_v2  ;;  %v5844_v48 = vld [vmem:[#allocation23 + $0x178] sm:$0xff] }
 0x741   : > { %5891 = vmatpush.xpose.msra.mxu3 %v5846_v14  ;;  %5931 = vmatpush.xpose.msrb.mxu1 %v5848_v34  ;;  %v5626_v7 = vpop.f32.mrf.mxu1 }
 0x742   : > { %v5789_v4 = vmax.f32 %v5507_v24, 0.0  ;;  %v5627_v21 = vadd.f32 %v5626_v7, %v5607_v19  ;;  %v5836_v24 = vld [vmem:[#allocation23 + $0x138] sm:$0xff] }
 0x743   : > { %5875 = vmatpush.xpose.msra.mxu2 %v5813_v52  ;;  %5915 = vmatpush.xpose.msrb.mxu0 %v5815_v53 }
 0x744   : > { %v5792_v33 = vmax.f32 %v5627_v21, 0.0 }
 0x745   : > { %5892 = vmatpush.xpose.msra.mxu3 %v5838_v17  ;;  %5932 = vmatpush.xpose.msrb.mxu1 %v5840_v0 }
 0x747   : > { %5876 = vmatpush.xpose.msra.mxu2 %v5805_v58  ;;  %5916 = vmatpush.xpose.msrb.mxu0 %v5807_v1  ;;  %v5586_v25 = vpop.f32.mrf.mxu3 }
 0x748   : > { %v5587_v30 = vadd.f32 %v5586_v25, %v5567_v15  ;;  %v5811_v15 = vld [vmem:[#allocation23 + $0x70] sm:$0xff] }
 0x749   : > { %5893 = vmatpush.xpose.msra.mxu3 %v5830_v61  ;;  %5933 = vmatpush.xpose.msrb.mxu1 %v5832_v40  ;;  %v5843_v61 = vld [vmem:[#allocation23 + $0x170] sm:$0xff]  ;;  %v5820_v40 = vld [vmem:[#allocation23 + $0xb8] sm:$0xff] }
 0x74a   : > { %v5791_v36 = vmax.f32 %v5587_v30, 0.0 }
 0x74b   : > { %5877 = vmatpush.xpose.msra.mxu2 %v5797_v50  ;;  %5917 = vmatpush.xpose.msrb.mxu0 %v5799_v55  ;;  %v5859_v50 = vld [vmem:[#allocation23 + $0x1f0] sm:$0xff] }
 0x74c   : > { %v5851_v55 = vld [vmem:[#allocation23 + $0x1b0] sm:$0xff] }
 0x74d   : > { %5894 = vmatpush.xpose.msra.mxu3 %v5822_v45  ;;  %5934 = vmatpush.xpose.msrb.mxu1 %v5824_v10  ;;  %v5804_v45 = vld [vmem:[#allocation23 + $0x38] sm:$0xff]  ;;  %v5803_v10 = vld [vmem:[#allocation23 + $0x30] sm:$0xff] }
 0x74e   : > { %5878 = vmatmul.f32.vlgmr.msra.gmra.mxu2 %v5789_v4  ;;  %5918 = vmatmul.f32.vlgmr.msrb.gmra.mxu0 %v5791_v36  ;;  %v5835_v4 = vld [vmem:[#allocation23 + $0x130] sm:$0xff] }
 0x74f   : > { %5950 = vmatpush.xpose.msrb.mxu2 %v5857_v6  ;;  %5990 = vmatpush.xpose.msra.mxu0 %v5859_v50  ;;  %v5460_v6 = vperm.slane %v8218_v39, 7 }
 0x751   : > { %5895 = vmatpush.xpose.msra.mxu3 %v5814_v63  ;;  %5935 = vmatpush.xpose.msrb.mxu1 %v5816_v23 }
 0x753   : > { %5951 = vmatpush.xpose.msrb.mxu2 %v5849_v57  ;;  %5991 = vmatpush.xpose.msra.mxu0 %v5851_v55  ;;  %v5459_v57 = vperm.slane %v8218_v39, 6 }
 0x755   : > { %5896 = vmatpush.xpose.msra.mxu3 %v5806_v11  ;;  %5936 = vmatpush.xpose.msrb.mxu1 %v5808_v16  ;;  %v5861_v16 = vld [vmem:[#allocation25] sm:$0x1] }
 0x757   : > { %5952 = vmatpush.xpose.msrb.mxu2 %v5841_v62  ;;  %5992 = vmatpush.xpose.msra.mxu0 %v5843_v61 }
 0x759   : > { %5897 = vmatpush.xpose.msra.mxu3 %v5798_v27  ;;  %5937 = vmatpush.xpose.msrb.mxu1 %v5800_v46 }
 0x75b   : > { %5953 = vmatpush.xpose.msrb.mxu2 %v5833_v20  ;;  %5993 = vmatpush.xpose.msra.mxu0 %v5835_v4 }
 0x75c   : > { %5898 = vmatmul.f32.vlgmr.msra.gmra.mxu3 %v5790_v44  ;;  %5938 = vmatmul.f32.vlgmr.msrb.gmra.mxu1 %v5792_v33 }
 0x75d   : > { %5970 = vmatpush.xpose.msrb.mxu3 %v5858_v31  ;;  %6010 = vmatpush.xpose.msra.mxu1 %v5860_v54 }
 0x75f   : > { %5954 = vmatpush.xpose.msrb.mxu2 %v5825_v8  ;;  %5994 = vmatpush.xpose.msra.mxu0 %v5827_v35 }
 0x761   : > { %5971 = vmatpush.xpose.msrb.mxu3 %v5850_v38  ;;  %6011 = vmatpush.xpose.msra.mxu1 %v5852_v49 }
 0x763   : > { %5955 = vmatpush.xpose.msrb.mxu2 %v5817_v28  ;;  %5995 = vmatpush.xpose.msra.mxu0 %v5819_v12 }
 0x765   : > { %5972 = vmatpush.xpose.msrb.mxu3 %v5842_v41  ;;  %6012 = vmatpush.xpose.msra.mxu1 %v5844_v48 }
 0x767   : > { %5956 = vmatpush.xpose.msrb.mxu2 %v5809_v29  ;;  %5996 = vmatpush.xpose.msra.mxu0 %v5811_v15 }
 0x769   : > { %5973 = vmatpush.xpose.msrb.mxu3 %v5834_v47  ;;  %6013 = vmatpush.xpose.msra.mxu1 %v5836_v24 }
 0x76b   : > { %5957 = vmatpush.xpose.msrb.mxu2 %v5801_v51  ;;  %v5686_v52 = vpop.f32.mrf.mxu0  ;;  %5997 = vmatpush.xpose.msra.mxu0 %v5803_v10 }
 0x76c   : > { %v5687_v53 = vadd.f32 %v5686_v52, %v5458_v32 }
 0x76d   : > { %5974 = vmatpush.xpose.msrb.mxu3 %v5826_v42  ;;  %6014 = vmatpush.xpose.msra.mxu1 %v5828_v26 }
 0x771   : > { %5975 = vmatpush.xpose.msrb.mxu3 %v5818_v43  ;;  %v5646_v58 = vpop.f32.mrf.mxu2  ;;  %6015 = vmatpush.xpose.msra.mxu1 %v5820_v40 }
 0x772   : > { %v5647_v1 = vadd.f32 %v5646_v58, %v5457_v3 }
 0x775   : > { %5976 = vmatpush.xpose.msrb.mxu3 %v5810_v60  ;;  %6016 = vmatpush.xpose.msra.mxu1 %v5812_v5 }
 0x779   : > { %5977 = vmatpush.xpose.msrb.mxu3 %v5802_v37  ;;  %v5706_v14 = vpop.f32.mrf.mxu1  ;;  %6017 = vmatpush.xpose.msra.mxu1 %v5804_v45 }
 0x77a   : > { %v5707_v34 = vadd.f32 %v5706_v14, %v5687_v53 }
 0x77c   : > { %v5794_v59 = vmax.f32 %v5707_v34, 0.0 }
 0x77e   : > { %5978 = vmatmul.f32.vlgmr.msrb.gmra.mxu3 %v5794_v59 }
 0x77f   : > { %v5666_v17 = vpop.f32.mrf.mxu3 }
 0x780   : > { %v5667_v2 = vadd.f32 %v5666_v17, %v5647_v1 }
 0x782   : > { %v5793_v0 = vmax.f32 %v5667_v2, 0.0 }
 0x784   : > { %5958 = vmatmul.f32.vlgmr.msrb.gmra.mxu2 %v5793_v0 }
 0x7ab   : > { %v5766_v25 = vpop.f32.mrf.mxu0 }
 0x7ac   : > { %v5767_v30 = vadd.f32 %v5766_v25, %v5460_v6 }
 0x7b1   : > { %v5726_v36 = vpop.f32.mrf.mxu2 }
 0x7b2   : > { %v5727_v9 = vadd.f32 %v5726_v36, %v5459_v57 }
 0x7b9   : > { %v5786_v63 = vpop.f32.mrf.mxu1 }
 0x7ba   : > { %v5787_v23 = vadd.f32 %v5786_v63, %v5767_v30 }
 0x7bc   : > { %v5796_v13 = vmax.f32 %v5787_v23, 0.0 }
 0x7be   : > { %6018 = vmatmul.f32.vlgmr.msra.gmra.mxu1 %v5796_v13 }
 0x7bf   : > { %v5746_v56 = vpop.f32.mrf.mxu3 }
 0x7c0   : > { %v5747_v11 = vadd.f32 %v5746_v56, %v5727_v9 }
 0x7c2   : > { %v5795_v62 = vmax.f32 %v5747_v11, 0.0 }
 0x7c4   : > { %5998 = vmatmul.f32.vlgmr.msra.gmra.mxu0 %v5795_v62 }
 0x7cb   : > { %v5919_v22 = vpop.f32.mrf.mxu0 }
 0x7d1   : > { %v5879_v18 = vpop.f32.mrf.mxu2 }
 0x7d2   : > { %v5880_v19 = vadd.f32 %v5879_v18, %v5861_v16 }
 0x7d9   : > { %v5939_v39 = vpop.f32.mrf.mxu1 }
 0x7df   : > { %v5899_v7 = vpop.f32.mrf.mxu3 }
 0x7e0   : > { %v5900_v20 = vadd.f32 %v5899_v7, %v5880_v19 }
 0x7e2   : > { %v5920_v27 = vadd.f32 %v5919_v22, %v5900_v20 }
 0x7e4   : > { %v5940_v46 = vadd.f32 %v5939_v39, %v5920_v27 }
 0x801   : > { %v5979_v8 = vpop.f32.mrf.mxu3 }
 0x807   : > { %v5959_v21 = vpop.f32.mrf.mxu2 }
 0x808   : > { %v5960_v31 = vadd.f32 %v5959_v21, %v5940_v46 }
 0x80a   : > { %v5980_v44 = vadd.f32 %v5979_v8, %v5960_v31 }
 0x83b   : > { %v6019_v41 = vpop.f32.mrf.mxu1 }
 0x841   : > { %v5999_v33 = vpop.f32.mrf.mxu0 }
 0x842   : > { %v6000_v38 = vadd.f32 %v5999_v33, %v5980_v44 }
 0x844   : > { %v6020_v28 = vadd.f32 %v6019_v41, %v6000_v38 }
 0x846   : > { %6023 = vst.msk [vmem:[%s816_s30] sm:$0x1] %vm6022_vm14, %v6020_v28 }
 0x847   : > { %7032 = shalt.err (!%p7029_p8)
}
 0x848   : > { %6411 = dma.vmem_to_hbm [thread:$0]  (%p7253_p5), %s6044_s28, 16, %s6046_s2, %s6030_s25  }
 0x849 PF: > { %s8341_s3 = sld [smem:[#allocation39_spill]] }
 0x84a   : > { %s8342_s23 = sld [smem:[#allocation36_spill]] }
 0x84f   : > { %p6493_p9 = scmp.ge.s32.totalorder %s8341_s3, 2 }
 0x850   : > { %s6065_s20 = sand.u32 1, %s8342_s23  }
 0x851   : > { %p6460_p10 = pnand %p6493_p9, %p7257_p6  ;;  %s6066_s7 = scalar_lea.sflag [#allocation4], %s6065_s20 }
 0x853   : > { %p6461_p11 = pneg %p6460_p10 }
 0x855   : > { %7082 = dma.done.wait (%p6461_p11), %s6066_s7, 16  }
 0x856   : > { %7084 = vsyncadd (%p6461_p11), %s6066_s7, 4294967280  ;;  %s8344_s30 = sld [smem:[#allocation40_spill]] }
 0x857   : > { %s8345_s27 = sld [smem:[#allocation37_spill]] }
 0x858   : > { %s8346_s28 = sld [smem:[#allocation38_spill]] }
 0x859   : > { %s8347_s29 = sld [smem:[#allocation41_spill]] }
 0x85c   : > { %p37_p12 = scmp.ge.s32.totalorder %s8344_s30, 4  }
 0x85e   :  { %39 = sbr.rel (!%p37_p12) target bundleno = 20 (0x14), region = 202 }
 0x863   :  { %6071 = vsyncpa [#allocation3], 1 }
 0x864   :  { %6073 = vsyncpa [#allocation3 + $0x1], 1 }
 0x865   :  { %6074 = vsyncpa [#allocation6], 1 }
 0x866   :  { %6075 = vsyncpa [#allocation9], 1 }
 0x867   :  { %6076 = vsyncpa [#allocation12], 1 }
 0x868   :  { %6077 = vsyncpa [#allocation15], 1 }
 0x869   :  { %6078 = vsyncpa [#allocation18], 1 }
 0x86a   :  { %6079 = vsyncpa [#allocation21], 1 }
 0x86b   :  { %6080 = vsyncpa [#allocation24], 1 }
 0x86c   :  { %6081 = vsyncpa [#allocation4], 1 }
 0x86d   :  { %6083 = vsyncpa [#allocation4 + $0x1], 1 }

</bundles_post_ra>
